<compile_context>
chip_gen: v7x
topology: tpu7x:2x2x1
jax: 0.10.0
libtpu: 0.0.40
codegen_flags: <defaults>
</compile_context>

<pallas_src>
import jax
import jax.numpy as jnp
from jax.experimental import pallas as pl
from jax.experimental.pallas import tpu as pltpu


_WQ = 40    # flattened row stride (multiple of 8, >= widest padded row = 35)
_CH = 120   # output rows per inner chunk (multiple of 8 AND of _WQ)

_CONV_SPECS = [  # (Cin, Cout, kernel, padding), stride = 1 for all layers
    (1, 8, 2, 0),
    (8, 16, 4, 2),
    (16, 32, 2, 1),
    (32, 32, 4, 1),
    (32, 64, 3, 0),
]
_IN_HW = 32

assert _WQ % 8 == 0 and _CH % _WQ == 0


def _derive_geometry():
    """Static geometry of the flattened (row stride _WQ) activation canvases."""
    layers = []
    h = _IN_HW
    for (cin, cout, k, pad) in _CONV_SPECS:
        ho = h + 2 * pad - k + 1
        # lead offset so the producer's store offset (base + pad*(_WQ+1)) is 8-aligned
        base = (-(pad * (_WQ + 1))) % 8
        layers.append(dict(K=k, Cin=cin, Cout=cout, Hi=h, Ho=ho, Wo=ho,
                           pad=pad, base=base))
        h = ho
    canvas_rows, dst_off = [], [0]     # canvas i is the *input* canvas of layer i
    for i, L in enumerate(layers):
        read_end = L["base"] + (L["K"] - 1) * (_WQ + 1) + L["Ho"] * _WQ
        if i == 0:
            store_end = L["Hi"] * _WQ            # wrapper stages the whole input
        else:
            off = L["base"] + L["pad"] * (_WQ + 1)
            dst_off.append(off)
            store_end = off + layers[i - 1]["Ho"] * _WQ
        canvas_rows.append(-(-max(read_end, store_end) // 8) * 8)
    return layers, canvas_rows, dst_off


_LAYERS, _CANVAS_ROWS, _DST_OFF = _derive_geometry()
assert _WQ >= max(L["Hi"] + 2 * L["pad"] for L in _LAYERS)
assert all(L["Ho"] * _WQ >= _CH for L in _LAYERS)
_OUT_ROWS = _LAYERS[-1]["Ho"] * _WQ     # 1200
_OUT_HW = _LAYERS[-1]["Ho"]             # 30
_OUT_C = _LAYERS[-1]["Cout"]            # 64


# ------------------------------ kernel helpers ------------------------------

def _conv_layer(src_ref, w_ref, b_ref, dst_ref, *, K, Cin, Cout, Ho, Wo,
                base, dst_off, mask_cols, relu):
    """One conv layer over the flattened padded canvas, chunked along M.

    src_ref : (canvas_rows, Cin)  flattened padded input, row stride _WQ,
              padded image starting at flattened offset `base`.
    w_ref   : (K*K*Cin, Cout)     HWIO weights flattened host-side.
    b_ref   : (1, Cout)
    dst_ref : destination canvas / output; layer output stored at `dst_off`.
    """
    M = Ho * _WQ
    n_chunks = -(-M // _CH)
    bias = b_ref[...]                                    # (1, Cout), hoisted
    if mask_cols:
        # chunk starts are multiples of _WQ, so the column pattern is
        # chunk-invariant: a single tiny (CH, 1) mask, computed once.
        col = jax.lax.broadcasted_iota(jnp.int32, (_CH, 1), 0) % _WQ
        mask = (col < Wo).astype(jnp.float32)

    def chunk_body(c, carry):
        # Last chunk is clamped (overlapping re-store of identical values),
        # keeping every start a multiple of _WQ (hence of 8).
        start = pl.multiple_of(jnp.minimum(c * _CH, M - _CH), 8)
        acc = jnp.zeros((_CH, Cout), jnp.float32)        # register-resident
        for kh in range(K):
            row_off = base + kh * _WQ
            for kw in range(K):
                patch = src_ref[pl.ds(row_off + kw + start, _CH), :]   # (CH, Cin)
                wk = w_ref[pl.ds((kh * K + kw) * Cin, Cin), :]         # (Cin, Cout)
                if Cin == 1:
                    acc = acc + patch * wk               # VPU broadcast (K=1 matmul is degenerate)
                else:
                    acc = acc + jnp.dot(patch, wk, preferred_element_type=jnp.float32)
        y = acc + bias
        if relu:
            y = jnp.maximum(y, 0.0)
        if mask_cols:
            y = y * mask                                 # zero junk columns (w >= Wo)
        dst_ref[pl.ds(dst_off + start, _CH), :] = y      # one aligned store per chunk
        return carry

    jax.lax.fori_loop(0, n_chunks, chunk_body, 0)


def _fused_cnn_kernel(x_ref,
                      w0, b0, w1, b1, w2, b2, w3, b3, w4, b4,
                      o_ref, s1, s2, s3, s4):
    canvases = [x_ref, s1, s2, s3, s4]
    weights = [(w0, b0), (w1, b1), (w2, b2), (w3, b3), (w4, b4)]

    # Halo-only memsets: interiors of s1..s4 are fully overwritten by the
    # producing layer's contiguous store; only the pad/slack bands need zeros.
    for i in range(1, 5):
        dst = canvases[i]
        ch = dst.shape[1]
        lead = _DST_OFF[i]
        if lead:
            dst[pl.ds(0, lead), :] = jnp.zeros((lead, ch), jnp.float32)
        trail_start = _DST_OFF[i] + _LAYERS[i - 1]["Ho"] * _WQ
        trail = _CANVAS_ROWS[i] - trail_start
        if trail:
            dst[pl.ds(trail_start, trail), :] = jnp.zeros((trail, ch), jnp.float32)

    for i, L in enumerate(_LAYERS):
        last = i == len(_LAYERS) - 1
        _conv_layer(canvases[i], weights[i][0], weights[i][1],
                    o_ref if last else canvases[i + 1],
                    K=L["K"], Cin=L["Cin"], Cout=L["Cout"],
                    Ho=L["Ho"], Wo=L["Wo"], base=L["base"],
                    dst_off=0 if last else _DST_OFF[i + 1],
                    # conv3's junk cols feed only junk conv4 outputs (pad=0),
                    # conv4's junk cols are sliced away in the wrapper.
                    mask_cols=(i < 3),
                    relu=last)


def _build_fused_call():
    scratch = [pltpu.VMEM((_CANVAS_ROWS[i], _CONV_SPECS[i][0]), jnp.float32)
               for i in range(1, 5)]
    return pl.pallas_call(
        _fused_cnn_kernel,
        out_shape=jax.ShapeDtypeStruct((_OUT_ROWS, _OUT_C), jnp.float32),
        in_specs=[pl.BlockSpec(memory_space=pltpu.MemorySpace.VMEM)] * 11,
        out_specs=pl.BlockSpec(memory_space=pltpu.MemorySpace.VMEM),
        scratch_shapes=scratch,
        compiler_params=pltpu.CompilerParams(
            vmem_limit_bytes=16 * 1024 * 1024),
    )


# ------------------------------ module wrapper -------------------------------

def init_params(key):
    """Deterministic PyTorch-style uniform(-1/sqrt(fan_in), 1/sqrt(fan_in)) init."""
    params = []
    for i, (cin, cout, k, pad) in enumerate(_CONV_SPECS):
        kw_key, kb_key = jax.random.split(jax.random.fold_in(key, i))
        bound = 1.0 / float(cin * k * k) ** 0.5
        w = jax.random.uniform(kw_key, (k, k, cin, cout), jnp.float32, -bound, bound)
        b = jax.random.uniform(kb_key, (cout,), jnp.float32, -bound, bound)
        params.append((w, b, pad))
    return params


def make_forward(params):
    fused = _build_fused_call()

    # Host-side: flatten HWIO weights to dense 2-D (KH*KW*Cin, Cout) slabs.
    flat_args = []
    for (w, b, _pad) in params:
        kh, kw, cin, cout = w.shape
        flat_args.append(w.reshape(kh * kw * cin, cout))
        flat_args.append(b.reshape(1, cout))

    @jax.jit
    def forward(x_nchw):
        # x_nchw: (1, 1, 32, 32), same convention as the PyTorch module input.
        x = x_nchw[0, 0]                                        # (32, 32)
        x = jnp.pad(x, ((0, 0), (0, _WQ - _IN_HW)))             # (32, _WQ)
        x = x.reshape(_IN_HW * _WQ, 1)
        x = jnp.pad(x, ((0, _CANVAS_ROWS[0] - _IN_HW * _WQ), (0, 0)))
        y = fused(x, *flat_args)                                # (30*_WQ, 64)
        y = y.reshape(_OUT_HW, _WQ, _OUT_C)[:, :_OUT_HW, :]     # drop junk columns
        y = jnp.transpose(y, (2, 0, 1))                         # (64, 30, 30)
        # torch.cat([v5, v5, v5], axis=0): free replication in the wrapper.
        return jnp.broadcast_to(y[None], (3, _OUT_C, _OUT_HW, _OUT_HW))

    return forward


def reference_forward(x_nchw, params):
    x = jnp.transpose(x_nchw, (0, 2, 3, 1))                     # NHWC
    for (w, b, pad) in params:
        x = jax.lax.conv_general_dilated(
            x, w, window_strides=(1, 1),
            padding=[(pad, pad), (pad, pad)],
            dimension_numbers=("NHWC", "HWIO", "NHWC")) + b
    x = jnp.concatenate([x, x, x], axis=0)
    x = jnp.maximum(x, 0.0)
    return jnp.transpose(x, (0, 3, 1, 2))


if __name__ == "__main__":
    key = jax.random.PRNGKey(0)
    pkey, xkey = jax.random.split(key)
    params = init_params(pkey)
    x1 = jax.random.normal(xkey, (1, 1, 32, 32), jnp.float32)   # NCHW input

    forward = make_forward(params)
    out = forward(x1)
    jax.block_until_ready(out)

    assert out.shape == (3, 64, 30, 30), out.shape
    ref = reference_forward(x1, params)
    assert jnp.allclose(out, ref, rtol=1e-4, atol=1e-4), (
        "mismatch vs XLA reference: max abs diff = "
        f"{float(jnp.max(jnp.abs(out - ref)))}")

    print("KERNEL_OK")
</pallas_src>

<mosaic_0001>
module attributes {stable_mosaic.version = 11 : i64} {
  func.func @_fused_cnn_kernel(%arg0: memref<1288x1xf32, #tpu.memory_space<vmem>>, %arg1: memref<4x8xf32, #tpu.memory_space<vmem>>, %arg2: memref<1x8xf32, #tpu.memory_space<vmem>>, %arg3: memref<128x16xf32, #tpu.memory_space<vmem>>, %arg4: memref<1x16xf32, #tpu.memory_space<vmem>>, %arg5: memref<64x32xf32, #tpu.memory_space<vmem>>, %arg6: memref<1x32xf32, #tpu.memory_space<vmem>>, %arg7: memref<512x32xf32, #tpu.memory_space<vmem>>, %arg8: memref<1x32xf32, #tpu.memory_space<vmem>>, %arg9: memref<288x64xf32, #tpu.memory_space<vmem>>, %arg10: memref<1x64xf32, #tpu.memory_space<vmem>>, %arg11: memref<1200x64xf32, #tpu.memory_space<vmem>>, %arg12: memref<1416x8xf32, #tpu.memory_space<vmem>>, %arg13: memref<1368x16xf32, #tpu.memory_space<vmem>>, %arg14: memref<1416x32xf32, #tpu.memory_space<vmem>>, %arg15: memref<1288x32xf32, #tpu.memory_space<vmem>>) attributes {dimension_semantics = [], scalar_prefetch = 0 : i64, scratch_operands = 4 : i64, tpu.core_type = #tpu.core_type<tc>} {
    %cst = arith.constant 0.000000e+00 : f32
    %0 = vector.broadcast %cst : f32 to vector<88x8xf32>
    %c0 = arith.constant 0 : index
    %c0_0 = arith.constant 0 : index
    %1 = vector.load %arg12[%c0, %c0_0] : memref<1416x8xf32, #tpu.memory_space<vmem>>, vector<88x8xf32>
    tpu.vector_store %arg12[%c0, %c0_0], %0 {strides = array<i32>} : memref<1416x8xf32, #tpu.memory_space<vmem>>, vector<88x8xf32>,
    %cst_1 = arith.constant 0.000000e+00 : f32
    %2 = vector.broadcast %cst_1 : f32 to vector<88x8xf32>
    %c1328 = arith.constant 1328 : index
    %c0_2 = arith.constant 0 : index
    %3 = vector.load %arg12[%c1328, %c0_2] : memref<1416x8xf32, #tpu.memory_space<vmem>>, vector<88x8xf32>
    tpu.vector_store %arg12[%c1328, %c0_2], %2 {strides = array<i32>} : memref<1416x8xf32, #tpu.memory_space<vmem>>, vector<88x8xf32>,
    %cst_3 = arith.constant 0.000000e+00 : f32
    %4 = vector.broadcast %cst_3 : f32 to vector<48x16xf32>
    %c0_4 = arith.constant 0 : index
    %c0_5 = arith.constant 0 : index
    %5 = vector.load %arg13[%c0_4, %c0_5] : memref<1368x16xf32, #tpu.memory_space<vmem>>, vector<48x16xf32>
    tpu.vector_store %arg13[%c0_4, %c0_5], %4 {strides = array<i32>} : memref<1368x16xf32, #tpu.memory_space<vmem>>, vector<48x16xf32>,
    %cst_6 = arith.constant 0.000000e+00 : f32
    %6 = vector.broadcast %cst_6 : f32 to vector<40x16xf32>
    %c1328_7 = arith.constant 1328 : index
    %c0_8 = arith.constant 0 : index
    %7 = vector.load %arg13[%c1328_7, %c0_8] : memref<1368x16xf32, #tpu.memory_space<vmem>>, vector<40x16xf32>
    tpu.vector_store %arg13[%c1328_7, %c0_8], %6 {strides = array<i32>} : memref<1368x16xf32, #tpu.memory_space<vmem>>, vector<40x16xf32>,
    %cst_9 = arith.constant 0.000000e+00 : f32
    %8 = vector.broadcast %cst_9 : f32 to vector<48x32xf32>
    %c0_10 = arith.constant 0 : index
    %c0_11 = arith.constant 0 : index
    %9 = vector.load %arg14[%c0_10, %c0_11] : memref<1416x32xf32, #tpu.memory_space<vmem>>, vector<48x32xf32>
    tpu.vector_store %arg14[%c0_10, %c0_11], %8 {strides = array<i32>} : memref<1416x32xf32, #tpu.memory_space<vmem>>, vector<48x32xf32>,
    %cst_12 = arith.constant 0.000000e+00 : f32
    %10 = vector.broadcast %cst_12 : f32 to vector<48x32xf32>
    %c1368 = arith.constant 1368 : index
    %c0_13 = arith.constant 0 : index
    %11 = vector.load %arg14[%c1368, %c0_13] : memref<1416x32xf32, #tpu.memory_space<vmem>>, vector<48x32xf32>
    tpu.vector_store %arg14[%c1368, %c0_13], %10 {strides = array<i32>} : memref<1416x32xf32, #tpu.memory_space<vmem>>, vector<48x32xf32>,
    %cst_14 = arith.constant 0.000000e+00 : f32
    %12 = vector.broadcast %cst_14 : f32 to vector<8x32xf32>
    %c1280 = arith.constant 1280 : index
    %c0_15 = arith.constant 0 : index
    %13 = vector.load %arg15[%c1280, %c0_15] : memref<1288x32xf32, #tpu.memory_space<vmem>>, vector<8x32xf32>
    tpu.vector_store %arg15[%c1280, %c0_15], %12 {strides = array<i32>} : memref<1288x32xf32, #tpu.memory_space<vmem>>, vector<8x32xf32>,
    %c0_16 = arith.constant 0 : index
    %c0_17 = arith.constant 0 : index
    %14 = vector.load %arg2[%c0_16, %c0_17] : memref<1x8xf32, #tpu.memory_space<vmem>>, vector<1x8xf32>
    %15 = tpu.iota {dimensions = array<i32: 0>} : vector<120x1xi32>
    %c40_i32 = arith.constant 40 : i32
    %c0_i32 = arith.constant 0 : i32
    %16 = arith.cmpi eq, %c40_i32, %c0_i32 : i32
    %c1_i32 = arith.constant 1 : i32
    %17 = arith.select %16, %c1_i32, %c40_i32 : i32
    %18 = vector.broadcast %17 : i32 to vector<120x1xi32>
    %19 = arith.remsi %15, %18 : vector<120x1xi32>
    %c0_i32_18 = arith.constant 0 : i32
    %20 = vector.broadcast %c0_i32_18 : i32 to vector<120x1xi32>
    %21 = arith.cmpi ne, %19, %20 : vector<120x1xi32>
    %c0_i32_19 = arith.constant 0 : i32
    %22 = vector.broadcast %c0_i32_19 : i32 to vector<120x1xi32>
    %23 = arith.cmpi slt, %19, %22 : vector<120x1xi32>
    %c0_i32_20 = arith.constant 0 : i32
    %24 = arith.cmpi slt, %17, %c0_i32_20 : i32
    %25 = vector.broadcast %24 : i1 to vector<120x1xi1>
    %26 = vector.broadcast %25 : vector<120x1xi1> to vector<120x1xi1>
    %27 = arith.xori %23, %26 : vector<120x1xi1>
    %28 = arith.andi %27, %21 : vector<120x1xi1>
    %29 = vector.broadcast %17 : i32 to vector<120x1xi32>
    %30 = arith.addi %19, %29 : vector<120x1xi32>
    %31 = arith.select %28, %30, %19 : vector<120x1xi1>, vector<120x1xi32>
    %c31_i32 = arith.constant 31 : i32
    %32 = vector.broadcast %c31_i32 : i32 to vector<120x1xi32>
    %33 = arith.cmpi slt, %31, %32 : vector<120x1xi32>
    %34 = arith.extui %33 : vector<120x1xi1> to vector<120x1xi32>
    %35 = arith.sitofp %34 : vector<120x1xi32> to vector<120x1xf32>
    %c0_i32_21 = arith.constant 0 : i32
    %c11_i32 = arith.constant 11 : i32
    %36 = arith.addi %c0_i32_21, %c11_i32 : i32
    %c1_i32_22 = arith.constant 1 : i32
    scf.for %arg16 = %c0_i32_21 to %36 step %c1_i32_22  : i32 {
      %c120_i32 = arith.constant 120 : i32
      %87 = arith.muli %arg16, %c120_i32 : i32
      %c1120_i32 = arith.constant 1120 : i32
      %88 = arith.minsi %87, %c1120_i32 : i32
      %89 = tpu.assume_multiple %88, 8 : i32
      %cst_59 = arith.constant 0.000000e+00 : f32
      %90 = vector.broadcast %cst_59 : f32 to vector<120x8xf32>
      %c0_i32_60 = arith.constant 0 : i32
      %91 = arith.addi %c0_i32_60, %89 : i32
      %92 = arith.index_cast %91 : i32 to index
      %c0_61 = arith.constant 0 : index
      %93 = vector.load %arg0[%92, %c0_61] : memref<1288x1xf32, #tpu.memory_space<vmem>>, vector<120x1xf32>
      %c0_62 = arith.constant 0 : index
      %c0_63 = arith.constant 0 : index
      %94 = vector.load %arg1[%c0_62, %c0_63] : memref<4x8xf32, #tpu.memory_space<vmem>>, vector<1x8xf32>
      %95 = vector.broadcast %93 : vector<120x1xf32> to vector<120x8xf32>
      %96 = vector.broadcast %94 : vector<1x8xf32> to vector<120x8xf32>
      %97 = arith.mulf %95, %96 : vector<120x8xf32>
      %98 = arith.addf %90, %97 : vector<120x8xf32>
      %c1_i32_64 = arith.constant 1 : i32
      %99 = arith.addi %c1_i32_64, %89 : i32
      %100 = arith.index_cast %99 : i32 to index
      %c0_65 = arith.constant 0 : index
      %101 = vector.load %arg0[%100, %c0_65] : memref<1288x1xf32, #tpu.memory_space<vmem>>, vector<120x1xf32>
      %c1 = arith.constant 1 : index
      %c0_66 = arith.constant 0 : index
      %102 = vector.load %arg1[%c1, %c0_66] : memref<4x8xf32, #tpu.memory_space<vmem>>, vector<1x8xf32>
      %103 = vector.broadcast %101 : vector<120x1xf32> to vector<120x8xf32>
      %104 = vector.broadcast %102 : vector<1x8xf32> to vector<120x8xf32>
      %105 = arith.mulf %103, %104 : vector<120x8xf32>
      %106 = arith.addf %98, %105 : vector<120x8xf32>
      %c40_i32_67 = arith.constant 40 : i32
      %107 = arith.addi %c40_i32_67, %89 : i32
      %108 = arith.index_cast %107 : i32 to index
      %c0_68 = arith.constant 0 : index
      %109 = vector.load %arg0[%108, %c0_68] : memref<1288x1xf32, #tpu.memory_space<vmem>>, vector<120x1xf32>
      %c2 = arith.constant 2 : index
      %c0_69 = arith.constant 0 : index
      %110 = vector.load %arg1[%c2, %c0_69] : memref<4x8xf32, #tpu.memory_space<vmem>>, vector<1x8xf32>
      %111 = vector.broadcast %109 : vector<120x1xf32> to vector<120x8xf32>
      %112 = vector.broadcast %110 : vector<1x8xf32> to vector<120x8xf32>
      %113 = arith.mulf %111, %112 : vector<120x8xf32>
      %114 = arith.addf %106, %113 : vector<120x8xf32>
      %c41_i32 = arith.constant 41 : i32
      %115 = arith.addi %c41_i32, %89 : i32
      %116 = arith.index_cast %115 : i32 to index
      %c0_70 = arith.constant 0 : index
      %117 = vector.load %arg0[%116, %c0_70] : memref<1288x1xf32, #tpu.memory_space<vmem>>, vector<120x1xf32>
      %c3 = arith.constant 3 : index
      %c0_71 = arith.constant 0 : index
      %118 = vector.load %arg1[%c3, %c0_71] : memref<4x8xf32, #tpu.memory_space<vmem>>, vector<1x8xf32>
      %119 = vector.broadcast %117 : vector<120x1xf32> to vector<120x8xf32>
      %120 = vector.broadcast %118 : vector<1x8xf32> to vector<120x8xf32>
      %121 = arith.mulf %119, %120 : vector<120x8xf32>
      %122 = arith.addf %114, %121 : vector<120x8xf32>
      %123 = vector.broadcast %14 : vector<1x8xf32> to vector<120x8xf32>
      %124 = arith.addf %122, %123 : vector<120x8xf32>
      %125 = vector.broadcast %35 : vector<120x1xf32> to vector<120x8xf32>
      %126 = arith.mulf %124, %125 : vector<120x8xf32>
      %c88_i32 = arith.constant 88 : i32
      %127 = arith.addi %c88_i32, %89 : i32
      %128 = arith.index_cast %127 : i32 to index
      %c0_72 = arith.constant 0 : index
      %129 = vector.load %arg12[%128, %c0_72] : memref<1416x8xf32, #tpu.memory_space<vmem>>, vector<120x8xf32>
      tpu.vector_store %arg12[%128, %c0_72], %126 {strides = array<i32>} : memref<1416x8xf32, #tpu.memory_space<vmem>>, vector<120x8xf32>,
    }
    %c11_i32_23 = arith.constant 11 : i32
    %c0_24 = arith.constant 0 : index
    %c0_25 = arith.constant 0 : index
    %37 = vector.load %arg4[%c0_24, %c0_25] : memref<1x16xf32, #tpu.memory_space<vmem>>, vector<1x16xf32>
    %38 = tpu.iota {dimensions = array<i32: 0>} : vector<120x1xi32>
    %c40_i32_26 = arith.constant 40 : i32
    %c0_i32_27 = arith.constant 0 : i32
    %39 = arith.cmpi eq, %c40_i32_26, %c0_i32_27 : i32
    %c1_i32_28 = arith.constant 1 : i32
    %40 = arith.select %39, %c1_i32_28, %c40_i32_26 : i32
    %41 = vector.broadcast %40 : i32 to vector<120x1xi32>
    %42 = arith.remsi %38, %41 : vector<120x1xi32>
    %c0_i32_29 = arith.constant 0 : i32
    %43 = vector.broadcast %c0_i32_29 : i32 to vector<120x1xi32>
    %44 = arith.cmpi ne, %42, %43 : vector<120x1xi32>
    %c0_i32_30 = arith.constant 0 : i32
    %45 = vector.broadcast %c0_i32_30 : i32 to vector<120x1xi32>
    %46 = arith.cmpi slt, %42, %45 : vector<120x1xi32>
    %c0_i32_31 = arith.constant 0 : i32
    %47 = arith.cmpi slt, %40, %c0_i32_31 : i32
    %48 = vector.broadcast %47 : i1 to vector<120x1xi1>
    %49 = vector.broadcast %48 : vector<120x1xi1> to vector<120x1xi1>
    %50 = arith.xori %46, %49 : vector<120x1xi1>
    %51 = arith.andi %50, %44 : vector<120x1xi1>
    %52 = vector.broadcast %40 : i32 to vector<120x1xi32>
    %53 = arith.addi %42, %52 : vector<120x1xi32>
    %54 = arith.select %51, %53, %42 : vector<120x1xi1>, vector<120x1xi32>
    %c32_i32 = arith.constant 32 : i32
    %55 = vector.broadcast %c32_i32 : i32 to vector<120x1xi32>
    %56 = arith.cmpi slt, %54, %55 : vector<120x1xi32>
    %57 = arith.extui %56 : vector<120x1xi1> to vector<120x1xi32>
    %58 = arith.sitofp %57 : vector<120x1xi32> to vector<120x1xf32>
    %c0_i32_32 = arith.constant 0 : i32
    %c11_i32_33 = arith.constant 11 : i32
    %59 = arith.addi %c0_i32_32, %c11_i32_33 : i32
    %c1_i32_34 = arith.constant 1 : i32
    scf.for %arg16 = %c0_i32_32 to %59 step %c1_i32_34  : i32 {
      %c120_i32 = arith.constant 120 : i32
      %87 = arith.muli %arg16, %c120_i32 : i32
      %c1160_i32 = arith.constant 1160 : i32
      %88 = arith.minsi %87, %c1160_i32 : i32
      %89 = tpu.assume_multiple %88, 8 : i32
      %cst_59 = arith.constant 0.000000e+00 : f32
      %90 = vector.broadcast %cst_59 : f32 to vector<120x16xf32>
      %c6_i32 = arith.constant 6 : i32
      %91 = arith.addi %c6_i32, %89 : i32
      %92 = arith.index_cast %91 : i32 to index
      %c0_60 = arith.constant 0 : index
      %93 = vector.load %arg12[%92, %c0_60] : memref<1416x8xf32, #tpu.memory_space<vmem>>, vector<120x8xf32>
      %c0_61 = arith.constant 0 : index
      %c0_62 = arith.constant 0 : index
      %94 = vector.load %arg3[%c0_61, %c0_62] : memref<128x16xf32, #tpu.memory_space<vmem>>, vector<8x16xf32>
      %cst_63 = arith.constant dense<0.000000e+00> : vector<120x16xf32>
      %95 = tpu.matmul %93, %94, %cst_63 {dimension_numbers = #tpu.dot_dimension_numbers<[1], [0], [0], [1], [0, 0, 1, 1], [], []>} : vector<120x8xf32>, vector<8x16xf32>, vector<120x16xf32> -> vector<120x16xf32>
      %96 = arith.addf %90, %95 : vector<120x16xf32>
      %c7_i32 = arith.constant 7 : i32
      %97 = arith.addi %c7_i32, %89 : i32
      %98 = arith.index_cast %97 : i32 to index
      %c0_64 = arith.constant 0 : index
      %99 = vector.load %arg12[%98, %c0_64] : memref<1416x8xf32, #tpu.memory_space<vmem>>, vector<120x8xf32>
      %c8 = arith.constant 8 : index
      %c0_65 = arith.constant 0 : index
      %100 = vector.load %arg3[%c8, %c0_65] : memref<128x16xf32, #tpu.memory_space<vmem>>, vector<8x16xf32>
      %cst_66 = arith.constant dense<0.000000e+00> : vector<120x16xf32>
      %101 = tpu.matmul %99, %100, %cst_66 {dimension_numbers = #tpu.dot_dimension_numbers<[1], [0], [0], [1], [0, 0, 1, 1], [], []>} : vector<120x8xf32>, vector<8x16xf32>, vector<120x16xf32> -> vector<120x16xf32>
      %102 = arith.addf %96, %101 : vector<120x16xf32>
      %c8_i32 = arith.constant 8 : i32
      %103 = arith.addi %c8_i32, %89 : i32
      %104 = arith.index_cast %103 : i32 to index
      %c0_67 = arith.constant 0 : index
      %105 = vector.load %arg12[%104, %c0_67] : memref<1416x8xf32, #tpu.memory_space<vmem>>, vector<120x8xf32>
      %c16 = arith.constant 16 : index
      %c0_68 = arith.constant 0 : index
      %106 = vector.load %arg3[%c16, %c0_68] : memref<128x16xf32, #tpu.memory_space<vmem>>, vector<8x16xf32>
      %cst_69 = arith.constant dense<0.000000e+00> : vector<120x16xf32>
      %107 = tpu.matmul %105, %106, %cst_69 {dimension_numbers = #tpu.dot_dimension_numbers<[1], [0], [0], [1], [0, 0, 1, 1], [], []>} : vector<120x8xf32>, vector<8x16xf32>, vector<120x16xf32> -> vector<120x16xf32>
      %108 = arith.addf %102, %107 : vector<120x16xf32>
      %c9_i32 = arith.constant 9 : i32
      %109 = arith.addi %c9_i32, %89 : i32
      %110 = arith.index_cast %109 : i32 to index
      %c0_70 = arith.constant 0 : index
      %111 = vector.load %arg12[%110, %c0_70] : memref<1416x8xf32, #tpu.memory_space<vmem>>, vector<120x8xf32>
      %c24 = arith.constant 24 : index
      %c0_71 = arith.constant 0 : index
      %112 = vector.load %arg3[%c24, %c0_71] : memref<128x16xf32, #tpu.memory_space<vmem>>, vector<8x16xf32>
      %cst_72 = arith.constant dense<0.000000e+00> : vector<120x16xf32>
      %113 = tpu.matmul %111, %112, %cst_72 {dimension_numbers = #tpu.dot_dimension_numbers<[1], [0], [0], [1], [0, 0, 1, 1], [], []>} : vector<120x8xf32>, vector<8x16xf32>, vector<120x16xf32> -> vector<120x16xf32>
      %114 = arith.addf %108, %113 : vector<120x16xf32>
      %c46_i32 = arith.constant 46 : i32
      %115 = arith.addi %c46_i32, %89 : i32
      %116 = arith.index_cast %115 : i32 to index
      %c0_73 = arith.constant 0 : index
      %117 = vector.load %arg12[%116, %c0_73] : memref<1416x8xf32, #tpu.memory_space<vmem>>, vector<120x8xf32>
      %c32 = arith.constant 32 : index
      %c0_74 = arith.constant 0 : index
      %118 = vector.load %arg3[%c32, %c0_74] : memref<128x16xf32, #tpu.memory_space<vmem>>, vector<8x16xf32>
      %cst_75 = arith.constant dense<0.000000e+00> : vector<120x16xf32>
      %119 = tpu.matmul %117, %118, %cst_75 {dimension_numbers = #tpu.dot_dimension_numbers<[1], [0], [0], [1], [0, 0, 1, 1], [], []>} : vector<120x8xf32>, vector<8x16xf32>, vector<120x16xf32> -> vector<120x16xf32>
      %120 = arith.addf %114, %119 : vector<120x16xf32>
      %c47_i32 = arith.constant 47 : i32
      %121 = arith.addi %c47_i32, %89 : i32
      %122 = arith.index_cast %121 : i32 to index
      %c0_76 = arith.constant 0 : index
      %123 = vector.load %arg12[%122, %c0_76] : memref<1416x8xf32, #tpu.memory_space<vmem>>, vector<120x8xf32>
      %c40 = arith.constant 40 : index
      %c0_77 = arith.constant 0 : index
      %124 = vector.load %arg3[%c40, %c0_77] : memref<128x16xf32, #tpu.memory_space<vmem>>, vector<8x16xf32>
      %cst_78 = arith.constant dense<0.000000e+00> : vector<120x16xf32>
      %125 = tpu.matmul %123, %124, %cst_78 {dimension_numbers = #tpu.dot_dimension_numbers<[1], [0], [0], [1], [0, 0, 1, 1], [], []>} : vector<120x8xf32>, vector<8x16xf32>, vector<120x16xf32> -> vector<120x16xf32>
      %126 = arith.addf %120, %125 : vector<120x16xf32>
      %c48_i32 = arith.constant 48 : i32
      %127 = arith.addi %c48_i32, %89 : i32
      %128 = arith.index_cast %127 : i32 to index
      %c0_79 = arith.constant 0 : index
      %129 = vector.load %arg12[%128, %c0_79] : memref<1416x8xf32, #tpu.memory_space<vmem>>, vector<120x8xf32>
      %c48 = arith.constant 48 : index
      %c0_80 = arith.constant 0 : index
      %130 = vector.load %arg3[%c48, %c0_80] : memref<128x16xf32, #tpu.memory_space<vmem>>, vector<8x16xf32>
      %cst_81 = arith.constant dense<0.000000e+00> : vector<120x16xf32>
      %131 = tpu.matmul %129, %130, %cst_81 {dimension_numbers = #tpu.dot_dimension_numbers<[1], [0], [0], [1], [0, 0, 1, 1], [], []>} : vector<120x8xf32>, vector<8x16xf32>, vector<120x16xf32> -> vector<120x16xf32>
      %132 = arith.addf %126, %131 : vector<120x16xf32>
      %c49_i32 = arith.constant 49 : i32
      %133 = arith.addi %c49_i32, %89 : i32
      %134 = arith.index_cast %133 : i32 to index
      %c0_82 = arith.constant 0 : index
      %135 = vector.load %arg12[%134, %c0_82] : memref<1416x8xf32, #tpu.memory_space<vmem>>, vector<120x8xf32>
      %c56 = arith.constant 56 : index
      %c0_83 = arith.constant 0 : index
      %136 = vector.load %arg3[%c56, %c0_83] : memref<128x16xf32, #tpu.memory_space<vmem>>, vector<8x16xf32>
      %cst_84 = arith.constant dense<0.000000e+00> : vector<120x16xf32>
      %137 = tpu.matmul %135, %136, %cst_84 {dimension_numbers = #tpu.dot_dimension_numbers<[1], [0], [0], [1], [0, 0, 1, 1], [], []>} : vector<120x8xf32>, vector<8x16xf32>, vector<120x16xf32> -> vector<120x16xf32>
      %138 = arith.addf %132, %137 : vector<120x16xf32>
      %c86_i32 = arith.constant 86 : i32
      %139 = arith.addi %c86_i32, %89 : i32
      %140 = arith.index_cast %139 : i32 to index
      %c0_85 = arith.constant 0 : index
      %141 = vector.load %arg12[%140, %c0_85] : memref<1416x8xf32, #tpu.memory_space<vmem>>, vector<120x8xf32>
      %c64 = arith.constant 64 : index
      %c0_86 = arith.constant 0 : index
      %142 = vector.load %arg3[%c64, %c0_86] : memref<128x16xf32, #tpu.memory_space<vmem>>, vector<8x16xf32>
      %cst_87 = arith.constant dense<0.000000e+00> : vector<120x16xf32>
      %143 = tpu.matmul %141, %142, %cst_87 {dimension_numbers = #tpu.dot_dimension_numbers<[1], [0], [0], [1], [0, 0, 1, 1], [], []>} : vector<120x8xf32>, vector<8x16xf32>, vector<120x16xf32> -> vector<120x16xf32>
      %144 = arith.addf %138, %143 : vector<120x16xf32>
      %c87_i32 = arith.constant 87 : i32
      %145 = arith.addi %c87_i32, %89 : i32
      %146 = arith.index_cast %145 : i32 to index
      %c0_88 = arith.constant 0 : index
      %147 = vector.load %arg12[%146, %c0_88] : memref<1416x8xf32, #tpu.memory_space<vmem>>, vector<120x8xf32>
      %c72 = arith.constant 72 : index
      %c0_89 = arith.constant 0 : index
      %148 = vector.load %arg3[%c72, %c0_89] : memref<128x16xf32, #tpu.memory_space<vmem>>, vector<8x16xf32>
      %cst_90 = arith.constant dense<0.000000e+00> : vector<120x16xf32>
      %149 = tpu.matmul %147, %148, %cst_90 {dimension_numbers = #tpu.dot_dimension_numbers<[1], [0], [0], [1], [0, 0, 1, 1], [], []>} : vector<120x8xf32>, vector<8x16xf32>, vector<120x16xf32> -> vector<120x16xf32>
      %150 = arith.addf %144, %149 : vector<120x16xf32>
      %c88_i32 = arith.constant 88 : i32
      %151 = arith.addi %c88_i32, %89 : i32
      %152 = arith.index_cast %151 : i32 to index
      %c0_91 = arith.constant 0 : index
      %153 = vector.load %arg12[%152, %c0_91] : memref<1416x8xf32, #tpu.memory_space<vmem>>, vector<120x8xf32>
      %c80 = arith.constant 80 : index
      %c0_92 = arith.constant 0 : index
      %154 = vector.load %arg3[%c80, %c0_92] : memref<128x16xf32, #tpu.memory_space<vmem>>, vector<8x16xf32>
      %cst_93 = arith.constant dense<0.000000e+00> : vector<120x16xf32>
      %155 = tpu.matmul %153, %154, %cst_93 {dimension_numbers = #tpu.dot_dimension_numbers<[1], [0], [0], [1], [0, 0, 1, 1], [], []>} : vector<120x8xf32>, vector<8x16xf32>, vector<120x16xf32> -> vector<120x16xf32>
      %156 = arith.addf %150, %155 : vector<120x16xf32>
      %c89_i32 = arith.constant 89 : i32
      %157 = arith.addi %c89_i32, %89 : i32
      %158 = arith.index_cast %157 : i32 to index
      %c0_94 = arith.constant 0 : index
      %159 = vector.load %arg12[%158, %c0_94] : memref<1416x8xf32, #tpu.memory_space<vmem>>, vector<120x8xf32>
      %c88 = arith.constant 88 : index
      %c0_95 = arith.constant 0 : index
      %160 = vector.load %arg3[%c88, %c0_95] : memref<128x16xf32, #tpu.memory_space<vmem>>, vector<8x16xf32>
      %cst_96 = arith.constant dense<0.000000e+00> : vector<120x16xf32>
      %161 = tpu.matmul %159, %160, %cst_96 {dimension_numbers = #tpu.dot_dimension_numbers<[1], [0], [0], [1], [0, 0, 1, 1], [], []>} : vector<120x8xf32>, vector<8x16xf32>, vector<120x16xf32> -> vector<120x16xf32>
      %162 = arith.addf %156, %161 : vector<120x16xf32>
      %c126_i32 = arith.constant 126 : i32
      %163 = arith.addi %c126_i32, %89 : i32
      %164 = arith.index_cast %163 : i32 to index
      %c0_97 = arith.constant 0 : index
      %165 = vector.load %arg12[%164, %c0_97] : memref<1416x8xf32, #tpu.memory_space<vmem>>, vector<120x8xf32>
      %c96 = arith.constant 96 : index
      %c0_98 = arith.constant 0 : index
      %166 = vector.load %arg3[%c96, %c0_98] : memref<128x16xf32, #tpu.memory_space<vmem>>, vector<8x16xf32>
      %cst_99 = arith.constant dense<0.000000e+00> : vector<120x16xf32>
      %167 = tpu.matmul %165, %166, %cst_99 {dimension_numbers = #tpu.dot_dimension_numbers<[1], [0], [0], [1], [0, 0, 1, 1], [], []>} : vector<120x8xf32>, vector<8x16xf32>, vector<120x16xf32> -> vector<120x16xf32>
      %168 = arith.addf %162, %167 : vector<120x16xf32>
      %c127_i32 = arith.constant 127 : i32
      %169 = arith.addi %c127_i32, %89 : i32
      %170 = arith.index_cast %169 : i32 to index
      %c0_100 = arith.constant 0 : index
      %171 = vector.load %arg12[%170, %c0_100] : memref<1416x8xf32, #tpu.memory_space<vmem>>, vector<120x8xf32>
      %c104 = arith.constant 104 : index
      %c0_101 = arith.constant 0 : index
      %172 = vector.load %arg3[%c104, %c0_101] : memref<128x16xf32, #tpu.memory_space<vmem>>, vector<8x16xf32>
      %cst_102 = arith.constant dense<0.000000e+00> : vector<120x16xf32>
      %173 = tpu.matmul %171, %172, %cst_102 {dimension_numbers = #tpu.dot_dimension_numbers<[1], [0], [0], [1], [0, 0, 1, 1], [], []>} : vector<120x8xf32>, vector<8x16xf32>, vector<120x16xf32> -> vector<120x16xf32>
      %174 = arith.addf %168, %173 : vector<120x16xf32>
      %c128_i32 = arith.constant 128 : i32
      %175 = arith.addi %c128_i32, %89 : i32
      %176 = arith.index_cast %175 : i32 to index
      %c0_103 = arith.constant 0 : index
      %177 = vector.load %arg12[%176, %c0_103] : memref<1416x8xf32, #tpu.memory_space<vmem>>, vector<120x8xf32>
      %c112 = arith.constant 112 : index
      %c0_104 = arith.constant 0 : index
      %178 = vector.load %arg3[%c112, %c0_104] : memref<128x16xf32, #tpu.memory_space<vmem>>, vector<8x16xf32>
      %cst_105 = arith.constant dense<0.000000e+00> : vector<120x16xf32>
      %179 = tpu.matmul %177, %178, %cst_105 {dimension_numbers = #tpu.dot_dimension_numbers<[1], [0], [0], [1], [0, 0, 1, 1], [], []>} : vector<120x8xf32>, vector<8x16xf32>, vector<120x16xf32> -> vector<120x16xf32>
      %180 = arith.addf %174, %179 : vector<120x16xf32>
      %c129_i32 = arith.constant 129 : i32
      %181 = arith.addi %c129_i32, %89 : i32
      %182 = arith.index_cast %181 : i32 to index
      %c0_106 = arith.constant 0 : index
      %183 = vector.load %arg12[%182, %c0_106] : memref<1416x8xf32, #tpu.memory_space<vmem>>, vector<120x8xf32>
      %c120 = arith.constant 120 : index
      %c0_107 = arith.constant 0 : index
      %184 = vector.load %arg3[%c120, %c0_107] : memref<128x16xf32, #tpu.memory_space<vmem>>, vector<8x16xf32>
      %cst_108 = arith.constant dense<0.000000e+00> : vector<120x16xf32>
      %185 = tpu.matmul %183, %184, %cst_108 {dimension_numbers = #tpu.dot_dimension_numbers<[1], [0], [0], [1], [0, 0, 1, 1], [], []>} : vector<120x8xf32>, vector<8x16xf32>, vector<120x16xf32> -> vector<120x16xf32>
      %186 = arith.addf %180, %185 : vector<120x16xf32>
      %187 = vector.broadcast %37 : vector<1x16xf32> to vector<120x16xf32>
      %188 = arith.addf %186, %187 : vector<120x16xf32>
      %189 = vector.broadcast %58 : vector<120x1xf32> to vector<120x16xf32>
      %190 = arith.mulf %188, %189 : vector<120x16xf32>
      %c48_i32_109 = arith.constant 48 : i32
      %191 = arith.addi %c48_i32_109, %89 : i32
      %192 = arith.index_cast %191 : i32 to index
      %c0_110 = arith.constant 0 : index
      %193 = vector.load %arg13[%192, %c0_110] : memref<1368x16xf32, #tpu.memory_space<vmem>>, vector<120x16xf32>
      tpu.vector_store %arg13[%192, %c0_110], %190 {strides = array<i32>} : memref<1368x16xf32, #tpu.memory_space<vmem>>, vector<120x16xf32>,
    }
    %c11_i32_35 = arith.constant 11 : i32
    %c0_36 = arith.constant 0 : index
    %c0_37 = arith.constant 0 : index
    %60 = vector.load %arg6[%c0_36, %c0_37] : memref<1x32xf32, #tpu.memory_space<vmem>>, vector<1x32xf32>
    %61 = tpu.iota {dimensions = array<i32: 0>} : vector<120x1xi32>
    %c40_i32_38 = arith.constant 40 : i32
    %c0_i32_39 = arith.constant 0 : i32
    %62 = arith.cmpi eq, %c40_i32_38, %c0_i32_39 : i32
    %c1_i32_40 = arith.constant 1 : i32
    %63 = arith.select %62, %c1_i32_40, %c40_i32_38 : i32
    %64 = vector.broadcast %63 : i32 to vector<120x1xi32>
    %65 = arith.remsi %61, %64 : vector<120x1xi32>
    %c0_i32_41 = arith.constant 0 : i32
    %66 = vector.broadcast %c0_i32_41 : i32 to vector<120x1xi32>
    %67 = arith.cmpi ne, %65, %66 : vector<120x1xi32>
    %c0_i32_42 = arith.constant 0 : i32
    %68 = vector.broadcast %c0_i32_42 : i32 to vector<120x1xi32>
    %69 = arith.cmpi slt, %65, %68 : vector<120x1xi32>
    %c0_i32_43 = arith.constant 0 : i32
    %70 = arith.cmpi slt, %63, %c0_i32_43 : i32
    %71 = vector.broadcast %70 : i1 to vector<120x1xi1>
    %72 = vector.broadcast %71 : vector<120x1xi1> to vector<120x1xi1>
    %73 = arith.xori %69, %72 : vector<120x1xi1>
    %74 = arith.andi %73, %67 : vector<120x1xi1>
    %75 = vector.broadcast %63 : i32 to vector<120x1xi32>
    %76 = arith.addi %65, %75 : vector<120x1xi32>
    %77 = arith.select %74, %76, %65 : vector<120x1xi1>, vector<120x1xi32>
    %c33_i32 = arith.constant 33 : i32
    %78 = vector.broadcast %c33_i32 : i32 to vector<120x1xi32>
    %79 = arith.cmpi slt, %77, %78 : vector<120x1xi32>
    %80 = arith.extui %79 : vector<120x1xi1> to vector<120x1xi32>
    %81 = arith.sitofp %80 : vector<120x1xi32> to vector<120x1xf32>
    %c0_i32_44 = arith.constant 0 : i32
    %c11_i32_45 = arith.constant 11 : i32
    %82 = arith.addi %c0_i32_44, %c11_i32_45 : i32
    %c1_i32_46 = arith.constant 1 : i32
    scf.for %arg16 = %c0_i32_44 to %82 step %c1_i32_46  : i32 {
      %c120_i32 = arith.constant 120 : i32
      %87 = arith.muli %arg16, %c120_i32 : i32
      %c1200_i32 = arith.constant 1200 : i32
      %88 = arith.minsi %87, %c1200_i32 : i32
      %89 = tpu.assume_multiple %88, 8 : i32
      %cst_59 = arith.constant 0.000000e+00 : f32
      %90 = vector.broadcast %cst_59 : f32 to vector<120x32xf32>
      %c7_i32 = arith.constant 7 : i32
      %91 = arith.addi %c7_i32, %89 : i32
      %92 = arith.index_cast %91 : i32 to index
      %c0_60 = arith.constant 0 : index
      %93 = vector.load %arg13[%92, %c0_60] : memref<1368x16xf32, #tpu.memory_space<vmem>>, vector<120x16xf32>
      %c0_61 = arith.constant 0 : index
      %c0_62 = arith.constant 0 : index
      %94 = vector.load %arg5[%c0_61, %c0_62] : memref<64x32xf32, #tpu.memory_space<vmem>>, vector<16x32xf32>
      %cst_63 = arith.constant dense<0.000000e+00> : vector<120x32xf32>
      %95 = tpu.matmul %93, %94, %cst_63 {dimension_numbers = #tpu.dot_dimension_numbers<[1], [0], [0], [1], [0, 0, 1, 1], [], []>} : vector<120x16xf32>, vector<16x32xf32>, vector<120x32xf32> -> vector<120x32xf32>
      %96 = arith.addf %90, %95 : vector<120x32xf32>
      %c8_i32 = arith.constant 8 : i32
      %97 = arith.addi %c8_i32, %89 : i32
      %98 = arith.index_cast %97 : i32 to index
      %c0_64 = arith.constant 0 : index
      %99 = vector.load %arg13[%98, %c0_64] : memref<1368x16xf32, #tpu.memory_space<vmem>>, vector<120x16xf32>
      %c16 = arith.constant 16 : index
      %c0_65 = arith.constant 0 : index
      %100 = vector.load %arg5[%c16, %c0_65] : memref<64x32xf32, #tpu.memory_space<vmem>>, vector<16x32xf32>
      %cst_66 = arith.constant dense<0.000000e+00> : vector<120x32xf32>
      %101 = tpu.matmul %99, %100, %cst_66 {dimension_numbers = #tpu.dot_dimension_numbers<[1], [0], [0], [1], [0, 0, 1, 1], [], []>} : vector<120x16xf32>, vector<16x32xf32>, vector<120x32xf32> -> vector<120x32xf32>
      %102 = arith.addf %96, %101 : vector<120x32xf32>
      %c47_i32 = arith.constant 47 : i32
      %103 = arith.addi %c47_i32, %89 : i32
      %104 = arith.index_cast %103 : i32 to index
      %c0_67 = arith.constant 0 : index
      %105 = vector.load %arg13[%104, %c0_67] : memref<1368x16xf32, #tpu.memory_space<vmem>>, vector<120x16xf32>
      %c32 = arith.constant 32 : index
      %c0_68 = arith.constant 0 : index
      %106 = vector.load %arg5[%c32, %c0_68] : memref<64x32xf32, #tpu.memory_space<vmem>>, vector<16x32xf32>
      %cst_69 = arith.constant dense<0.000000e+00> : vector<120x32xf32>
      %107 = tpu.matmul %105, %106, %cst_69 {dimension_numbers = #tpu.dot_dimension_numbers<[1], [0], [0], [1], [0, 0, 1, 1], [], []>} : vector<120x16xf32>, vector<16x32xf32>, vector<120x32xf32> -> vector<120x32xf32>
      %108 = arith.addf %102, %107 : vector<120x32xf32>
      %c48_i32 = arith.constant 48 : i32
      %109 = arith.addi %c48_i32, %89 : i32
      %110 = arith.index_cast %109 : i32 to index
      %c0_70 = arith.constant 0 : index
      %111 = vector.load %arg13[%110, %c0_70] : memref<1368x16xf32, #tpu.memory_space<vmem>>, vector<120x16xf32>
      %c48 = arith.constant 48 : index
      %c0_71 = arith.constant 0 : index
      %112 = vector.load %arg5[%c48, %c0_71] : memref<64x32xf32, #tpu.memory_space<vmem>>, vector<16x32xf32>
      %cst_72 = arith.constant dense<0.000000e+00> : vector<120x32xf32>
      %113 = tpu.matmul %111, %112, %cst_72 {dimension_numbers = #tpu.dot_dimension_numbers<[1], [0], [0], [1], [0, 0, 1, 1], [], []>} : vector<120x16xf32>, vector<16x32xf32>, vector<120x32xf32> -> vector<120x32xf32>
      %114 = arith.addf %108, %113 : vector<120x32xf32>
      %115 = vector.broadcast %60 : vector<1x32xf32> to vector<120x32xf32>
      %116 = arith.addf %114, %115 : vector<120x32xf32>
      %117 = vector.broadcast %81 : vector<120x1xf32> to vector<120x32xf32>
      %118 = arith.mulf %116, %117 : vector<120x32xf32>
      %c48_i32_73 = arith.constant 48 : i32
      %119 = arith.addi %c48_i32_73, %89 : i32
      %120 = arith.index_cast %119 : i32 to index
      %c0_74 = arith.constant 0 : index
      %121 = vector.load %arg14[%120, %c0_74] : memref<1416x32xf32, #tpu.memory_space<vmem>>, vector<120x32xf32>
      tpu.vector_store %arg14[%120, %c0_74], %118 {strides = array<i32>} : memref<1416x32xf32, #tpu.memory_space<vmem>>, vector<120x32xf32>,
    }
    %c11_i32_47 = arith.constant 11 : i32
    %c0_48 = arith.constant 0 : index
    %c0_49 = arith.constant 0 : index
    %83 = vector.load %arg8[%c0_48, %c0_49] : memref<1x32xf32, #tpu.memory_space<vmem>>, vector<1x32xf32>
    %c0_i32_50 = arith.constant 0 : i32
    %c11_i32_51 = arith.constant 11 : i32
    %84 = arith.addi %c0_i32_50, %c11_i32_51 : i32
    %c1_i32_52 = arith.constant 1 : i32
    scf.for %arg16 = %c0_i32_50 to %84 step %c1_i32_52  : i32 {
      %c120_i32 = arith.constant 120 : i32
      %87 = arith.muli %arg16, %c120_i32 : i32
      %c1160_i32 = arith.constant 1160 : i32
      %88 = arith.minsi %87, %c1160_i32 : i32
      %89 = tpu.assume_multiple %88, 8 : i32
      %cst_59 = arith.constant 0.000000e+00 : f32
      %90 = vector.broadcast %cst_59 : f32 to vector<120x32xf32>
      %c7_i32 = arith.constant 7 : i32
      %91 = arith.addi %c7_i32, %89 : i32
      %92 = arith.index_cast %91 : i32 to index
      %c0_60 = arith.constant 0 : index
      %93 = vector.load %arg14[%92, %c0_60] : memref<1416x32xf32, #tpu.memory_space<vmem>>, vector<120x32xf32>
      %c0_61 = arith.constant 0 : index
      %c0_62 = arith.constant 0 : index
      %94 = vector.load %arg7[%c0_61, %c0_62] : memref<512x32xf32, #tpu.memory_space<vmem>>, vector<32x32xf32>
      %cst_63 = arith.constant dense<0.000000e+00> : vector<120x32xf32>
      %95 = tpu.matmul %93, %94, %cst_63 {dimension_numbers = #tpu.dot_dimension_numbers<[1], [0], [0], [1], [0, 0, 1, 1], [], []>} : vector<120x32xf32>, vector<32x32xf32>, vector<120x32xf32> -> vector<120x32xf32>
      %96 = arith.addf %90, %95 : vector<120x32xf32>
      %c8_i32 = arith.constant 8 : i32
      %97 = arith.addi %c8_i32, %89 : i32
      %98 = arith.index_cast %97 : i32 to index
      %c0_64 = arith.constant 0 : index
      %99 = vector.load %arg14[%98, %c0_64] : memref<1416x32xf32, #tpu.memory_space<vmem>>, vector<120x32xf32>
      %c32 = arith.constant 32 : index
      %c0_65 = arith.constant 0 : index
      %100 = vector.load %arg7[%c32, %c0_65] : memref<512x32xf32, #tpu.memory_space<vmem>>, vector<32x32xf32>
      %cst_66 = arith.constant dense<0.000000e+00> : vector<120x32xf32>
      %101 = tpu.matmul %99, %100, %cst_66 {dimension_numbers = #tpu.dot_dimension_numbers<[1], [0], [0], [1], [0, 0, 1, 1], [], []>} : vector<120x32xf32>, vector<32x32xf32>, vector<120x32xf32> -> vector<120x32xf32>
      %102 = arith.addf %96, %101 : vector<120x32xf32>
      %c9_i32 = arith.constant 9 : i32
      %103 = arith.addi %c9_i32, %89 : i32
      %104 = arith.index_cast %103 : i32 to index
      %c0_67 = arith.constant 0 : index
      %105 = vector.load %arg14[%104, %c0_67] : memref<1416x32xf32, #tpu.memory_space<vmem>>, vector<120x32xf32>
      %c64 = arith.constant 64 : index
      %c0_68 = arith.constant 0 : index
      %106 = vector.load %arg7[%c64, %c0_68] : memref<512x32xf32, #tpu.memory_space<vmem>>, vector<32x32xf32>
      %cst_69 = arith.constant dense<0.000000e+00> : vector<120x32xf32>
      %107 = tpu.matmul %105, %106, %cst_69 {dimension_numbers = #tpu.dot_dimension_numbers<[1], [0], [0], [1], [0, 0, 1, 1], [], []>} : vector<120x32xf32>, vector<32x32xf32>, vector<120x32xf32> -> vector<120x32xf32>
      %108 = arith.addf %102, %107 : vector<120x32xf32>
      %c10_i32_70 = arith.constant 10 : i32
      %109 = arith.addi %c10_i32_70, %89 : i32
      %110 = arith.index_cast %109 : i32 to index
      %c0_71 = arith.constant 0 : index
      %111 = vector.load %arg14[%110, %c0_71] : memref<1416x32xf32, #tpu.memory_space<vmem>>, vector<120x32xf32>
      %c96 = arith.constant 96 : index
      %c0_72 = arith.constant 0 : index
      %112 = vector.load %arg7[%c96, %c0_72] : memref<512x32xf32, #tpu.memory_space<vmem>>, vector<32x32xf32>
      %cst_73 = arith.constant dense<0.000000e+00> : vector<120x32xf32>
      %113 = tpu.matmul %111, %112, %cst_73 {dimension_numbers = #tpu.dot_dimension_numbers<[1], [0], [0], [1], [0, 0, 1, 1], [], []>} : vector<120x32xf32>, vector<32x32xf32>, vector<120x32xf32> -> vector<120x32xf32>
      %114 = arith.addf %108, %113 : vector<120x32xf32>
      %c47_i32 = arith.constant 47 : i32
      %115 = arith.addi %c47_i32, %89 : i32
      %116 = arith.index_cast %115 : i32 to index
      %c0_74 = arith.constant 0 : index
      %117 = vector.load %arg14[%116, %c0_74] : memref<1416x32xf32, #tpu.memory_space<vmem>>, vector<120x32xf32>
      %c128 = arith.constant 128 : index
      %c0_75 = arith.constant 0 : index
      %118 = vector.load %arg7[%c128, %c0_75] : memref<512x32xf32, #tpu.memory_space<vmem>>, vector<32x32xf32>
      %cst_76 = arith.constant dense<0.000000e+00> : vector<120x32xf32>
      %119 = tpu.matmul %117, %118, %cst_76 {dimension_numbers = #tpu.dot_dimension_numbers<[1], [0], [0], [1], [0, 0, 1, 1], [], []>} : vector<120x32xf32>, vector<32x32xf32>, vector<120x32xf32> -> vector<120x32xf32>
      %120 = arith.addf %114, %119 : vector<120x32xf32>
      %c48_i32 = arith.constant 48 : i32
      %121 = arith.addi %c48_i32, %89 : i32
      %122 = arith.index_cast %121 : i32 to index
      %c0_77 = arith.constant 0 : index
      %123 = vector.load %arg14[%122, %c0_77] : memref<1416x32xf32, #tpu.memory_space<vmem>>, vector<120x32xf32>
      %c160 = arith.constant 160 : index
      %c0_78 = arith.constant 0 : index
      %124 = vector.load %arg7[%c160, %c0_78] : memref<512x32xf32, #tpu.memory_space<vmem>>, vector<32x32xf32>
      %cst_79 = arith.constant dense<0.000000e+00> : vector<120x32xf32>
      %125 = tpu.matmul %123, %124, %cst_79 {dimension_numbers = #tpu.dot_dimension_numbers<[1], [0], [0], [1], [0, 0, 1, 1], [], []>} : vector<120x32xf32>, vector<32x32xf32>, vector<120x32xf32> -> vector<120x32xf32>
      %126 = arith.addf %120, %125 : vector<120x32xf32>
      %c49_i32 = arith.constant 49 : i32
      %127 = arith.addi %c49_i32, %89 : i32
      %128 = arith.index_cast %127 : i32 to index
      %c0_80 = arith.constant 0 : index
      %129 = vector.load %arg14[%128, %c0_80] : memref<1416x32xf32, #tpu.memory_space<vmem>>, vector<120x32xf32>
      %c192 = arith.constant 192 : index
      %c0_81 = arith.constant 0 : index
      %130 = vector.load %arg7[%c192, %c0_81] : memref<512x32xf32, #tpu.memory_space<vmem>>, vector<32x32xf32>
      %cst_82 = arith.constant dense<0.000000e+00> : vector<120x32xf32>
      %131 = tpu.matmul %129, %130, %cst_82 {dimension_numbers = #tpu.dot_dimension_numbers<[1], [0], [0], [1], [0, 0, 1, 1], [], []>} : vector<120x32xf32>, vector<32x32xf32>, vector<120x32xf32> -> vector<120x32xf32>
      %132 = arith.addf %126, %131 : vector<120x32xf32>
      %c50_i32 = arith.constant 50 : i32
      %133 = arith.addi %c50_i32, %89 : i32
      %134 = arith.index_cast %133 : i32 to index
      %c0_83 = arith.constant 0 : index
      %135 = vector.load %arg14[%134, %c0_83] : memref<1416x32xf32, #tpu.memory_space<vmem>>, vector<120x32xf32>
      %c224 = arith.constant 224 : index
      %c0_84 = arith.constant 0 : index
      %136 = vector.load %arg7[%c224, %c0_84] : memref<512x32xf32, #tpu.memory_space<vmem>>, vector<32x32xf32>
      %cst_85 = arith.constant dense<0.000000e+00> : vector<120x32xf32>
      %137 = tpu.matmul %135, %136, %cst_85 {dimension_numbers = #tpu.dot_dimension_numbers<[1], [0], [0], [1], [0, 0, 1, 1], [], []>} : vector<120x32xf32>, vector<32x32xf32>, vector<120x32xf32> -> vector<120x32xf32>
      %138 = arith.addf %132, %137 : vector<120x32xf32>
      %c87_i32 = arith.constant 87 : i32
      %139 = arith.addi %c87_i32, %89 : i32
      %140 = arith.index_cast %139 : i32 to index
      %c0_86 = arith.constant 0 : index
      %141 = vector.load %arg14[%140, %c0_86] : memref<1416x32xf32, #tpu.memory_space<vmem>>, vector<120x32xf32>
      %c256 = arith.constant 256 : index
      %c0_87 = arith.constant 0 : index
      %142 = vector.load %arg7[%c256, %c0_87] : memref<512x32xf32, #tpu.memory_space<vmem>>, vector<32x32xf32>
      %cst_88 = arith.constant dense<0.000000e+00> : vector<120x32xf32>
      %143 = tpu.matmul %141, %142, %cst_88 {dimension_numbers = #tpu.dot_dimension_numbers<[1], [0], [0], [1], [0, 0, 1, 1], [], []>} : vector<120x32xf32>, vector<32x32xf32>, vector<120x32xf32> -> vector<120x32xf32>
      %144 = arith.addf %138, %143 : vector<120x32xf32>
      %c88_i32 = arith.constant 88 : i32
      %145 = arith.addi %c88_i32, %89 : i32
      %146 = arith.index_cast %145 : i32 to index
      %c0_89 = arith.constant 0 : index
      %147 = vector.load %arg14[%146, %c0_89] : memref<1416x32xf32, #tpu.memory_space<vmem>>, vector<120x32xf32>
      %c288 = arith.constant 288 : index
      %c0_90 = arith.constant 0 : index
      %148 = vector.load %arg7[%c288, %c0_90] : memref<512x32xf32, #tpu.memory_space<vmem>>, vector<32x32xf32>
      %cst_91 = arith.constant dense<0.000000e+00> : vector<120x32xf32>
      %149 = tpu.matmul %147, %148, %cst_91 {dimension_numbers = #tpu.dot_dimension_numbers<[1], [0], [0], [1], [0, 0, 1, 1], [], []>} : vector<120x32xf32>, vector<32x32xf32>, vector<120x32xf32> -> vector<120x32xf32>
      %150 = arith.addf %144, %149 : vector<120x32xf32>
      %c89_i32 = arith.constant 89 : i32
      %151 = arith.addi %c89_i32, %89 : i32
      %152 = arith.index_cast %151 : i32 to index
      %c0_92 = arith.constant 0 : index
      %153 = vector.load %arg14[%152, %c0_92] : memref<1416x32xf32, #tpu.memory_space<vmem>>, vector<120x32xf32>
      %c320 = arith.constant 320 : index
      %c0_93 = arith.constant 0 : index
      %154 = vector.load %arg7[%c320, %c0_93] : memref<512x32xf32, #tpu.memory_space<vmem>>, vector<32x32xf32>
      %cst_94 = arith.constant dense<0.000000e+00> : vector<120x32xf32>
      %155 = tpu.matmul %153, %154, %cst_94 {dimension_numbers = #tpu.dot_dimension_numbers<[1], [0], [0], [1], [0, 0, 1, 1], [], []>} : vector<120x32xf32>, vector<32x32xf32>, vector<120x32xf32> -> vector<120x32xf32>
      %156 = arith.addf %150, %155 : vector<120x32xf32>
      %c90_i32 = arith.constant 90 : i32
      %157 = arith.addi %c90_i32, %89 : i32
      %158 = arith.index_cast %157 : i32 to index
      %c0_95 = arith.constant 0 : index
      %159 = vector.load %arg14[%158, %c0_95] : memref<1416x32xf32, #tpu.memory_space<vmem>>, vector<120x32xf32>
      %c352 = arith.constant 352 : index
      %c0_96 = arith.constant 0 : index
      %160 = vector.load %arg7[%c352, %c0_96] : memref<512x32xf32, #tpu.memory_space<vmem>>, vector<32x32xf32>
      %cst_97 = arith.constant dense<0.000000e+00> : vector<120x32xf32>
      %161 = tpu.matmul %159, %160, %cst_97 {dimension_numbers = #tpu.dot_dimension_numbers<[1], [0], [0], [1], [0, 0, 1, 1], [], []>} : vector<120x32xf32>, vector<32x32xf32>, vector<120x32xf32> -> vector<120x32xf32>
      %162 = arith.addf %156, %161 : vector<120x32xf32>
      %c127_i32 = arith.constant 127 : i32
      %163 = arith.addi %c127_i32, %89 : i32
      %164 = arith.index_cast %163 : i32 to index
      %c0_98 = arith.constant 0 : index
      %165 = vector.load %arg14[%164, %c0_98] : memref<1416x32xf32, #tpu.memory_space<vmem>>, vector<120x32xf32>
      %c384 = arith.constant 384 : index
      %c0_99 = arith.constant 0 : index
      %166 = vector.load %arg7[%c384, %c0_99] : memref<512x32xf32, #tpu.memory_space<vmem>>, vector<32x32xf32>
      %cst_100 = arith.constant dense<0.000000e+00> : vector<120x32xf32>
      %167 = tpu.matmul %165, %166, %cst_100 {dimension_numbers = #tpu.dot_dimension_numbers<[1], [0], [0], [1], [0, 0, 1, 1], [], []>} : vector<120x32xf32>, vector<32x32xf32>, vector<120x32xf32> -> vector<120x32xf32>
      %168 = arith.addf %162, %167 : vector<120x32xf32>
      %c128_i32 = arith.constant 128 : i32
      %169 = arith.addi %c128_i32, %89 : i32
      %170 = arith.index_cast %169 : i32 to index
      %c0_101 = arith.constant 0 : index
      %171 = vector.load %arg14[%170, %c0_101] : memref<1416x32xf32, #tpu.memory_space<vmem>>, vector<120x32xf32>
      %c416 = arith.constant 416 : index
      %c0_102 = arith.constant 0 : index
      %172 = vector.load %arg7[%c416, %c0_102] : memref<512x32xf32, #tpu.memory_space<vmem>>, vector<32x32xf32>
      %cst_103 = arith.constant dense<0.000000e+00> : vector<120x32xf32>
      %173 = tpu.matmul %171, %172, %cst_103 {dimension_numbers = #tpu.dot_dimension_numbers<[1], [0], [0], [1], [0, 0, 1, 1], [], []>} : vector<120x32xf32>, vector<32x32xf32>, vector<120x32xf32> -> vector<120x32xf32>
      %174 = arith.addf %168, %173 : vector<120x32xf32>
      %c129_i32 = arith.constant 129 : i32
      %175 = arith.addi %c129_i32, %89 : i32
      %176 = arith.index_cast %175 : i32 to index
      %c0_104 = arith.constant 0 : index
      %177 = vector.load %arg14[%176, %c0_104] : memref<1416x32xf32, #tpu.memory_space<vmem>>, vector<120x32xf32>
      %c448 = arith.constant 448 : index
      %c0_105 = arith.constant 0 : index
      %178 = vector.load %arg7[%c448, %c0_105] : memref<512x32xf32, #tpu.memory_space<vmem>>, vector<32x32xf32>
      %cst_106 = arith.constant dense<0.000000e+00> : vector<120x32xf32>
      %179 = tpu.matmul %177, %178, %cst_106 {dimension_numbers = #tpu.dot_dimension_numbers<[1], [0], [0], [1], [0, 0, 1, 1], [], []>} : vector<120x32xf32>, vector<32x32xf32>, vector<120x32xf32> -> vector<120x32xf32>
      %180 = arith.addf %174, %179 : vector<120x32xf32>
      %c130_i32 = arith.constant 130 : i32
      %181 = arith.addi %c130_i32, %89 : i32
      %182 = arith.index_cast %181 : i32 to index
      %c0_107 = arith.constant 0 : index
      %183 = vector.load %arg14[%182, %c0_107] : memref<1416x32xf32, #tpu.memory_space<vmem>>, vector<120x32xf32>
      %c480 = arith.constant 480 : index
      %c0_108 = arith.constant 0 : index
      %184 = vector.load %arg7[%c480, %c0_108] : memref<512x32xf32, #tpu.memory_space<vmem>>, vector<32x32xf32>
      %cst_109 = arith.constant dense<0.000000e+00> : vector<120x32xf32>
      %185 = tpu.matmul %183, %184, %cst_109 {dimension_numbers = #tpu.dot_dimension_numbers<[1], [0], [0], [1], [0, 0, 1, 1], [], []>} : vector<120x32xf32>, vector<32x32xf32>, vector<120x32xf32> -> vector<120x32xf32>
      %186 = arith.addf %180, %185 : vector<120x32xf32>
      %187 = vector.broadcast %83 : vector<1x32xf32> to vector<120x32xf32>
      %188 = arith.addf %186, %187 : vector<120x32xf32>
      %c0_i32_110 = arith.constant 0 : i32
      %189 = arith.addi %c0_i32_110, %89 : i32
      %190 = arith.index_cast %189 : i32 to index
      %c0_111 = arith.constant 0 : index
      %191 = vector.load %arg15[%190, %c0_111] : memref<1288x32xf32, #tpu.memory_space<vmem>>, vector<120x32xf32>
      tpu.vector_store %arg15[%190, %c0_111], %188 {strides = array<i32>} : memref<1288x32xf32, #tpu.memory_space<vmem>>, vector<120x32xf32>,
    }
    %c11_i32_53 = arith.constant 11 : i32
    %c0_54 = arith.constant 0 : index
    %c0_55 = arith.constant 0 : index
    %85 = vector.load %arg10[%c0_54, %c0_55] : memref<1x64xf32, #tpu.memory_space<vmem>>, vector<1x64xf32>
    %c0_i32_56 = arith.constant 0 : i32
    %c10_i32 = arith.constant 10 : i32
    %86 = arith.addi %c0_i32_56, %c10_i32 : i32
    %c1_i32_57 = arith.constant 1 : i32
    scf.for %arg16 = %c0_i32_56 to %86 step %c1_i32_57  : i32 {
      %c120_i32 = arith.constant 120 : i32
      %87 = arith.muli %arg16, %c120_i32 : i32
      %c1080_i32 = arith.constant 1080 : i32
      %88 = arith.minsi %87, %c1080_i32 : i32
      %89 = tpu.assume_multiple %88, 8 : i32
      %cst_59 = arith.constant 0.000000e+00 : f32
      %90 = vector.broadcast %cst_59 : f32 to vector<120x64xf32>
      %c0_i32_60 = arith.constant 0 : i32
      %91 = arith.addi %c0_i32_60, %89 : i32
      %92 = arith.index_cast %91 : i32 to index
      %c0_61 = arith.constant 0 : index
      %93 = vector.load %arg15[%92, %c0_61] : memref<1288x32xf32, #tpu.memory_space<vmem>>, vector<120x32xf32>
      %c0_62 = arith.constant 0 : index
      %c0_63 = arith.constant 0 : index
      %94 = vector.load %arg9[%c0_62, %c0_63] : memref<288x64xf32, #tpu.memory_space<vmem>>, vector<32x64xf32>
      %cst_64 = arith.constant dense<0.000000e+00> : vector<120x64xf32>
      %95 = tpu.matmul %93, %94, %cst_64 {dimension_numbers = #tpu.dot_dimension_numbers<[1], [0], [0], [1], [0, 0, 1, 1], [], []>} : vector<120x32xf32>, vector<32x64xf32>, vector<120x64xf32> -> vector<120x64xf32>
      %96 = arith.addf %90, %95 : vector<120x64xf32>
      %c1_i32_65 = arith.constant 1 : i32
      %97 = arith.addi %c1_i32_65, %89 : i32
      %98 = arith.index_cast %97 : i32 to index
      %c0_66 = arith.constant 0 : index
      %99 = vector.load %arg15[%98, %c0_66] : memref<1288x32xf32, #tpu.memory_space<vmem>>, vector<120x32xf32>
      %c32 = arith.constant 32 : index
      %c0_67 = arith.constant 0 : index
      %100 = vector.load %arg9[%c32, %c0_67] : memref<288x64xf32, #tpu.memory_space<vmem>>, vector<32x64xf32>
      %cst_68 = arith.constant dense<0.000000e+00> : vector<120x64xf32>
      %101 = tpu.matmul %99, %100, %cst_68 {dimension_numbers = #tpu.dot_dimension_numbers<[1], [0], [0], [1], [0, 0, 1, 1], [], []>} : vector<120x32xf32>, vector<32x64xf32>, vector<120x64xf32> -> vector<120x64xf32>
      %102 = arith.addf %96, %101 : vector<120x64xf32>
      %c2_i32 = arith.constant 2 : i32
      %103 = arith.addi %c2_i32, %89 : i32
      %104 = arith.index_cast %103 : i32 to index
      %c0_69 = arith.constant 0 : index
      %105 = vector.load %arg15[%104, %c0_69] : memref<1288x32xf32, #tpu.memory_space<vmem>>, vector<120x32xf32>
      %c64 = arith.constant 64 : index
      %c0_70 = arith.constant 0 : index
      %106 = vector.load %arg9[%c64, %c0_70] : memref<288x64xf32, #tpu.memory_space<vmem>>, vector<32x64xf32>
      %cst_71 = arith.constant dense<0.000000e+00> : vector<120x64xf32>
      %107 = tpu.matmul %105, %106, %cst_71 {dimension_numbers = #tpu.dot_dimension_numbers<[1], [0], [0], [1], [0, 0, 1, 1], [], []>} : vector<120x32xf32>, vector<32x64xf32>, vector<120x64xf32> -> vector<120x64xf32>
      %108 = arith.addf %102, %107 : vector<120x64xf32>
      %c40_i32_72 = arith.constant 40 : i32
      %109 = arith.addi %c40_i32_72, %89 : i32
      %110 = arith.index_cast %109 : i32 to index
      %c0_73 = arith.constant 0 : index
      %111 = vector.load %arg15[%110, %c0_73] : memref<1288x32xf32, #tpu.memory_space<vmem>>, vector<120x32xf32>
      %c96 = arith.constant 96 : index
      %c0_74 = arith.constant 0 : index
      %112 = vector.load %arg9[%c96, %c0_74] : memref<288x64xf32, #tpu.memory_space<vmem>>, vector<32x64xf32>
      %cst_75 = arith.constant dense<0.000000e+00> : vector<120x64xf32>
      %113 = tpu.matmul %111, %112, %cst_75 {dimension_numbers = #tpu.dot_dimension_numbers<[1], [0], [0], [1], [0, 0, 1, 1], [], []>} : vector<120x32xf32>, vector<32x64xf32>, vector<120x64xf32> -> vector<120x64xf32>
      %114 = arith.addf %108, %113 : vector<120x64xf32>
      %c41_i32 = arith.constant 41 : i32
      %115 = arith.addi %c41_i32, %89 : i32
      %116 = arith.index_cast %115 : i32 to index
      %c0_76 = arith.constant 0 : index
      %117 = vector.load %arg15[%116, %c0_76] : memref<1288x32xf32, #tpu.memory_space<vmem>>, vector<120x32xf32>
      %c128 = arith.constant 128 : index
      %c0_77 = arith.constant 0 : index
      %118 = vector.load %arg9[%c128, %c0_77] : memref<288x64xf32, #tpu.memory_space<vmem>>, vector<32x64xf32>
      %cst_78 = arith.constant dense<0.000000e+00> : vector<120x64xf32>
      %119 = tpu.matmul %117, %118, %cst_78 {dimension_numbers = #tpu.dot_dimension_numbers<[1], [0], [0], [1], [0, 0, 1, 1], [], []>} : vector<120x32xf32>, vector<32x64xf32>, vector<120x64xf32> -> vector<120x64xf32>
      %120 = arith.addf %114, %119 : vector<120x64xf32>
      %c42_i32 = arith.constant 42 : i32
      %121 = arith.addi %c42_i32, %89 : i32
      %122 = arith.index_cast %121 : i32 to index
      %c0_79 = arith.constant 0 : index
      %123 = vector.load %arg15[%122, %c0_79] : memref<1288x32xf32, #tpu.memory_space<vmem>>, vector<120x32xf32>
      %c160 = arith.constant 160 : index
      %c0_80 = arith.constant 0 : index
      %124 = vector.load %arg9[%c160, %c0_80] : memref<288x64xf32, #tpu.memory_space<vmem>>, vector<32x64xf32>
      %cst_81 = arith.constant dense<0.000000e+00> : vector<120x64xf32>
      %125 = tpu.matmul %123, %124, %cst_81 {dimension_numbers = #tpu.dot_dimension_numbers<[1], [0], [0], [1], [0, 0, 1, 1], [], []>} : vector<120x32xf32>, vector<32x64xf32>, vector<120x64xf32> -> vector<120x64xf32>
      %126 = arith.addf %120, %125 : vector<120x64xf32>
      %c80_i32 = arith.constant 80 : i32
      %127 = arith.addi %c80_i32, %89 : i32
      %128 = arith.index_cast %127 : i32 to index
      %c0_82 = arith.constant 0 : index
      %129 = vector.load %arg15[%128, %c0_82] : memref<1288x32xf32, #tpu.memory_space<vmem>>, vector<120x32xf32>
      %c192 = arith.constant 192 : index
      %c0_83 = arith.constant 0 : index
      %130 = vector.load %arg9[%c192, %c0_83] : memref<288x64xf32, #tpu.memory_space<vmem>>, vector<32x64xf32>
      %cst_84 = arith.constant dense<0.000000e+00> : vector<120x64xf32>
      %131 = tpu.matmul %129, %130, %cst_84 {dimension_numbers = #tpu.dot_dimension_numbers<[1], [0], [0], [1], [0, 0, 1, 1], [], []>} : vector<120x32xf32>, vector<32x64xf32>, vector<120x64xf32> -> vector<120x64xf32>
      %132 = arith.addf %126, %131 : vector<120x64xf32>
      %c81_i32 = arith.constant 81 : i32
      %133 = arith.addi %c81_i32, %89 : i32
      %134 = arith.index_cast %133 : i32 to index
      %c0_85 = arith.constant 0 : index
      %135 = vector.load %arg15[%134, %c0_85] : memref<1288x32xf32, #tpu.memory_space<vmem>>, vector<120x32xf32>
      %c224 = arith.constant 224 : index
      %c0_86 = arith.constant 0 : index
      %136 = vector.load %arg9[%c224, %c0_86] : memref<288x64xf32, #tpu.memory_space<vmem>>, vector<32x64xf32>
      %cst_87 = arith.constant dense<0.000000e+00> : vector<120x64xf32>
      %137 = tpu.matmul %135, %136, %cst_87 {dimension_numbers = #tpu.dot_dimension_numbers<[1], [0], [0], [1], [0, 0, 1, 1], [], []>} : vector<120x32xf32>, vector<32x64xf32>, vector<120x64xf32> -> vector<120x64xf32>
      %138 = arith.addf %132, %137 : vector<120x64xf32>
      %c82_i32 = arith.constant 82 : i32
      %139 = arith.addi %c82_i32, %89 : i32
      %140 = arith.index_cast %139 : i32 to index
      %c0_88 = arith.constant 0 : index
      %141 = vector.load %arg15[%140, %c0_88] : memref<1288x32xf32, #tpu.memory_space<vmem>>, vector<120x32xf32>
      %c256 = arith.constant 256 : index
      %c0_89 = arith.constant 0 : index
      %142 = vector.load %arg9[%c256, %c0_89] : memref<288x64xf32, #tpu.memory_space<vmem>>, vector<32x64xf32>
      %cst_90 = arith.constant dense<0.000000e+00> : vector<120x64xf32>
      %143 = tpu.matmul %141, %142, %cst_90 {dimension_numbers = #tpu.dot_dimension_numbers<[1], [0], [0], [1], [0, 0, 1, 1], [], []>} : vector<120x32xf32>, vector<32x64xf32>, vector<120x64xf32> -> vector<120x64xf32>
      %144 = arith.addf %138, %143 : vector<120x64xf32>
      %145 = vector.broadcast %85 : vector<1x64xf32> to vector<120x64xf32>
      %146 = arith.addf %144, %145 : vector<120x64xf32>
      %cst_91 = arith.constant 0.000000e+00 : f32
      %147 = vector.broadcast %cst_91 : f32 to vector<120x64xf32>
      %148 = arith.maximumf %146, %147 : vector<120x64xf32>
      %c0_i32_92 = arith.constant 0 : i32
      %149 = arith.addi %c0_i32_92, %89 : i32
      %150 = arith.index_cast %149 : i32 to index
      %c0_93 = arith.constant 0 : index
      %151 = vector.load %arg11[%150, %c0_93] : memref<1200x64xf32, #tpu.memory_space<vmem>>, vector<120x64xf32>
      tpu.vector_store %arg11[%150, %c0_93], %148 {strides = array<i32>} : memref<1200x64xf32, #tpu.memory_space<vmem>>, vector<120x64xf32>,
    }
    %c10_i32_58 = arith.constant 10 : i32
    return
  }
}

</mosaic_0001>

<bundles_post_ra>
// kernel: forward.1
= control target key start
LH: loop header
LB: loop body
LE: loop exit
PB: predicated region body
PF: predicated region fallthrough
CT: control target
= control target key end

     0   :  { %vm21861_vm0 = vcmask 64512   ;;  %v88_v0 = vlaneseq  ;;  %vm21860_vm1 = vcmask 130048   ;;  %v21862_v1 = vmov 0.0   ;;  %s21847_s0 = inlined_call_operand.vmem [shape: f32[1288,1], index: 0, kind: input, shape index: {}]   ;;  %s21848_s1 = inlined_call_operand.vmem [shape: f32[4,8], index: 1, kind: input, shape index: {}]   ;;  %s21849_s2 = inlined_call_operand.vmem [shape: f32[1,8], index: 2, kind: input, shape index: {}]   ;;  %s21850_s3 = inlined_call_operand.vmem [shape: f32[128,16], index: 3, kind: input, shape index: {}]   ;;  %s21851_s4 = inlined_call_operand.vmem [shape: f32[1,16], index: 4, kind: input, shape index: {}]   ;;  %s21852_s5 = inlined_call_operand.vmem [shape: f32[64,32], index: 5, kind: input, shape index: {}]   ;;  %s21853_s6 = inlined_call_operand.vmem [shape: f32[1,32], index: 6, kind: input, shape index: {}]   ;;  %s21854_s7 = inlined_call_operand.vmem [shape: f32[512,32], index: 7, kind: input, shape index: {}]   ;;  %s21855_s8 = inlined_call_operand.vmem [shape: f32[1,32], index: 8, kind: input, shape index: {}]   ;;  %s21856_s9 = inlined_call_operand.vmem [shape: f32[288,64], index: 9, kind: input, shape index: {}]   ;;  %s21857_s10 = inlined_call_operand.vmem [shape: f32[1,64], index: 10, kind: input, shape index: {}]   ;;  %s21858_s11 = inlined_call_operand.vmem [shape: f32[1200,64], index: 11, kind: output, shape index: {}]  }
   0x1   :  { %39 = vst.msk [vmem:[#allocation2] sm:$0xff] %vm21861_vm0, %v21862_v1  ;;  %40 = vst.msk [vmem:[#allocation2 + $0x8] sm:$0xff] %vm21861_vm0, %v21862_v1  ;;  %v16145_v2 = vld [vmem:[%s21849_s2] ss:$0 sm:$0xff]  ;;  %vm21859_vm2 = vcmask 261120   ;;  %s16581_s2 = smov 0  }
   0x2   :  { %41 = vst.msk [vmem:[#allocation2 + $0x10] sm:$0xff] %vm21861_vm0, %v21862_v1  ;;  %42 = vst.msk [vmem:[#allocation2 + $0x18] sm:$0xff] %vm21861_vm0, %v21862_v1  ;;  %v89_v3 = vshrl.u32 %v88_v0, 7 }
   0x3   :  { %43 = vst.msk [vmem:[#allocation2 + $0x20] sm:$0xff] %vm21861_vm0, %v21862_v1  ;;  %44 = vst.msk [vmem:[#allocation2 + $0x28] sm:$0xff] %vm21861_vm0, %v21862_v1 }
   0x4   :  { %45 = vst.msk [vmem:[#allocation2 + $0x30] sm:$0xff] %vm21861_vm0, %v21862_v1  ;;  %46 = vst.msk [vmem:[#allocation2 + $0x38] sm:$0xff] %vm21861_vm0, %v21862_v1  ;;  %v90_v4 = vadd.s32 8, %v89_v3  ;;  %v91_v5 = vadd.s32 16, %v89_v3  ;;  %v92_v6 = vadd.s32 24, %v89_v3  ;;  %v93_v7 = vadd.s32 32, %v89_v3 }
   0x5   :  { %47 = vst.msk [vmem:[#allocation2 + $0x40] sm:$0xff] %vm21861_vm0, %v21862_v1  ;;  %48 = vst.msk [vmem:[#allocation2 + $0x48] sm:$0xff] %vm21861_vm0, %v21862_v1  ;;  %v94_v8 = vadd.s32 40, %v89_v3  ;;  %v95_v9 = vadd.s32 48, %v89_v3  ;;  %v96_v10 = vadd.s32 56, %v89_v3  ;;  %v97_v11 = vadd.s32 64, %v89_v3 }
   0x6   :  { %49 = vst.msk [vmem:[#allocation2 + $0x50] sm:$0xff] %vm21861_vm0, %v21862_v1  ;;  %50 = vst.msk [vmem:[#allocation2 + $0x530] sm:$0xff] %vm21861_vm0, %v21862_v1  ;;  %v16195_v12 = vadd.s32 72, %v89_v3  ;;  %v16197_v13 = vadd.s32 80, %v89_v3  ;;  %v16199_v14 = vadd.s32 88, %v89_v3  ;;  %v16201_v15 = vadd.s32 96, %v89_v3 }
   0x7   :  { %51 = vst.msk [vmem:[#allocation2 + $0x538] sm:$0xff] %vm21861_vm0, %v21862_v1  ;;  %52 = vst.msk [vmem:[#allocation2 + $0x540] sm:$0xff] %vm21861_vm0, %v21862_v1  ;;  %v16203_v16 = vmul.u32.u64.low 3435973837, %v89_v3  ;;  %v16204_v17 = vmul.u32.u64.high 3435973837, %v89_v3, %v16203_v16  ;;  %v16206_v18 = vmul.u32.u64.low 3435973837, %v90_v4  ;;  %v16207_v19 = vmul.u32.u64.high 3435973837, %v90_v4, %v16206_v18 }
   0x8   :  { %53 = vst.msk [vmem:[#allocation2 + $0x548] sm:$0xff] %vm21861_vm0, %v21862_v1  ;;  %54 = vst.msk [vmem:[#allocation2 + $0x550] sm:$0xff] %vm21861_vm0, %v21862_v1  ;;  %v16209_v20 = vmul.u32.u64.low 3435973837, %v91_v5  ;;  %v16210_v21 = vmul.u32.u64.high 3435973837, %v91_v5, %v16209_v20  ;;  %v16212_v22 = vmul.u32.u64.low 3435973837, %v92_v6  ;;  %v16213_v23 = vmul.u32.u64.high 3435973837, %v92_v6, %v16212_v22 }
   0x9   :  { %55 = vst.msk [vmem:[#allocation2 + $0x558] sm:$0xff] %vm21861_vm0, %v21862_v1  ;;  %56 = vst.msk [vmem:[#allocation2 + $0x560] sm:$0xff] %vm21861_vm0, %v21862_v1  ;;  %v16215_v24 = vmul.u32.u64.low 3435973837, %v93_v7  ;;  %v16216_v25 = vmul.u32.u64.high 3435973837, %v93_v7, %v16215_v24  ;;  %v16218_v26 = vmul.u32.u64.low 3435973837, %v94_v8  ;;  %v16219_v27 = vmul.u32.u64.high 3435973837, %v94_v8, %v16218_v26 }
   0xa   :  { %57 = vst.msk [vmem:[#allocation2 + $0x568] sm:$0xff] %vm21861_vm0, %v21862_v1  ;;  %58 = vst.msk [vmem:[#allocation2 + $0x570] sm:$0xff] %vm21861_vm0, %v21862_v1  ;;  %v16221_v28 = vmul.u32.u64.low 3435973837, %v95_v9  ;;  %v16222_v29 = vmul.u32.u64.high 3435973837, %v95_v9, %v16221_v28  ;;  %v16224_v30 = vadd.s32 104, %v89_v3  ;;  %v110_v31 = vshrl.u32 %v16204_v17, 5 }
   0xb   :  { %59 = vst.msk [vmem:[#allocation2 + $0x578] sm:$0xff] %vm21861_vm0, %v21862_v1  ;;  %60 = vst.msk [vmem:[#allocation2 + $0x580] sm:$0xff] %vm21861_vm0, %v21862_v1  ;;  %v16227_v32 = vmul.u32.u64.low 3435973837, %v96_v10  ;;  %v16228_v33 = vmul.u32.u64.high 3435973837, %v96_v10, %v16227_v32  ;;  %v121_v34 = vshrl.u32 %v16207_v19, 5  ;;  %v132_v35 = vshrl.u32 %v16210_v21, 5 }
   0xc   :  { %62 = vst.msk [vmem:[#allocation3] sm:$0xff] %vm21860_vm1, %v21862_v1  ;;  %63 = vst.msk [vmem:[#allocation3 + $0x8] sm:$0xff] %vm21860_vm1, %v21862_v1  ;;  %v16232_v36 = vmul.u32.u64.low 3435973837, %v97_v11  ;;  %v16233_v37 = vmul.u32.u64.high 3435973837, %v97_v11, %v16232_v36  ;;  %v16235_v38 = vadd.s32 112, %v89_v3  ;;  %v111_v39 = vmul.u32 40, %v110_v31 }
   0xd   :  { %64 = vst.msk [vmem:[#allocation3 + $0x10] sm:$0xff] %vm21860_vm1, %v21862_v1  ;;  %65 = vst.msk [vmem:[#allocation3 + $0x18] sm:$0xff] %vm21860_vm1, %v21862_v1  ;;  %v143_v40 = vshrl.u32 %v16213_v23, 5  ;;  %v154_v41 = vshrl.u32 %v16216_v25, 5  ;;  %v122_v42 = vmul.u32 40, %v121_v34  ;;  %v133_v43 = vmul.u32 40, %v132_v35 }
   0xe   :  { %66 = vst.msk [vmem:[#allocation3 + $0x20] sm:$0xff] %vm21860_vm1, %v21862_v1  ;;  %67 = vst.msk [vmem:[#allocation3 + $0x28] sm:$0xff] %vm21860_vm1, %v21862_v1  ;;  %v165_v44 = vshrl.u32 %v16219_v27, 5  ;;  %v176_v45 = vshrl.u32 %v16222_v29, 5  ;;  %v16241_v46 = vsub.s32 %v89_v3, %v111_v39  ;;  %v187_v49 = vshrl.u32 %v16228_v33, 5 }
   0xf   :  { %68 = vst.msk [vmem:[#allocation3 + $0x530] sm:$0xff] %vm21860_vm1, %v21862_v1  ;;  %69 = vst.msk [vmem:[#allocation3 + $0x538] sm:$0xff] %vm21860_vm1, %v21862_v1  ;;  %v144_v47 = vmul.u32 40, %v143_v40  ;;  %v155_v48 = vmul.u32 40, %v154_v41  ;;  %v16244_v50 = vsub.s32 %v90_v4, %v122_v42  ;;  %v16246_v51 = vsub.s32 %v91_v5, %v133_v43 }
  0x10   :  { %70 = vst.msk [vmem:[#allocation3 + $0x540] sm:$0xff] %vm21860_vm1, %v21862_v1  ;;  %71 = vst.msk [vmem:[#allocation3 + $0x548] sm:$0xff] %vm21860_vm1, %v21862_v1  ;;  %v166_v52 = vmul.u32 40, %v165_v44  ;;  %v177_v53 = vmul.u32 40, %v176_v45  ;;  %v198_v57 = vshrl.u32 %v16233_v37, 5  ;;  %vm269_vm3 = vcmp.ne.s32.totalorder %v16241_v46, 0 }
  0x11   :  { %72 = vst.msk [vmem:[#allocation3 + $0x550] sm:$0xff] %vm21860_vm1, %v21862_v1  ;;  %v16248_v54 = vsub.s32 %v92_v6, %v144_v47  ;;  %v16250_v55 = vsub.s32 %v93_v7, %v155_v48  ;;  %v188_v56 = vmul.u32 40, %v187_v49  ;;  %vm270_vm4 = vcmp.ne.s32.totalorder %v16244_v50, 0 }
  0x12   :  { %74 = vst.msk [vmem:[#allocation4] sm:$0xff] %vm21859_vm2, %v21862_v1  ;;  %75 = vst.msk [vmem:[#allocation4 + $0x8] sm:$0xff] %vm21859_vm2, %v21862_v1  ;;  %v16253_v58 = vsub.s32 %v94_v8, %v166_v52  ;;  %v16255_v59 = vsub.s32 %v95_v9, %v177_v53  ;;  %v16258_v60 = vmul.u32.u64.low 3435973837, %v16195_v12  ;;  %v16259_v61 = vmul.u32.u64.high 3435973837, %v16195_v12, %v16258_v60 }
  0x13   :  { %76 = vst.msk [vmem:[#allocation4 + $0x10] sm:$0xff] %vm21859_vm2, %v21862_v1  ;;  %77 = vst.msk [vmem:[#allocation4 + $0x18] sm:$0xff] %vm21859_vm2, %v21862_v1  ;;  %v16261_v62 = vsub.s32 %v96_v10, %v188_v56  ;;  %v199_v63 = vmul.u32 40, %v198_v57  ;;  %v16264_v0 = vmul.u32.u64.low 3435973837, %v16197_v13  ;;  %v16265_v3 = vmul.u32.u64.high 3435973837, %v16197_v13, %v16264_v0 }
  0x14   :  { %78 = vst.msk [vmem:[#allocation4 + $0x20] sm:$0xff] %vm21859_vm2, %v21862_v1  ;;  %79 = vst.msk [vmem:[#allocation4 + $0x28] sm:$0xff] %vm21859_vm2, %v21862_v1  ;;  %v16268_v4 = vmul.u32.u64.low 3435973837, %v16199_v14  ;;  %v16269_v5 = vmul.u32.u64.high 3435973837, %v16199_v14, %v16268_v4  ;;  %v16272_v6 = vmul.u32.u64.low 3435973837, %v16201_v15  ;;  %v16273_v7 = vmul.u32.u64.high 3435973837, %v16201_v15, %v16272_v6 }
  0x15   :  { %80 = vst.msk [vmem:[#allocation4 + $0x558] sm:$0xff] %vm21859_vm2, %v21862_v1  ;;  %81 = vst.msk [vmem:[#allocation4 + $0x560] sm:$0xff] %vm21859_vm2, %v21862_v1  ;;  %v16275_v8 = vsub.s32 %v97_v11, %v199_v63  ;;  %v16278_v9 = vmul.u32.u64.low 3435973837, %v16224_v30  ;;  %v16279_v16 = vmul.u32.u64.high 3435973837, %v16224_v30, %v16278_v9  ;;  %v209_v10 = vshrl.u32 %v16259_v61, 5 }
  0x16   :  { %82 = vst.msk [vmem:[#allocation4 + $0x568] sm:$0xff] %vm21859_vm2, %v21862_v1  ;;  %83 = vst.msk [vmem:[#allocation4 + $0x570] sm:$0xff] %vm21859_vm2, %v21862_v1  ;;  %v16284_v17 = vmul.u32.u64.low 3435973837, %v16235_v38  ;;  %v16285_v18 = vmul.u32.u64.high 3435973837, %v16235_v38, %v16284_v17  ;;  %v220_v19 = vshrl.u32 %v16265_v3, 5  ;;  %vm271_vm5 = vcmp.ne.s32.totalorder %v16246_v51, 0 }
  0x17   :  { %84 = vst.msk [vmem:[#allocation4 + $0x578] sm:$0xff] %vm21859_vm2, %v21862_v1  ;;  %85 = vst.msk [vmem:[#allocation4 + $0x580] sm:$0xff] %vm21859_vm2, %v21862_v1  ;;  %vm272_vm6 = vcmp.ne.s32.totalorder %v16248_v54, 0  ;;  %vm273_vm7 = vcmp.ne.s32.totalorder %v16250_v55, 0  ;;  %v210_v11 = vmul.u32 40, %v209_v10  ;;  %v231_v20 = vshrl.u32 %v16269_v5, 5 }
  0x18   :  { %86 = vst.msk [vmem:[#allocation5 + $0x500] sm:$0xff] %vm21859_vm2, %v21862_v1  ;;  %v242_v21 = vshrl.u32 %v16273_v7, 5  ;;  %v221_v22 = vmul.u32 40, %v220_v19  ;;  %v253_v23 = vshrl.u32 %v16279_v16, 5  ;;  %v264_v27 = vshrl.u32 %v16285_v18, 5 }
  0x19   :  { %v16299_v24 = vsub.s32 %v16195_v12, %v210_v11  ;;  %v232_v25 = vmul.u32 40, %v231_v20  ;;  %vm284_vm12 = vcmp.lt.s32.totalorder %v16241_v46, 0  ;;  %vm285_vm15 = vcmp.lt.s32.totalorder %v16244_v50, 0 }
  0x1a   :  { %v243_v26 = vmul.u32 40, %v242_v21  ;;  %v16303_v28 = vsub.s32 %v16197_v13, %v221_v22  ;;  %v254_v29 = vmul.u32 40, %v253_v23  ;;  %vm286_vm2 = vcmp.lt.s32.totalorder %v16246_v51, 0  ;;  %vm16322_vm1 = vmand %vm284_vm12, %vm269_vm3 }
  0x1b   :  { %v16308_v31 = vsub.s32 %v16199_v14, %v232_v25  ;;  %v265_v12 = vmul.u32 40, %v264_v27  ;;  %vm287_vm11 = vcmp.lt.s32.totalorder %v16248_v54, 0  ;;  %vm16334_vm14 = vmand %vm285_vm15, %vm270_vm4  ;;  %vm288_vm12 = vcmp.lt.s32.totalorder %v16250_v55, 0 }
  0x1c   :  { %v16311_v32 = vsub.s32 %v16201_v15, %v243_v26  ;;  %v16315_v33 = vsub.s32 %v16224_v30, %v254_v29  ;;  %vm289_vm10 = vcmp.lt.s32.totalorder %v16253_v58, 0  ;;  %vm16344_vm0 = vmand %vm286_vm2, %vm271_vm5  ;;  %vm292_vm15 = vcmp.lt.s32.totalorder %v16275_v8, 0 }
  0x1d   :  { %v16327_v14 = vsub.s32 %v16235_v38, %v265_v12  ;;  %vm16354_vm8 = vmand %vm287_vm11, %vm272_vm6  ;;  %vm294_vm9 = vcmp.lt.s32.totalorder %v16303_v28, 0  ;;  %vm295_vm2 = vcmp.lt.s32.totalorder %v16308_v31, 0  ;;  %vm21890_vm6 = vcmp.ne.s32.totalorder %v16253_v58, 0 }
  0x1e   :  { %vm16364_vm4 = vmand %vm288_vm12, %vm273_vm7  ;;  %v314_v37 = vadd.s32 40, %v16241_v46  ;;  %v315_v38 = vadd.s32 40, %v16244_v50  ;;  %v316_v39 = vadd.s32 40, %v16246_v51  ;;  %vm21893_vm13 = vcmp.ne.s32.totalorder %v16255_v59, 0 }
  0x1f   :  { %vm16371_vm11 = vmand %vm289_vm10, %vm21890_vm6  ;;  %vm21894_vm7 = vcmp.lt.s32.totalorder %v16255_v59, 0  ;;  %v317_v41 = vadd.s32 40, %v16248_v54  ;;  %v318_v42 = vadd.s32 40, %v16250_v55  ;;  %v319_v43 = vadd.s32 40, %v16253_v58 }
  0x20   :  { %vm16382_vm12 = vmand %vm21894_vm7, %vm21893_vm13  ;;  %v320_v44 = vadd.s32 40, %v16255_v59  ;;  %vm21897_vm10 = vcmp.ne.s32.totalorder %v16261_v62, 0  ;;  %vm21898_vm6 = vcmp.lt.s32.totalorder %v16261_v62, 0  ;;  %v321_v47 = vadd.s32 40, %v16261_v62 }
  0x21   :  { %vm16394_vm3 = vmand %vm21898_vm6, %vm21897_vm10  ;;  %v322_v48 = vadd.s32 40, %v16275_v8  ;;  %v323_v49 = vadd.s32 40, %v16299_v24  ;;  %v324_v52 = vadd.s32 40, %v16303_v28  ;;  %vm21901_vm13 = vcmp.ne.s32.totalorder %v16275_v8, 0 }
  0x22   :  { %vm16406_vm7 = vmand %vm292_vm15, %vm21901_vm13  ;;  %v325_v56 = vadd.s32 40, %v16308_v31  ;;  %v326_v57 = vadd.s32 40, %v16311_v32  ;;  %v327_v60 = vadd.s32 40, %v16315_v33  ;;  %v328_v61 = vadd.s32 40, %v16327_v14 }
  0x23   :  { %vm21904_vm10 = vcmp.ne.s32.totalorder %v16299_v24, 0  ;;  %vm21905_vm6 = vcmp.lt.s32.totalorder %v16299_v24, 0  ;;  %v16421_v63 = vsel %vm16322_vm1, %v314_v37, %v16241_v46  ;;  %v16426_v0 = vsel %vm16334_vm14, %v315_v38, %v16244_v50 }
  0x24   :  { %vm308_vm5 = vmand %vm21905_vm6, %vm21904_vm10  ;;  %21906 = vst [vmem:[#allocation6_spill] sm:$0xff] %v16421_v63  ;;  %v16431_v3 = vsel %vm16344_vm0, %v316_v39, %v16246_v51  ;;  %v16436_v4 = vsel %vm16354_vm8, %v317_v41, %v16248_v54  ;;  %vm21910_vm15 = vcmp.ne.s32.totalorder %v16303_v28, 0  ;;  %v16445_v46 = vsel %vm16364_vm4, %v318_v42, %v16250_v55 }
  0x25   :  { %21907 = vst [vmem:[#allocation7_spill] sm:$0xff] %v16426_v0  ;;  %21908 = vst [vmem:[#allocation8_spill] sm:$0xff] %v16431_v3  ;;  %v16450_v50 = vsel %vm16371_vm11, %v319_v43, %v16253_v58  ;;  %v16455_v51 = vsel %vm16382_vm12, %v320_v44, %v16255_v59  ;;  %v16460_v54 = vsel %vm16394_vm3, %v321_v47, %v16261_v62  ;;  %vm21915_vm0 = vcmp.ne.s32.totalorder %v16308_v31, 0 }
  0x26   :  { %21909 = vst [vmem:[#allocation9_spill] sm:$0xff] %v16436_v4  ;;  %vm309_vm1 = vmand %vm294_vm9, %vm21910_vm15  ;;  %v16469_v55 = vsel %vm16406_vm7, %v322_v48, %v16275_v8  ;;  %v16472_v58 = vsel %vm308_vm5, %v323_v49, %v16299_v24  ;;  %vm344_vm9 = vcmp.lt.s32.totalorder %v16421_v63, 31  ;;  %vm21919_vm14 = vcmp.ne.s32.totalorder %v16311_v32, 0 }
  0x27   :  { %21911 = vst [vmem:[#allocation10_spill] sm:$0xff] %v16445_v46  ;;  %21912 = vst [vmem:[#allocation11_spill] sm:$0xff] %v16450_v50  ;;  %v16475_v59 = vsel %vm309_vm1, %v324_v52, %v16303_v28  ;;  %vm21920_vm3 = vcmp.lt.s32.totalorder %v16311_v32, 0  ;;  %vm346_vm11 = vcmp.lt.s32.totalorder %v16431_v3, 31  ;;  %vm347_vm5 = vcmp.lt.s32.totalorder %v16436_v4, 31 }
  0x28   :  { %21913 = vst [vmem:[#allocation12_spill] sm:$0xff] %v16455_v51  ;;  %21914 = vst [vmem:[#allocation13_spill] sm:$0xff] %v16460_v54  ;;  %vm21922_vm12 = vcmp.ne.s32.totalorder %v16315_v33, 0  ;;  %vm21923_vm13 = vcmp.lt.s32.totalorder %v16315_v33, 0  ;;  %vm348_vm10 = vcmp.lt.s32.totalorder %v16445_v46, 31  ;;  %vm349_vm6 = vcmp.lt.s32.totalorder %v16450_v50, 31 }
  0x29   :  { %vm310_vm8 = vmand %vm295_vm2, %vm21915_vm0  ;;  %21916 = vst [vmem:[#allocation14_spill] sm:$0xff] %v16469_v55  ;;  %vm345_vm2 = vcmp.lt.s32.totalorder %v16426_v0, 31  ;;  %vm21925_vm1 = vcmp.ne.s32.totalorder %v16327_v14, 0  ;;  %vm21926_vm0 = vcmp.lt.s32.totalorder %v16327_v14, 0  ;;  %v16519_v8 = vsel %vm344_vm9, 1.0, %v21862_v1 }
  0x2a   :  { %21917 = vst [vmem:[#allocation15_spill] sm:$0xff] %v16472_v58  ;;  %21918 = vst [vmem:[#allocation16_spill] sm:$0xff] %v16475_v59  ;;  %v16483_v62 = vsel %vm310_vm8, %v325_v56, %v16308_v31  ;;  %v16524_v9 = vsel %vm345_vm2, 1.0, %v21862_v1  ;;  %v16529_v16 = vsel %vm346_vm11, 1.0, %v21862_v1  ;;  %v16534_v10 = vsel %vm347_vm5, 1.0, %v21862_v1 }
  0x2b   :  { %vm311_vm4 = vmand %vm21920_vm3, %vm21919_vm14  ;;  %21921 = vst [vmem:[#allocation17_spill] sm:$0xff] %v16483_v62  ;;  %vm351_vm14 = vcmp.lt.s32.totalorder %v16460_v54, 31  ;;  %vm352_vm3 = vcmp.lt.s32.totalorder %v16469_v55, 31  ;;  %v16539_v17 = vsel %vm348_vm10, 1.0, %v21862_v1  ;;  %v16544_v18 = vsel %vm349_vm6, 1.0, %v21862_v1 }
  0x2c   :  { %vm312_vm7 = vmand %vm21923_vm13, %vm21922_vm12  ;;  %v16493_v5 = vsel %vm311_vm4, %v326_v57, %v16311_v32  ;;  %vm353_vm4 = vcmp.lt.s32.totalorder %v16472_v58, 31  ;;  %vm354_vm12 = vcmp.lt.s32.totalorder %v16475_v59, 31  ;;  %vm355_vm13 = vcmp.lt.s32.totalorder %v16483_v62, 31 }
  0x2d   :  { %21924 = vst [vmem:[#allocation18_spill] sm:$0xff] %v16493_v5  ;;  %vm313_vm8 = vmand %vm21926_vm0, %vm21925_vm1  ;;  %v16503_v6 = vsel %vm312_vm7, %v327_v60, %v16315_v33  ;;  %vm356_vm15 = vcmp.lt.s32.totalorder %v16493_v5, 31  ;;  %vm21929_vm9 = vcmp.lt.s32.totalorder %v16455_v51, 31  ;;  %v16554_v11 = vsel %vm351_vm14, 1.0, %v21862_v1 }
  0x2e   :  { %21927 = vst [vmem:[#allocation19_spill] sm:$0xff] %v16503_v6  ;;  %v16509_v7 = vsel %vm313_vm8, %v328_v61, %v16327_v14  ;;  %vm357_vm1 = vcmp.lt.s32.totalorder %v16503_v6, 31  ;;  %v16549_v19 = vsel %vm21929_vm9, 1.0, %v21862_v1  ;;  %21930 = vst [vmem:[#allocation21_spill] sm:$0xff] %v16554_v11  ;;  %v16559_v20 = vsel %vm352_vm3, 1.0, %v21862_v1 }
  0x2f   :  { %21928 = vst [vmem:[#allocation20_spill] sm:$0xff] %v16509_v7  ;;  %vm358_vm7 = vcmp.lt.s32.totalorder %v16509_v7, 31  ;;  %21931 = vst [vmem:[#allocation22_spill] sm:$0xff] %v16559_v20  ;;  %v16564_v21 = vsel %vm353_vm4, 1.0, %v21862_v1  ;;  %v16567_v22 = vsel %vm354_vm12, 1.0, %v21862_v1  ;;  %v16570_v23 = vsel %vm355_vm13, 1.0, %v21862_v1 }
  0x30   :  { %21932 = vst [vmem:[#allocation23_spill] sm:$0xff] %v16564_v21  ;;  %21933 = vst [vmem:[#allocation24_spill] sm:$0xff] %v16567_v22  ;;  %v16573_v24 = vsel %vm356_vm15, 1.0, %v21862_v1  ;;  %v16576_v25 = vsel %vm357_vm1, 1.0, %v21862_v1  ;;  %v16579_v26 = vsel %vm358_vm7, 1.0, %v21862_v1 }
  0x31   :  { %21934 = vst [vmem:[#allocation25_spill] sm:$0xff] %v16570_v23  ;;  %21935 = vst [vmem:[#allocation26_spill] sm:$0xff] %v16573_v24 }
  0x32   :  { %21936 = vst [vmem:[#allocation27_spill] sm:$0xff] %v16576_v25  ;;  %21937 = vst [vmem:[#allocation28_spill] sm:$0xff] %v16579_v26 }
  0x33 LB: > { %v16026_v27 = vmov 0   ;;  %s395_s19 = smul.u32 120, %s16007_s2  ;;  %v16668_v54 = vld [vmem:[%s21848_s1 + $0x1] ss:$0 sm:$0xff]  ;;  %v11198_v46 = vld [vmem:[%s21848_s1] ss:$0 sm:$0xff]  ;;  %s16007_s2 = sphi %s16581_s2, %s394_s2  }
  0x34   : > { %15984 = vset.pattern.permute.xlu1 %v16026_v27  ;;  %15983 = vset.pattern.permute.xlu0 %v16026_v27  ;;  %v16680_v4 = vld [vmem:[%s21848_s1 + $0x2] ss:$0 sm:$0xff]  ;;  %v16692_v11 = vld [vmem:[%s21848_s1 + $0x3] ss:$0 sm:$0xff]  ;;  %vm21943_vm2 = vcmask 64512   ;;  %s394_s2 = sadd.s32 1, %s16007_s2  }
  0x35   : > { %p396_p0 = scmp.lt.s32.totalorder %s395_s19, 1120  ;;  %vm21944_vm11 = vmmov %vm21943_vm2  ;;  %p391_p1 = scmp.ge.s32.totalorder %s394_s2, 11  }
  0x36   : > { %vm21945_vm5 = vmmov %vm21943_vm2 }
  0x37   : > { %s22700_s19 = smov (!%p396_p0, %s395_s19), 1120  ;;  %vm21946_vm10 = vmmov %vm21943_vm2 }
  0x38   : > { %s16593_s22 = scalar_lea.vmem %s21847_s0, %s22700_s19  ;;  %s16731_s12 = scalar_lea.vmem [#allocation2], %s22700_s19  ;;  %vm21947_vm6 = vmmov %vm21943_vm2 }
  0x39   : > { %v401_v28 = vld [vmem:[%s16593_s22 + $0x10] sm:$0xff]  ;;  %v399_v29 = vld [vmem:[%s16593_s22] sm:$0xff]  ;;  %v402_v31 = vld [vmem:[%s16593_s22 + $0x18] sm:$0xff]  ;;  %s16910_s0 = smov (%p391_p1), 0  }
  0x3a   : > { %427 = vperm.xlu1 %15984, %v401_v28   ;;  %417 = vperm.xlu0 %15983, %v399_v29   ;;  %v400_v32 = vld [vmem:[%s16593_s22 + $0x8] sm:$0xff]  ;;  %v403_v33 = vld [vmem:[%s16593_s22 + $0x20] sm:$0xff]  ;;  %v406_v13 = vld [vmem:[%s16593_s22 + $0x38] sm:$0xff] }
  0x3b   : > { %v404_v12 = vld [vmem:[%s16593_s22 + $0x28] sm:$0xff]  ;;  %v405_v14 = vld [vmem:[%s16593_s22 + $0x30] sm:$0xff]  ;;  %v407_v30 = vld [vmem:[%s16593_s22 + $0x40] sm:$0xff] }
  0x3c   : > { %v408_v15 = vld [vmem:[%s16593_s22 + $0x48] sm:$0xff]  ;;  %v410_v34 = vld [vmem:[%s16593_s22 + $0x58] sm:$0xff]  ;;  %v409_v35 = vld [vmem:[%s16593_s22 + $0x50] sm:$0xff] }
  0x3d   : > { %v412_v36 = vld [vmem:[%s16593_s22 + $0x68] sm:$0xff]  ;;  %v411_v37 = vld [vmem:[%s16593_s22 + $0x60] sm:$0xff]  ;;  %v413_v39 = vld [vmem:[%s16593_s22 + $0x70] sm:$0xff] }
  0x3e   : > { %432 = vperm.xlu1 %15984, %v402_v31   ;;  %422 = vperm.xlu0 %15983, %v400_v32   ;;  %v11199_v38 = vld [vmem:[%s16593_s22 + $0x1] sm:$0xff]  ;;  %v11201_v40 = vld [vmem:[%s16593_s22 + $0x11] sm:$0xff]  ;;  %v11200_v41 = vld [vmem:[%s16593_s22 + $0x9] sm:$0xff] }
  0x3f   : > { %v11203_v42 = vld [vmem:[%s16593_s22 + $0x21] sm:$0xff]  ;;  %v11202_v43 = vld [vmem:[%s16593_s22 + $0x19] sm:$0xff]  ;;  %v11205_v44 = vld [vmem:[%s16593_s22 + $0x31] sm:$0xff] }
  0x40   : > { %v11204_v45 = vld [vmem:[%s16593_s22 + $0x29] sm:$0xff]  ;;  %v11207_v47 = vld [vmem:[%s16593_s22 + $0x41] sm:$0xff]  ;;  %v11206_v48 = vld [vmem:[%s16593_s22 + $0x39] sm:$0xff] }
  0x41   : > { %v11209_v49 = vld [vmem:[%s16593_s22 + $0x51] sm:$0xff]  ;;  %v11208_v52 = vld [vmem:[%s16593_s22 + $0x49] sm:$0xff]  ;;  %v11211_v53 = vld [vmem:[%s16593_s22 + $0x61] sm:$0xff] }
  0x42   : > { %442 = vperm.xlu1 %15984, %v404_v12   ;;  %437 = vperm.xlu0 %15983, %v403_v33   ;;  %v11210_v56 = vld [vmem:[%s16593_s22 + $0x59] sm:$0xff]  ;;  %v11213_v57 = vld [vmem:[%s16593_s22 + $0x71] sm:$0xff]  ;;  %v11212_v60 = vld [vmem:[%s16593_s22 + $0x69] sm:$0xff] }
  0x43   : > { %v11226_v61 = vld [vmem:[%s16593_s22 + $0x80] sm:$0xff]  ;;  %v11225_v27 = vld [vmem:[%s16593_s22 + $0x78] sm:$0xff]  ;;  %v11228_v28 = vld [vmem:[%s16593_s22 + $0x90] sm:$0xff] }
  0x44   : > { %v11227_v29 = vld [vmem:[%s16593_s22 + $0x88] sm:$0xff]  ;;  %v11229_v31 = vld [vmem:[%s16593_s22 + $0x98] sm:$0xff]  ;;  %vm21950_vm15 = vmmov %vm21943_vm2 }
  0x45   : > { %v11241_v32 = vld [vmem:[%s16593_s22 + $0x79] sm:$0xff]  ;;  %v11242_v33 = vld [vmem:[%s16593_s22 + $0x81] sm:$0xff]  ;;  %vm21951_vm0 = vmmov %vm21943_vm2 }
  0x46   : > { %452 = vperm.xlu1 %15984, %v406_v13   ;;  %447 = vperm.xlu0 %15983, %v405_v14   ;;  %vm21957_vm8 = vmmov %vm21951_vm0 }
  0x47   : > { %vm21958_vm14 = vmmov %vm21951_vm0 }
  0x48   : > { %vm21961_vm3 = vmmov %vm21951_vm0 }
  0x49   : > { %vm21962_vm4 = vmmov %vm21951_vm0 }
  0x4a   : > { %462 = vperm.xlu1 %15984, %v408_v15   ;;  %457 = vperm.xlu0 %15983, %v407_v30   ;;  %vm21965_vm12 = vmmov %vm21951_vm0 }
  0x4b   : > { %vm21966_vm13 = vmmov %vm21951_vm0 }
  0x4c   : > { %vm21969_vm1 = vmmov %vm21951_vm0 }
  0x4d   : > { %vm21970_vm7 = vmmov %vm21951_vm0 }
  0x4e   : > { %472 = vperm.xlu1 %15984, %v410_v34   ;;  %467 = vperm.xlu0 %15983, %v409_v35  }
  0x52   : > { %482 = vperm.xlu1 %15984, %v412_v36   ;;  %477 = vperm.xlu0 %15983, %v411_v37  }
  0x56   : > { %544 = vperm.xlu1 %15984, %v11199_v38   ;;  %487 = vperm.xlu0 %15983, %v413_v39  }
  0x5a   : > { %554 = vperm.xlu1 %15984, %v11201_v40   ;;  %549 = vperm.xlu0 %15983, %v11200_v41  }
  0x5e   : > { %564 = vperm.xlu1 %15984, %v11203_v42   ;;  %559 = vperm.xlu0 %15983, %v11202_v43  }
  0x62   : > { %574 = vperm.xlu1 %15984, %v11205_v44   ;;  %569 = vperm.xlu0 %15983, %v11204_v45  }
  0x66   : > { %584 = vperm.xlu1 %15984, %v11207_v47   ;;  %579 = vperm.xlu0 %15983, %v11206_v48  }
  0x6a   : > { %594 = vperm.xlu1 %15984, %v11209_v49   ;;  %589 = vperm.xlu0 %15983, %v11208_v52  }
  0x6e   : > { %604 = vperm.xlu1 %15984, %v11211_v53   ;;  %599 = vperm.xlu0 %15983, %v11210_v56  }
  0x72   : > { %614 = vperm.xlu1 %15984, %v11213_v57   ;;  %609 = vperm.xlu0 %15983, %v11212_v60  }
  0x76   : > { %676 = vperm.xlu1 %15984, %v405_v14   ;;  %671 = vperm.xlu0 %15983, %v404_v12   ;;  %v11243_v12 = vld [vmem:[%s16593_s22 + $0x89] sm:$0xff]  ;;  %v11244_v14 = vld [vmem:[%s16593_s22 + $0x91] sm:$0xff] }
  0x7a   : > { %686 = vperm.xlu1 %15984, %v407_v30   ;;  %681 = vperm.xlu0 %15983, %v406_v13   ;;  %v11245_v13 = vld [vmem:[%s16593_s22 + $0x99] sm:$0xff] }
  0x7e   : > { %696 = vperm.xlu1 %15984, %v409_v35   ;;  %691 = vperm.xlu0 %15983, %v408_v15  }
  0x82   : > { %706 = vperm.xlu1 %15984, %v411_v37   ;;  %701 = vperm.xlu0 %15983, %v410_v34  }
  0x86   : > { %716 = vperm.xlu1 %15984, %v413_v39   ;;  %711 = vperm.xlu0 %15983, %v412_v36  }
  0x8a   : > { %726 = vperm.xlu1 %15984, %v11226_v61   ;;  %721 = vperm.xlu0 %15983, %v11225_v27  }
  0x8e   : > { %736 = vperm.xlu1 %15984, %v11228_v28   ;;  %731 = vperm.xlu0 %15983, %v11227_v29  }
  0x92   : > { %798 = vperm.xlu1 %15984, %v11204_v45   ;;  %741 = vperm.xlu0 %15983, %v11229_v31  }
  0x96   : > { %808 = vperm.xlu1 %15984, %v11206_v48   ;;  %803 = vperm.xlu0 %15983, %v11205_v44  }
  0x9a   : > { %818 = vperm.xlu1 %15984, %v11208_v52   ;;  %813 = vperm.xlu0 %15983, %v11207_v47  }
  0x9e   : > { %828 = vperm.xlu1 %15984, %v11210_v56   ;;  %823 = vperm.xlu0 %15983, %v11209_v49  }
  0xa2   : > { %838 = vperm.xlu1 %15984, %v11212_v60   ;;  %833 = vperm.xlu0 %15983, %v11211_v53  }
  0xa6   : > { %848 = vperm.xlu1 %15984, %v11241_v32   ;;  %843 = vperm.xlu0 %15983, %v11213_v57  }
  0xaa   : > { %858 = vperm.xlu1 %15984, %v11243_v12   ;;  %853 = vperm.xlu0 %15983, %v11242_v33  }
  0xae   : > { %868 = vperm.xlu1 %15984, %v11245_v13   ;;  %863 = vperm.xlu0 %15983, %v11244_v14  }
  0xb9   : > { %v428_v15 = vpop.permute.xlu1 %427  ;;  %v418_v30 = vpop.permute.xlu0 %417 }
  0xba   : > { %v494_v25 = vmul.f32 %v11198_v46, %v418_v30  ;;  %v496_v23 = vmul.f32 %v11198_v46, %v428_v15 }
  0xbd   : > { %v433_v34 = vpop.permute.xlu1 %432  ;;  %v423_v35 = vpop.permute.xlu0 %422 }
  0xbe   : > { %v497_v24 = vmul.f32 %v11198_v46, %v433_v34  ;;  %v495_v21 = vmul.f32 %v11198_v46, %v423_v35 }
  0xc1   : > { %v443_v36 = vpop.permute.xlu1 %442  ;;  %v438_v37 = vpop.permute.xlu0 %437 }
  0xc2   : > { %v499_v20 = vmul.f32 %v11198_v46, %v443_v36 }
  0xc5   : > { %v453_v38 = vpop.permute.xlu1 %452  ;;  %v448_v39 = vpop.permute.xlu0 %447 }
  0xc6   : > { %v500_v30 = vmul.f32 %v11198_v46, %v448_v39 }
  0xc9   : > { %v463_v40 = vpop.permute.xlu1 %462  ;;  %v458_v41 = vpop.permute.xlu0 %457 }
  0xcd   : > { %v473_v42 = vpop.permute.xlu1 %472  ;;  %v468_v43 = vpop.permute.xlu0 %467 }
  0xce   : > { %v16708_v39 = vmul.f32 %v11198_v46, %v468_v43 }
  0xd1   : > { %v483_v44 = vpop.permute.xlu1 %482  ;;  %v16635_v45 = vpop.permute.xlu0 %477 }
  0xd5   : > { %v545_v47 = vpop.permute.xlu1 %544  ;;  %v16637_v48 = vpop.permute.xlu0 %487 }
  0xd6   : > { %v621_v3 = vmul.f32 %v16668_v54, %v545_v47 }
  0xd8   : > { %v636_v47 = vadd.f32 %v621_v3, %v494_v25 }
  0xd9   : > { %v555_v49 = vpop.permute.xlu1 %554  ;;  %v550_v52 = vpop.permute.xlu0 %549 }
  0xda   : > { %v622_v22 = vmul.f32 %v16668_v54, %v550_v52  ;;  %v502_v52 = vmul.f32 %v11198_v46, %v458_v41  ;;  %v16713_v41 = vmul.f32 %v11198_v46, %v16635_v45 }
  0xdc   : > { %v637_v3 = vadd.f32 %v622_v22, %v495_v21 }
  0xdd   : > { %v565_v53 = vpop.permute.xlu1 %564  ;;  %v560_v56 = vpop.permute.xlu0 %559 }
  0xde   : > { %v625_v25 = vmul.f32 %v16668_v54, %v565_v53 }
  0xe1   : > { %v16639_v57 = vpop.permute.xlu1 %574  ;;  %v16641_v60 = vpop.permute.xlu0 %569 }
  0xe2   : > { %v627_v45 = vmul.f32 %v16668_v54, %v16639_v57 }
  0xe5   : > { %v16643_v61 = vpop.permute.xlu1 %584  ;;  %v16645_v27 = vpop.permute.xlu0 %579 }
  0xe9   : > { %v16647_v28 = vpop.permute.xlu1 %594  ;;  %v16649_v29 = vpop.permute.xlu0 %589 }
  0xed   : > { %v16651_v31 = vpop.permute.xlu1 %604  ;;  %v16653_v32 = vpop.permute.xlu0 %599 }
  0xf1   : > { %v16655_v12 = vpop.permute.xlu1 %614  ;;  %v16657_v33 = vpop.permute.xlu0 %609 }
  0xf2   : > { %21938 = vst [vmem:[#allocation29_spill] sm:$0xff] %v16655_v12  ;;  %21939 = vst [vmem:[#allocation30_spill] sm:$0xff] %v16657_v33  ;;  %v498_v33 = vmul.f32 %v11198_v46, %v438_v37  ;;  %v16695_v12 = vmul.f32 %v11198_v46, %v453_v38  ;;  %v16704_v37 = vmul.f32 %v11198_v46, %v473_v42 }
  0xf3   : > { %v624_v38 = vmul.f32 %v16668_v54, %v560_v56 }
  0xf5   : > { %v677_v13 = vpop.permute.xlu1 %676  ;;  %v672_v14 = vpop.permute.xlu0 %671 }
  0xf6   : > { %v748_v26 = vmul.f32 %v16680_v4, %v672_v14  ;;  %v749_v15 = vmul.f32 %v16680_v4, %v677_v13 }
  0xf8   : > { %v763_v14 = vadd.f32 %v748_v26, %v636_v47  ;;  %v764_v26 = vadd.f32 %v749_v15, %v637_v3 }
  0xf9   : > { %v687_v1 = vpop.permute.xlu1 %686  ;;  %v682_v7 = vpop.permute.xlu0 %681 }
  0xfd   : > { %v697_v6 = vpop.permute.xlu1 %696  ;;  %v692_v5 = vpop.permute.xlu0 %691 }
  0xfe   : > { %v752_v42 = vmul.f32 %v16680_v4, %v692_v5  ;;  %v16725_v5 = vmul.f32 %v11198_v46, %v16637_v48 }
 0x101   : > { %v16659_v62 = vpop.permute.xlu1 %706  ;;  %v702_v59 = vpop.permute.xlu0 %701 }
 0x105   : > { %v16661_v58 = vpop.permute.xlu1 %716  ;;  %v16663_v55 = vpop.permute.xlu0 %711 }
 0x109   : > { %v16670_v51 = vpop.permute.xlu1 %726  ;;  %v16672_v50 = vpop.permute.xlu0 %721 }
 0x10a   : > { %21940 = vst [vmem:[#allocation31_spill] sm:$0xff] %v16670_v51  ;;  %v750_v51 = vmul.f32 %v16680_v4, %v682_v7  ;;  %v751_v7 = vmul.f32 %v16680_v4, %v687_v1  ;;  %v626_v1 = vmul.f32 %v16668_v54, %v16641_v60 }
 0x10d   : > { %v16683_v0 = vpop.permute.xlu1 %736  ;;  %v16685_v63 = vpop.permute.xlu0 %731 }
 0x10e   : > { %21941 = vst [vmem:[#allocation32_spill] sm:$0xff] %v16683_v0  ;;  %21942 = vst [vmem:[#allocation33_spill] sm:$0xff] %v16685_v63  ;;  %v623_v0 = vmul.f32 %v16668_v54, %v555_v49  ;;  %v16697_v63 = vmul.f32 %v11198_v46, %v463_v40  ;;  %v16710_v40 = vmul.f32 %v11198_v46, %v483_v44 }
 0x110   : > { %v638_v49 = vadd.f32 %v623_v0, %v496_v23  ;;  %v640_v0 = vadd.f32 %v625_v25, %v498_v33  ;;  %v639_v23 = vadd.f32 %v624_v38, %v497_v24  ;;  %v754_v33 = vmul.f32 %v16680_v4, %v702_v59 }
 0x111   : > { %v799_v34 = vpop.permute.xlu1 %798  ;;  %v16700_v35 = vpop.permute.xlu0 %741  ;;  %v641_v25 = vadd.f32 %v626_v1, %v499_v20  ;;  %v629_v59 = vmul.f32 %v16668_v54, %v16643_v61  ;;  %v628_v38 = vmul.f32 %v16668_v54, %v16645_v27  ;;  %v756_v20 = vmul.f32 %v16680_v4, %v16663_v55 }
 0x112   : > { %v875_v36 = vmul.f32 %v16692_v11, %v799_v34  ;;  %v765_v22 = vadd.f32 %v750_v51, %v638_v49  ;;  %v766_v34 = vadd.f32 %v751_v7, %v639_v23  ;;  %v631_v55 = vmul.f32 %v16668_v54, %v16647_v28 }
 0x114   : > { %v890_v13 = vadd.f32 %v875_v36, %v763_v14  ;;  %v753_v14 = vmul.f32 %v16680_v4, %v697_v6  ;;  %v767_v36 = vadd.f32 %v752_v42, %v640_v0  ;;  %v642_v6 = vadd.f32 %v627_v45, %v500_v30 }
 0x115   : > { %v809_v47 = vpop.permute.xlu1 %808  ;;  %v804_v21 = vpop.permute.xlu0 %803  ;;  %v630_v0 = vmul.f32 %v16668_v54, %v16649_v29 }
 0x116   : > { %v911_v53 = vadd.f32 %v16145_v2, %v890_v13  ;;  %v877_v43 = vmul.f32 %v16692_v11, %v809_v47  ;;  %v876_v44 = vmul.f32 %v16692_v11, %v804_v21  ;;  %v768_v42 = vadd.f32 %v753_v14, %v641_v25  ;;  %v21948_v25 = vld [vmem:[#allocation31_spill] sm:$0xff] }
 0x117   : > { %v755_v47 = vmul.f32 %v16680_v4, %v16659_v62  ;;  %v769_v21 = vadd.f32 %v754_v33, %v642_v6  ;;  %v644_v62 = vadd.f32 %v629_v59, %v502_v52  ;;  %v759_v59 = vmul.f32 %v16680_v4, %v21948_v25 }
 0x118   : > { %v926_v51 = vmul.f32 %v16519_v8, %v911_v53  ;;  %v892_v56 = vadd.f32 %v877_v43, %v765_v22  ;;  %v891_v15 = vadd.f32 %v876_v44, %v764_v26  ;;  %v643_v44 = vadd.f32 %v628_v38, %v16695_v12  ;;  %v21980_v8 = vld [vmem:[#allocation15_spill] sm:$0xff] (%p391_p1) }
 0x119   : > { %v819_v24 = vpop.permute.xlu1 %818  ;;  %v814_v3 = vpop.permute.xlu0 %813  ;;  %v758_v12 = vmul.f32 %v16680_v4, %v16672_v50  ;;  %v645_v50 = vadd.f32 %v630_v0, %v16697_v63  ;;  %v21956_v0 = vld [vmem:[#allocation32_spill] sm:$0xff] }
 0x11a   : > { %11248 = vst.msk [vmem:[%s16731_s12 + $0x58] sm:$0xff] %vm21943_vm2, %v926_v51  ;;  %v913_v46 = vadd.f32 %v16145_v2, %v892_v56  ;;  %v912_v48 = vadd.f32 %v16145_v2, %v891_v15  ;;  %v879_v57 = vmul.f32 %v16692_v11, %v819_v24  ;;  %v878_v60 = vmul.f32 %v16692_v11, %v814_v3 }
 0x11b   : > { %v770_v56 = vadd.f32 %v755_v47, %v643_v44  ;;  %v757_v15 = vmul.f32 %v16680_v4, %v16661_v58  ;;  %v646_v58 = vadd.f32 %v631_v55, %v16708_v39  ;;  %v633_v24 = vmul.f32 %v16668_v54, %v16651_v31  ;;  %v21949_v39 = vld [vmem:[#allocation33_spill] sm:$0xff] }
 0x11c   : > { %v928_v49 = vmul.f32 %v16529_v16, %v913_v46  ;;  %v927_v13 = vmul.f32 %v16524_v9, %v912_v48  ;;  %v894_v26 = vadd.f32 %v879_v57, %v767_v36  ;;  %v893_v7 = vadd.f32 %v878_v60, %v766_v34  ;;  %v21981_v9 = vld [vmem:[#allocation16_spill] sm:$0xff] (%p391_p1)  ;;  %v21982_v16 = vld [vmem:[#allocation17_spill] sm:$0xff] (%p391_p1) }
 0x11d   : > { %v829_v30 = vpop.permute.xlu1 %828  ;;  %v824_v22 = vpop.permute.xlu0 %823  ;;  %v771_v34 = vadd.f32 %v756_v20, %v644_v62  ;;  %v632_v3 = vmul.f32 %v16668_v54, %v16653_v32  ;;  %v772_v6 = vadd.f32 %v757_v15, %v645_v50  ;;  %v773_v38 = vadd.f32 %v758_v12, %v646_v58 }
 0x11e   : > { %11250 = vst.msk [vmem:[%s16731_s12 + $0x68] sm:$0xff] %vm21944_vm11, %v928_v49  ;;  %v915_v61 = vadd.f32 %v16145_v2, %v894_v26  ;;  %v914_v27 = vadd.f32 %v16145_v2, %v893_v7  ;;  %v881_v53 = vmul.f32 %v16692_v11, %v829_v30  ;;  %v880_v43 = vmul.f32 %v16692_v11, %v824_v22  ;;  %v21953_v30 = vld [vmem:[#allocation30_spill] sm:$0xff] }
 0x11f   : > { %11249 = vst.msk [vmem:[%s16731_s12 + $0x60] sm:$0xff] %vm21945_vm5, %v927_v13  ;;  %v760_v63 = vmul.f32 %v16680_v4, %v21949_v39  ;;  %v647_v47 = vadd.f32 %v632_v3, %v16704_v37  ;;  %v634_v22 = vmul.f32 %v16668_v54, %v21953_v30  ;;  %v762_v37 = vmul.f32 %v16680_v4, %v16700_v35  ;;  %v21959_v35 = vld [vmem:[#allocation24_spill] sm:$0xff] }
 0x120   : > { %v930_v23 = vmul.f32 %v16539_v17, %v915_v61  ;;  %v929_v45 = vmul.f32 %v16534_v10, %v914_v27  ;;  %v896_v1 = vadd.f32 %v881_v53, %v769_v21  ;;  %v895_v51 = vadd.f32 %v880_v43, %v768_v42  ;;  %v21952_v21 = vld [vmem:[#allocation29_spill] sm:$0xff]  ;;  %v21955_v53 = vld [vmem:[#allocation21_spill] sm:$0xff]  ;;  %v21967_v39 = vld [vmem:[#allocation28_spill] sm:$0xff] }
 0x121   : > { %v839_v52 = vpop.permute.xlu1 %838  ;;  %v834_v14 = vpop.permute.xlu0 %833  ;;  %v648_v42 = vadd.f32 %v633_v24, %v16713_v41  ;;  %v635_v20 = vmul.f32 %v16668_v54, %v21952_v21  ;;  %v21954_v61 = vld [vmem:[#allocation22_spill] sm:$0xff]  ;;  %v774_v55 = vadd.f32 %v759_v59, %v647_v47  ;;  %v21976_v47 = vld [vmem:[#allocation11_spill] sm:$0xff] (%p391_p1)  ;;  %v21977_v21 = vld [vmem:[#allocation12_spill] sm:$0xff] (%p391_p1) }
 0x122   : > { %11252 = vst.msk [vmem:[%s16731_s12 + $0x78] sm:$0xff] %vm21946_vm10, %v930_v23  ;;  %v917_v28 = vadd.f32 %v16145_v2, %v896_v1  ;;  %v916_v29 = vadd.f32 %v16145_v2, %v895_v51  ;;  %v883_v36 = vmul.f32 %v16692_v11, %v839_v52  ;;  %v882_v33 = vmul.f32 %v16692_v11, %v834_v14  ;;  %v21960_v52 = vld [vmem:[#allocation23_spill] sm:$0xff]  ;;  %v21983_v10 = vld [vmem:[#allocation18_spill] sm:$0xff] (%p391_p1) }
 0x123   : > { %11251 = vst.msk [vmem:[%s16731_s12 + $0x70] sm:$0xff] %vm21947_vm6, %v929_v45  ;;  %v761_v23 = vmul.f32 %v16680_v4, %v21956_v0  ;;  %v775_v45 = vadd.f32 %v760_v63, %v648_v42  ;;  %v649_v4 = vadd.f32 %v634_v22, %v16710_v40  ;;  %v21975_v42 = vld [vmem:[#allocation10_spill] sm:$0xff] (%p391_p1)  ;;  %vm964_vm6 = vcmp.lt.s32.totalorder (%p391_p1), %v21976_v47, 32  ;;  %v21984_v17 = vld [vmem:[#allocation19_spill] sm:$0xff] (%p391_p1) }
 0x124   : > { %v932_v46 = vmul.f32 %v16549_v19, %v917_v28  ;;  %v931_v48 = vmul.f32 %v16544_v18, %v916_v29  ;;  %v898_v57 = vadd.f32 %v883_v36, %v771_v34  ;;  %v897_v60 = vadd.f32 %v882_v33, %v770_v56  ;;  %v21985_v18 = vld [vmem:[#allocation20_spill] sm:$0xff] (%p391_p1) }
 0x125   : > { %v849_v49 = vpop.permute.xlu1 %848  ;;  %v844_v13 = vpop.permute.xlu0 %843  ;;  %v650_v34 = vadd.f32 %v635_v20, %v16725_v5  ;;  %v776_v36 = vadd.f32 %v761_v23, %v649_v4  ;;  %vm963_vm10 = vcmp.lt.s32.totalorder (%p391_p1), %v21975_v42, 32  ;;  %v21978_v20 = vld [vmem:[#allocation13_spill] sm:$0xff] (%p391_p1)  ;;  %v21986_v19 = vmov (%p391_p1), 0.0  }
 0x126   : > { %11254 = vst.msk [vmem:[%s16731_s12 + $0x88] sm:$0xff] %vm21950_vm15, %v932_v46  ;;  %v919_v31 = vadd.f32 %v16145_v2, %v898_v57  ;;  %v918_v32 = vadd.f32 %v16145_v2, %v897_v60  ;;  %v885_v26 = vmul.f32 %v16692_v11, %v849_v49  ;;  %v884_v7 = vmul.f32 %v16692_v11, %v844_v13  ;;  %v21963_v46 = vld [vmem:[#allocation26_spill] sm:$0xff]  ;;  %v21964_v57 = vld [vmem:[#allocation25_spill] sm:$0xff]  ;;  %v21968_v49 = vld [vmem:[#allocation27_spill] sm:$0xff] }
 0x127   : > { %11253 = vst.msk [vmem:[%s16731_s12 + $0x80] sm:$0xff] %vm21951_vm0, %v931_v48  ;;  %v777_v33 = vadd.f32 %v762_v37, %v650_v34  ;;  %vm965_vm15 = vcmp.lt.s32.totalorder (%p391_p1), %v21977_v21, 32  ;;  %vm966_vm0 = vcmp.lt.s32.totalorder (%p391_p1), %v21978_v20, 32 }
 0x128   : > { %v934_v27 = vmul.f32 %v21954_v61, %v919_v31  ;;  %v933_v43 = vmul.f32 %v21955_v53, %v918_v32  ;;  %v900_v62 = vadd.f32 %v885_v26, %v773_v38  ;;  %v899_v44 = vadd.f32 %v884_v7, %v772_v6  ;;  %v21971_v31 = vld [vmem:[#allocation6_spill] sm:$0xff] (%p391_p1)  ;;  %v21972_v32 = vld [vmem:[#allocation7_spill] sm:$0xff] (%p391_p1)  ;;  %v21973_v26 = vld [vmem:[#allocation8_spill] sm:$0xff] (%p391_p1) }
 0x129   : > { %v859_v41 = vpop.permute.xlu1 %858  ;;  %v854_v1 = vpop.permute.xlu0 %853  ;;  %vm959_vm9 = vcmp.lt.s32.totalorder (%p391_p1), %v21971_v31, 32  ;;  %vm960_vm2 = vcmp.lt.s32.totalorder (%p391_p1), %v21972_v32, 32  ;;  %vm961_vm11 = vcmp.lt.s32.totalorder (%p391_p1), %v21973_v26, 32  ;;  %v21974_v7 = vld [vmem:[#allocation9_spill] sm:$0xff] (%p391_p1)  ;;  %v16878_v53 = vsel (%p391_p1), %vm963_vm10, 1.0, %v21986_v19 }
 0x12a   : > { %11256 = vst.msk [vmem:[%s16731_s12 + $0x98] sm:$0xff] %vm21957_vm8, %v934_v27  ;;  %v921_v54 = vadd.f32 %v16145_v2, %v900_v62  ;;  %v920_v51 = vadd.f32 %v16145_v2, %v899_v44  ;;  %v887_v56 = vmul.f32 %v16692_v11, %v859_v41  ;;  %v886_v15 = vmul.f32 %v16692_v11, %v854_v1 }
 0x12b   : > { %11255 = vst.msk [vmem:[%s16731_s12 + $0x90] sm:$0xff] %vm21958_vm14, %v933_v43  ;;  %vm962_vm5 = vcmp.lt.s32.totalorder (%p391_p1), %v21974_v7, 32  ;;  %vm968_vm14 = vcmp.lt.s32.totalorder (%p391_p1), %v21980_v8, 32  ;;  %v16866_v30 = vsel (%p391_p1), %vm959_vm9, 1.0, %v21986_v19  ;;  %v16869_v22 = vsel (%p391_p1), %vm960_vm2, 1.0, %v21986_v19 }
 0x12c   : > { %v936_v12 = vmul.f32 %v21959_v35, %v921_v54  ;;  %v935_v14 = vmul.f32 %v21960_v52, %v920_v51  ;;  %v902_v28 = vadd.f32 %v887_v56, %v775_v45  ;;  %v901_v29 = vadd.f32 %v886_v15, %v774_v55 }
 0x12d   : > { %v869_v58 = vpop.permute.xlu1 %868  ;;  %v864_v50 = vpop.permute.xlu0 %863  ;;  %v16872_v61 = vsel (%p391_p1), %vm961_vm11, 1.0, %v21986_v19  ;;  %v16875_v27 = vsel (%p391_p1), %vm962_vm5, 1.0, %v21986_v19  ;;  %v16881_v43 = vsel (%p391_p1), %vm964_vm6, 1.0, %v21986_v19  ;;  %v16884_v62 = vsel (%p391_p1), %vm965_vm15, 1.0, %v21986_v19 }
 0x12e   : > { %11258 = vst.msk [vmem:[%s16731_s12 + $0xa8] sm:$0xff] %vm21961_vm3, %v936_v12  ;;  %v923_v40 = vadd.f32 %v16145_v2, %v902_v28  ;;  %v922_v5 = vadd.f32 %v16145_v2, %v901_v29  ;;  %v889_v24 = vmul.f32 %v16692_v11, %v869_v58  ;;  %v888_v3 = vmul.f32 %v16692_v11, %v864_v50  ;;  %v16848_v11 = vld [vmem:[%s21851_s4] ss:$0 sm:$0xff] (%p391_p1) }
 0x12f   : > { %11257 = vst.msk [vmem:[%s16731_s12 + $0xa0] sm:$0xff] %vm21962_vm4, %v935_v14  ;;  %vm969_vm3 = vcmp.lt.s32.totalorder (%p391_p1), %v21981_v9, 32  ;;  %vm970_vm4 = vcmp.lt.s32.totalorder (%p391_p1), %v21982_v16, 32  ;;  %21987 = vst [vmem:[#allocation21_spill] sm:$0xff] (%p391_p1), %v16884_v62  ;;  %v16887_v44 = vsel (%p391_p1), %vm966_vm0, 1.0, %v21986_v19  ;;  %v16893_v0 = vsel (%p391_p1), %vm968_vm14, 1.0, %v21986_v19 }
 0x130   : > { %v938_v48 = vmul.f32 %v21963_v46, %v923_v40  ;;  %v937_v60 = vmul.f32 %v21964_v57, %v922_v5  ;;  %v904_v6 = vadd.f32 %v889_v24, %v777_v33  ;;  %v903_v25 = vadd.f32 %v888_v3, %v776_v36  ;;  %21988 = vst [vmem:[#allocation22_spill] sm:$0xff] (%p391_p1), %v16887_v44 }
 0x131   :  { %393 = sbr.rel (!%p391_p1) target bundleno = 51 (0x33), region = 153  ;;  %21990 = vst [vmem:[#allocation24_spill] sm:$0xff] (%p391_p1), %v16893_v0  ;;  %v16896_v23 = vsel (%p391_p1), %vm969_vm3, 1.0, %v21986_v19  ;;  %v16899_v45 = vsel (%p391_p1), %vm970_vm4, 1.0, %v21986_v19 }
 0x132   : > { %11260 = vst.msk [vmem:[%s16731_s12 + $0xb8] sm:$0xff] %vm21965_vm12, %v938_v48  ;;  %v925_v59 = vadd.f32 %v16145_v2, %v904_v6  ;;  %v924_v38 = vadd.f32 %v16145_v2, %v903_v25  ;;  %v21979_v2 = vld [vmem:[#allocation14_spill] sm:$0xff] (%p391_p1)  ;;  %vm971_vm12 = vcmp.lt.s32.totalorder (%p391_p1), %v21983_v10, 32  ;;  %21991 = vst [vmem:[#allocation25_spill] sm:$0xff] (%p391_p1), %v16896_v23 }
 0x133   : > { %11259 = vst.msk [vmem:[%s16731_s12 + $0xb0] sm:$0xff] %vm21966_vm13, %v937_v60  ;;  %vm967_vm8 = vcmp.lt.s32.totalorder (%p391_p1), %v21979_v2, 32  ;;  %vm972_vm13 = vcmp.lt.s32.totalorder (%p391_p1), %v21984_v17, 32  ;;  %21992 = vst [vmem:[#allocation26_spill] sm:$0xff] (%p391_p1), %v16899_v45  ;;  %v16902_v37 = vsel (%p391_p1), %vm971_vm12, 1.0, %v21986_v19 }
 0x134   : > { %v940_v63 = vmul.f32 %v21967_v39, %v925_v59  ;;  %v939_v13 = vmul.f32 %v21968_v49, %v924_v38  ;;  %v16890_v55 = vsel (%p391_p1), %vm967_vm8, 1.0, %v21986_v19  ;;  %21993 = vst [vmem:[#allocation27_spill] sm:$0xff] (%p391_p1), %v16902_v37  ;;  %v16905_v41 = vsel (%p391_p1), %vm972_vm13, 1.0, %v21986_v19 }
 0x135   :  { %21989 = vst [vmem:[#allocation23_spill] sm:$0xff] (%p391_p1), %v16890_v55  ;;  %21994 = vst [vmem:[#allocation28_spill] sm:$0xff] (%p391_p1), %v16905_v41 }
 0x136   : > { %11262 = vst.msk [vmem:[%s16731_s12 + $0xc8] sm:$0xff] %vm21969_vm1, %v940_v63  ;;  %vm973_vm1 = vcmp.lt.s32.totalorder (%p391_p1), %v21985_v18, 32 }
 0x137   : > { %11261 = vst.msk [vmem:[%s16731_s12 + $0xc0] sm:$0xff] %vm21970_vm7, %v939_v13  ;;  %v16908_v1 = vsel (%p391_p1), %vm973_vm1, 1.0, %v21986_v19 }
 0x138   :  { %21995 = vst [vmem:[#allocation34_spill] sm:$0xff] %v16908_v1 }
 0x139 LB: > { %v1048_v54 = vld [vmem:[%s21850_s3 + $0x8] sm:$0xff]  ;;  %v1030_v51 = vld [vmem:[%s21850_s3] sm:$0xff]  ;;  %v16027_v56 = vmov 0.0   ;;  %vm16028_vm7 = vmmov 0   ;;  %s1010_s17 = smul.u32 120, %s16011_s0  ;;  %v1436_v15 = vld [vmem:[%s21850_s3 + $0x10] sm:$0xff]  ;;  %s16011_s0 = sphi %s16910_s0, %s1009_s0  }
 0x13a   : > { %13461 = vmatprep.subr.mxu0 %v16027_v56  ;;  %13508 = vmatprep.subr.mxu1 %v16027_v56  ;;  %v1654_v34 = vld [vmem:[%s21850_s3 + $0x18] sm:$0xff]  ;;  %vm21996_vm9 = vcmask 64512   ;;  %v1872_v47 = vld [vmem:[%s21850_s3 + $0x20] sm:$0xff]  ;;  %v2090_v21 = vld [vmem:[%s21850_s3 + $0x28] sm:$0xff]  ;;  %s1009_s0 = sadd.s32 1, %s16011_s0  }
 0x13b   : > { %13462 = vmatpush3.msra.mxu0 %v1048_v54  ;;  %13463 = vmatprep.mubr.msk.f32.mxu0 %vm16028_vm7, %v16027_v56  ;;  %p1011_p2 = scmp.lt.s32.totalorder %s1010_s17, 1160  ;;  %vm21997_vm2 = vmmov %vm21996_vm9  ;;  %v3180_v23 = vld [vmem:[%s21850_s3 + $0x50] sm:$0xff]  ;;  %p1006_p3 = scmp.ge.s32.totalorder %s1009_s0, 11  }
 0x13c   : > { %13509 = vmatpush3.msra.mxu1 %v1030_v51  ;;  %13510 = vmatprep.mubr.msk.f32.mxu1 %vm16028_vm7, %v16027_v56  ;;  %vm21998_vm11 = vmmov %vm21997_vm2 }
 0x13d   : > { %13555 = vmatprep.subr.mxu0 %v16027_v56  ;;  %13602 = vmatprep.subr.mxu1 %v16027_v56  ;;  %s22702_s17 = smov (!%p1011_p2, %s1010_s17), 1160  ;;  %vm21999_vm5 = vmmov %vm21997_vm2 }
 0x13e   : > { %s16939_s21 = scalar_lea.vmem [#allocation2], %s22702_s17  ;;  %vm22000_vm10 = vmmov %vm21997_vm2 }
 0x13f   : > { %v11293_v4 = vld [vmem:[%s16939_s21 + $0x7] sm:$0xff]  ;;  %v11294_v12 = vld [vmem:[%s16939_s21 + $0xf] sm:$0xff]  ;;  %v11295_v14 = vld [vmem:[%s16939_s21 + $0x17] sm:$0xff] }
 0x140   : > { %v11278_v35 = vld [vmem:[%s16939_s21 + $0x6] sm:$0xff]  ;;  %13464 = vmatmul.mubr.msk.f32.vlgmr.msra.gmra.mrb[0].mxu0 %vm21996_vm9, %v11293_v4  ;;  %v11279_v52 = vld [vmem:[%s16939_s21 + $0xe] sm:$0xff]  ;;  %v11280_v28 = vld [vmem:[%s16939_s21 + $0x16] sm:$0xff] }
 0x141   : > { %13511 = vmatmul.mubr.msk.f32.vlgmr.msra.gmra.mrb[0].mxu1 %vm21997_vm2, %v11278_v35  ;;  %13556 = vmatpush3.msra.mxu0 %v1436_v15  ;;  %vm22001_vm6 = vmmov %vm21997_vm2  ;;  %v11296_v29 = vld [vmem:[%s16939_s21 + $0x1f] sm:$0xff]  ;;  %v11297_v33 = vld [vmem:[%s16939_s21 + $0x27] sm:$0xff] }
 0x142   : > { %13603 = vmatpush3.msra.mxu1 %v1654_v34  ;;  %13466 = vmatprep.mubr.msk.f32.mxu0 %vm16028_vm7, %v16027_v56  ;;  %v11281_v36 = vld [vmem:[%s16939_s21 + $0x1e] sm:$0xff]  ;;  %vm22002_vm15 = vmmov %vm21997_vm2  ;;  %v11282_v58 = vld [vmem:[%s16939_s21 + $0x26] sm:$0xff] }
 0x143   : > { %13513 = vmatprep.mubr.msk.f32.mxu1 %vm16028_vm7, %v16027_v56  ;;  %13649 = vmatprep.subr.mxu0 %v16027_v56  ;;  %vm22003_vm0 = vmmov %vm21997_vm2  ;;  %v16984_v50 = vld [vmem:[%s16939_s21 + $0x2f] sm:$0xff]  ;;  %v16998_v5 = vld [vmem:[%s16939_s21 + $0x37] sm:$0xff] }
 0x144   : > { %13696 = vmatprep.subr.mxu1 %v16027_v56  ;;  %13467 = vmatmul.mubr.msk.f32.gmra.mrb[2].mxu0 %vm21998_vm11, %v11294_v12  ;;  %vm22004_vm8 = vmmov %vm22003_vm0  ;;  %v16987_v40 = vld [vmem:[%s16939_s21 + $0x2e] sm:$0xff]  ;;  %v17001_v24 = vld [vmem:[%s16939_s21 + $0x36] sm:$0xff] }
 0x145   : > { %13514 = vmatmul.mubr.msk.f32.gmra.mrb[2].mxu1 %vm21999_vm5, %v11279_v52  ;;  %13469 = vmatprep.mubr.msk.f32.mxu0 %vm16028_vm7, %v16027_v56  ;;  %vm22005_vm14 = vmmov %vm22003_vm0  ;;  %v17012_v3 = vld [vmem:[%s16939_s21 + $0x3f] sm:$0xff]  ;;  %v17026_v48 = vld [vmem:[%s16939_s21 + $0x47] sm:$0xff] }
 0x146   : > { %13516 = vmatprep.mubr.msk.f32.mxu1 %vm16028_vm7, %v16027_v56  ;;  %vm22006_vm3 = vmmov %vm22003_vm0  ;;  %v17015_v46 = vld [vmem:[%s16939_s21 + $0x3e] sm:$0xff]  ;;  %v17029_v57 = vld [vmem:[%s16939_s21 + $0x46] sm:$0xff] }
 0x147   : > { %vm22007_vm4 = vmmov %vm22003_vm0  ;;  %v17040_v60 = vld [vmem:[%s16939_s21 + $0x4f] sm:$0xff]  ;;  %v17054_v25 = vld [vmem:[%s16939_s21 + $0x57] sm:$0xff] }
 0x148   : > { %13470 = vmatmul.mubr.msk.f32.gmra.mrb[4].mxu0 %vm22000_vm10, %v11295_v14  ;;  %vm22008_vm12 = vmmov %vm22003_vm0  ;;  %v17043_v6 = vld [vmem:[%s16939_s21 + $0x4e] sm:$0xff]  ;;  %v17057_v59 = vld [vmem:[%s16939_s21 + $0x56] sm:$0xff] }
 0x149   : > { %13517 = vmatmul.mubr.msk.f32.gmra.mrb[4].mxu1 %vm22001_vm6, %v11280_v28  ;;  %13472 = vmatprep.mubr.msk.f32.mxu0 %vm16028_vm7, %v16027_v56  ;;  %vm22009_vm13 = vmmov %vm22003_vm0  ;;  %v17068_v38 = vld [vmem:[%s16939_s21 + $0x5f] sm:$0xff]  ;;  %v17082_v63 = vld [vmem:[%s16939_s21 + $0x67] sm:$0xff] }
 0x14a   : > { %13519 = vmatprep.mubr.msk.f32.mxu1 %vm16028_vm7, %v16027_v56  ;;  %vm22010_vm1 = vmmov %vm22003_vm0  ;;  %v17071_v39 = vld [vmem:[%s16939_s21 + $0x5e] sm:$0xff]  ;;  %v17085_v49 = vld [vmem:[%s16939_s21 + $0x66] sm:$0xff] }
 0x14b   : > { %vm22011_vm9 = vmmov %vm22003_vm0  ;;  %v17096_v13 = vld [vmem:[%s16939_s21 + $0x6f] sm:$0xff]  ;;  %v17110_v32 = vld [vmem:[%s16939_s21 + $0x77] sm:$0xff] }
 0x14c   : > { %13473 = vmatmul.mubr.msk.f32.gmra.mrb[6].mxu0 %vm22002_vm15, %v11296_v29  ;;  %vm22012_vm2 = vmmov %vm22003_vm0  ;;  %v17099_v31 = vld [vmem:[%s16939_s21 + $0x6e] sm:$0xff]  ;;  %v17113_v26 = vld [vmem:[%s16939_s21 + $0x76] sm:$0xff] }
 0x14d   : > { %13520 = vmatmul.mubr.msk.f32.gmra.mrb[6].mxu1 %vm22003_vm0, %v11281_v36  ;;  %13475 = vmatprep.mubr.msk.f32.mxu0 %vm16028_vm7, %v16027_v56  ;;  %vm22013_vm11 = vmmov %vm22003_vm0  ;;  %v11338_v7 = vld [vmem:[%s16939_s21 + $0x8] sm:$0xff]  ;;  %v11339_v20 = vld [vmem:[%s16939_s21 + $0x10] sm:$0xff] }
 0x14e   : > { %13522 = vmatprep.mubr.msk.f32.mxu1 %vm16028_vm7, %v16027_v56  ;;  %vm22014_vm5 = vmmov %vm22003_vm0  ;;  %v11368_v42 = vld [vmem:[%s16939_s21 + $0x9] sm:$0xff]  ;;  %v11369_v2 = vld [vmem:[%s16939_s21 + $0x11] sm:$0xff] }
 0x14f   : > { %vm22015_vm10 = vmmov %vm22003_vm0  ;;  %v11340_v8 = vld [vmem:[%s16939_s21 + $0x18] sm:$0xff]  ;;  %v11341_v16 = vld [vmem:[%s16939_s21 + $0x20] sm:$0xff] }
 0x150   : > { %13476 = vmatmul.mubr.msk.f32.gmra.mrb[8].mxu0 %vm22004_vm8, %v11297_v33  ;;  %vm22016_vm6 = vmmov %vm22003_vm0  ;;  %v11370_v9 = vld [vmem:[%s16939_s21 + $0x19] sm:$0xff]  ;;  %v11371_v10 = vld [vmem:[%s16939_s21 + $0x21] sm:$0xff] }
 0x151   : > { %13523 = vmatmul.mubr.msk.f32.gmra.mrb[8].mxu1 %vm22005_vm14, %v11282_v58  ;;  %13478 = vmatprep.mubr.msk.f32.mxu0 %vm16028_vm7, %v16027_v56  ;;  %vm22017_vm15 = vmmov %vm22003_vm0  ;;  %v11342_v17 = vld [vmem:[%s16939_s21 + $0x28] sm:$0xff]  ;;  %v17170_v19 = vld [vmem:[%s16939_s21 + $0x30] sm:$0xff] }
 0x152   : > { %13525 = vmatprep.mubr.msk.f32.mxu1 %vm16028_vm7, %v16027_v56  ;;  %vm22018_vm8 = vmmov %vm22003_vm0  ;;  %v11372_v18 = vld [vmem:[%s16939_s21 + $0x29] sm:$0xff]  ;;  %v17175_v54 = vld [vmem:[%s16939_s21 + $0x31] sm:$0xff] }
 0x153   : > { %vm22019_vm14 = vmmov %vm22003_vm0  ;;  %v17184_v51 = vld [vmem:[%s16939_s21 + $0x38] sm:$0xff]  ;;  %v17198_v34 = vld [vmem:[%s16939_s21 + $0x40] sm:$0xff] }
 0x154   : > { %13479 = vmatmul.mubr.msk.f32.gmra.mrb[10].mxu0 %vm22006_vm3, %v16984_v50  ;;  %vm22020_vm3 = vmmov %vm22003_vm0  ;;  %v17189_v15 = vld [vmem:[%s16939_s21 + $0x39] sm:$0xff]  ;;  %v17203_v4 = vld [vmem:[%s16939_s21 + $0x41] sm:$0xff] }
 0x155   : > { %13526 = vmatmul.mubr.msk.f32.gmra.mrb[10].mxu1 %vm22007_vm4, %v16987_v40  ;;  %13481 = vmatprep.mubr.msk.f32.mxu0 %vm16028_vm7, %v16027_v56  ;;  %vm22021_vm4 = vmmov %vm22003_vm0  ;;  %v17212_v35 = vld [vmem:[%s16939_s21 + $0x48] sm:$0xff]  ;;  %v17226_v52 = vld [vmem:[%s16939_s21 + $0x50] sm:$0xff] }
 0x156   : > { %13528 = vmatprep.mubr.msk.f32.mxu1 %vm16028_vm7, %v16027_v56  ;;  %v17217_v12 = vld [vmem:[%s16939_s21 + $0x49] sm:$0xff]  ;;  %v17231_v14 = vld [vmem:[%s16939_s21 + $0x51] sm:$0xff]  ;;  %v17245_v29 = vld [vmem:[%s16939_s21 + $0x59] sm:$0xff] }
 0x157   : > { %v17240_v28 = vld [vmem:[%s16939_s21 + $0x58] sm:$0xff]  ;;  %v17254_v36 = vld [vmem:[%s16939_s21 + $0x60] sm:$0xff]  ;;  %v17268_v58 = vld [vmem:[%s16939_s21 + $0x68] sm:$0xff] }
 0x158   : > { %13482 = vmatmul.mubr.msk.f32.gmra.mrb[12].mxu0 %vm22008_vm12, %v16998_v5  ;;  %vm22022_vm12 = vmmov %vm22003_vm0  ;;  %v17259_v33 = vld [vmem:[%s16939_s21 + $0x61] sm:$0xff] }
 0x159   : > { %13529 = vmatmul.mubr.msk.f32.gmra.mrb[12].mxu1 %vm22009_vm13, %v17001_v24  ;;  %13484 = vmatprep.mubr.msk.f32.mxu0 %vm16028_vm7, %v16027_v56  ;;  %vm22023_vm13 = vmmov %vm22003_vm0  ;;  %v17624_v41 = vld [vmem:[%s16939_s21 + $0xa0] sm:$0xff] }
 0x15a   : > { %13531 = vmatprep.mubr.msk.f32.mxu1 %vm16028_vm7, %v16027_v56  ;;  %v17629_v37 = vld [vmem:[%s16939_s21 + $0xa1] sm:$0xff] }
 0x15c   : > { %13485 = vmatmul.mubr.msk.f32.gmra.mrb[14].mxu0 %vm22010_vm1, %v17012_v3  ;;  %vm22024_vm1 = vmmov %vm22003_vm0 }
 0x15d   : > { %13532 = vmatmul.mubr.msk.f32.gmra.mrb[14].mxu1 %vm22011_vm9, %v17015_v46  ;;  %13487 = vmatprep.mubr.msk.f32.mxu0 %vm16028_vm7, %v16027_v56  ;;  %vm22025_vm9 = vmmov %vm22003_vm0 }
 0x15e   : > { %13534 = vmatprep.mubr.msk.f32.mxu1 %vm16028_vm7, %v16027_v56 }
 0x160   : > { %13488 = vmatmul.mubr.msk.f32.gmra.mrb[16].mxu0 %vm22012_vm2, %v17026_v48  ;;  %vm22026_vm2 = vmmov %vm22003_vm0 }
 0x161   : > { %13535 = vmatmul.mubr.msk.f32.gmra.mrb[16].mxu1 %vm22013_vm11, %v17029_v57  ;;  %13490 = vmatprep.mubr.msk.f32.mxu0 %vm16028_vm7, %v16027_v56  ;;  %vm22027_vm11 = vmmov %vm22003_vm0 }
 0x162   : > { %13537 = vmatprep.mubr.msk.f32.mxu1 %vm16028_vm7, %v16027_v56 }
 0x164   : > { %13491 = vmatmul.mubr.msk.f32.gmra.mrb[18].mxu0 %vm22014_vm5, %v17040_v60  ;;  %vm22028_vm5 = vmmov %vm22003_vm0 }
 0x165   : > { %13538 = vmatmul.mubr.msk.f32.gmra.mrb[18].mxu1 %vm22015_vm10, %v17043_v6  ;;  %13493 = vmatprep.mubr.msk.f32.mxu0 %vm16028_vm7, %v16027_v56  ;;  %vm22029_vm10 = vmmov %vm22003_vm0 }
 0x166   : > { %13540 = vmatprep.mubr.msk.f32.mxu1 %vm16028_vm7, %v16027_v56 }
 0x168   : > { %13494 = vmatmul.mubr.msk.f32.gmra.mrb[20].mxu0 %vm22016_vm6, %v17054_v25  ;;  %vm22030_vm6 = vmmov %vm22003_vm0 }
 0x169   : > { %13541 = vmatmul.mubr.msk.f32.gmra.mrb[20].mxu1 %vm22017_vm15, %v17057_v59  ;;  %13496 = vmatprep.mubr.msk.f32.mxu0 %vm16028_vm7, %v16027_v56  ;;  %vm22031_vm15 = vmmov %vm22003_vm0 }
 0x16a   : > { %13543 = vmatprep.mubr.msk.f32.mxu1 %vm16028_vm7, %v16027_v56 }
 0x16c   : > { %13497 = vmatmul.mubr.msk.f32.gmra.mrb[22].mxu0 %vm22003_vm0, %v17068_v38 }
 0x16d   : > { %13544 = vmatmul.mubr.msk.f32.gmra.mrb[22].mxu1 %vm22018_vm8, %v17071_v39  ;;  %13499 = vmatprep.mubr.msk.f32.mxu0 %vm16028_vm7, %v16027_v56  ;;  %vm22032_vm8 = vmmov %vm22003_vm0 }
 0x16e   : > { %13546 = vmatprep.mubr.msk.f32.mxu1 %vm16028_vm7, %v16027_v56 }
 0x170   : > { %13500 = vmatmul.mubr.msk.f32.gmra.mrb[24].mxu0 %vm22019_vm14, %v17082_v63  ;;  %vm22033_vm14 = vmmov %vm22003_vm0 }
 0x171   : > { %13547 = vmatmul.mubr.msk.f32.gmra.mrb[24].mxu1 %vm22020_vm3, %v17085_v49  ;;  %13502 = vmatprep.mubr.msk.f32.mxu0 %vm16028_vm7, %v16027_v56  ;;  %vm22034_vm3 = vmmov %vm22003_vm0 }
 0x172   : > { %13549 = vmatprep.mubr.msk.f32.mxu1 %vm16028_vm7, %v16027_v56 }
 0x174   : > { %13503 = vmatmul.mubr.msk.f32.gmra.mrb[26].mxu0 %vm22021_vm4, %v17096_v13  ;;  %vm22035_vm4 = vmmov %vm22003_vm0 }
 0x175   : > { %13550 = vmatmul.mubr.msk.f32.gmra.mrb[26].mxu1 %vm22022_vm12, %v17099_v31  ;;  %13505 = vmatprep.mubr.msk.f32.mxu0 %vm16028_vm7, %v16027_v56  ;;  %vm22036_vm12 = vmmov %vm22003_vm0 }
 0x176   : > { %13552 = vmatprep.mubr.msk.f32.mxu1 %vm16028_vm7, %v16027_v56 }
 0x178   : > { %13506 = vmatmul.mubr.msk.f32.gmra.mrb[28].mxu0 %vm22023_vm13, %v17110_v32  ;;  %vm22037_vm13 = vmmov %vm22003_vm0 }
 0x179   : > { %13553 = vmatmul.mubr.msk.f32.gmra.mrb[28].mxu1 %vm22024_vm1, %v17113_v26  ;;  %13557 = vmatprep.mubr.msk.f32.mxu0 %vm16028_vm7, %v16027_v56  ;;  %vm22038_vm1 = vmmov %vm22003_vm0 }
 0x17a   : > { %13604 = vmatprep.mubr.msk.f32.mxu1 %vm16028_vm7, %v16027_v56 }
 0x17c   : > { %13558 = vmatmul.mubr.msk.f32.vlgmr.msra.gmra.mrb[30].mxu0 %vm22025_vm9, %v11338_v7  ;;  %vm22039_vm9 = vmmov %vm22003_vm0  ;;  %v17273_v7 = vld [vmem:[%s16939_s21 + $0x69] sm:$0xff] }
 0x17d   : > { %13605 = vmatmul.mubr.msk.f32.vlgmr.msra.gmra.mrb[30].mxu1 %vm22026_vm2, %v11368_v42  ;;  %13650 = vmatpush3.msra.mxu0 %v1872_v47  ;;  %vm22040_vm2 = vmmov %vm22003_vm0  ;;  %v17282_v42 = vld [vmem:[%s16939_s21 + $0x70] sm:$0xff] }
 0x17e   : > { %13697 = vmatpush3.msra.mxu1 %v2090_v21  ;;  %13560 = vmatprep.mubr.msk.f32.mxu0 %vm16028_vm7, %v16027_v56  ;;  %v17287_v47 = vld [vmem:[%s16939_s21 + $0x71] sm:$0xff] }
 0x17f   : > { %13607 = vmatprep.mubr.msk.f32.mxu1 %vm16028_vm7, %v16027_v56  ;;  %13743 = vmatprep.subr.mxu0 %v16027_v56  ;;  %v17296_v21 = vld [vmem:[%s16939_s21 + $0x78] sm:$0xff] }
 0x180   : > { %13790 = vmatprep.subr.mxu1 %v16027_v56  ;;  %13561 = vmatmul.mubr.msk.f32.gmra.mrb[32].mxu0 %vm22027_vm11, %v11339_v20  ;;  %vm22041_vm11 = vmmov %vm22003_vm0  ;;  %v17301_v20 = vld [vmem:[%s16939_s21 + $0x79] sm:$0xff] }
 0x181   : > { %13608 = vmatmul.mubr.msk.f32.gmra.mrb[32].mxu1 %vm22028_vm5, %v11369_v2  ;;  %13563 = vmatprep.mubr.msk.f32.mxu0 %vm16028_vm7, %v16027_v56  ;;  %vm22042_vm5 = vmmov %vm22003_vm0  ;;  %v2308_v2 = vld [vmem:[%s21850_s3 + $0x30] sm:$0xff] }
 0x182   : > { %13610 = vmatprep.mubr.msk.f32.mxu1 %vm16028_vm7, %v16027_v56 }
 0x184   : > { %13564 = vmatmul.mubr.msk.f32.gmra.mrb[34].mxu0 %vm22029_vm10, %v11340_v8  ;;  %vm22043_vm10 = vmmov %vm22003_vm0  ;;  %v2526_v8 = vld [vmem:[%s21850_s3 + $0x38] sm:$0xff] }
 0x185   : > { %13611 = vmatmul.mubr.msk.f32.gmra.mrb[34].mxu1 %vm22030_vm6, %v11370_v9  ;;  %13566 = vmatprep.mubr.msk.f32.mxu0 %vm16028_vm7, %v16027_v56  ;;  %vm22044_vm6 = vmmov %vm22003_vm0  ;;  %v2744_v9 = vld [vmem:[%s21850_s3 + $0x40] sm:$0xff] }
 0x186   : > { %13613 = vmatprep.mubr.msk.f32.mxu1 %vm16028_vm7, %v16027_v56 }
 0x188   : > { %13567 = vmatmul.mubr.msk.f32.gmra.mrb[36].mxu0 %vm22031_vm15, %v11341_v16  ;;  %vm22045_vm15 = vmmov %vm22003_vm0  ;;  %v2962_v16 = vld [vmem:[%s21850_s3 + $0x48] sm:$0xff] }
 0x189   : > { %13614 = vmatmul.mubr.msk.f32.gmra.mrb[36].mxu1 %vm22003_vm0, %v11371_v10  ;;  %13569 = vmatprep.mubr.msk.f32.mxu0 %vm16028_vm7, %v16027_v56 }
 0x18a   : > { %13616 = vmatprep.mubr.msk.f32.mxu1 %vm16028_vm7, %v16027_v56 }
 0x18c   : > { %13570 = vmatmul.mubr.msk.f32.gmra.mrb[38].mxu0 %vm22032_vm8, %v11342_v17  ;;  %vm22046_vm8 = vmmov %vm22003_vm0 }
 0x18d   : > { %13617 = vmatmul.mubr.msk.f32.gmra.mrb[38].mxu1 %vm22033_vm14, %v11372_v18  ;;  %13572 = vmatprep.mubr.msk.f32.mxu0 %vm16028_vm7, %v16027_v56  ;;  %vm22047_vm14 = vmmov %vm22003_vm0 }
 0x18e   : > { %13619 = vmatprep.mubr.msk.f32.mxu1 %vm16028_vm7, %v16027_v56 }
 0x190   : > { %13573 = vmatmul.mubr.msk.f32.gmra.mrb[40].mxu0 %vm22034_vm3, %v17170_v19  ;;  %vm22048_vm3 = vmmov %vm22003_vm0 }
 0x191   : > { %13620 = vmatmul.mubr.msk.f32.gmra.mrb[40].mxu1 %vm22035_vm4, %v17175_v54  ;;  %13575 = vmatprep.mubr.msk.f32.mxu0 %vm16028_vm7, %v16027_v56  ;;  %vm22049_vm4 = vmmov %vm22003_vm0 }
 0x192   : > { %13622 = vmatprep.mubr.msk.f32.mxu1 %vm16028_vm7, %v16027_v56 }
 0x194   : > { %13576 = vmatmul.mubr.msk.f32.gmra.mrb[42].mxu0 %vm22036_vm12, %v17184_v51  ;;  %vm22050_vm12 = vmmov %vm22003_vm0 }
 0x195   : > { %13623 = vmatmul.mubr.msk.f32.gmra.mrb[42].mxu1 %vm22037_vm13, %v17189_v15  ;;  %13578 = vmatprep.mubr.msk.f32.mxu0 %vm16028_vm7, %v16027_v56  ;;  %vm22051_vm13 = vmmov %vm22003_vm0 }
 0x196   : > { %13625 = vmatprep.mubr.msk.f32.mxu1 %vm16028_vm7, %v16027_v56 }
 0x198   : > { %13579 = vmatmul.mubr.msk.f32.gmra.mrb[44].mxu0 %vm22038_vm1, %v17198_v34  ;;  %vm22052_vm1 = vmmov %vm22003_vm0 }
 0x199   : > { %13626 = vmatmul.mubr.msk.f32.gmra.mrb[44].mxu1 %vm22039_vm9, %v17203_v4  ;;  %13581 = vmatprep.mubr.msk.f32.mxu0 %vm16028_vm7, %v16027_v56  ;;  %vm22053_vm9 = vmmov %vm22003_vm0 }
 0x19a   : > { %13628 = vmatprep.mubr.msk.f32.mxu1 %vm16028_vm7, %v16027_v56 }
 0x19c   : > { %13582 = vmatmul.mubr.msk.f32.gmra.mrb[46].mxu0 %vm22040_vm2, %v17212_v35  ;;  %vm22054_vm2 = vmmov %vm22003_vm0 }
 0x19d   : > { %13629 = vmatmul.mubr.msk.f32.gmra.mrb[46].mxu1 %vm22041_vm11, %v17217_v12  ;;  %13584 = vmatprep.mubr.msk.f32.mxu0 %vm16028_vm7, %v16027_v56  ;;  %vm22055_vm11 = vmmov %vm22003_vm0 }
 0x19e   : > { %13631 = vmatprep.mubr.msk.f32.mxu1 %vm16028_vm7, %v16027_v56 }
 0x1a0   : > { %13585 = vmatmul.mubr.msk.f32.gmra.mrb[48].mxu0 %vm22042_vm5, %v17226_v52  ;;  %vm22056_vm5 = vmmov %vm22003_vm0 }
 0x1a1   : > { %13632 = vmatmul.mubr.msk.f32.gmra.mrb[48].mxu1 %vm22043_vm10, %v17231_v14  ;;  %13587 = vmatprep.mubr.msk.f32.mxu0 %vm16028_vm7, %v16027_v56  ;;  %vm22057_vm10 = vmmov %vm22003_vm0 }
 0x1a2   : > { %13634 = vmatprep.mubr.msk.f32.mxu1 %vm16028_vm7, %v16027_v56 }
 0x1a4   : > { %13588 = vmatmul.mubr.msk.f32.gmra.mrb[50].mxu0 %vm22044_vm6, %v17240_v28  ;;  %vm22058_vm6 = vmmov %vm22003_vm0 }
 0x1a5   : > { %13635 = vmatmul.mubr.msk.f32.gmra.mrb[50].mxu1 %vm22045_vm15, %v17245_v29  ;;  %13590 = vmatprep.mubr.msk.f32.mxu0 %vm16028_vm7, %v16027_v56  ;;  %vm22059_vm15 = vmmov %vm22003_vm0 }
 0x1a6   : > { %13637 = vmatprep.mubr.msk.f32.mxu1 %vm16028_vm7, %v16027_v56 }
 0x1a8   : > { %13591 = vmatmul.mubr.msk.f32.gmra.mrb[52].mxu0 %vm22003_vm0, %v17254_v36 }
 0x1a9   : > { %13638 = vmatmul.mubr.msk.f32.gmra.mrb[52].mxu1 %vm22046_vm8, %v17259_v33  ;;  %13593 = vmatprep.mubr.msk.f32.mxu0 %vm16028_vm7, %v16027_v56  ;;  %vm22060_vm8 = vmmov %vm22003_vm0 }
 0x1aa   : > { %13640 = vmatprep.mubr.msk.f32.mxu1 %vm16028_vm7, %v16027_v56 }
 0x1ac   : > { %13594 = vmatmul.mubr.msk.f32.gmra.mrb[54].mxu0 %vm22047_vm14, %v17268_v58  ;;  %vm22061_vm14 = vmmov %vm22003_vm0 }
 0x1ad   : > { %13641 = vmatmul.mubr.msk.f32.gmra.mrb[54].mxu1 %vm22048_vm3, %v17273_v7  ;;  %13596 = vmatprep.mubr.msk.f32.mxu0 %vm16028_vm7, %v16027_v56  ;;  %vm22062_vm3 = vmmov %vm22003_vm0 }
 0x1ae   : > { %13643 = vmatprep.mubr.msk.f32.mxu1 %vm16028_vm7, %v16027_v56 }
 0x1b0   : > { %13597 = vmatmul.mubr.msk.f32.gmra.mrb[56].mxu0 %vm22049_vm4, %v17282_v42  ;;  %vm22063_vm4 = vmmov %vm22003_vm0 }
 0x1b1   : > { %13644 = vmatmul.mubr.msk.f32.gmra.mrb[56].mxu1 %vm22050_vm12, %v17287_v47  ;;  %13599 = vmatprep.mubr.msk.f32.mxu0 %vm16028_vm7, %v16027_v56  ;;  %vm22064_vm12 = vmmov %vm22003_vm0 }
 0x1b2   : > { %13646 = vmatprep.mubr.msk.f32.mxu1 %vm16028_vm7, %v16027_v56 }
 0x1b4   : > { %13600 = vmatmul.mubr.msk.f32.gmra.mrb[58].mxu0 %vm22051_vm13, %v17296_v21  ;;  %vm22065_vm13 = vmmov %vm22003_vm0 }
 0x1b5   : > { %13647 = vmatmul.mubr.msk.f32.gmra.mrb[58].mxu1 %vm22052_vm1, %v17301_v20  ;;  %13651 = vmatprep.mubr.msk.f32.mxu0 %vm16028_vm7, %v16027_v56  ;;  %vm22066_vm1 = vmmov %vm22003_vm0 }
 0x1b6   : > { %13698 = vmatprep.mubr.msk.f32.mxu1 %vm16028_vm7, %v16027_v56 }
 0x1b8   : > { %13652 = vmatmul.mubr.msk.f32.vlgmr.msra.gmra.mrb[60].mxu0 %vm22053_vm9, %v16987_v40  ;;  %vm22067_vm9 = vmmov %vm22003_vm0  ;;  %v17403_v40 = vld [vmem:[%s16939_s21 + $0x7f] sm:$0xff] }
 0x1b9   : > { %13699 = vmatmul.mubr.msk.f32.vlgmr.msra.gmra.mrb[60].mxu1 %vm22054_vm2, %v16984_v50  ;;  %13744 = vmatpush3.msra.mxu0 %v2308_v2  ;;  %vm22068_vm2 = vmmov %vm22003_vm0  ;;  %v17398_v50 = vld [vmem:[%s16939_s21 + $0x7e] sm:$0xff] }
 0x1ba   : > { %13791 = vmatpush3.msra.mxu1 %v2526_v8  ;;  %13654 = vmatprep.mubr.msk.f32.mxu0 %vm16028_vm7, %v16027_v56 }
 0x1bb   : > { %13701 = vmatprep.mubr.msk.f32.mxu1 %vm16028_vm7, %v16027_v56  ;;  %13837 = vmatprep.subr.mxu0 %v16027_v56 }
 0x1bc   : > { %13884 = vmatprep.subr.mxu1 %v16027_v56  ;;  %13655 = vmatmul.mubr.msk.f32.gmra.mrb[62].mxu0 %vm22055_vm11, %v17001_v24  ;;  %vm22069_vm11 = vmmov %vm22003_vm0  ;;  %v17417_v24 = vld [vmem:[%s16939_s21 + $0x87] sm:$0xff] }
 0x1bd   : > { %13702 = vmatmul.mubr.msk.f32.gmra.mrb[62].mxu1 %vm22056_vm5, %v16998_v5  ;;  %13657 = vmatprep.mubr.msk.f32.mxu0 %vm16028_vm7, %v16027_v56  ;;  %vm22070_vm5 = vmmov %vm22003_vm0  ;;  %v17412_v5 = vld [vmem:[%s16939_s21 + $0x86] sm:$0xff] }
 0x1be   : > { %13704 = vmatprep.mubr.msk.f32.mxu1 %vm16028_vm7, %v16027_v56 }
 0x1c0   : > { %13658 = vmatmul.mubr.msk.f32.gmra.mrb[64].mxu0 %vm22057_vm10, %v17015_v46  ;;  %vm22071_vm10 = vmmov %vm22003_vm0  ;;  %v17431_v46 = vld [vmem:[%s16939_s21 + $0x8f] sm:$0xff] }
 0x1c1   : > { %13705 = vmatmul.mubr.msk.f32.gmra.mrb[64].mxu1 %vm22058_vm6, %v17012_v3  ;;  %13660 = vmatprep.mubr.msk.f32.mxu0 %vm16028_vm7, %v16027_v56  ;;  %vm22072_vm6 = vmmov %vm22003_vm0  ;;  %v17426_v3 = vld [vmem:[%s16939_s21 + $0x8e] sm:$0xff] }
 0x1c2   : > { %13707 = vmatprep.mubr.msk.f32.mxu1 %vm16028_vm7, %v16027_v56 }
 0x1c4   : > { %13661 = vmatmul.mubr.msk.f32.gmra.mrb[66].mxu0 %vm22059_vm15, %v17029_v57  ;;  %vm22073_vm15 = vmmov %vm22003_vm0  ;;  %v17445_v57 = vld [vmem:[%s16939_s21 + $0x97] sm:$0xff] }
 0x1c5   : > { %13708 = vmatmul.mubr.msk.f32.gmra.mrb[66].mxu1 %vm22003_vm0, %v17026_v48  ;;  %13663 = vmatprep.mubr.msk.f32.mxu0 %vm16028_vm7, %v16027_v56  ;;  %v17440_v48 = vld [vmem:[%s16939_s21 + $0x96] sm:$0xff] }
 0x1c6   : > { %13710 = vmatprep.mubr.msk.f32.mxu1 %vm16028_vm7, %v16027_v56 }
 0x1c8   : > { %13664 = vmatmul.mubr.msk.f32.gmra.mrb[68].mxu0 %vm22060_vm8, %v17043_v6  ;;  %vm22074_vm8 = vmmov %vm22003_vm0  ;;  %v17459_v6 = vld [vmem:[%s16939_s21 + $0x9f] sm:$0xff] }
 0x1c9   : > { %13711 = vmatmul.mubr.msk.f32.gmra.mrb[68].mxu1 %vm22061_vm14, %v17040_v60  ;;  %13666 = vmatprep.mubr.msk.f32.mxu0 %vm16028_vm7, %v16027_v56  ;;  %vm22075_vm14 = vmmov %vm22003_vm0  ;;  %v17454_v60 = vld [vmem:[%s16939_s21 + $0x9e] sm:$0xff] }
 0x1ca   : > { %13713 = vmatprep.mubr.msk.f32.mxu1 %vm16028_vm7, %v16027_v56 }
 0x1cc   : > { %13667 = vmatmul.mubr.msk.f32.gmra.mrb[70].mxu0 %vm22062_vm3, %v17057_v59  ;;  %vm22076_vm3 = vmmov %vm22003_vm0 }
 0x1cd   : > { %13714 = vmatmul.mubr.msk.f32.gmra.mrb[70].mxu1 %vm22063_vm4, %v17054_v25  ;;  %13669 = vmatprep.mubr.msk.f32.mxu0 %vm16028_vm7, %v16027_v56  ;;  %vm22077_vm4 = vmmov %vm22003_vm0 }
 0x1ce   : > { %13716 = vmatprep.mubr.msk.f32.mxu1 %vm16028_vm7, %v16027_v56 }
 0x1d0   : > { %13670 = vmatmul.mubr.msk.f32.gmra.mrb[72].mxu0 %vm22064_vm12, %v17071_v39  ;;  %vm22078_vm12 = vmmov %vm22003_vm0 }
 0x1d1   : > { %13717 = vmatmul.mubr.msk.f32.gmra.mrb[72].mxu1 %vm22065_vm13, %v17068_v38  ;;  %13672 = vmatprep.mubr.msk.f32.mxu0 %vm16028_vm7, %v16027_v56  ;;  %vm22079_vm13 = vmmov %vm22003_vm0 }
 0x1d2   : > { %13719 = vmatprep.mubr.msk.f32.mxu1 %vm16028_vm7, %v16027_v56 }
 0x1d4   : > { %13673 = vmatmul.mubr.msk.f32.gmra.mrb[74].mxu0 %vm22066_vm1, %v17085_v49  ;;  %vm22080_vm1 = vmmov %vm22003_vm0 }
 0x1d5   : > { %13720 = vmatmul.mubr.msk.f32.gmra.mrb[74].mxu1 %vm22067_vm9, %v17082_v63  ;;  %13675 = vmatprep.mubr.msk.f32.mxu0 %vm16028_vm7, %v16027_v56  ;;  %vm22081_vm9 = vmmov %vm22003_vm0 }
 0x1d6   : > { %13722 = vmatprep.mubr.msk.f32.mxu1 %vm16028_vm7, %v16027_v56 }
 0x1d8   : > { %13676 = vmatmul.mubr.msk.f32.gmra.mrb[76].mxu0 %vm22068_vm2, %v17099_v31  ;;  %vm22082_vm2 = vmmov %vm22003_vm0 }
 0x1d9   : > { %13723 = vmatmul.mubr.msk.f32.gmra.mrb[76].mxu1 %vm22069_vm11, %v17096_v13  ;;  %13678 = vmatprep.mubr.msk.f32.mxu0 %vm16028_vm7, %v16027_v56  ;;  %vm22083_vm11 = vmmov %vm22003_vm0 }
 0x1da   : > { %13725 = vmatprep.mubr.msk.f32.mxu1 %vm16028_vm7, %v16027_v56 }
 0x1dc   : > { %13679 = vmatmul.mubr.msk.f32.gmra.mrb[78].mxu0 %vm22070_vm5, %v17113_v26  ;;  %vm22084_vm5 = vmmov %vm22003_vm0 }
 0x1dd   : > { %13726 = vmatmul.mubr.msk.f32.gmra.mrb[78].mxu1 %vm22071_vm10, %v17110_v32  ;;  %13681 = vmatprep.mubr.msk.f32.mxu0 %vm16028_vm7, %v16027_v56  ;;  %vm22085_vm10 = vmmov %vm22003_vm0 }
 0x1de   : > { %13728 = vmatprep.mubr.msk.f32.mxu1 %vm16028_vm7, %v16027_v56 }
 0x1e0   : > { %13682 = vmatmul.mubr.msk.f32.gmra.mrb[80].mxu0 %vm22072_vm6, %v17398_v50  ;;  %vm22086_vm6 = vmmov %vm22003_vm0 }
 0x1e1   : > { %13729 = vmatmul.mubr.msk.f32.gmra.mrb[80].mxu1 %vm22073_vm15, %v17403_v40  ;;  %13684 = vmatprep.mubr.msk.f32.mxu0 %vm16028_vm7, %v16027_v56  ;;  %vm22087_vm15 = vmmov %vm22003_vm0 }
 0x1e2   : > { %13731 = vmatprep.mubr.msk.f32.mxu1 %vm16028_vm7, %v16027_v56 }
 0x1e4   : > { %13685 = vmatmul.mubr.msk.f32.gmra.mrb[82].mxu0 %vm22003_vm0, %v17412_v5 }
 0x1e5   : > { %13732 = vmatmul.mubr.msk.f32.gmra.mrb[82].mxu1 %vm22074_vm8, %v17417_v24  ;;  %13687 = vmatprep.mubr.msk.f32.mxu0 %vm16028_vm7, %v16027_v56  ;;  %vm22088_vm8 = vmmov %vm22003_vm0 }
 0x1e6   : > { %13734 = vmatprep.mubr.msk.f32.mxu1 %vm16028_vm7, %v16027_v56 }
 0x1e8   : > { %13688 = vmatmul.mubr.msk.f32.gmra.mrb[84].mxu0 %vm22075_vm14, %v17426_v3  ;;  %vm22089_vm14 = vmmov %vm22003_vm0 }
 0x1e9   : > { %13735 = vmatmul.mubr.msk.f32.gmra.mrb[84].mxu1 %vm22076_vm3, %v17431_v46  ;;  %13690 = vmatprep.mubr.msk.f32.mxu0 %vm16028_vm7, %v16027_v56  ;;  %vm22090_vm3 = vmmov %vm22003_vm0 }
 0x1ea   : > { %13737 = vmatprep.mubr.msk.f32.mxu1 %vm16028_vm7, %v16027_v56 }
 0x1ec   : > { %13691 = vmatmul.mubr.msk.f32.gmra.mrb[86].mxu0 %vm22077_vm4, %v17440_v48  ;;  %vm22091_vm4 = vmmov %vm22003_vm0 }
 0x1ed   : > { %13738 = vmatmul.mubr.msk.f32.gmra.mrb[86].mxu1 %vm22078_vm12, %v17445_v57  ;;  %13693 = vmatprep.mubr.msk.f32.mxu0 %vm16028_vm7, %v16027_v56  ;;  %vm22092_vm12 = vmmov %vm22003_vm0 }
 0x1ee   : > { %13740 = vmatprep.mubr.msk.f32.mxu1 %vm16028_vm7, %v16027_v56 }
 0x1f0   : > { %13694 = vmatmul.mubr.msk.f32.gmra.mrb[88].mxu0 %vm22079_vm13, %v17454_v60  ;;  %vm22093_vm13 = vmmov %vm22003_vm0 }
 0x1f1   : > { %13741 = vmatmul.mubr.msk.f32.gmra.mrb[88].mxu1 %vm22080_vm1, %v17459_v6  ;;  %13745 = vmatprep.mubr.msk.f32.mxu0 %vm16028_vm7, %v16027_v56  ;;  %vm22094_vm1 = vmmov %vm22003_vm0 }
 0x1f2   : > { %13792 = vmatprep.mubr.msk.f32.mxu1 %vm16028_vm7, %v16027_v56 }
 0x1f4   : > { %13746 = vmatmul.mubr.msk.f32.vlgmr.msra.gmra.mrb[90].mxu0 %vm22081_vm9, %v17170_v19  ;;  %vm22095_vm9 = vmmov %vm22003_vm0 }
 0x1f5   : > { %13793 = vmatmul.mubr.msk.f32.vlgmr.msra.gmra.mrb[90].mxu1 %vm22082_vm2, %v17175_v54  ;;  %13838 = vmatpush3.msra.mxu0 %v2744_v9  ;;  %vm22096_vm2 = vmmov %vm22003_vm0 }
 0x1f6   : > { %13885 = vmatpush3.msra.mxu1 %v2962_v16  ;;  %13748 = vmatprep.mubr.msk.f32.mxu0 %vm16028_vm7, %v16027_v56 }
 0x1f7   : > { %13795 = vmatprep.mubr.msk.f32.mxu1 %vm16028_vm7, %v16027_v56  ;;  %13931 = vmatprep.subr.mxu0 %v16027_v56 }
 0x1f8   : > { %13978 = vmatprep.subr.mxu1 %v16027_v56  ;;  %13749 = vmatmul.mubr.msk.f32.gmra.mrb[92].mxu0 %vm22083_vm11, %v17184_v51  ;;  %vm22097_vm11 = vmmov %vm22003_vm0 }
 0x1f9   : > { %13796 = vmatmul.mubr.msk.f32.gmra.mrb[92].mxu1 %vm22084_vm5, %v17189_v15  ;;  %13751 = vmatprep.mubr.msk.f32.mxu0 %vm16028_vm7, %v16027_v56  ;;  %vm22098_vm5 = vmmov %vm22003_vm0 }
 0x1fa   : > { %13798 = vmatprep.mubr.msk.f32.mxu1 %vm16028_vm7, %v16027_v56 }
 0x1fc   : > { %13752 = vmatmul.mubr.msk.f32.gmra.mrb[94].mxu0 %vm22085_vm10, %v17198_v34  ;;  %vm22099_vm10 = vmmov %vm22003_vm0 }
 0x1fd   : > { %13799 = vmatmul.mubr.msk.f32.gmra.mrb[94].mxu1 %vm22086_vm6, %v17203_v4  ;;  %13754 = vmatprep.mubr.msk.f32.mxu0 %vm16028_vm7, %v16027_v56  ;;  %vm22100_vm6 = vmmov %vm22003_vm0 }
 0x1fe   : > { %13801 = vmatprep.mubr.msk.f32.mxu1 %vm16028_vm7, %v16027_v56 }
 0x200   : > { %13755 = vmatmul.mubr.msk.f32.gmra.mrb[96].mxu0 %vm22087_vm15, %v17212_v35  ;;  %vm22101_vm15 = vmmov %vm22003_vm0 }
 0x201   : > { %13802 = vmatmul.mubr.msk.f32.gmra.mrb[96].mxu1 %vm22003_vm0, %v17217_v12  ;;  %13757 = vmatprep.mubr.msk.f32.mxu0 %vm16028_vm7, %v16027_v56  ;;  %v17560_v12 = vld [vmem:[%s16939_s21 + $0x80] sm:$0xff] }
 0x202   : > { %13804 = vmatprep.mubr.msk.f32.mxu1 %vm16028_vm7, %v16027_v56 }
 0x204   : > { %13758 = vmatmul.mubr.msk.f32.gmra.mrb[98].mxu0 %vm22088_vm8, %v17226_v52  ;;  %v17565_v52 = vld [vmem:[%s16939_s21 + $0x81] sm:$0xff]  ;;  %vm22102_vm8 = vmmov %vm22003_vm0 }
 0x205   : > { %13805 = vmatmul.mubr.msk.f32.gmra.mrb[98].mxu1 %vm22089_vm14, %v17231_v14  ;;  %13760 = vmatprep.mubr.msk.f32.mxu0 %vm16028_vm7, %v16027_v56  ;;  %vm22103_vm14 = vmmov %vm22003_vm0 }
 0x206   : > { %13807 = vmatprep.mubr.msk.f32.mxu1 %vm16028_vm7, %v16027_v56 }
 0x208   : > { %13761 = vmatmul.mubr.msk.f32.gmra.mrb[100].mxu0 %vm22090_vm3, %v17240_v28  ;;  %vm22104_vm3 = vmmov %vm22003_vm0 }
 0x209   : > { %13808 = vmatmul.mubr.msk.f32.gmra.mrb[100].mxu1 %vm22091_vm4, %v17245_v29  ;;  %13763 = vmatprep.mubr.msk.f32.mxu0 %vm16028_vm7, %v16027_v56  ;;  %vm22105_vm4 = vmmov %vm22003_vm0 }
 0x20a   : > { %13810 = vmatprep.mubr.msk.f32.mxu1 %vm16028_vm7, %v16027_v56 }
 0x20c   : > { %13764 = vmatmul.mubr.msk.f32.gmra.mrb[102].mxu0 %vm22092_vm12, %v17254_v36  ;;  %vm22106_vm12 = vmmov %vm22003_vm0 }
 0x20d   : > { %13811 = vmatmul.mubr.msk.f32.gmra.mrb[102].mxu1 %vm22093_vm13, %v17259_v33  ;;  %13766 = vmatprep.mubr.msk.f32.mxu0 %vm16028_vm7, %v16027_v56  ;;  %vm22107_vm13 = vmmov %vm22003_vm0 }
 0x20e   : > { %13813 = vmatprep.mubr.msk.f32.mxu1 %vm16028_vm7, %v16027_v56 }
 0x210   : > { %13767 = vmatmul.mubr.msk.f32.gmra.mrb[104].mxu0 %vm22094_vm1, %v17268_v58  ;;  %vm22108_vm1 = vmmov %vm22003_vm0 }
 0x211   : > { %13814 = vmatmul.mubr.msk.f32.gmra.mrb[104].mxu1 %vm22095_vm9, %v17273_v7  ;;  %13769 = vmatprep.mubr.msk.f32.mxu0 %vm16028_vm7, %v16027_v56  ;;  %vm22109_vm9 = vmmov %vm22003_vm0 }
 0x212   : > { %13816 = vmatprep.mubr.msk.f32.mxu1 %vm16028_vm7, %v16027_v56 }
 0x213   : > { %v1160_v10 = vpop.f32.mrb[0].mxu0 }
 0x214   : > { %v1345_v17 = vpop.f32.mrb[0].mxu1  ;;  %v13465_v19 = vpop.f32.mrb[1].mxu0  ;;  %13770 = vmatmul.mubr.msk.f32.gmra.mrb[106].mxu0 %vm22096_vm2, %v17282_v42  ;;  %vm22110_vm2 = vmmov %vm22003_vm0 }
 0x215   : > { %v17541_v18 = vadd.f32 %v1345_v17, %v1160_v10  ;;  %v13512_v54 = vpop.f32.mrb[1].mxu1  ;;  %13817 = vmatmul.mubr.msk.f32.gmra.mrb[106].mxu1 %vm22097_vm11, %v17287_v47  ;;  %13772 = vmatprep.mubr.msk.f32.mxu0 %vm16028_vm7, %v16027_v56  ;;  %v17576_v10 = vld [vmem:[%s16939_s21 + $0x88] sm:$0xff]  ;;  %vm22111_vm11 = vmmov %vm22003_vm0 }
 0x216   : > { %13819 = vmatprep.mubr.msk.f32.mxu1 %vm16028_vm7, %v16027_v56  ;;  %v17581_v17 = vld [vmem:[%s16939_s21 + $0x89] sm:$0xff] }
 0x217   : > { %v1165_v51 = vpop.f32.mrb[2].mxu0 }
 0x218   : > { %v1350_v15 = vpop.f32.mrb[2].mxu1  ;;  %v13468_v4 = vpop.f32.mrb[3].mxu0  ;;  %13773 = vmatmul.mubr.msk.f32.gmra.mrb[108].mxu0 %vm22098_vm5, %v17296_v21  ;;  %vm22112_vm5 = vmmov %vm22003_vm0 }
 0x219   : > { %v17551_v34 = vadd.f32 %v1350_v15, %v1165_v51  ;;  %v13515_v35 = vpop.f32.mrb[3].mxu1  ;;  %13820 = vmatmul.mubr.msk.f32.gmra.mrb[108].mxu1 %vm22099_vm10, %v17301_v20  ;;  %13775 = vmatprep.mubr.msk.f32.mxu0 %vm16028_vm7, %v16027_v56  ;;  %vm22113_vm10 = vmmov %vm22003_vm0 }
 0x21a   : > { %13822 = vmatprep.mubr.msk.f32.mxu1 %vm16028_vm7, %v16027_v56  ;;  %v17592_v35 = vld [vmem:[%s16939_s21 + $0x90] sm:$0xff] }
 0x21b   : > { %v1170_v14 = vpop.f32.mrb[4].mxu0 }
 0x21c   : > { %v1355_v2 = vpop.f32.mrb[4].mxu1  ;;  %v13471_v9 = vpop.f32.mrb[5].mxu0  ;;  %13776 = vmatmul.mubr.msk.f32.gmra.mrb[110].mxu0 %vm22100_vm6, %v17560_v12  ;;  %vm22114_vm6 = vmmov %vm22003_vm0 }
 0x21d   : > { %v17567_v8 = vadd.f32 %v1355_v2, %v1170_v14  ;;  %v13518_v16 = vpop.f32.mrb[5].mxu1  ;;  %13823 = vmatmul.mubr.msk.f32.gmra.mrb[110].mxu1 %vm22101_vm15, %v17565_v52  ;;  %13778 = vmatprep.mubr.msk.f32.mxu0 %vm16028_vm7, %v16027_v56  ;;  %v17597_v14 = vld [vmem:[%s16939_s21 + $0x91] sm:$0xff]  ;;  %vm22115_vm15 = vmmov %vm22003_vm0 }
 0x21e   : > { %13825 = vmatprep.mubr.msk.f32.mxu1 %vm16028_vm7, %v16027_v56 }
 0x21f   : > { %v1175_v19 = vpop.f32.mrb[6].mxu0 }
 0x220   : > { %v1360_v54 = vpop.f32.mrb[6].mxu1  ;;  %v13474_v15 = vpop.f32.mrb[7].mxu0  ;;  %13779 = vmatmul.mubr.msk.f32.gmra.mrb[112].mxu0 %vm22003_vm0, %v17576_v10 }
 0x221   : > { %v17583_v51 = vadd.f32 %v1360_v54, %v1175_v19  ;;  %v13521_v4 = vpop.f32.mrb[7].mxu1  ;;  %13826 = vmatmul.mubr.msk.f32.gmra.mrb[112].mxu1 %vm22102_vm8, %v17581_v17  ;;  %13781 = vmatprep.mubr.msk.f32.mxu0 %vm16028_vm7, %v16027_v56  ;;  %v17608_v15 = vld [vmem:[%s16939_s21 + $0x98] sm:$0xff]  ;;  %vm22116_vm8 = vmmov %vm22003_vm0 }
 0x222   : > { %13828 = vmatprep.mubr.msk.f32.mxu1 %vm16028_vm7, %v16027_v56  ;;  %v17613_v4 = vld [vmem:[%s16939_s21 + $0x99] sm:$0xff] }
 0x223   : > { %v1180_v2 = vpop.f32.mrb[8].mxu0 }
 0x224   : > { %v1365_v9 = vpop.f32.mrb[8].mxu1  ;;  %v13477_v19 = vpop.f32.mrb[9].mxu0  ;;  %13782 = vmatmul.mubr.msk.f32.gmra.mrb[114].mxu0 %vm22103_vm14, %v17592_v35  ;;  %vm22117_vm14 = vmmov %vm22003_vm0 }
 0x225   : > { %v17599_v16 = vadd.f32 %v1365_v9, %v1180_v2  ;;  %v13524_v54 = vpop.f32.mrb[9].mxu1  ;;  %13829 = vmatmul.mubr.msk.f32.gmra.mrb[114].mxu1 %vm22104_vm3, %v17597_v14  ;;  %13784 = vmatprep.mubr.msk.f32.mxu0 %vm16028_vm7, %v16027_v56  ;;  %vm22118_vm3 = vmmov %vm22003_vm0 }
 0x226   : > { %13831 = vmatprep.mubr.msk.f32.mxu1 %vm16028_vm7, %v16027_v56 }
 0x227   : > { %v1185_v2 = vpop.f32.mrb[10].mxu0 }
 0x228   : > { %v1370_v9 = vpop.f32.mrb[10].mxu1  ;;  %v13480_v1 = vpop.f32.mrb[11].mxu0  ;;  %13785 = vmatmul.mubr.msk.f32.gmra.mrb[116].mxu0 %vm22105_vm4, %v17608_v15  ;;  %vm22119_vm4 = vmmov %vm22003_vm0 }
 0x229   : > { %v17615_v19 = vadd.f32 %v1370_v9, %v1185_v2  ;;  %v13527_v54 = vpop.f32.mrb[11].mxu1  ;;  %13832 = vmatmul.mubr.msk.f32.gmra.mrb[116].mxu1 %vm22106_vm12, %v17613_v4  ;;  %13787 = vmatprep.mubr.msk.f32.mxu0 %vm16028_vm7, %v16027_v56  ;;  %vm22120_vm12 = vmmov %vm22003_vm0 }
 0x22a   : > { %13834 = vmatprep.mubr.msk.f32.mxu1 %vm16028_vm7, %v16027_v56 }
 0x22b   : > { %v1190_v2 = vpop.f32.mrb[12].mxu0 }
 0x22c   : > { %v1375_v9 = vpop.f32.mrb[12].mxu1  ;;  %v13483_v45 = vpop.f32.mrb[13].mxu0  ;;  %13788 = vmatmul.mubr.msk.f32.gmra.mrb[118].mxu0 %vm22107_vm13, %v17624_v41  ;;  %vm22121_vm13 = vmmov %vm22003_vm0 }
 0x22d   : > { %v17631_v1 = vadd.f32 %v1375_v9, %v1190_v2  ;;  %v13530_v54 = vpop.f32.mrb[13].mxu1  ;;  %13835 = vmatmul.mubr.msk.f32.gmra.mrb[118].mxu1 %vm22108_vm1, %v17629_v37  ;;  %13839 = vmatprep.mubr.msk.f32.mxu0 %vm16028_vm7, %v16027_v56  ;;  %v3398_v45 = vld [vmem:[%s21850_s3 + $0x58] sm:$0xff]  ;;  %vm22122_vm1 = vmmov %vm22003_vm0 }
 0x22e   : > { %13886 = vmatprep.mubr.msk.f32.mxu1 %vm16028_vm7, %v16027_v56 }
 0x22f   : > { %v1195_v2 = vpop.f32.mrb[14].mxu0 }
 0x230   : > { %v1380_v9 = vpop.f32.mrb[14].mxu1  ;;  %v13486_v0 = vpop.f32.mrb[15].mxu0  ;;  %13840 = vmatmul.mubr.msk.f32.vlgmr.msra.gmra.mrb[120].mxu0 %vm22109_vm9, %v17057_v59  ;;  %vm22123_vm9 = vmmov %vm22003_vm0 }
 0x231   : > { %v17647_v54 = vadd.f32 %v1380_v9, %v1195_v2  ;;  %v13533_v55 = vpop.f32.mrb[15].mxu1  ;;  %13887 = vmatmul.mubr.msk.f32.vlgmr.msra.gmra.mrb[120].mxu1 %vm22110_vm2, %v17054_v25  ;;  %13932 = vmatpush3.msra.mxu0 %v3180_v23  ;;  %vm22124_vm2 = vmmov %vm22003_vm0 }
 0x232   : > { %13979 = vmatpush3.msra.mxu1 %v3398_v45  ;;  %13842 = vmatprep.mubr.msk.f32.mxu0 %vm16028_vm7, %v16027_v56 }
 0x233   : > { %13889 = vmatprep.mubr.msk.f32.mxu1 %vm16028_vm7, %v16027_v56  ;;  %v1200_v44 = vpop.f32.mrb[16].mxu0  ;;  %14025 = vmatprep.subr.mxu0 %v16027_v56 }
 0x234   : > { %v1385_v62 = vpop.f32.mrb[16].mxu1  ;;  %14072 = vmatprep.subr.mxu1 %v16027_v56  ;;  %v13489_v55 = vpop.f32.mrb[17].mxu0  ;;  %13843 = vmatmul.mubr.msk.f32.gmra.mrb[122].mxu0 %vm22111_vm11, %v17071_v39  ;;  %vm22125_vm11 = vmmov %vm22003_vm0 }
 0x235   : > { %v17659_v0 = vadd.f32 %v1385_v62, %v1200_v44  ;;  %v13536_v23 = vpop.f32.mrb[17].mxu1  ;;  %13890 = vmatmul.mubr.msk.f32.gmra.mrb[122].mxu1 %vm22112_vm5, %v17068_v38  ;;  %13845 = vmatprep.mubr.msk.f32.mxu0 %vm16028_vm7, %v16027_v56  ;;  %vm22126_vm5 = vmmov %vm22003_vm0 }
 0x236   : > { %13892 = vmatprep.mubr.msk.f32.mxu1 %vm16028_vm7, %v16027_v56 }
 0x237   : > { %v1205_v25 = vpop.f32.mrb[18].mxu0 }
 0x238   : > { %v1390_v59 = vpop.f32.mrb[18].mxu1  ;;  %v13492_v62 = vpop.f32.mrb[19].mxu0  ;;  %13846 = vmatmul.mubr.msk.f32.gmra.mrb[124].mxu0 %vm22113_vm10, %v17085_v49  ;;  %vm22127_vm10 = vmmov %vm22003_vm0 }
 0x239   : > { %v17669_v45 = vadd.f32 %v1390_v59, %v1205_v25  ;;  %v13539_v44 = vpop.f32.mrb[19].mxu1  ;;  %13893 = vmatmul.mubr.msk.f32.gmra.mrb[124].mxu1 %vm22114_vm6, %v17082_v63  ;;  %13848 = vmatprep.mubr.msk.f32.mxu0 %vm16028_vm7, %v16027_v56  ;;  %vm22128_vm6 = vmmov %vm22003_vm0 }
 0x23a   : > { %13895 = vmatprep.mubr.msk.f32.mxu1 %vm16028_vm7, %v16027_v56 }
 0x23b   : > { %v1210_v38 = vpop.f32.mrb[20].mxu0 }
 0x23c   : > { %v1395_v39 = vpop.f32.mrb[20].mxu1  ;;  %v13495_v9 = vpop.f32.mrb[21].mxu0  ;;  %13849 = vmatmul.mubr.msk.f32.gmra.mrb[126].mxu0 %vm22115_vm15, %v17099_v31  ;;  %vm22129_vm15 = vmmov %vm22003_vm0 }
 0x23d   : > { %v17679_v2 = vadd.f32 %v1395_v39, %v1210_v38  ;;  %v13542_v55 = vpop.f32.mrb[21].mxu1  ;;  %13896 = vmatmul.mubr.msk.f32.gmra.mrb[126].mxu1 %vm22003_vm0, %v17096_v13  ;;  %13851 = vmatprep.mubr.msk.f32.mxu0 %vm16028_vm7, %v16027_v56 }
 0x23e   : > { %13898 = vmatprep.mubr.msk.f32.mxu1 %vm16028_vm7, %v16027_v56 }
 0x23f   : > { %v1215_v63 = vpop.f32.mrb[22].mxu0 }
 0x240   : > { %v1400_v49 = vpop.f32.mrb[22].mxu1  ;;  %v13498_v25 = vpop.f32.mrb[23].mxu0  ;;  %13852 = vmatmul.mubr.msk.f32.gmra.mrb[128].mxu0 %vm22116_vm8, %v17113_v26  ;;  %vm22130_vm8 = vmmov %vm22003_vm0 }
 0x241   : > { %v17689_v23 = vadd.f32 %v1400_v49, %v1215_v63  ;;  %v13545_v59 = vpop.f32.mrb[23].mxu1  ;;  %13899 = vmatmul.mubr.msk.f32.gmra.mrb[128].mxu1 %vm22117_vm14, %v17110_v32  ;;  %13854 = vmatprep.mubr.msk.f32.mxu0 %vm16028_vm7, %v16027_v56  ;;  %vm22131_vm14 = vmmov %vm22003_vm0 }
 0x242   : > { %13901 = vmatprep.mubr.msk.f32.mxu1 %vm16028_vm7, %v16027_v56 }
 0x243   : > { %v1220_v13 = vpop.f32.mrb[24].mxu0 }
 0x244   : > { %v1405_v31 = vpop.f32.mrb[24].mxu1  ;;  %v13501_v44 = vpop.f32.mrb[25].mxu0  ;;  %13855 = vmatmul.mubr.msk.f32.gmra.mrb[130].mxu0 %vm22118_vm3, %v17398_v50  ;;  %vm22132_vm3 = vmmov %vm22003_vm0 }
 0x245   : > { %v17699_v62 = vadd.f32 %v1405_v31, %v1220_v13  ;;  %v13548_v38 = vpop.f32.mrb[25].mxu1  ;;  %13902 = vmatmul.mubr.msk.f32.gmra.mrb[130].mxu1 %vm22119_vm4, %v17403_v40  ;;  %13857 = vmatprep.mubr.msk.f32.mxu0 %vm16028_vm7, %v16027_v56  ;;  %vm22133_vm4 = vmmov %vm22003_vm0 }
 0x246   : > { %13904 = vmatprep.mubr.msk.f32.mxu1 %vm16028_vm7, %v16027_v56 }
 0x247   : > { %v1225_v32 = vpop.f32.mrb[26].mxu0 }
 0x248   : > { %v1410_v26 = vpop.f32.mrb[26].mxu1  ;;  %v13504_v9 = vpop.f32.mrb[27].mxu0  ;;  %13858 = vmatmul.mubr.msk.f32.gmra.mrb[132].mxu0 %vm22120_vm12, %v17412_v5  ;;  %vm22134_vm12 = vmmov %vm22003_vm0 }
 0x249   : > { %v17709_v39 = vadd.f32 %v1410_v26, %v1225_v32  ;;  %v13551_v55 = vpop.f32.mrb[27].mxu1  ;;  %13905 = vmatmul.mubr.msk.f32.gmra.mrb[132].mxu1 %vm22121_vm13, %v17417_v24  ;;  %13860 = vmatprep.mubr.msk.f32.mxu0 %vm16028_vm7, %v16027_v56  ;;  %v17753_v32 = vld [vmem:[%s16939_s21 + $0xa7] sm:$0xff]  ;;  %vm22135_vm13 = vmmov %vm22003_vm0 }
 0x24a   : > { %13907 = vmatprep.mubr.msk.f32.mxu1 %vm16028_vm7, %v16027_v56 }
 0x24b   : > { %v1230_v50 = vpop.f32.mrb[28].mxu0 }
 0x24c   : > { %v1415_v40 = vpop.f32.mrb[28].mxu1  ;;  %v13507_v49 = vpop.f32.mrb[29].mxu0  ;;  %13861 = vmatmul.mubr.msk.f32.gmra.mrb[134].mxu0 %vm22122_vm1, %v17426_v3  ;;  %vm22136_vm1 = vmmov %vm22003_vm0 }
 0x24d   : > { %v17719_v63 = vadd.f32 %v1415_v40, %v1230_v50  ;;  %v13554_v25 = vpop.f32.mrb[29].mxu1  ;;  %13908 = vmatmul.mubr.msk.f32.gmra.mrb[134].mxu1 %vm22123_vm9, %v17431_v46  ;;  %13863 = vmatprep.mubr.msk.f32.mxu0 %vm16028_vm7, %v16027_v56  ;;  %v17765_v50 = vld [vmem:[%s16939_s21 + $0xae] sm:$0xff]  ;;  %vm22137_vm9 = vmmov %vm22003_vm0 }
 0x24e   : > { %13910 = vmatprep.mubr.msk.f32.mxu1 %vm16028_vm7, %v16027_v56  ;;  %v17770_v40 = vld [vmem:[%s16939_s21 + $0xaf] sm:$0xff] }
 0x24f   : > { %v1548_v5 = vpop.f32.mrb[30].mxu0 }
 0x250   : > { %v1766_v24 = vpop.f32.mrb[30].mxu1  ;;  %v1622_v59 = vadd.f32 %v1548_v5, %v17541_v18  ;;  %v13559_v13 = vpop.f32.mrb[31].mxu0  ;;  %13864 = vmatmul.mubr.msk.f32.gmra.mrb[136].mxu0 %vm22124_vm2, %v17440_v48  ;;  %vm22138_vm2 = vmmov %vm22003_vm0 }
 0x251   : > { %v13606_v3 = vpop.f32.mrb[31].mxu1  ;;  %13911 = vmatmul.mubr.msk.f32.gmra.mrb[136].mxu1 %vm22125_vm11, %v17445_v57  ;;  %13866 = vmatprep.mubr.msk.f32.mxu0 %vm16028_vm7, %v16027_v56  ;;  %v17748_v57 = vld [vmem:[%s16939_s21 + $0xa6] sm:$0xff]  ;;  %v17782_v13 = vld [vmem:[%s16939_s21 + $0xb6] sm:$0xff]  ;;  %vm22139_vm11 = vmmov %vm22003_vm0 }
 0x252   : > { %13913 = vmatprep.mubr.msk.f32.mxu1 %vm16028_vm7, %v16027_v56  ;;  %v17738_v46 = vadd.f32 %v1766_v24, %v1622_v59  ;;  %v17787_v3 = vld [vmem:[%s16939_s21 + $0xb7] sm:$0xff] }
 0x253   : > { %v1553_v31 = vpop.f32.mrb[32].mxu0 }
 0x254   : > { %v1771_v18 = vpop.f32.mrb[32].mxu1  ;;  %v1623_v44 = vadd.f32 %v1553_v31, %v17551_v34  ;;  %v13562_v38 = vpop.f32.mrb[33].mxu0  ;;  %13867 = vmatmul.mubr.msk.f32.gmra.mrb[138].mxu0 %vm22126_vm5, %v17454_v60  ;;  %vm22140_vm5 = vmmov %vm22003_vm0 }
 0x255   : > { %v13609_v48 = vpop.f32.mrb[33].mxu1  ;;  %13914 = vmatmul.mubr.msk.f32.gmra.mrb[138].mxu1 %vm22127_vm10, %v17459_v6  ;;  %13869 = vmatprep.mubr.msk.f32.mxu0 %vm16028_vm7, %v16027_v56  ;;  %vm22141_vm10 = vmmov %vm22003_vm0 }
 0x256   : > { %13916 = vmatprep.mubr.msk.f32.mxu1 %vm16028_vm7, %v16027_v56  ;;  %v17755_v34 = vadd.f32 %v1771_v18, %v1623_v44 }
 0x257   : > { %v1558_v26 = vpop.f32.mrb[34].mxu0 }
 0x258   : > { %v1776_v60 = vpop.f32.mrb[34].mxu1  ;;  %v1624_v9 = vadd.f32 %v1558_v26, %v17567_v8  ;;  %v13565_v55 = vpop.f32.mrb[35].mxu0  ;;  %13870 = vmatmul.mubr.msk.f32.gmra.mrb[140].mxu0 %vm22128_vm6, %v17748_v57  ;;  %v17799_v26 = vld [vmem:[%s16939_s21 + $0xbe] sm:$0xff]  ;;  %vm22142_vm6 = vmmov %vm22003_vm0 }
 0x259   : > { %v13612_v6 = vpop.f32.mrb[35].mxu1  ;;  %13917 = vmatmul.mubr.msk.f32.gmra.mrb[140].mxu1 %vm22129_vm15, %v17753_v32  ;;  %13872 = vmatprep.mubr.msk.f32.mxu0 %vm16028_vm7, %v16027_v56  ;;  %vm22143_vm15 = vmmov %vm22003_vm0 }
 0x25a   : > { %13919 = vmatprep.mubr.msk.f32.mxu1 %vm16028_vm7, %v16027_v56  ;;  %v17772_v8 = vadd.f32 %v1776_v60, %v1624_v9  ;;  %v17804_v60 = vld [vmem:[%s16939_s21 + $0xbf] sm:$0xff] }
 0x25b   : > { %v1563_v49 = vpop.f32.mrb[36].mxu0 }
 0x25c   : > { %v1781_v25 = vpop.f32.mrb[36].mxu1  ;;  %v1625_v5 = vadd.f32 %v1563_v49, %v17583_v51  ;;  %v13568_v24 = vpop.f32.mrb[37].mxu0  ;;  %13873 = vmatmul.mubr.msk.f32.gmra.mrb[142].mxu0 %vm22003_vm0, %v17765_v50 }
 0x25d   : > { %v13615_v59 = vpop.f32.mrb[37].mxu1  ;;  %13920 = vmatmul.mubr.msk.f32.gmra.mrb[142].mxu1 %vm22130_vm8, %v17770_v40  ;;  %13875 = vmatprep.mubr.msk.f32.mxu0 %vm16028_vm7, %v16027_v56  ;;  %v17821_v24 = vld [vmem:[%s16939_s21 + $0xc7] sm:$0xff]  ;;  %vm22144_vm8 = vmmov %vm22003_vm0 }
 0x25e   : > { %13922 = vmatprep.mubr.msk.f32.mxu1 %vm16028_vm7, %v16027_v56  ;;  %v17789_v51 = vadd.f32 %v1781_v25, %v1625_v5  ;;  %v17816_v5 = vld [vmem:[%s16939_s21 + $0xc6] sm:$0xff] }
 0x25f   : > { %v1568_v31 = vpop.f32.mrb[38].mxu0 }
 0x260   : > { %v1786_v18 = vpop.f32.mrb[38].mxu1  ;;  %v1626_v44 = vadd.f32 %v1568_v31, %v17599_v16  ;;  %v13571_v38 = vpop.f32.mrb[39].mxu0  ;;  %13876 = vmatmul.mubr.msk.f32.gmra.mrb[144].mxu0 %vm22131_vm14, %v17782_v13  ;;  %vm22145_vm14 = vmmov %vm22003_vm0 }
 0x261   : > { %v13618_v48 = vpop.f32.mrb[39].mxu1  ;;  %13923 = vmatmul.mubr.msk.f32.gmra.mrb[144].mxu1 %vm22132_vm3, %v17787_v3  ;;  %13878 = vmatprep.mubr.msk.f32.mxu0 %vm16028_vm7, %v16027_v56  ;;  %vm22146_vm3 = vmmov %vm22003_vm0 }
 0x262   : > { %13925 = vmatprep.mubr.msk.f32.mxu1 %vm16028_vm7, %v16027_v56  ;;  %v17806_v16 = vadd.f32 %v1786_v18, %v1626_v44 }
 0x263   : > { %v1573_v9 = vpop.f32.mrb[40].mxu0 }
 0x264   : > { %v1791_v55 = vpop.f32.mrb[40].mxu1  ;;  %v1627_v6 = vadd.f32 %v1573_v9, %v17615_v19  ;;  %v13574_v49 = vpop.f32.mrb[41].mxu0  ;;  %13879 = vmatmul.mubr.msk.f32.gmra.mrb[146].mxu0 %vm22133_vm4, %v17799_v26  ;;  %v3834_v9 = vld [vmem:[%s21850_s3 + $0x68] sm:$0xff]  ;;  %vm22147_vm4 = vmmov %vm22003_vm0 }
 0x265   : > { %v13621_v25 = vpop.f32.mrb[41].mxu1  ;;  %13926 = vmatmul.mubr.msk.f32.gmra.mrb[146].mxu1 %vm22134_vm12, %v17804_v60  ;;  %13881 = vmatprep.mubr.msk.f32.mxu0 %vm16028_vm7, %v16027_v56  ;;  %vm22148_vm12 = vmmov %vm22003_vm0 }
 0x266   : > { %13928 = vmatprep.mubr.msk.f32.mxu1 %vm16028_vm7, %v16027_v56  ;;  %v17823_v59 = vadd.f32 %v1791_v55, %v1627_v6 }
 0x267   : > { %v1578_v19 = vpop.f32.mrb[42].mxu0 }
 0x268   : > { %v1796_v31 = vpop.f32.mrb[42].mxu1  ;;  %v1628_v18 = vadd.f32 %v1578_v19, %v17631_v1  ;;  %v13577_v44 = vpop.f32.mrb[43].mxu0  ;;  %13882 = vmatmul.mubr.msk.f32.gmra.mrb[148].mxu0 %vm22135_vm13, %v17816_v5  ;;  %v3616_v1 = vld [vmem:[%s21850_s3 + $0x60] sm:$0xff]  ;;  %vm22149_vm13 = vmmov %vm22003_vm0 }
 0x269   : > { %v13624_v38 = vpop.f32.mrb[43].mxu1  ;;  %13929 = vmatmul.mubr.msk.f32.gmra.mrb[148].mxu1 %vm22136_vm1, %v17821_v24  ;;  %13933 = vmatprep.mubr.msk.f32.mxu0 %vm16028_vm7, %v16027_v56  ;;  %vm22150_vm1 = vmmov %vm22003_vm0 }
 0x26a   : > { %13980 = vmatprep.mubr.msk.f32.mxu1 %vm16028_vm7, %v16027_v56  ;;  %v17834_v48 = vadd.f32 %v1796_v31, %v1628_v18 }
 0x26b   : > { %v1583_v55 = vpop.f32.mrb[44].mxu0 }
 0x26c   : > { %v1801_v6 = vpop.f32.mrb[44].mxu1  ;;  %v1629_v49 = vadd.f32 %v1583_v55, %v17647_v54  ;;  %v13580_v25 = vpop.f32.mrb[45].mxu0  ;;  %13934 = vmatmul.mubr.msk.f32.vlgmr.msra.gmra.mrb[150].mxu0 %vm22137_vm9, %v17240_v28  ;;  %vm22151_vm9 = vmmov %vm22003_vm0 }
 0x26d   : > { %v13627_v19 = vpop.f32.mrb[45].mxu1  ;;  %13981 = vmatmul.mubr.msk.f32.vlgmr.msra.gmra.mrb[150].mxu1 %vm22138_vm2, %v17245_v29  ;;  %14026 = vmatpush3.msra.mxu0 %v3616_v1  ;;  %vm22152_vm2 = vmmov %vm22003_vm0 }
 0x26e   : > { %14073 = vmatpush3.msra.mxu1 %v3834_v9  ;;  %v17847_v31 = vadd.f32 %v1801_v6, %v1629_v49  ;;  %13936 = vmatprep.mubr.msk.f32.mxu0 %vm16028_vm7, %v16027_v56 }
 0x26f   : > { %13983 = vmatprep.mubr.msk.f32.mxu1 %vm16028_vm7, %v16027_v56  ;;  %v1588_v18 = vpop.f32.mrb[46].mxu0  ;;  %14119 = vmatprep.subr.mxu0 %v16027_v56 }
 0x270   : > { %v1806_v54 = vpop.f32.mrb[46].mxu1  ;;  %14166 = vmatprep.subr.mxu1 %v16027_v56  ;;  %v1630_v28 = vadd.f32 %v1588_v18, %v17659_v0  ;;  %v13583_v44 = vpop.f32.mrb[47].mxu0  ;;  %13937 = vmatmul.mubr.msk.f32.gmra.mrb[152].mxu0 %vm22139_vm11, %v17254_v36  ;;  %vm22153_vm11 = vmmov %vm22003_vm0 }
 0x271   : > { %v13630_v29 = vpop.f32.mrb[47].mxu1  ;;  %13984 = vmatmul.mubr.msk.f32.gmra.mrb[152].mxu1 %vm22140_vm5, %v17259_v33  ;;  %13939 = vmatprep.mubr.msk.f32.mxu0 %vm16028_vm7, %v16027_v56  ;;  %vm22154_vm5 = vmmov %vm22003_vm0 }
 0x272   : > { %13986 = vmatprep.mubr.msk.f32.mxu1 %vm16028_vm7, %v16027_v56  ;;  %v17864_v38 = vadd.f32 %v1806_v54, %v1630_v28 }
 0x273   : > { %v1593_v1 = vpop.f32.mrb[48].mxu0 }
 0x274   : > { %v1811_v9 = vpop.f32.mrb[48].mxu1  ;;  %v1631_v0 = vadd.f32 %v1593_v1, %v17669_v45  ;;  %v13586_v55 = vpop.f32.mrb[49].mxu0  ;;  %13940 = vmatmul.mubr.msk.f32.gmra.mrb[154].mxu0 %vm22141_vm10, %v17268_v58  ;;  %vm22155_vm10 = vmmov %vm22003_vm0 }
 0x275   : > { %v13633_v36 = vpop.f32.mrb[49].mxu1  ;;  %13987 = vmatmul.mubr.msk.f32.gmra.mrb[154].mxu1 %vm22142_vm6, %v17273_v7  ;;  %13942 = vmatprep.mubr.msk.f32.mxu0 %vm16028_vm7, %v16027_v56  ;;  %vm22156_vm6 = vmmov %vm22003_vm0 }
 0x276   : > { %13989 = vmatprep.mubr.msk.f32.mxu1 %vm16028_vm7, %v16027_v56  ;;  %v17875_v33 = vadd.f32 %v1811_v9, %v1631_v0 }
 0x277   : > { %v1598_v6 = vpop.f32.mrb[50].mxu0 }
 0x278   : > { %v1816_v49 = vpop.f32.mrb[50].mxu1  ;;  %v1632_v45 = vadd.f32 %v1598_v6, %v17679_v2  ;;  %v13589_v25 = vpop.f32.mrb[51].mxu0  ;;  %13943 = vmatmul.mubr.msk.f32.gmra.mrb[156].mxu0 %vm22143_vm15, %v17282_v42  ;;  %vm22157_vm15 = vmmov %vm22003_vm0 }
 0x279   : > { %v13636_v58 = vpop.f32.mrb[51].mxu1  ;;  %13990 = vmatmul.mubr.msk.f32.gmra.mrb[156].mxu1 %vm22003_vm0, %v17287_v47  ;;  %13945 = vmatprep.mubr.msk.f32.mxu0 %vm16028_vm7, %v16027_v56 }
 0x27a   : > { %13992 = vmatprep.mubr.msk.f32.mxu1 %vm16028_vm7, %v16027_v56  ;;  %v17886_v7 = vadd.f32 %v1816_v49, %v1632_v45 }
 0x27b   : > { %v1603_v19 = vpop.f32.mrb[52].mxu0 }
 0x27c   : > { %v1821_v18 = vpop.f32.mrb[52].mxu1  ;;  %v1633_v2 = vadd.f32 %v1603_v19, %v17689_v23  ;;  %v13592_v54 = vpop.f32.mrb[53].mxu0  ;;  %13946 = vmatmul.mubr.msk.f32.gmra.mrb[158].mxu0 %vm22144_vm8, %v17296_v21  ;;  %vm22158_vm8 = vmmov %vm22003_vm0 }
 0x27d   : > { %v13639_v42 = vpop.f32.mrb[53].mxu1  ;;  %13993 = vmatmul.mubr.msk.f32.gmra.mrb[158].mxu1 %vm22145_vm14, %v17301_v20  ;;  %13948 = vmatprep.mubr.msk.f32.mxu0 %vm16028_vm7, %v16027_v56  ;;  %vm22159_vm14 = vmmov %vm22003_vm0 }
 0x27e   : > { %13995 = vmatprep.mubr.msk.f32.mxu1 %vm16028_vm7, %v16027_v56  ;;  %v17897_v47 = vadd.f32 %v1821_v18, %v1633_v2  ;;  %v17956_v2 = vld [vmem:[%s16939_s21 + $0xa9] sm:$0xff] }
 0x27f   : > { %v1608_v28 = vpop.f32.mrb[54].mxu0 }
 0x280   : > { %v1826_v44 = vpop.f32.mrb[54].mxu1  ;;  %v1634_v23 = vadd.f32 %v1608_v28, %v17699_v62  ;;  %v13595_v29 = vpop.f32.mrb[55].mxu0  ;;  %13949 = vmatmul.mubr.msk.f32.gmra.mrb[160].mxu0 %vm22146_vm3, %v17560_v12  ;;  %vm22160_vm3 = vmmov %vm22003_vm0 }
 0x281   : > { %v13642_v21 = vpop.f32.mrb[55].mxu1  ;;  %13996 = vmatmul.mubr.msk.f32.gmra.mrb[160].mxu1 %vm22147_vm4, %v17565_v52  ;;  %13951 = vmatprep.mubr.msk.f32.mxu0 %vm16028_vm7, %v16027_v56  ;;  %vm22161_vm4 = vmmov %vm22003_vm0 }
 0x282   : > { %13998 = vmatprep.mubr.msk.f32.mxu1 %vm16028_vm7, %v16027_v56  ;;  %v17908_v20 = vadd.f32 %v1826_v44, %v1634_v23  ;;  %v17968_v44 = vld [vmem:[%s16939_s21 + $0xb0] sm:$0xff] }
 0x283   : > { %v1613_v1 = vpop.f32.mrb[56].mxu0  ;;  %v17973_v23 = vld [vmem:[%s16939_s21 + $0xb1] sm:$0xff] }
 0x284   : > { %v1831_v9 = vpop.f32.mrb[56].mxu1  ;;  %v1635_v62 = vadd.f32 %v1613_v1, %v17709_v39  ;;  %v13598_v0 = vpop.f32.mrb[57].mxu0  ;;  %13952 = vmatmul.mubr.msk.f32.gmra.mrb[162].mxu0 %vm22148_vm12, %v17576_v10  ;;  %vm22162_vm12 = vmmov %vm22003_vm0 }
 0x285   : > { %v13645_v12 = vpop.f32.mrb[57].mxu1  ;;  %13999 = vmatmul.mubr.msk.f32.gmra.mrb[162].mxu1 %vm22149_vm13, %v17581_v17  ;;  %13954 = vmatprep.mubr.msk.f32.mxu0 %vm16028_vm7, %v16027_v56  ;;  %v17985_v0 = vld [vmem:[%s16939_s21 + $0xb8] sm:$0xff]  ;;  %vm22163_vm13 = vmmov %vm22003_vm0 }
 0x286   : > { %14001 = vmatprep.mubr.msk.f32.mxu1 %vm16028_vm7, %v16027_v56  ;;  %v17919_v52 = vadd.f32 %v1831_v9, %v1635_v62  ;;  %v17990_v12 = vld [vmem:[%s16939_s21 + $0xb9] sm:$0xff] }
 0x287   : > { %v1618_v55 = vpop.f32.mrb[58].mxu0 }
 0x288   : > { %v1836_v36 = vpop.f32.mrb[58].mxu1  ;;  %v1636_v39 = vadd.f32 %v1618_v55, %v17719_v63  ;;  %v13601_v6 = vpop.f32.mrb[59].mxu0  ;;  %13955 = vmatmul.mubr.msk.f32.gmra.mrb[164].mxu0 %vm22150_vm1, %v17592_v35  ;;  %vm22164_vm1 = vmmov %vm22003_vm0 }
 0x289   : > { %v13648_v10 = vpop.f32.mrb[59].mxu1  ;;  %14002 = vmatmul.mubr.msk.f32.gmra.mrb[164].mxu1 %vm22151_vm9, %v17597_v14  ;;  %13957 = vmatprep.mubr.msk.f32.mxu0 %vm16028_vm7, %v16027_v56  ;;  %vm22165_vm9 = vmmov %vm22003_vm0 }
 0x28a   : > { %14004 = vmatprep.mubr.msk.f32.mxu1 %vm16028_vm7, %v16027_v56  ;;  %v17930_v17 = vadd.f32 %v1836_v36, %v1636_v39 }
 0x28b   : > { %v1984_v49 = vpop.f32.mrb[60].mxu0 }
 0x28c   : > { %v2202_v45 = vpop.f32.mrb[60].mxu1  ;;  %v2058_v63 = vadd.f32 %v1984_v49, %v17738_v46  ;;  %v13653_v25 = vpop.f32.mrb[61].mxu0  ;;  %13958 = vmatmul.mubr.msk.f32.gmra.mrb[166].mxu0 %vm22152_vm2, %v17608_v15  ;;  %v18002_v49 = vld [vmem:[%s16939_s21 + $0xc0] sm:$0xff]  ;;  %vm22166_vm2 = vmmov %vm22003_vm0 }
 0x28d   : > { %v13700_v35 = vpop.f32.mrb[61].mxu1  ;;  %14005 = vmatmul.mubr.msk.f32.gmra.mrb[166].mxu1 %vm22153_vm11, %v17613_v4  ;;  %13960 = vmatprep.mubr.msk.f32.mxu0 %vm16028_vm7, %v16027_v56  ;;  %v17951_v4 = vld [vmem:[%s16939_s21 + $0xa8] sm:$0xff]  ;;  %vm22167_vm11 = vmmov %vm22003_vm0 }
 0x28e   : > { %14007 = vmatprep.mubr.msk.f32.mxu1 %vm16028_vm7, %v16027_v56  ;;  %v17941_v14 = vadd.f32 %v2202_v45, %v2058_v63  ;;  %v18007_v45 = vld [vmem:[%s16939_s21 + $0xc1] sm:$0xff] }
 0x28f   : > { %v1989_v58 = vpop.f32.mrb[62].mxu0 }
 0x290   : > { %v2207_v46 = vpop.f32.mrb[62].mxu1  ;;  %v2059_v19 = vadd.f32 %v1989_v58, %v17755_v34  ;;  %v13656_v18 = vpop.f32.mrb[63].mxu0  ;;  %13961 = vmatmul.mubr.msk.f32.gmra.mrb[168].mxu0 %vm22154_vm5, %v17624_v41  ;;  %vm22168_vm5 = vmmov %vm22003_vm0 }
 0x291   : > { %v13703_v15 = vpop.f32.mrb[63].mxu1  ;;  %14008 = vmatmul.mubr.msk.f32.gmra.mrb[168].mxu1 %vm22155_vm10, %v17629_v37  ;;  %13963 = vmatprep.mubr.msk.f32.mxu0 %vm16028_vm7, %v16027_v56  ;;  %v18024_v18 = vld [vmem:[%s16939_s21 + $0xc9] sm:$0xff]  ;;  %vm22169_vm10 = vmmov %vm22003_vm0 }
 0x292   : > { %14010 = vmatprep.mubr.msk.f32.mxu1 %vm16028_vm7, %v16027_v56  ;;  %v17958_v34 = vadd.f32 %v2207_v46, %v2059_v19  ;;  %v18019_v19 = vld [vmem:[%s16939_s21 + $0xc8] sm:$0xff] }
 0x293   : > { %v1994_v54 = vpop.f32.mrb[64].mxu0 }
 0x294   : > { %v2212_v41 = vpop.f32.mrb[64].mxu1  ;;  %v2060_v42 = vadd.f32 %v1994_v54, %v17772_v8  ;;  %v13659_v28 = vpop.f32.mrb[65].mxu0  ;;  %13964 = vmatmul.mubr.msk.f32.gmra.mrb[170].mxu0 %vm22156_vm6, %v17951_v4  ;;  %vm22170_vm6 = vmmov %vm22003_vm0 }
 0x295   : > { %v13706_v37 = vpop.f32.mrb[65].mxu1  ;;  %14011 = vmatmul.mubr.msk.f32.gmra.mrb[170].mxu1 %vm22157_vm15, %v17956_v2  ;;  %13966 = vmatprep.mubr.msk.f32.mxu0 %vm16028_vm7, %v16027_v56  ;;  %vm22171_vm15 = vmmov %vm22003_vm0 }
 0x296   : > { %14013 = vmatprep.mubr.msk.f32.mxu1 %vm16028_vm7, %v16027_v56  ;;  %v17975_v8 = vadd.f32 %v2212_v41, %v2060_v42  ;;  %v11638_v37 = vld [vmem:[%s16939_s21 + $0x7e] sm:$0xff] }
 0x297   : > { %v1999_v29 = vpop.f32.mrb[66].mxu0 }
 0x298   : > { %v2217_v21 = vpop.f32.mrb[66].mxu1  ;;  %v2061_v1 = vadd.f32 %v1999_v29, %v17789_v51  ;;  %v13662_v9 = vpop.f32.mrb[67].mxu0  ;;  %13967 = vmatmul.mubr.msk.f32.gmra.mrb[172].mxu0 %vm22003_vm0, %v17968_v44  ;;  %v11668_v29 = vld [vmem:[%s16939_s21 + $0x7f] sm:$0xff] }
 0x299   : > { %v13709_v62 = vpop.f32.mrb[67].mxu1  ;;  %14014 = vmatmul.mubr.msk.f32.gmra.mrb[172].mxu1 %vm22158_vm8, %v17973_v23  ;;  %13969 = vmatprep.mubr.msk.f32.mxu0 %vm16028_vm7, %v16027_v56  ;;  %vm22172_vm8 = vmmov %vm22003_vm0 }
 0x29a   : > { %14016 = vmatprep.mubr.msk.f32.mxu1 %vm16028_vm7, %v16027_v56  ;;  %v17992_v51 = vadd.f32 %v2217_v21, %v2061_v1  ;;  %v4270_v1 = vld [vmem:[%s21850_s3 + $0x78] sm:$0xff] }
 0x29b   : > { %v2004_v55 = vpop.f32.mrb[68].mxu0 }
 0x29c   : > { %v2222_v36 = vpop.f32.mrb[68].mxu1  ;;  %v2062_v39 = vadd.f32 %v2004_v55, %v17806_v16  ;;  %v13665_v6 = vpop.f32.mrb[69].mxu0  ;;  %13970 = vmatmul.mubr.msk.f32.gmra.mrb[174].mxu0 %vm22159_vm14, %v17985_v0  ;;  %vm22173_vm14 = vmmov %vm22003_vm0 }
 0x29d   : > { %v13712_v10 = vpop.f32.mrb[69].mxu1  ;;  %14017 = vmatmul.mubr.msk.f32.gmra.mrb[174].mxu1 %vm22160_vm3, %v17990_v12  ;;  %13972 = vmatprep.mubr.msk.f32.mxu0 %vm16028_vm7, %v16027_v56  ;;  %v11639_v6 = vld [vmem:[%s16939_s21 + $0x86] sm:$0xff]  ;;  %vm22174_vm3 = vmmov %vm22003_vm0 }
 0x29e   : > { %14019 = vmatprep.mubr.msk.f32.mxu1 %vm16028_vm7, %v16027_v56  ;;  %v18009_v16 = vadd.f32 %v2222_v36, %v2062_v39  ;;  %v11669_v10 = vld [vmem:[%s16939_s21 + $0x87] sm:$0xff] }
 0x29f   : > { %v2009_v63 = vpop.f32.mrb[70].mxu0 }
 0x2a0   : > { %v2227_v25 = vpop.f32.mrb[70].mxu1  ;;  %v2063_v35 = vadd.f32 %v2009_v63, %v17823_v59  ;;  %v13668_v58 = vpop.f32.mrb[71].mxu0  ;;  %13973 = vmatmul.mubr.msk.f32.gmra.mrb[176].mxu0 %vm22161_vm4, %v18002_v49  ;;  %vm22175_vm4 = vmmov %vm22003_vm0 }
 0x2a1   : > { %v13715_v46 = vpop.f32.mrb[71].mxu1  ;;  %14020 = vmatmul.mubr.msk.f32.gmra.mrb[176].mxu1 %vm22162_vm12, %v18007_v45  ;;  %13975 = vmatprep.mubr.msk.f32.mxu0 %vm16028_vm7, %v16027_v56  ;;  %vm22176_vm12 = vmmov %vm22003_vm0 }
 0x2a2   : > { %14022 = vmatprep.mubr.msk.f32.mxu1 %vm16028_vm7, %v16027_v56  ;;  %v18026_v59 = vadd.f32 %v2227_v25, %v2063_v35 }
 0x2a3   : > { %v2014_v15 = vpop.f32.mrb[72].mxu0 }
 0x2a4   : > { %v2232_v54 = vpop.f32.mrb[72].mxu1  ;;  %v2064_v41 = vadd.f32 %v2014_v15, %v17834_v48  ;;  %v13671_v42 = vpop.f32.mrb[73].mxu0  ;;  %13976 = vmatmul.mubr.msk.f32.gmra.mrb[178].mxu0 %vm22163_vm13, %v18019_v19  ;;  %v4052_v48 = vld [vmem:[%s21850_s3 + $0x70] sm:$0xff]  ;;  %vm22177_vm13 = vmmov %vm22003_vm0  ;;  %s18631_s3 = smov (%p1006_p3), 0  }
 0x2a5   : > { %v13718_v28 = vpop.f32.mrb[73].mxu1  ;;  %14023 = vmatmul.mubr.msk.f32.gmra.mrb[178].mxu1 %vm22164_vm1, %v18024_v18  ;;  %14027 = vmatprep.mubr.msk.f32.mxu0 %vm16028_vm7, %v16027_v56  ;;  %v11640_v15 = vld [vmem:[%s16939_s21 + $0x8e] sm:$0xff]  ;;  %vm22178_vm1 = vmmov %vm22003_vm0 }
 0x2a6   : > { %14074 = vmatprep.mubr.msk.f32.mxu1 %vm16028_vm7, %v16027_v56  ;;  %v18039_v21 = vadd.f32 %v2232_v54, %v2064_v41  ;;  %v11670_v54 = vld [vmem:[%s16939_s21 + $0x8f] sm:$0xff] }
 0x2a7   : > { %v2019_v9 = vpop.f32.mrb[74].mxu0 }
 0x2a8   : > { %v2237_v62 = vpop.f32.mrb[74].mxu1  ;;  %v2065_v55 = vadd.f32 %v2019_v9, %v17847_v31  ;;  %v13674_v36 = vpop.f32.mrb[75].mxu0  ;;  %14028 = vmatmul.mubr.msk.f32.vlgmr.msra.gmra.mrb[180].mxu0 %vm22165_vm9, %v11638_v37  ;;  %vm22179_vm9 = vmmov %vm22003_vm0 }
 0x2a9   : > { %v13721_v39 = vpop.f32.mrb[75].mxu1  ;;  %14075 = vmatmul.mubr.msk.f32.vlgmr.msra.gmra.mrb[180].mxu1 %vm22166_vm2, %v11668_v29  ;;  %14120 = vmatpush3.msra.mxu0 %v4052_v48  ;;  %v11641_v48 = vld [vmem:[%s16939_s21 + $0x96] sm:$0xff]  ;;  %vm22180_vm2 = vmmov %vm22003_vm0 }
 0x2aa   : > { %14167 = vmatpush3.msra.mxu1 %v4270_v1  ;;  %v18052_v63 = vadd.f32 %v2237_v62, %v2065_v55  ;;  %14030 = vmatprep.mubr.msk.f32.mxu0 %vm16028_vm7, %v16027_v56  ;;  %v11671_v1 = vld [vmem:[%s16939_s21 + $0x97] sm:$0xff] }
 0x2ab   : > { %14077 = vmatprep.mubr.msk.f32.mxu1 %vm16028_vm7, %v16027_v56  ;;  %v2024_v31 = vpop.f32.mrb[76].mxu0 }
 0x2ac   : > { %v2242_v25 = vpop.f32.mrb[76].mxu1  ;;  %v2066_v35 = vadd.f32 %v2024_v31, %v17864_v38  ;;  %v13677_v58 = vpop.f32.mrb[77].mxu0  ;;  %14031 = vmatmul.mubr.msk.f32.gmra.mrb[182].mxu0 %vm22167_vm11, %v11639_v6  ;;  %v11642_v6 = vld [vmem:[%s16939_s21 + $0x9e] sm:$0xff]  ;;  %vm22181_vm11 = vmmov %vm22003_vm0 }
 0x2ad   : > { %v13724_v46 = vpop.f32.mrb[77].mxu1  ;;  %14078 = vmatmul.mubr.msk.f32.gmra.mrb[182].mxu1 %vm22168_vm5, %v11669_v10  ;;  %14033 = vmatprep.mubr.msk.f32.mxu0 %vm16028_vm7, %v16027_v56  ;;  %v11672_v10 = vld [vmem:[%s16939_s21 + $0x9f] sm:$0xff]  ;;  %vm22182_vm5 = vmmov %vm22003_vm0 }
 0x2ae   : > { %14080 = vmatprep.mubr.msk.f32.mxu1 %vm16028_vm7, %v16027_v56  ;;  %v18067_v41 = vadd.f32 %v2242_v25, %v2066_v35 }
 0x2af   : > { %v2029_v42 = vpop.f32.mrb[78].mxu0 }
 0x2b0   : > { %v2247_v38 = vpop.f32.mrb[78].mxu1  ;;  %v2067_v28 = vadd.f32 %v2029_v42, %v17875_v33  ;;  %v13680_v37 = vpop.f32.mrb[79].mxu0  ;;  %14034 = vmatmul.mubr.msk.f32.gmra.mrb[184].mxu0 %vm22169_vm10, %v11640_v15  ;;  %vm22183_vm10 = vmmov %vm22003_vm0 }
 0x2b1   : > { %v13727_v29 = vpop.f32.mrb[79].mxu1  ;;  %14081 = vmatmul.mubr.msk.f32.gmra.mrb[184].mxu1 %vm22170_vm6, %v11670_v54  ;;  %14036 = vmatprep.mubr.msk.f32.mxu0 %vm16028_vm7, %v16027_v56  ;;  %vm22184_vm6 = vmmov %vm22003_vm0 }
 0x2b2   : > { %14083 = vmatprep.mubr.msk.f32.mxu1 %vm16028_vm7, %v16027_v56  ;;  %v18078_v9 = vadd.f32 %v2247_v38, %v2067_v28 }
 0x2b3   : > { %v2034_v62 = vpop.f32.mrb[80].mxu0 }
 0x2b4   : > { %v2252_v33 = vpop.f32.mrb[80].mxu1  ;;  %v2068_v55 = vadd.f32 %v2034_v62, %v17886_v7  ;;  %v13683_v36 = vpop.f32.mrb[81].mxu0  ;;  %14037 = vmatmul.mubr.msk.f32.gmra.mrb[186].mxu0 %vm22171_vm15, %v11641_v48  ;;  %vm22185_vm15 = vmmov %vm22003_vm0 }
 0x2b5   : > { %v13730_v39 = vpop.f32.mrb[81].mxu1  ;;  %14084 = vmatmul.mubr.msk.f32.gmra.mrb[186].mxu1 %vm22003_vm0, %v11671_v1  ;;  %14039 = vmatprep.mubr.msk.f32.mxu0 %vm16028_vm7, %v16027_v56 }
 0x2b6   : > { %14086 = vmatprep.mubr.msk.f32.mxu1 %vm16028_vm7, %v16027_v56  ;;  %v18089_v31 = vadd.f32 %v2252_v33, %v2068_v55 }
 0x2b7   : > { %v2039_v25 = vpop.f32.mrb[82].mxu0 }
 0x2b8   : > { %v2257_v35 = vpop.f32.mrb[82].mxu1  ;;  %v2069_v7 = vadd.f32 %v2039_v25, %v17897_v47  ;;  %v13686_v58 = vpop.f32.mrb[83].mxu0  ;;  %14040 = vmatmul.mubr.msk.f32.gmra.mrb[188].mxu0 %vm22172_vm8, %v11642_v6  ;;  %vm22186_vm8 = vmmov %vm22003_vm0 }
 0x2b9   : > { %v13733_v46 = vpop.f32.mrb[83].mxu1  ;;  %14087 = vmatmul.mubr.msk.f32.gmra.mrb[188].mxu1 %vm22173_vm14, %v11672_v10  ;;  %14042 = vmatprep.mubr.msk.f32.mxu0 %vm16028_vm7, %v16027_v56  ;;  %vm22187_vm14 = vmmov %vm22003_vm0 }
 0x2ba   : > { %14089 = vmatprep.mubr.msk.f32.mxu1 %vm16028_vm7, %v16027_v56  ;;  %v18098_v15 = vadd.f32 %v2257_v35, %v2069_v7  ;;  %v11678_v7 = vld [vmem:[%s16939_s21 + $0xcf] sm:$0xff] }
 0x2bb   : > { %v2044_v54 = vpop.f32.mrb[84].mxu0 }
 0x2bc   : > { %v2262_v42 = vpop.f32.mrb[84].mxu1  ;;  %v2070_v38 = vadd.f32 %v2044_v54, %v17908_v20  ;;  %v13689_v28 = vpop.f32.mrb[85].mxu0  ;;  %14043 = vmatmul.mubr.msk.f32.gmra.mrb[190].mxu0 %vm22174_vm3, %v17748_v57  ;;  %vm22188_vm3 = vmmov %vm22003_vm0 }
 0x2bd   : > { %v13736_v47 = vpop.f32.mrb[85].mxu1  ;;  %14090 = vmatmul.mubr.msk.f32.gmra.mrb[190].mxu1 %vm22175_vm4, %v17753_v32  ;;  %14045 = vmatprep.mubr.msk.f32.mxu0 %vm16028_vm7, %v16027_v56  ;;  %vm22189_vm4 = vmmov %vm22003_vm0 }
 0x2be   : > { %14092 = vmatprep.mubr.msk.f32.mxu1 %vm16028_vm7, %v16027_v56  ;;  %v18109_v37 = vadd.f32 %v2262_v42, %v2070_v38  ;;  %v11649_v42 = vld [vmem:[%s16939_s21 + $0xd6] sm:$0xff] }
 0x2bf   : > { %v2049_v29 = vpop.f32.mrb[86].mxu0  ;;  %v11679_v38 = vld [vmem:[%s16939_s21 + $0xd7] sm:$0xff] }
 0x2c0   : > { %v2267_v48 = vpop.f32.mrb[86].mxu1  ;;  %v2071_v20 = vadd.f32 %v2049_v29, %v17919_v52  ;;  %v13692_v1 = vpop.f32.mrb[87].mxu0  ;;  %14046 = vmatmul.mubr.msk.f32.gmra.mrb[192].mxu0 %vm22176_vm12, %v17765_v50  ;;  %vm22190_vm12 = vmmov %vm22003_vm0 }
 0x2c1   : > { %v13739_v57 = vpop.f32.mrb[87].mxu1  ;;  %14093 = vmatmul.mubr.msk.f32.gmra.mrb[192].mxu1 %vm22177_vm13, %v17770_v40  ;;  %14048 = vmatprep.mubr.msk.f32.mxu0 %vm16028_vm7, %v16027_v56  ;;  %v11650_v1 = vld [vmem:[%s16939_s21 + $0xde] sm:$0xff]  ;;  %vm22191_vm13 = vmmov %vm22003_vm0 }
 0x2c2   : > { %14095 = vmatprep.mubr.msk.f32.mxu1 %vm16028_vm7, %v16027_v56  ;;  %v18120_v32 = vadd.f32 %v2267_v48, %v2071_v20  ;;  %v11680_v57 = vld [vmem:[%s16939_s21 + $0xdf] sm:$0xff] }
 0x2c3   : > { %v2054_v62 = vpop.f32.mrb[88].mxu0 }
 0x2c4   : > { %v2272_v33 = vpop.f32.mrb[88].mxu1  ;;  %v2072_v52 = vadd.f32 %v2054_v62, %v17930_v17  ;;  %v13695_v55 = vpop.f32.mrb[89].mxu0  ;;  %14049 = vmatmul.mubr.msk.f32.gmra.mrb[194].mxu0 %vm22178_vm1, %v17782_v13  ;;  %vm22192_vm1 = vmmov %vm22003_vm0 }
 0x2c5   : > { %v13742_v50 = vpop.f32.mrb[89].mxu1  ;;  %14096 = vmatmul.mubr.msk.f32.gmra.mrb[194].mxu1 %vm22179_vm9, %v17787_v3  ;;  %14051 = vmatprep.mubr.msk.f32.mxu0 %vm16028_vm7, %v16027_v56  ;;  %vm22193_vm9 = vmmov %vm22003_vm0 }
 0x2c6   : > { %14098 = vmatprep.mubr.msk.f32.mxu1 %vm16028_vm7, %v16027_v56  ;;  %v18131_v40 = vadd.f32 %v2272_v33, %v2072_v52 }
 0x2c7   : > { %v2420_v36 = vpop.f32.mrb[90].mxu0 }
 0x2c8   : > { %v2638_v39 = vpop.f32.mrb[90].mxu1  ;;  %v2494_v17 = vadd.f32 %v2420_v36, %v17941_v14  ;;  %v13747_v6 = vpop.f32.mrb[91].mxu0  ;;  %14052 = vmatmul.mubr.msk.f32.gmra.mrb[196].mxu0 %vm22180_vm2, %v17799_v26  ;;  %v11651_v36 = vld [vmem:[%s16939_s21 + $0xe6] sm:$0xff]  ;;  %vm22194_vm2 = vmmov %vm22003_vm0 }
 0x2c9   : > { %v13794_v13 = vpop.f32.mrb[91].mxu1  ;;  %14099 = vmatmul.mubr.msk.f32.gmra.mrb[196].mxu1 %vm22181_vm11, %v17804_v60  ;;  %14054 = vmatprep.mubr.msk.f32.mxu0 %vm16028_vm7, %v16027_v56  ;;  %v11648_v60 = vld [vmem:[%s16939_s21 + $0xce] sm:$0xff]  ;;  %vm22195_vm11 = vmmov %vm22003_vm0 }
 0x2ca   : > { %14101 = vmatprep.mubr.msk.f32.mxu1 %vm16028_vm7, %v16027_v56  ;;  %v18142_v3 = vadd.f32 %v2638_v39, %v2494_v17  ;;  %v11681_v39 = vld [vmem:[%s16939_s21 + $0xe7] sm:$0xff] }
 0x2cb   : > { %v2425_v10 = vpop.f32.mrb[92].mxu0 }
 0x2cc   : > { %v2643_v14 = vpop.f32.mrb[92].mxu1  ;;  %v2495_v25 = vadd.f32 %v2425_v10, %v17958_v34  ;;  %v13750_v35 = vpop.f32.mrb[93].mxu0  ;;  %14055 = vmatmul.mubr.msk.f32.gmra.mrb[198].mxu0 %vm22182_vm5, %v17816_v5  ;;  %vm22196_vm5 = vmmov %vm22003_vm0 }
 0x2cd   : > { %v13797_v26 = vpop.f32.mrb[93].mxu1  ;;  %14102 = vmatmul.mubr.msk.f32.gmra.mrb[198].mxu1 %vm22183_vm10, %v17821_v24  ;;  %14057 = vmatprep.mubr.msk.f32.mxu0 %vm16028_vm7, %v16027_v56  ;;  %v11682_v35 = vld [vmem:[%s16939_s21 + $0xef] sm:$0xff]  ;;  %vm22197_vm10 = vmmov %vm22003_vm0 }
 0x2ce   : > { %14104 = vmatprep.mubr.msk.f32.mxu1 %vm16028_vm7, %v16027_v56  ;;  %v18155_v58 = vadd.f32 %v2643_v14, %v2495_v25  ;;  %v11652_v25 = vld [vmem:[%s16939_s21 + $0xee] sm:$0xff] }
 0x2cf   : > { %v2430_v34 = vpop.f32.mrb[94].mxu0 }
 0x2d0   : > { %v2648_v46 = vpop.f32.mrb[94].mxu1  ;;  %v2496_v5 = vadd.f32 %v2430_v34, %v17975_v8  ;;  %v13753_v54 = vpop.f32.mrb[95].mxu0  ;;  %14058 = vmatmul.mubr.msk.f32.gmra.mrb[200].mxu0 %vm22184_vm6, %v11648_v60  ;;  %vm22198_vm6 = vmmov %vm22003_vm0 }
 0x2d1   : > { %v13800_v24 = vpop.f32.mrb[95].mxu1  ;;  %14105 = vmatmul.mubr.msk.f32.gmra.mrb[200].mxu1 %vm22185_vm15, %v11678_v7  ;;  %14060 = vmatprep.mubr.msk.f32.mxu0 %vm16028_vm7, %v16027_v56  ;;  %v11728_v54 = vld [vmem:[%s16939_s21 + $0x81] sm:$0xff]  ;;  %vm22199_vm15 = vmmov %vm22003_vm0 }
 0x2d2   : > { %14107 = vmatprep.mubr.msk.f32.mxu1 %vm16028_vm7, %v16027_v56  ;;  %v18166_v28 = vadd.f32 %v2648_v46, %v2496_v5  ;;  %v11698_v5 = vld [vmem:[%s16939_s21 + $0x80] sm:$0xff] }
 0x2d3   : > { %v2435_v47 = vpop.f32.mrb[96].mxu0 }
 0x2d4   : > { %v2653_v8 = vpop.f32.mrb[96].mxu1  ;;  %v2497_v29 = vadd.f32 %v2435_v47, %v17992_v51  ;;  %v13756_v48 = vpop.f32.mrb[97].mxu0  ;;  %14061 = vmatmul.mubr.msk.f32.gmra.mrb[202].mxu0 %vm22003_vm0, %v11649_v42 }
 0x2d5   : > { %v13803_v20 = vpop.f32.mrb[97].mxu1  ;;  %14108 = vmatmul.mubr.msk.f32.gmra.mrb[202].mxu1 %vm22186_vm8, %v11679_v38  ;;  %14063 = vmatprep.mubr.msk.f32.mxu0 %vm16028_vm7, %v16027_v56  ;;  %v11729_v48 = vld [vmem:[%s16939_s21 + $0x89] sm:$0xff]  ;;  %vm22200_vm8 = vmmov %vm22003_vm0 }
 0x2d6   : > { %14110 = vmatprep.mubr.msk.f32.mxu1 %vm16028_vm7, %v16027_v56  ;;  %v18177_v62 = vadd.f32 %v2653_v8, %v2497_v29  ;;  %v11699_v29 = vld [vmem:[%s16939_s21 + $0x88] sm:$0xff] }
 0x2d7   : > { %v2440_v33 = vpop.f32.mrb[98].mxu0 }
 0x2d8   : > { %v2658_v51 = vpop.f32.mrb[98].mxu1  ;;  %v2498_v52 = vadd.f32 %v2440_v33, %v18009_v16  ;;  %v13759_v55 = vpop.f32.mrb[99].mxu0  ;;  %14064 = vmatmul.mubr.msk.f32.gmra.mrb[204].mxu0 %vm22187_vm14, %v11650_v1  ;;  %vm22201_vm14 = vmmov %vm22003_vm0 }
 0x2d9   : > { %v13806_v50 = vpop.f32.mrb[99].mxu1  ;;  %14111 = vmatmul.mubr.msk.f32.gmra.mrb[204].mxu1 %vm22188_vm3, %v11680_v57  ;;  %14066 = vmatprep.mubr.msk.f32.mxu0 %vm16028_vm7, %v16027_v56  ;;  %v11730_v55 = vld [vmem:[%s16939_s21 + $0x91] sm:$0xff]  ;;  %vm22202_vm3 = vmmov %vm22003_vm0 }
 0x2da   : > { %14113 = vmatprep.mubr.msk.f32.mxu1 %vm16028_vm7, %v16027_v56  ;;  %v18188_v17 = vadd.f32 %v2658_v51, %v2498_v52  ;;  %v11700_v52 = vld [vmem:[%s16939_s21 + $0x90] sm:$0xff] }
 0x2db   : > { %v2445_v6 = vpop.f32.mrb[100].mxu0 }
 0x2dc   : > { %v2663_v16 = vpop.f32.mrb[100].mxu1  ;;  %v2499_v13 = vadd.f32 %v2445_v6, %v18026_v59  ;;  %v13762_v10 = vpop.f32.mrb[101].mxu0  ;;  %14067 = vmatmul.mubr.msk.f32.gmra.mrb[206].mxu0 %vm22189_vm4, %v11651_v36  ;;  %vm22203_vm4 = vmmov %vm22003_vm0 }
 0x2dd   : > { %v13809_v14 = vpop.f32.mrb[101].mxu1  ;;  %14114 = vmatmul.mubr.msk.f32.gmra.mrb[206].mxu1 %vm22190_vm12, %v11681_v39  ;;  %14069 = vmatprep.mubr.msk.f32.mxu0 %vm16028_vm7, %v16027_v56  ;;  %v11731_v10 = vld [vmem:[%s16939_s21 + $0x99] sm:$0xff]  ;;  %vm22204_vm12 = vmmov %vm22003_vm0 }
 0x2de   : > { %14116 = vmatprep.mubr.msk.f32.mxu1 %vm16028_vm7, %v16027_v56  ;;  %v18199_v26 = vadd.f32 %v2663_v16, %v2499_v13  ;;  %v11701_v13 = vld [vmem:[%s16939_s21 + $0x98] sm:$0xff] }
 0x2df   : > { %v2450_v60 = vpop.f32.mrb[102].mxu0 }
 0x2e0   : > { %v2668_v59 = vpop.f32.mrb[102].mxu1  ;;  %v2500_v7 = vadd.f32 %v2450_v60, %v18039_v21  ;;  %v13765_v34 = vpop.f32.mrb[103].mxu0  ;;  %14070 = vmatmul.mubr.msk.f32.gmra.mrb[208].mxu0 %vm22191_vm13, %v11652_v25  ;;  %vm22205_vm13 = vmmov %vm22003_vm0 }
 0x2e1   : > { %v13812_v46 = vpop.f32.mrb[103].mxu1  ;;  %14117 = vmatmul.mubr.msk.f32.gmra.mrb[208].mxu1 %vm22192_vm1, %v11682_v35  ;;  %14121 = vmatprep.mubr.msk.f32.mxu0 %vm16028_vm7, %v16027_v56  ;;  %v11732_v34 = vld [vmem:[%s16939_s21 + $0xa1] sm:$0xff]  ;;  %vm22206_vm1 = vmmov %vm22003_vm0 }
 0x2e2   : > { %14168 = vmatprep.mubr.msk.f32.mxu1 %vm16028_vm7, %v16027_v56  ;;  %v18210_v24 = vadd.f32 %v2668_v59, %v2500_v7  ;;  %v11702_v7 = vld [vmem:[%s16939_s21 + $0xa0] sm:$0xff] }
 0x2e3   : > { %v2455_v42 = vpop.f32.mrb[104].mxu0 }
 0x2e4   : > { %v2673_v21 = vpop.f32.mrb[104].mxu1  ;;  %v2501_v38 = vadd.f32 %v2455_v42, %v18052_v63  ;;  %v13768_v47 = vpop.f32.mrb[105].mxu0  ;;  %14122 = vmatmul.mubr.msk.f32.vlgmr.msra.gmra.mrb[210].mxu0 %vm22193_vm9, %v11698_v5  ;;  %vm22207_vm9 = vmmov %vm22003_vm0 }
 0x2e5   : > { %v13815_v8 = vpop.f32.mrb[105].mxu1  ;;  %14169 = vmatmul.mubr.msk.f32.vlgmr.msra.gmra.mrb[210].mxu1 %vm22194_vm2, %v11728_v54  ;;  %14124 = vmatprep.mubr.msk.f32.mxu0 %vm16028_vm7, %v16027_v56  ;;  %vm22208_vm2 = vmmov %vm22003_vm0 }
 0x2e6   : > { %14171 = vmatprep.mubr.msk.f32.mxu1 %vm16028_vm7, %v16027_v56  ;;  %v18221_v20 = vadd.f32 %v2673_v21, %v2501_v38 }
 0x2e7   : > { %v2460_v1 = vpop.f32.mrb[106].mxu0 }
 0x2e8   : > { %v2678_v63 = vpop.f32.mrb[106].mxu1  ;;  %v2502_v57 = vadd.f32 %v2460_v1, %v18067_v41  ;;  %v13771_v33 = vpop.f32.mrb[107].mxu0  ;;  %14125 = vmatmul.mubr.msk.f32.gmra.mrb[212].mxu0 %vm22195_vm11, %v11699_v29  ;;  %vm22209_vm11 = vmmov %vm22003_vm0 }
 0x2e9   : > { %v13818_v51 = vpop.f32.mrb[107].mxu1  ;;  %14172 = vmatmul.mubr.msk.f32.gmra.mrb[212].mxu1 %vm22196_vm5, %v11729_v48  ;;  %14127 = vmatprep.mubr.msk.f32.mxu0 %vm16028_vm7, %v16027_v56  ;;  %vm22210_vm5 = vmmov %vm22003_vm0 }
 0x2ea   : > { %14174 = vmatprep.mubr.msk.f32.mxu1 %vm16028_vm7, %v16027_v56  ;;  %v18232_v50 = vadd.f32 %v2678_v63, %v2502_v57 }
 0x2eb   : > { %v2465_v36 = vpop.f32.mrb[108].mxu0 }
 0x2ec   : > { %v2683_v41 = vpop.f32.mrb[108].mxu1  ;;  %v2503_v39 = vadd.f32 %v2465_v36, %v18078_v9  ;;  %v13774_v6 = vpop.f32.mrb[109].mxu0  ;;  %14128 = vmatmul.mubr.msk.f32.gmra.mrb[214].mxu0 %vm22197_vm10, %v11700_v52  ;;  %vm22211_vm10 = vmmov %vm22003_vm0 }
 0x2ed   : > { %v13821_v16 = vpop.f32.mrb[109].mxu1  ;;  %14175 = vmatmul.mubr.msk.f32.gmra.mrb[214].mxu1 %vm22198_vm6, %v11730_v55  ;;  %14130 = vmatprep.mubr.msk.f32.mxu0 %vm16028_vm7, %v16027_v56  ;;  %vm22212_vm6 = vmmov %vm22003_vm0 }
 0x2ee   : > { %14177 = vmatprep.mubr.msk.f32.mxu1 %vm16028_vm7, %v16027_v56  ;;  %v18243_v14 = vadd.f32 %v2683_v41, %v2503_v39 }
 0x2ef   : > { %v2470_v25 = vpop.f32.mrb[110].mxu0 }
 0x2f0   : > { %v2688_v9 = vpop.f32.mrb[110].mxu1  ;;  %v2504_v35 = vadd.f32 %v2470_v25, %v18089_v31  ;;  %v13777_v60 = vpop.f32.mrb[111].mxu0  ;;  %14131 = vmatmul.mubr.msk.f32.gmra.mrb[216].mxu0 %vm22199_vm15, %v11701_v13  ;;  %vm22213_vm15 = vmmov %vm22003_vm0 }
 0x2f1   : > { %v13824_v59 = vpop.f32.mrb[111].mxu1  ;;  %14178 = vmatmul.mubr.msk.f32.gmra.mrb[216].mxu1 %vm22003_vm0, %v11731_v10  ;;  %14133 = vmatprep.mubr.msk.f32.mxu0 %vm16028_vm7, %v16027_v56  ;;  %v11738_v10 = vld [vmem:[%s16939_s21 + $0xd1] sm:$0xff] }
 0x2f2   : > { %14180 = vmatprep.mubr.msk.f32.mxu1 %vm16028_vm7, %v16027_v56  ;;  %v18254_v46 = vadd.f32 %v2688_v9, %v2504_v35  ;;  %v11709_v60 = vld [vmem:[%s16939_s21 + $0xd8] sm:$0xff] }
 0x2f3   : > { %v2475_v5 = vpop.f32.mrb[112].mxu0  ;;  %v11739_v59 = vld [vmem:[%s16939_s21 + $0xd9] sm:$0xff] }
 0x2f4   : > { %v2693_v54 = vpop.f32.mrb[112].mxu1  ;;  %v2505_v31 = vadd.f32 %v2475_v5, %v18098_v15  ;;  %v13780_v42 = vpop.f32.mrb[113].mxu0  ;;  %14134 = vmatmul.mubr.msk.f32.gmra.mrb[218].mxu0 %vm22200_vm8, %v11702_v7  ;;  %vm22214_vm8 = vmmov %vm22003_vm0 }
 0x2f5   : > { %v13827_v21 = vpop.f32.mrb[113].mxu1  ;;  %14181 = vmatmul.mubr.msk.f32.gmra.mrb[218].mxu1 %vm22201_vm14, %v11732_v34  ;;  %14136 = vmatprep.mubr.msk.f32.mxu0 %vm16028_vm7, %v16027_v56  ;;  %v11710_v42 = vld [vmem:[%s16939_s21 + $0xe0] sm:$0xff]  ;;  %vm22215_vm14 = vmmov %vm22003_vm0 }
 0x2f6   : > { %14183 = vmatprep.mubr.msk.f32.mxu1 %vm16028_vm7, %v16027_v56  ;;  %v18263_v38 = vadd.f32 %v2693_v54, %v2505_v31  ;;  %v11740_v21 = vld [vmem:[%s16939_s21 + $0xe1] sm:$0xff] }
 0x2f7   : > { %v2480_v47 = vpop.f32.mrb[114].mxu0 }
 0x2f8   : > { %v2698_v8 = vpop.f32.mrb[114].mxu1  ;;  %v2506_v29 = vadd.f32 %v2480_v47, %v18109_v37  ;;  %v13783_v48 = vpop.f32.mrb[115].mxu0  ;;  %14137 = vmatmul.mubr.msk.f32.gmra.mrb[220].mxu0 %vm22202_vm3, %v17951_v4  ;;  %vm22216_vm3 = vmmov %vm22003_vm0 }
 0x2f9   : > { %v13830_v15 = vpop.f32.mrb[115].mxu1  ;;  %14184 = vmatmul.mubr.msk.f32.gmra.mrb[220].mxu1 %vm22203_vm4, %v17956_v2  ;;  %14139 = vmatprep.mubr.msk.f32.mxu0 %vm16028_vm7, %v16027_v56  ;;  %vm22217_vm4 = vmmov %vm22003_vm0 }
 0x2fa   : > { %14186 = vmatprep.mubr.msk.f32.mxu1 %vm16028_vm7, %v16027_v56  ;;  %v18274_v1 = vadd.f32 %v2698_v8, %v2506_v29 }
 0x2fb   : > { %v2485_v63 = vpop.f32.mrb[116].mxu0 }
 0x2fc   : > { %v2703_v57 = vpop.f32.mrb[116].mxu1  ;;  %v2507_v37 = vadd.f32 %v2485_v63, %v18120_v32  ;;  %v13786_v33 = vpop.f32.mrb[117].mxu0  ;;  %14140 = vmatmul.mubr.msk.f32.gmra.mrb[222].mxu0 %vm22204_vm12, %v17968_v44  ;;  %v11711_v63 = vld [vmem:[%s16939_s21 + $0xe8] sm:$0xff]  ;;  %vm22218_vm12 = vmmov %vm22003_vm0 }
 0x2fd   : > { %v13833_v4 = vpop.f32.mrb[117].mxu1  ;;  %14187 = vmatmul.mubr.msk.f32.gmra.mrb[222].mxu1 %vm22205_vm13, %v17973_v23  ;;  %14142 = vmatprep.mubr.msk.f32.mxu0 %vm16028_vm7, %v16027_v56  ;;  %vm22219_vm13 = vmmov %vm22003_vm0 }
 0x2fe   : > { %14189 = vmatprep.mubr.msk.f32.mxu1 %vm16028_vm7, %v16027_v56  ;;  %v18285_v2 = vadd.f32 %v2703_v57, %v2507_v37  ;;  %v11741_v57 = vld [vmem:[%s16939_s21 + $0xe9] sm:$0xff] }
 0x2ff   : > { %v2490_v51 = vpop.f32.mrb[118].mxu0 }
 0x300   : > { %v2708_v52 = vpop.f32.mrb[118].mxu1  ;;  %v2508_v32 = vadd.f32 %v2490_v51, %v18131_v40  ;;  %v13789_v55 = vpop.f32.mrb[119].mxu0  ;;  %14143 = vmatmul.mubr.msk.f32.gmra.mrb[224].mxu0 %vm22206_vm1, %v17985_v0  ;;  %vm22220_vm1 = vmmov %vm22003_vm0 }
 0x301   : > { %v13836_v44 = vpop.f32.mrb[119].mxu1  ;;  %14190 = vmatmul.mubr.msk.f32.gmra.mrb[224].mxu1 %vm22207_vm9, %v17990_v12  ;;  %14145 = vmatprep.mubr.msk.f32.mxu0 %vm16028_vm7, %v16027_v56  ;;  %v11742_v55 = vld [vmem:[%s16939_s21 + $0xf1] sm:$0xff] }
 0x302   : > { %14192 = vmatprep.mubr.msk.f32.mxu1 %vm16028_vm7, %v16027_v56  ;;  %v18296_v23 = vadd.f32 %v2708_v52, %v2508_v32  ;;  %v11712_v32 = vld [vmem:[%s16939_s21 + $0xf0] sm:$0xff] }
 0x303   : > { %v2856_v36 = vpop.f32.mrb[120].mxu0 }
 0x304   : > { %v3074_v41 = vpop.f32.mrb[120].mxu1  ;;  %v2930_v40 = vadd.f32 %v2856_v36, %v18142_v3  ;;  %v13841_v39 = vpop.f32.mrb[121].mxu0  ;;  %14146 = vmatmul.mubr.msk.f32.gmra.mrb[226].mxu0 %vm22208_vm2, %v18002_v49 }
 0x305   : > { %v13888_v0 = vpop.f32.mrb[121].mxu1  ;;  %14193 = vmatmul.mubr.msk.f32.gmra.mrb[226].mxu1 %vm22209_vm11, %v18007_v45  ;;  %14148 = vmatprep.mubr.msk.f32.mxu0 %vm16028_vm7, %v16027_v56  ;;  %v11708_v45 = vld [vmem:[%s16939_s21 + $0xd0] sm:$0xff]  ;;  %s18490_s21 = scalar_lea.vmem [#allocation3], %s22702_s17 }
 0x306   : > { %14195 = vmatprep.mubr.msk.f32.mxu1 %vm16028_vm7, %v16027_v56  ;;  %v18307_v12 = vadd.f32 %v3074_v41, %v2930_v40 }
 0x307   : > { %v2861_v6 = vpop.f32.mrb[122].mxu0 }
 0x308   : > { %v3079_v3 = vpop.f32.mrb[122].mxu1  ;;  %v2931_v16 = vadd.f32 %v2861_v6, %v18155_v58  ;;  %v13844_v13 = vpop.f32.mrb[123].mxu0  ;;  %14149 = vmatmul.mubr.msk.f32.gmra.mrb[228].mxu0 %vm22210_vm5, %v18019_v19 }
 0x309   : > { %v13891_v49 = vpop.f32.mrb[123].mxu1  ;;  %14196 = vmatmul.mubr.msk.f32.gmra.mrb[228].mxu1 %vm22211_vm10, %v18024_v18  ;;  %14151 = vmatprep.mubr.msk.f32.mxu0 %vm16028_vm7, %v16027_v56 }
 0x30a   : > { %14198 = vmatprep.mubr.msk.f32.mxu1 %vm16028_vm7, %v16027_v56  ;;  %v18320_v25 = vadd.f32 %v3079_v3, %v2931_v16 }
 0x30b   : > { %v2866_v58 = vpop.f32.mrb[124].mxu0 }
 0x30c   : > { %v3084_v9 = vpop.f32.mrb[124].mxu1  ;;  %v2932_v19 = vadd.f32 %v2866_v58, %v18166_v28  ;;  %v13847_v35 = vpop.f32.mrb[125].mxu0  ;;  %14152 = vmatmul.mubr.msk.f32.gmra.mrb[230].mxu0 %vm22212_vm6, %v11708_v45 }
 0x30d   : > { %v13894_v18 = vpop.f32.mrb[125].mxu1  ;;  %14199 = vmatmul.mubr.msk.f32.gmra.mrb[230].mxu1 %vm22213_vm15, %v11738_v10  ;;  %14154 = vmatprep.mubr.msk.f32.mxu0 %vm16028_vm7, %v16027_v56 }
 0x30e   : > { %14201 = vmatprep.mubr.msk.f32.mxu1 %vm16028_vm7, %v16027_v56  ;;  %v18331_v7 = vadd.f32 %v3084_v9, %v2932_v19 }
 0x30f   : > { %v2871_v34 = vpop.f32.mrb[126].mxu0 }
 0x310   : > { %v3089_v28 = vpop.f32.mrb[126].mxu1  ;;  %v2933_v5 = vadd.f32 %v2871_v34, %v18177_v62  ;;  %v13850_v54 = vpop.f32.mrb[127].mxu0  ;;  %14155 = vmatmul.mubr.msk.f32.gmra.mrb[232].mxu0 %vm22003_vm0, %v11709_v60 }
 0x311   : > { %v13897_v31 = vpop.f32.mrb[127].mxu1  ;;  %14202 = vmatmul.mubr.msk.f32.gmra.mrb[232].mxu1 %vm22214_vm8, %v11739_v59  ;;  %14157 = vmatprep.mubr.msk.f32.mxu0 %vm16028_vm7, %v16027_v56 }
 0x312   : > { %14204 = vmatprep.mubr.msk.f32.mxu1 %vm16028_vm7, %v16027_v56  ;;  %v18342_v47 = vadd.f32 %v3089_v28, %v2933_v5 }
 0x313   : > { %v2876_v8 = vpop.f32.mrb[128].mxu0 }
 0x314   : > { %v3094_v62 = vpop.f32.mrb[128].mxu1  ;;  %v2934_v29 = vadd.f32 %v2876_v8, %v18188_v17  ;;  %v13853_v48 = vpop.f32.mrb[129].mxu0  ;;  %14158 = vmatmul.mubr.msk.f32.gmra.mrb[234].mxu0 %vm22215_vm14, %v11710_v42 }
 0x315   : > { %v13900_v15 = vpop.f32.mrb[129].mxu1  ;;  %14205 = vmatmul.mubr.msk.f32.gmra.mrb[234].mxu1 %vm22216_vm3, %v11740_v21  ;;  %14160 = vmatprep.mubr.msk.f32.mxu0 %vm16028_vm7, %v16027_v56 }
 0x316   : > { %14207 = vmatprep.mubr.msk.f32.mxu1 %vm16028_vm7, %v16027_v56  ;;  %v18353_v37 = vadd.f32 %v3094_v62, %v2934_v29 }
 0x317   : > { %v2881_v33 = vpop.f32.mrb[130].mxu0 }
 0x318   : > { %v3099_v17 = vpop.f32.mrb[130].mxu1  ;;  %v2935_v4 = vadd.f32 %v2881_v33, %v18199_v26  ;;  %v13856_v51 = vpop.f32.mrb[131].mxu0  ;;  %14161 = vmatmul.mubr.msk.f32.gmra.mrb[236].mxu0 %vm22217_vm4, %v11711_v63 }
 0x319   : > { %v13903_v52 = vpop.f32.mrb[131].mxu1  ;;  %14208 = vmatmul.mubr.msk.f32.gmra.mrb[236].mxu1 %vm22218_vm12, %v11741_v57  ;;  %14163 = vmatprep.mubr.msk.f32.mxu0 %vm16028_vm7, %v16027_v56 }
 0x31a   : > { %14210 = vmatprep.mubr.msk.f32.mxu1 %vm16028_vm7, %v16027_v56  ;;  %v18364_v44 = vadd.f32 %v3099_v17, %v2935_v4  ;;  %vm22221_vm7 = vcmask 130048  }
 0x31b   : > { %v2886_v36 = vpop.f32.mrb[132].mxu0  ;;  %vm22222_vm9 = vmmov %vm22221_vm7 }
 0x31c   : > { %v3104_v41 = vpop.f32.mrb[132].mxu1  ;;  %v2936_v26 = vadd.f32 %v2886_v36, %v18210_v24  ;;  %v13859_v40 = vpop.f32.mrb[133].mxu0  ;;  %14164 = vmatmul.mubr.msk.f32.gmra.mrb[238].mxu0 %vm22219_vm13, %v11712_v32  ;;  %vm22223_vm2 = vmmov %vm22221_vm7 }
 0x31d   : > { %v13906_v39 = vpop.f32.mrb[133].mxu1  ;;  %14211 = vmatmul.mubr.msk.f32.gmra.mrb[238].mxu1 %vm22220_vm1, %v11742_v55  ;;  %vm22224_vm11 = vmmov %vm22223_vm2 }
 0x31e   : > { %v18369_v0 = vadd.f32 %v3104_v41, %v2936_v26  ;;  %vm22225_vm5 = vmmov %vm22223_vm2 }
 0x31f   : > { %v2891_v6 = vpop.f32.mrb[134].mxu0  ;;  %vm22226_vm10 = vmmov %vm22223_vm2 }
 0x320   : > { %v3109_v3 = vpop.f32.mrb[134].mxu1  ;;  %v2937_v16 = vadd.f32 %v2891_v6, %v18221_v20  ;;  %v13862_v56 = vpop.f32.mrb[135].mxu0  ;;  %vm22228_vm6 = vmmov %vm22223_vm2 }
 0x321   : > { %v13909_v13 = vpop.f32.mrb[135].mxu1  ;;  %vm22230_vm15 = vmmov %vm22223_vm2 }
 0x322   : > { %v18372_v49 = vadd.f32 %v3109_v3, %v2937_v16  ;;  %vm22232_vm0 = vmmov %vm22223_vm2 }
 0x323   : > { %v2896_v45 = vpop.f32.mrb[136].mxu0  ;;  %vm22234_vm8 = vmmov %vm22232_vm0 }
 0x324   : > { %v3114_v10 = vpop.f32.mrb[136].mxu1  ;;  %v2938_v24 = vadd.f32 %v2896_v45, %v18232_v50  ;;  %v13865_v58 = vpop.f32.mrb[137].mxu0  ;;  %vm22236_vm14 = vmmov %vm22232_vm0 }
 0x325   : > { %v13912_v9 = vpop.f32.mrb[137].mxu1  ;;  %vm22238_vm3 = vmmov %vm22232_vm0 }
 0x326   : > { %v18375_v19 = vadd.f32 %v3114_v10, %v2938_v24  ;;  %vm22240_vm4 = vmmov %vm22232_vm0 }
 0x327   : > { %v2901_v35 = vpop.f32.mrb[138].mxu0  ;;  %vm22242_vm12 = vmmov %vm22232_vm0 }
 0x328   : > { %v3119_v18 = vpop.f32.mrb[138].mxu1  ;;  %v2939_v60 = vadd.f32 %v2901_v35, %v18243_v14  ;;  %v13868_v59 = vpop.f32.mrb[139].mxu0  ;;  %vm22244_vm13 = vmmov %vm22232_vm0 }
 0x329   : > { %v13915_v34 = vpop.f32.mrb[139].mxu1 }
 0x32a   : > { %v18378_v28 = vadd.f32 %v3119_v18, %v2939_v60 }
 0x32b   : > { %v2906_v20 = vpop.f32.mrb[140].mxu0 }
 0x32c   : > { %v3124_v5 = vpop.f32.mrb[140].mxu1  ;;  %v2940_v54 = vadd.f32 %v2906_v20, %v18254_v46  ;;  %v13871_v31 = vpop.f32.mrb[141].mxu0 }
 0x32d   : > { %v13918_v42 = vpop.f32.mrb[141].mxu1 }
 0x32e   : > { %v18381_v21 = vadd.f32 %v3124_v5, %v2940_v54 }
 0x32f   : > { %v2911_v50 = vpop.f32.mrb[142].mxu0 }
 0x330   : > { %v3129_v8 = vpop.f32.mrb[142].mxu1  ;;  %v2941_v62 = vadd.f32 %v2911_v50, %v18263_v38  ;;  %v13874_v29 = vpop.f32.mrb[143].mxu0 }
 0x331   : > { %v13921_v48 = vpop.f32.mrb[143].mxu1 }
 0x332   : > { %v18384_v15 = vadd.f32 %v3129_v8, %v2941_v62 }
 0x333   : > { %v2916_v14 = vpop.f32.mrb[144].mxu0 }
 0x334   : > { %v3134_v63 = vpop.f32.mrb[144].mxu1  ;;  %v2942_v57 = vadd.f32 %v2916_v14, %v18274_v1  ;;  %v13877_v33 = vpop.f32.mrb[145].mxu0 }
 0x335   : > { %v13924_v17 = vpop.f32.mrb[145].mxu1 }
 0x336   : > { %v18387_v4 = vadd.f32 %v3134_v63, %v2942_v57 }
 0x337   : > { %v2921_v46 = vpop.f32.mrb[146].mxu0 }
 0x338   : > { %v3139_v51 = vpop.f32.mrb[146].mxu1  ;;  %v2943_v52 = vadd.f32 %v2921_v46, %v18285_v2  ;;  %v13880_v32 = vpop.f32.mrb[147].mxu0 }
 0x339   : > { %v13927_v55 = vpop.f32.mrb[147].mxu1 }
 0x33a   : > { %v18390_v36 = vadd.f32 %v3139_v51, %v2943_v52 }
 0x33b   : > { %v2926_v38 = vpop.f32.mrb[148].mxu0 }
 0x33c   : > { %v3144_v41 = vpop.f32.mrb[148].mxu1  ;;  %v2944_v26 = vadd.f32 %v2926_v38, %v18296_v23  ;;  %v13883_v40 = vpop.f32.mrb[149].mxu0 }
 0x33d   : > { %v13930_v39 = vpop.f32.mrb[149].mxu1 }
 0x33e   : > { %v18393_v6 = vadd.f32 %v3144_v41, %v2944_v26 }
 0x33f   : > { %v3292_v1 = vpop.f32.mrb[150].mxu0 }
 0x340   : > { %v3510_v3 = vpop.f32.mrb[150].mxu1  ;;  %v3366_v16 = vadd.f32 %v3292_v1, %v18307_v12  ;;  %v13935_v56 = vpop.f32.mrb[151].mxu0 }
 0x341   : > { %v13982_v13 = vpop.f32.mrb[151].mxu1 }
 0x342   : > { %v18396_v45 = vadd.f32 %v3510_v3, %v3366_v16 }
 0x343   : > { %v3297_v2 = vpop.f32.mrb[152].mxu0 }
 0x344   : > { %v3515_v10 = vpop.f32.mrb[152].mxu1  ;;  %v3367_v24 = vadd.f32 %v3297_v2, %v18320_v25  ;;  %v13938_v58 = vpop.f32.mrb[153].mxu0 }
 0x345   : > { %v13985_v9 = vpop.f32.mrb[153].mxu1 }
 0x346   : > { %v18399_v35 = vadd.f32 %v3515_v10, %v3367_v24 }
 0x347   : > { %v3302_v23 = vpop.f32.mrb[154].mxu0 }
 0x348   : > { %v3520_v18 = vpop.f32.mrb[154].mxu1  ;;  %v3368_v60 = vadd.f32 %v3302_v23, %v18331_v7  ;;  %v13941_v59 = vpop.f32.mrb[155].mxu0 }
 0x349   : > { %v13988_v34 = vpop.f32.mrb[155].mxu1 }
 0x34a   : > { %v18402_v20 = vadd.f32 %v3520_v18, %v3368_v60 }
 0x34b   : > { %v3307_v12 = vpop.f32.mrb[156].mxu0 }
 0x34c   : > { %v3525_v5 = vpop.f32.mrb[156].mxu1  ;;  %v3369_v54 = vadd.f32 %v3307_v12, %v18342_v47  ;;  %v13944_v31 = vpop.f32.mrb[157].mxu0 }
 0x34d   : > { %v13991_v42 = vpop.f32.mrb[157].mxu1 }
 0x34e   : > { %v18405_v50 = vadd.f32 %v3525_v5, %v3369_v54 }
 0x34f   : > { %v3312_v25 = vpop.f32.mrb[158].mxu0 }
 0x350   : > { %v3530_v8 = vpop.f32.mrb[158].mxu1  ;;  %v3370_v62 = vadd.f32 %v3312_v25, %v18353_v37  ;;  %v13947_v29 = vpop.f32.mrb[159].mxu0 }
 0x351   : > { %v13994_v48 = vpop.f32.mrb[159].mxu1 }
 0x352   : > { %v18408_v14 = vadd.f32 %v3530_v8, %v3370_v62 }
 0x353   : > { %v3317_v7 = vpop.f32.mrb[160].mxu0 }
 0x354   : > { %v3535_v63 = vpop.f32.mrb[160].mxu1  ;;  %v3371_v57 = vadd.f32 %v3317_v7, %v18364_v44  ;;  %v13950_v33 = vpop.f32.mrb[161].mxu0 }
 0x355   : > { %v13997_v17 = vpop.f32.mrb[161].mxu1 }
 0x356   : > { %v18411_v46 = vadd.f32 %v3535_v63, %v3371_v57 }
 0x357   : > { %v3322_v47 = vpop.f32.mrb[162].mxu0 }
 0x358   : > { %v3540_v51 = vpop.f32.mrb[162].mxu1  ;;  %v3372_v52 = vadd.f32 %v3322_v47, %v18369_v0  ;;  %v13953_v32 = vpop.f32.mrb[163].mxu0 }
 0x359   : > { %v14000_v55 = vpop.f32.mrb[163].mxu1 }
 0x35a   : > { %v18414_v38 = vadd.f32 %v3540_v51, %v3372_v52 }
 0x35b   : > { %v3327_v37 = vpop.f32.mrb[164].mxu0 }
 0x35c   : > { %v3545_v41 = vpop.f32.mrb[164].mxu1  ;;  %v3373_v26 = vadd.f32 %v3327_v37, %v18372_v49  ;;  %v13956_v40 = vpop.f32.mrb[165].mxu0 }
 0x35d   : > { %v14003_v39 = vpop.f32.mrb[165].mxu1 }
 0x35e   : > { %v18417_v1 = vadd.f32 %v3545_v41, %v3373_v26 }
 0x35f   : > { %v3332_v44 = vpop.f32.mrb[166].mxu0 }
 0x360   : > { %v3550_v3 = vpop.f32.mrb[166].mxu1  ;;  %v3374_v16 = vadd.f32 %v3332_v44, %v18375_v19  ;;  %v13959_v56 = vpop.f32.mrb[167].mxu0 }
 0x361   : > { %v14006_v13 = vpop.f32.mrb[167].mxu1 }
 0x362   : > { %v18420_v2 = vadd.f32 %v3550_v3, %v3374_v16 }
 0x363   : > { %v3337_v0 = vpop.f32.mrb[168].mxu0 }
 0x364   : > { %v3555_v10 = vpop.f32.mrb[168].mxu1  ;;  %v3375_v24 = vadd.f32 %v3337_v0, %v18378_v28  ;;  %v13962_v58 = vpop.f32.mrb[169].mxu0 }
 0x365   : > { %v14009_v9 = vpop.f32.mrb[169].mxu1 }
 0x366   : > { %v18423_v23 = vadd.f32 %v3555_v10, %v3375_v24 }
 0x367   : > { %v3342_v49 = vpop.f32.mrb[170].mxu0 }
 0x368   : > { %v3560_v18 = vpop.f32.mrb[170].mxu1  ;;  %v3376_v60 = vadd.f32 %v3342_v49, %v18381_v21  ;;  %v13965_v59 = vpop.f32.mrb[171].mxu0 }
 0x369   : > { %v14012_v34 = vpop.f32.mrb[171].mxu1 }
 0x36a   : > { %v18426_v12 = vadd.f32 %v3560_v18, %v3376_v60 }
 0x36b   : > { %v3347_v19 = vpop.f32.mrb[172].mxu0 }
 0x36c   : > { %v3565_v5 = vpop.f32.mrb[172].mxu1  ;;  %v3377_v54 = vadd.f32 %v3347_v19, %v18384_v15  ;;  %v13968_v31 = vpop.f32.mrb[173].mxu0 }
 0x36d   : > { %v14015_v42 = vpop.f32.mrb[173].mxu1 }
 0x36e   : > { %v18429_v25 = vadd.f32 %v3565_v5, %v3377_v54 }
 0x36f   : > { %v3352_v28 = vpop.f32.mrb[174].mxu0 }
 0x370   : > { %v3570_v8 = vpop.f32.mrb[174].mxu1  ;;  %v3378_v62 = vadd.f32 %v3352_v28, %v18387_v4  ;;  %v13971_v29 = vpop.f32.mrb[175].mxu0 }
 0x371   : > { %v14018_v48 = vpop.f32.mrb[175].mxu1 }
 0x372   : > { %v18432_v7 = vadd.f32 %v3570_v8, %v3378_v62 }
 0x373   : > { %v3357_v21 = vpop.f32.mrb[176].mxu0 }
 0x374   : > { %v3575_v63 = vpop.f32.mrb[176].mxu1  ;;  %v3379_v57 = vadd.f32 %v3357_v21, %v18390_v36  ;;  %v13974_v33 = vpop.f32.mrb[177].mxu0 }
 0x375   : > { %v14021_v17 = vpop.f32.mrb[177].mxu1 }
 0x376   : > { %v18435_v47 = vadd.f32 %v3575_v63, %v3379_v57 }
 0x377   : > { %v3362_v15 = vpop.f32.mrb[178].mxu0 }
 0x378   : > { %v3580_v51 = vpop.f32.mrb[178].mxu1  ;;  %v3380_v52 = vadd.f32 %v3362_v15, %v18393_v6  ;;  %v13977_v32 = vpop.f32.mrb[179].mxu0 }
 0x379   : > { %v14024_v55 = vpop.f32.mrb[179].mxu1 }
 0x37a   : > { %v18438_v37 = vadd.f32 %v3580_v51, %v3380_v52 }
 0x37b   : > { %v3728_v4 = vpop.f32.mrb[180].mxu0 }
 0x37c   : > { %v3946_v41 = vpop.f32.mrb[180].mxu1  ;;  %v3802_v26 = vadd.f32 %v3728_v4, %v18396_v45  ;;  %v14029_v40 = vpop.f32.mrb[181].mxu0 }
 0x37d   : > { %v14076_v39 = vpop.f32.mrb[181].mxu1 }
 0x37e   : > { %v18441_v44 = vadd.f32 %v3946_v41, %v3802_v26 }
 0x37f   : > { %v3733_v36 = vpop.f32.mrb[182].mxu0 }
 0x380   : > { %v3951_v3 = vpop.f32.mrb[182].mxu1  ;;  %v3803_v16 = vadd.f32 %v3733_v36, %v18399_v35  ;;  %v14032_v56 = vpop.f32.mrb[183].mxu0 }
 0x381   : > { %v14079_v13 = vpop.f32.mrb[183].mxu1 }
 0x382   : > { %v18444_v0 = vadd.f32 %v3951_v3, %v3803_v16 }
 0x383   : > { %v3738_v6 = vpop.f32.mrb[184].mxu0 }
 0x384   : > { %v3956_v10 = vpop.f32.mrb[184].mxu1  ;;  %v3804_v24 = vadd.f32 %v3738_v6, %v18402_v20  ;;  %v14035_v58 = vpop.f32.mrb[185].mxu0 }
 0x385   : > { %v14082_v9 = vpop.f32.mrb[185].mxu1 }
 0x386   : > { %v18447_v49 = vadd.f32 %v3956_v10, %v3804_v24 }
 0x387   : > { %v3743_v45 = vpop.f32.mrb[186].mxu0 }
 0x388   : > { %v3961_v18 = vpop.f32.mrb[186].mxu1  ;;  %v3805_v60 = vadd.f32 %v3743_v45, %v18405_v50  ;;  %v14038_v59 = vpop.f32.mrb[187].mxu0 }
 0x389   : > { %v14085_v34 = vpop.f32.mrb[187].mxu1 }
 0x38a   : > { %v18450_v19 = vadd.f32 %v3961_v18, %v3805_v60 }
 0x38b   : > { %v3748_v35 = vpop.f32.mrb[188].mxu0 }
 0x38c   : > { %v3966_v5 = vpop.f32.mrb[188].mxu1  ;;  %v3806_v54 = vadd.f32 %v3748_v35, %v18408_v14  ;;  %v14041_v31 = vpop.f32.mrb[189].mxu0 }
 0x38d   : > { %v14088_v42 = vpop.f32.mrb[189].mxu1 }
 0x38e   : > { %v18453_v28 = vadd.f32 %v3966_v5, %v3806_v54 }
 0x38f   : > { %v3753_v20 = vpop.f32.mrb[190].mxu0 }
 0x390   : > { %v3971_v8 = vpop.f32.mrb[190].mxu1  ;;  %v3807_v62 = vadd.f32 %v3753_v20, %v18411_v46  ;;  %v14044_v29 = vpop.f32.mrb[191].mxu0 }
 0x391   : > { %v14091_v48 = vpop.f32.mrb[191].mxu1 }
 0x392   : > { %v18456_v21 = vadd.f32 %v3971_v8, %v3807_v62 }
 0x393   : > { %v3758_v50 = vpop.f32.mrb[192].mxu0 }
 0x394   : > { %v3976_v63 = vpop.f32.mrb[192].mxu1  ;;  %v3808_v57 = vadd.f32 %v3758_v50, %v18414_v38  ;;  %v14047_v33 = vpop.f32.mrb[193].mxu0 }
 0x395   : > { %v14094_v17 = vpop.f32.mrb[193].mxu1 }
 0x396   : > { %v18459_v15 = vadd.f32 %v3976_v63, %v3808_v57 }
 0x397   : > { %v3763_v14 = vpop.f32.mrb[194].mxu0 }
 0x398   : > { %v3981_v51 = vpop.f32.mrb[194].mxu1  ;;  %v3809_v52 = vadd.f32 %v3763_v14, %v18417_v1  ;;  %v14050_v32 = vpop.f32.mrb[195].mxu0 }
 0x399   : > { %v14097_v55 = vpop.f32.mrb[195].mxu1 }
 0x39a   : > { %v18462_v4 = vadd.f32 %v3981_v51, %v3809_v52 }
 0x39b   : > { %v3768_v46 = vpop.f32.mrb[196].mxu0 }
 0x39c   : > { %v3986_v41 = vpop.f32.mrb[196].mxu1  ;;  %v3810_v26 = vadd.f32 %v3768_v46, %v18420_v2  ;;  %v14053_v40 = vpop.f32.mrb[197].mxu0 }
 0x39d   : > { %v14100_v39 = vpop.f32.mrb[197].mxu1 }
 0x39e   : > { %v18465_v36 = vadd.f32 %v3986_v41, %v3810_v26 }
 0x39f   : > { %v3773_v38 = vpop.f32.mrb[198].mxu0 }
 0x3a0   : > { %v3991_v3 = vpop.f32.mrb[198].mxu1  ;;  %v3811_v16 = vadd.f32 %v3773_v38, %v18423_v23  ;;  %v14056_v56 = vpop.f32.mrb[199].mxu0 }
 0x3a1   : > { %v14103_v13 = vpop.f32.mrb[199].mxu1 }
 0x3a2   : > { %v18468_v6 = vadd.f32 %v3991_v3, %v3811_v16 }
 0x3a3   : > { %v3778_v1 = vpop.f32.mrb[200].mxu0 }
 0x3a4   : > { %v3996_v10 = vpop.f32.mrb[200].mxu1  ;;  %v3812_v24 = vadd.f32 %v3778_v1, %v18426_v12  ;;  %v14059_v58 = vpop.f32.mrb[201].mxu0 }
 0x3a5   : > { %v14106_v9 = vpop.f32.mrb[201].mxu1 }
 0x3a6   : > { %v18471_v45 = vadd.f32 %v3996_v10, %v3812_v24 }
 0x3a7   : > { %v3783_v2 = vpop.f32.mrb[202].mxu0 }
 0x3a8   : > { %v4001_v18 = vpop.f32.mrb[202].mxu1  ;;  %v3813_v60 = vadd.f32 %v3783_v2, %v18429_v25  ;;  %v14062_v59 = vpop.f32.mrb[203].mxu0 }
 0x3a9   : > { %v14109_v34 = vpop.f32.mrb[203].mxu1 }
 0x3aa   : > { %v18474_v35 = vadd.f32 %v4001_v18, %v3813_v60 }
 0x3ab   : > { %v3788_v23 = vpop.f32.mrb[204].mxu0 }
 0x3ac   : > { %v4006_v5 = vpop.f32.mrb[204].mxu1  ;;  %v3814_v54 = vadd.f32 %v3788_v23, %v18432_v7  ;;  %v14065_v31 = vpop.f32.mrb[205].mxu0 }
 0x3ad   : > { %v14112_v42 = vpop.f32.mrb[205].mxu1 }
 0x3ae   : > { %v18477_v20 = vadd.f32 %v4006_v5, %v3814_v54 }
 0x3af   : > { %v3793_v12 = vpop.f32.mrb[206].mxu0 }
 0x3b0   : > { %v4011_v8 = vpop.f32.mrb[206].mxu1  ;;  %v3815_v62 = vadd.f32 %v3793_v12, %v18435_v47  ;;  %v14068_v29 = vpop.f32.mrb[207].mxu0 }
 0x3b1   : > { %v14115_v48 = vpop.f32.mrb[207].mxu1 }
 0x3b2   : > { %v18480_v50 = vadd.f32 %v4011_v8, %v3815_v62 }
 0x3b3   : > { %v3798_v25 = vpop.f32.mrb[208].mxu0 }
 0x3b4   : > { %v4016_v63 = vpop.f32.mrb[208].mxu1  ;;  %v3816_v57 = vadd.f32 %v3798_v25, %v18438_v37  ;;  %v14071_v33 = vpop.f32.mrb[209].mxu0 }
 0x3b5   : > { %v14118_v17 = vpop.f32.mrb[209].mxu1 }
 0x3b6   : > { %v18483_v14 = vadd.f32 %v4016_v63, %v3816_v57 }
 0x3b7   : > { %v4164_v7 = vpop.f32.mrb[210].mxu0 }
 0x3b8   : > { %v4382_v51 = vpop.f32.mrb[210].mxu1  ;;  %v4238_v52 = vadd.f32 %v4164_v7, %v18441_v44  ;;  %v14123_v32 = vpop.f32.mrb[211].mxu0 }
 0x3b9   : > { %v14170_v55 = vpop.f32.mrb[211].mxu1 }
 0x3ba   : > { %v4456_v47 = vadd.f32 %v4382_v51, %v4238_v52 }
 0x3bb   : > { %v4169_v46 = vpop.f32.mrb[212].mxu0 }
 0x3bc   : > { %v4387_v41 = vpop.f32.mrb[212].mxu1  ;;  %v4477_v26 = vadd.f32 %v16848_v11, %v4456_v47  ;;  %v4239_v40 = vadd.f32 %v4169_v46, %v18444_v0  ;;  %v14126_v39 = vpop.f32.mrb[213].mxu0 }
 0x3bd   : > { %v14173_v37 = vpop.f32.mrb[213].mxu1 }
 0x3be   : > { %v4492_v38 = vmul.f32 %v16866_v30, %v4477_v26  ;;  %v4457_v3 = vadd.f32 %v4387_v41, %v4239_v40  ;;  %v22254_v30 = vld [vmem:[#allocation15_spill] sm:$0xff] (%p1006_p3) }
 0x3bf   : > { %v4174_v16 = vpop.f32.mrb[214].mxu0 }
 0x3c0   : > { %v4392_v56 = vpop.f32.mrb[214].mxu1  ;;  %11759 = vst.msk [vmem:[%s18490_s21 + $0x30] sm:$0xff] %vm22221_vm7, %v4492_v38  ;;  %v4478_v44 = vadd.f32 %v16848_v11, %v4457_v3  ;;  %v4240_v13 = vadd.f32 %v4174_v16, %v18447_v49  ;;  %v14129_v1 = vpop.f32.mrb[215].mxu0  ;;  %v22227_v38 = vld [vmem:[#allocation21_spill] sm:$0xff] }
 0x3c1   : > { %v14176_v0 = vpop.f32.mrb[215].mxu1 }
 0x3c2   : > { %v4493_v10 = vmul.f32 %v16869_v22, %v4478_v44  ;;  %v4458_v24 = vadd.f32 %v4392_v56, %v4240_v13  ;;  %v22255_v22 = vld [vmem:[#allocation16_spill] sm:$0xff] (%p1006_p3) }
 0x3c3   : > { %v4179_v58 = vpop.f32.mrb[216].mxu0 }
 0x3c4   : > { %v4397_v9 = vpop.f32.mrb[216].mxu1  ;;  %11760 = vst.msk [vmem:[%s18490_s21 + $0x38] sm:$0xff] %vm22222_vm9, %v4493_v10  ;;  %v4479_v2 = vadd.f32 %v16848_v11, %v4458_v24  ;;  %v4241_v18 = vadd.f32 %v4179_v58, %v18450_v19  ;;  %v14132_v60 = vpop.f32.mrb[217].mxu0  ;;  %v22229_v10 = vld [vmem:[#allocation22_spill] sm:$0xff] }
 0x3c5   : > { %v14179_v59 = vpop.f32.mrb[217].mxu1 }
 0x3c6   : > { %v4494_v34 = vmul.f32 %v16872_v61, %v4479_v2  ;;  %v4459_v49 = vadd.f32 %v4397_v9, %v4241_v18  ;;  %v22256_v61 = vld [vmem:[#allocation17_spill] sm:$0xff] (%p1006_p3) }
 0x3c7   : > { %v4184_v23 = vpop.f32.mrb[218].mxu0 }
 0x3c8   : > { %v4402_v5 = vpop.f32.mrb[218].mxu1  ;;  %11761 = vst.msk [vmem:[%s18490_s21 + $0x40] sm:$0xff] %vm22223_vm2, %v4494_v34  ;;  %v4480_v54 = vadd.f32 %v16848_v11, %v4459_v49  ;;  %v4242_v31 = vadd.f32 %v4184_v23, %v18453_v28  ;;  %v14135_v42 = vpop.f32.mrb[219].mxu0  ;;  %v22231_v34 = vld [vmem:[#allocation23_spill] sm:$0xff] }
 0x3c9   : > { %v14182_v12 = vpop.f32.mrb[219].mxu1 }
 0x3ca   : > { %v4495_v8 = vmul.f32 %v16875_v27, %v4480_v54  ;;  %v4460_v19 = vadd.f32 %v4402_v5, %v4242_v31  ;;  %v22257_v27 = vld [vmem:[#allocation18_spill] sm:$0xff] (%p1006_p3) }
 0x3cb   : > { %v4189_v62 = vpop.f32.mrb[220].mxu0 }
 0x3cc   : > { %v4407_v29 = vpop.f32.mrb[220].mxu1  ;;  %11762 = vst.msk [vmem:[%s18490_s21 + $0x48] sm:$0xff] %vm22224_vm11, %v4495_v8  ;;  %v4481_v48 = vadd.f32 %v16848_v11, %v4460_v19  ;;  %v4243_v25 = vadd.f32 %v4189_v62, %v18456_v21  ;;  %v14138_v63 = vpop.f32.mrb[221].mxu0  ;;  %v22233_v8 = vld [vmem:[#allocation24_spill] sm:$0xff] }
 0x3cd   : > { %v14185_v57 = vpop.f32.mrb[221].mxu1 }
 0x3ce   : > { %v4496_v33 = vmul.f32 %v16878_v53, %v4481_v48  ;;  %v4461_v28 = vadd.f32 %v4407_v29, %v4243_v25  ;;  %v22258_v53 = vld [vmem:[#allocation19_spill] sm:$0xff] (%p1006_p3) }
 0x3cf   : > { %v4194_v17 = vpop.f32.mrb[222].mxu0 }
 0x3d0   : > { %v4412_v7 = vpop.f32.mrb[222].mxu1  ;;  %11763 = vst.msk [vmem:[%s18490_s21 + $0x50] sm:$0xff] %vm22225_vm5, %v4496_v33  ;;  %v4482_v51 = vadd.f32 %v16848_v11, %v4461_v28  ;;  %v4244_v52 = vadd.f32 %v4194_v17, %v18459_v15  ;;  %v14141_v32 = vpop.f32.mrb[223].mxu0  ;;  %v22235_v33 = vld [vmem:[#allocation25_spill] sm:$0xff] }
 0x3d1   : > { %v14188_v55 = vpop.f32.mrb[223].mxu1 }
 0x3d2   : > { %v4497_v47 = vmul.f32 %v16881_v43, %v4482_v51  ;;  %v4462_v21 = vadd.f32 %v4412_v7, %v4244_v52  ;;  %v22259_v43 = vld [vmem:[#allocation20_spill] sm:$0xff] (%p1006_p3) }
 0x3d3   : > { %v4199_v46 = vpop.f32.mrb[224].mxu0 }
 0x3d4   : > { %v4417_v41 = vpop.f32.mrb[224].mxu1  ;;  %11764 = vst.msk [vmem:[%s18490_s21 + $0x58] sm:$0xff] %vm22226_vm10, %v4497_v47  ;;  %v4483_v26 = vadd.f32 %v16848_v11, %v4462_v21  ;;  %v4245_v40 = vadd.f32 %v4199_v46, %v18462_v4  ;;  %v14144_v39 = vpop.f32.mrb[225].mxu0  ;;  %v22237_v47 = vld [vmem:[#allocation26_spill] sm:$0xff] }
 0x3d5   : > { %v14191_v37 = vpop.f32.mrb[225].mxu1 }
 0x3d6   : > { %v4498_v3 = vmul.f32 %v22227_v38, %v4483_v26  ;;  %v4463_v15 = vadd.f32 %v4417_v41, %v4245_v40  ;;  %v22239_v38 = vld [vmem:[#allocation27_spill] sm:$0xff] }
 0x3d7   : > { %v4204_v16 = vpop.f32.mrb[226].mxu0 }
 0x3d8   : > { %v4422_v56 = vpop.f32.mrb[226].mxu1  ;;  %11765 = vst.msk [vmem:[%s18490_s21 + $0x60] sm:$0xff] %vm22228_vm6, %v4498_v3  ;;  %v4484_v44 = vadd.f32 %v16848_v11, %v4463_v15  ;;  %v4246_v13 = vadd.f32 %v4204_v16, %v18465_v36  ;;  %v14147_v1 = vpop.f32.mrb[227].mxu0 }
 0x3d9   : > { %v14194_v0 = vpop.f32.mrb[227].mxu1 }
 0x3da   : > { %v4499_v24 = vmul.f32 %v22229_v10, %v4484_v44  ;;  %v4464_v4 = vadd.f32 %v4422_v56, %v4246_v13  ;;  %v22241_v0 = vld [vmem:[#allocation28_spill] sm:$0xff] }
 0x3db   : > { %v4209_v58 = vpop.f32.mrb[228].mxu0 }
 0x3dc   : > { %v4427_v9 = vpop.f32.mrb[228].mxu1  ;;  %11766 = vst.msk [vmem:[%s18490_s21 + $0x68] sm:$0xff] %vm22230_vm15, %v4499_v24  ;;  %v4485_v2 = vadd.f32 %v16848_v11, %v4464_v4  ;;  %v4247_v18 = vadd.f32 %v4209_v58, %v18468_v6  ;;  %v14150_v60 = vpop.f32.mrb[229].mxu0  ;;  %v22243_v4 = vld [vmem:[#allocation34_spill] sm:$0xff] }
 0x3dd   : > { %v14197_v59 = vpop.f32.mrb[229].mxu1  ;;  %v22248_v60 = vld [vmem:[#allocation9_spill] sm:$0xff] (%p1006_p3) }
 0x3de   : > { %v4500_v49 = vmul.f32 %v22231_v34, %v4485_v2  ;;  %v4465_v36 = vadd.f32 %v4427_v9, %v4247_v18  ;;  %v22245_v9 = vld [vmem:[#allocation6_spill] sm:$0xff] (%p1006_p3)  ;;  %v22246_v2 = vld [vmem:[#allocation7_spill] sm:$0xff] (%p1006_p3)  ;;  %v22247_v18 = vld [vmem:[#allocation8_spill] sm:$0xff] (%p1006_p3)  ;;  %vm4527_vm2 = vcmp.lt.s32.totalorder (%p1006_p3), %v22248_v60, 33 }
 0x3df   : > { %v4214_v23 = vpop.f32.mrb[230].mxu0  ;;  %vm4524_vm1 = vcmp.lt.s32.totalorder (%p1006_p3), %v22245_v9, 33  ;;  %vm4525_vm7 = vcmp.lt.s32.totalorder (%p1006_p3), %v22246_v2, 33  ;;  %vm4526_vm9 = vcmp.lt.s32.totalorder (%p1006_p3), %v22247_v18, 33  ;;  %v22249_v59 = vld [vmem:[#allocation10_spill] sm:$0xff] (%p1006_p3)  ;;  %v22250_v34 = vld [vmem:[#allocation11_spill] sm:$0xff] (%p1006_p3) }
 0x3e0   : > { %v4432_v5 = vpop.f32.mrb[230].mxu1  ;;  %11767 = vst.msk [vmem:[%s18490_s21 + $0x70] sm:$0xff] %vm22232_vm0, %v4500_v49  ;;  %v4486_v54 = vadd.f32 %v16848_v11, %v4465_v36  ;;  %v4248_v31 = vadd.f32 %v4214_v23, %v18471_v45  ;;  %v14153_v42 = vpop.f32.mrb[231].mxu0  ;;  %vm4528_vm11 = vcmp.lt.s32.totalorder (%p1006_p3), %v22249_v59, 33  ;;  %vm4529_vm5 = vcmp.lt.s32.totalorder (%p1006_p3), %v22250_v34, 33  ;;  %v22251_v49 = vld [vmem:[#allocation12_spill] sm:$0xff] (%p1006_p3) }
 0x3e1   : > { %v14200_v12 = vpop.f32.mrb[231].mxu1  ;;  %vm4530_vm10 = vcmp.lt.s32.totalorder (%p1006_p3), %v22251_v49, 33  ;;  %v22252_v36 = vld [vmem:[#allocation13_spill] sm:$0xff] (%p1006_p3)  ;;  %vm4533_vm0 = vcmp.lt.s32.totalorder (%p1006_p3), %v22254_v30, 33  ;;  %v22260_v23 = vmov (%p1006_p3), 0.0  }
 0x3e2   : > { %v4501_v19 = vmul.f32 %v22233_v8, %v4486_v54  ;;  %v4466_v6 = vadd.f32 %v4432_v5, %v4248_v31  ;;  %vm4531_vm6 = vcmp.lt.s32.totalorder (%p1006_p3), %v22252_v36, 33  ;;  %v18587_v5 = vsel (%p1006_p3), %vm4524_vm1, 1.0, %v22260_v23 }
 0x3e3   : > { %v4219_v62 = vpop.f32.mrb[232].mxu0  ;;  %v18590_v54 = vsel (%p1006_p3), %vm4525_vm7, 1.0, %v22260_v23  ;;  %v18593_v31 = vsel (%p1006_p3), %vm4526_vm9, 1.0, %v22260_v23  ;;  %v18596_v42 = vsel (%p1006_p3), %vm4527_vm2, 1.0, %v22260_v23  ;;  %v18599_v12 = vsel (%p1006_p3), %vm4528_vm11, 1.0, %v22260_v23 }
 0x3e4   : > { %v4437_v29 = vpop.f32.mrb[232].mxu1  ;;  %11768 = vst.msk [vmem:[%s18490_s21 + $0x78] sm:$0xff] %vm22234_vm8, %v4501_v19  ;;  %v4487_v48 = vadd.f32 %v16848_v11, %v4466_v6  ;;  %v4249_v25 = vadd.f32 %v4219_v62, %v18474_v35  ;;  %v14156_v63 = vpop.f32.mrb[233].mxu0  ;;  %vm4534_vm8 = vcmp.lt.s32.totalorder (%p1006_p3), %v22255_v22, 33  ;;  %v18602_v8 = vsel (%p1006_p3), %vm4529_vm5, 1.0, %v22260_v23 }
 0x3e5   : > { %v14203_v57 = vpop.f32.mrb[233].mxu1  ;;  %v18605_v19 = vsel (%p1006_p3), %vm4530_vm10, 1.0, %v22260_v23  ;;  %v18608_v6 = vsel (%p1006_p3), %vm4531_vm6, 1.0, %v22260_v23 }
 0x3e6   : > { %v4502_v28 = vmul.f32 %v22235_v33, %v4487_v48  ;;  %v4467_v45 = vadd.f32 %v4437_v29, %v4249_v25  ;;  %v18614_v29 = vsel (%p1006_p3), %vm4533_vm0, 1.0, %v22260_v23  ;;  %v18617_v48 = vsel (%p1006_p3), %vm4534_vm8, 1.0, %v22260_v23 }
 0x3e7   : > { %v4224_v17 = vpop.f32.mrb[234].mxu0 }
 0x3e8   : > { %v4442_v7 = vpop.f32.mrb[234].mxu1  ;;  %11769 = vst.msk [vmem:[%s18490_s21 + $0x80] sm:$0xff] %vm22236_vm14, %v4502_v28  ;;  %v4488_v51 = vadd.f32 %v16848_v11, %v4467_v45  ;;  %v4250_v52 = vadd.f32 %v4224_v17, %v18477_v20  ;;  %v14159_v32 = vpop.f32.mrb[235].mxu0  ;;  %vm4535_vm14 = vcmp.lt.s32.totalorder (%p1006_p3), %v22256_v61, 33 }
 0x3e9   : > { %v14206_v55 = vpop.f32.mrb[235].mxu1  ;;  %v18620_v25 = vsel (%p1006_p3), %vm4535_vm14, 1.0, %v22260_v23 }
 0x3ea   : > { %v4503_v21 = vmul.f32 %v22237_v47, %v4488_v51  ;;  %v4468_v35 = vadd.f32 %v4442_v7, %v4250_v52 }
 0x3eb   : > { %v4229_v46 = vpop.f32.mrb[236].mxu0 }
 0x3ec   : > { %v4447_v41 = vpop.f32.mrb[236].mxu1  ;;  %11770 = vst.msk [vmem:[%s18490_s21 + $0x88] sm:$0xff] %vm22238_vm3, %v4503_v21  ;;  %v4489_v26 = vadd.f32 %v16848_v11, %v4468_v35  ;;  %v4251_v40 = vadd.f32 %v4229_v46, %v18480_v50  ;;  %v14162_v39 = vpop.f32.mrb[237].mxu0  ;;  %vm4536_vm3 = vcmp.lt.s32.totalorder (%p1006_p3), %v22257_v27, 33 }
 0x3ed   : > { %v14209_v37 = vpop.f32.mrb[237].mxu1  ;;  %v18623_v63 = vsel (%p1006_p3), %vm4536_vm3, 1.0, %v22260_v23 }
 0x3ee   : > { %v4504_v20 = vmul.f32 %v22239_v38, %v4489_v26  ;;  %v4469_v3 = vadd.f32 %v4447_v41, %v4251_v40 }
 0x3ef   : > { %v4234_v15 = vpop.f32.mrb[238].mxu0 }
 0x3f0   : > { %v4452_v16 = vpop.f32.mrb[238].mxu1  ;;  %11771 = vst.msk [vmem:[%s18490_s21 + $0x90] sm:$0xff] %vm22240_vm4, %v4504_v20  ;;  %v4490_v56 = vadd.f32 %v16848_v11, %v4469_v3  ;;  %v4252_v44 = vadd.f32 %v4234_v15, %v18483_v14  ;;  %v14165_v13 = vpop.f32.mrb[239].mxu0  ;;  %v18569_v14 = vld [vmem:[%s21853_s6] ss:$0 sm:$0xff] (%p1006_p3)  ;;  %vm4537_vm4 = vcmp.lt.s32.totalorder (%p1006_p3), %v22258_v53, 33 }
 0x3f1   : > { %v14212_v1 = vpop.f32.mrb[239].mxu1  ;;  %v18626_v57 = vsel (%p1006_p3), %vm4537_vm4, 1.0, %v22260_v23 }
 0x3f2   : > { %v4505_v10 = vmul.f32 %v22241_v0, %v4490_v56  ;;  %v4470_v24 = vadd.f32 %v4452_v16, %v4252_v44  ;;  %1008 = sbr.rel (!%p1006_p3) target bundleno = 313 (0x139), region = 164 }
 0x3f4   : > { %11772 = vst.msk [vmem:[%s18490_s21 + $0x98] sm:$0xff] %vm22242_vm12, %v4505_v10  ;;  %v4491_v50 = vadd.f32 %v16848_v11, %v4470_v24  ;;  %v22253_v11 = vld [vmem:[#allocation14_spill] sm:$0xff] (%p1006_p3)  ;;  %vm4538_vm12 = vcmp.lt.s32.totalorder (%p1006_p3), %v22259_v43, 33 }
 0x3f5   :  { %vm4532_vm15 = vcmp.lt.s32.totalorder (%p1006_p3), %v22253_v11, 33  ;;  %v18629_v33 = vsel (%p1006_p3), %vm4538_vm12, 1.0, %v22260_v23 }
 0x3f6   : > { %v4506_v58 = vmul.f32 %v22243_v4, %v4491_v50  ;;  %v18611_v62 = vsel (%p1006_p3), %vm4532_vm15, 1.0, %v22260_v23 }
 0x3f8   : > { %11773 = vst.msk [vmem:[%s18490_s21 + $0xa0] sm:$0xff] %vm22244_vm13, %v4506_v58 }
 0x3f9 LB: > { %v4614_v28 = vld [vmem:[%s21852_s5 + $0x10] sm:$0xff]  ;;  %v4615_v45 = vld [vmem:[%s21852_s5 + $0x18] sm:$0xff]  ;;  %v4595_v17 = vld [vmem:[%s21852_s5] sm:$0xff]  ;;  %v16029_v7 = vmov 0.0|0.0   ;;  %vm16030_vm13 = vmmov 0   ;;  %v16031_v55 = vmov 0.0   ;;  %s16015_s3 = sphi %s18631_s3, %s4574_s3  }
 0x3fa   : > { %15734 = vmatprep.subr.bf16.mxu0 %v16029_v7  ;;  %v15735_v51 = vpack.c.bf16 %v4615_v45, %v4614_v28  ;;  %15737 = vmatprep.subr.bf16.mxu1 %v16029_v7  ;;  %v4596_v52 = vld [vmem:[%s21852_s5 + $0x8] sm:$0xff]  ;;  %s4575_s14 = smul.u32 120, %s16015_s3  ;;  %v5003_v47 = vld [vmem:[%s21852_s5 + $0x20] sm:$0xff]  ;;  %v5222_v35 = vld [vmem:[%s21852_s5 + $0x30] sm:$0xff]  ;;  %vm22261_vm1 = vcmask 130048   ;;  %s4574_s3 = sadd.s32 1, %s16015_s3  }
 0x3fb   : > { %v15738_v32 = vpack.c.bf16 %v4596_v52, %v4595_v17  ;;  %14217 = vmatprep.mubr.msk.f32.mxu0 %vm16030_vm13, %v16031_v55  ;;  %14266 = vmatprep.mubr.msk.f32.mxu1 %vm16030_vm13, %v16031_v55  ;;  %v5004_v21 = vld [vmem:[%s21852_s5 + $0x28] sm:$0xff]  ;;  %v5223_v46 = vld [vmem:[%s21852_s5 + $0x38] sm:$0xff]  ;;  %vm22262_vm7 = vmmov %vm22261_vm1  ;;  %p4571_p5 = scmp.ge.s32.totalorder %s4574_s3, 11  }
 0x3fc   : > { %15736 = vmatpush3.bf16.msra.mxu0 %v15735_v51  ;;  %p4576_p4 = scmp.lt.s32.totalorder %s4575_s14, 1200  ;;  %v15741_v41 = vpack.c.bf16 %v5004_v21, %v5003_v47  ;;  %v15744_v26 = vpack.c.bf16 %v5223_v46, %v5222_v35  ;;  %vm22263_vm9 = vmmov %vm22261_vm1  ;;  %s19002_s21 = smov (%p4571_p5), 0  }
 0x3fd   : > { %15739 = vmatpush3.bf16.msra.mxu1 %v15738_v32  ;;  %15740 = vmatprep.subr.bf16.mxu0 %v16029_v7  ;;  %vm22264_vm2 = vmmov %vm22261_vm1 }
 0x3fe   : > { %15743 = vmatprep.subr.bf16.mxu1 %v16029_v7  ;;  %s22704_s14 = smov (!%p4576_p4, %s4575_s14), 1200  ;;  %vm22265_vm11 = vmmov %vm22261_vm1 }
 0x3ff   : > { %s18668_s22 = scalar_lea.vmem [#allocation3], %s22704_s14  ;;  %vm22266_vm5 = vmmov %vm22261_vm1  ;;  %s18921_s23 = scalar_lea.vmem [#allocation4], %s22704_s14 }
 0x400   : > { %v11804_v40 = vld [vmem:[%s18668_s22 + $0x8] sm:$0xff]  ;;  %v11805_v37 = vld [vmem:[%s18668_s22 + $0x10] sm:$0xff]  ;;  %v11806_v20 = vld [vmem:[%s18668_s22 + $0x18] sm:$0xff] }
 0x401   : > { %v11789_v39 = vld [vmem:[%s18668_s22 + $0x7] sm:$0xff]  ;;  %14218 = vmatmul.mubr.msk.f32.vlgmr.msra.gmra.mrb[0].mxu0 %vm22261_vm1, %v11804_v40  ;;  %v11790_v38 = vld [vmem:[%s18668_s22 + $0xf] sm:$0xff]  ;;  %v11791_v3 = vld [vmem:[%s18668_s22 + $0x17] sm:$0xff] }
 0x402   : > { %14267 = vmatmul.mubr.msk.f32.vlgmr.msra.gmra.mrb[0].mxu1 %vm22262_vm7, %v11789_v39  ;;  %15742 = vmatpush3.bf16.msra.mxu0 %v15741_v41  ;;  %v11807_v15 = vld [vmem:[%s18668_s22 + $0x20] sm:$0xff]  ;;  %vm22267_vm10 = vmmov %vm22261_vm1  ;;  %v11808_v56 = vld [vmem:[%s18668_s22 + $0x28] sm:$0xff] }
 0x403   : > { %15745 = vmatpush3.bf16.msra.mxu1 %v15744_v26  ;;  %14220 = vmatprep.mubr.msk.f32.mxu0 %vm16030_vm13, %v16031_v55  ;;  %v11792_v16 = vld [vmem:[%s18668_s22 + $0x1f] sm:$0xff]  ;;  %vm22268_vm6 = vmmov %vm22261_vm1  ;;  %v11793_v44 = vld [vmem:[%s18668_s22 + $0x27] sm:$0xff] }
 0x404   : > { %14269 = vmatprep.mubr.msk.f32.mxu1 %vm16030_vm13, %v16031_v55  ;;  %vm22269_vm15 = vmmov %vm22261_vm1  ;;  %v11809_v13 = vld [vmem:[%s18668_s22 + $0x30] sm:$0xff]  ;;  %v11810_v0 = vld [vmem:[%s18668_s22 + $0x38] sm:$0xff] }
 0x405   : > { %14221 = vmatmul.mubr.msk.f32.gmra.mrb[2].mxu0 %vm22263_vm9, %v11805_v37  ;;  %vm22270_vm0 = vmmov %vm22261_vm1  ;;  %v11794_v1 = vld [vmem:[%s18668_s22 + $0x2f] sm:$0xff]  ;;  %v11795_v10 = vld [vmem:[%s18668_s22 + $0x37] sm:$0xff] }
 0x406   : > { %14270 = vmatmul.mubr.msk.f32.gmra.mrb[2].mxu1 %vm22264_vm2, %v11790_v38  ;;  %14223 = vmatprep.mubr.msk.f32.mxu0 %vm16030_vm13, %v16031_v55  ;;  %vm22271_vm8 = vmmov %vm22270_vm0  ;;  %v11811_v24 = vld [vmem:[%s18668_s22 + $0x40] sm:$0xff]  ;;  %v11812_v4 = vld [vmem:[%s18668_s22 + $0x48] sm:$0xff] }
 0x407   : > { %14272 = vmatprep.mubr.msk.f32.mxu1 %vm16030_vm13, %v16031_v55  ;;  %vm22272_vm14 = vmmov %vm22270_vm0  ;;  %v11796_v50 = vld [vmem:[%s18668_s22 + $0x3f] sm:$0xff]  ;;  %v11797_v58 = vld [vmem:[%s18668_s22 + $0x47] sm:$0xff] }
 0x408   : > { %vm22273_vm3 = vmmov %vm22270_vm0  ;;  %v11813_v9 = vld [vmem:[%s18668_s22 + $0x50] sm:$0xff]  ;;  %v11814_v18 = vld [vmem:[%s18668_s22 + $0x58] sm:$0xff] }
 0x409   : > { %14224 = vmatmul.mubr.msk.f32.gmra.mrb[4].mxu0 %vm22265_vm11, %v11806_v20  ;;  %vm22274_vm4 = vmmov %vm22270_vm0  ;;  %v11798_v2 = vld [vmem:[%s18668_s22 + $0x4f] sm:$0xff]  ;;  %v11799_v60 = vld [vmem:[%s18668_s22 + $0x57] sm:$0xff] }
 0x40a   : > { %14273 = vmatmul.mubr.msk.f32.gmra.mrb[4].mxu1 %vm22266_vm5, %v11791_v3  ;;  %14226 = vmatprep.mubr.msk.f32.mxu0 %vm16030_vm13, %v16031_v55  ;;  %vm22275_vm12 = vmmov %vm22270_vm0  ;;  %v11815_v59 = vld [vmem:[%s18668_s22 + $0x60] sm:$0xff]  ;;  %v11816_v49 = vld [vmem:[%s18668_s22 + $0x68] sm:$0xff] }
 0x40b   : > { %14275 = vmatprep.mubr.msk.f32.mxu1 %vm16030_vm13, %v16031_v55  ;;  %vm22276_vm1 = vmmov %vm22270_vm0  ;;  %v11800_v34 = vld [vmem:[%s18668_s22 + $0x5f] sm:$0xff]  ;;  %v11801_v36 = vld [vmem:[%s18668_s22 + $0x67] sm:$0xff] }
 0x40c   : > { %vm22277_vm7 = vmmov %vm22270_vm0  ;;  %v11817_v11 = vld [vmem:[%s18668_s22 + $0x70] sm:$0xff]  ;;  %v11818_v22 = vld [vmem:[%s18668_s22 + $0x78] sm:$0xff] }
 0x40d   : > { %14227 = vmatmul.mubr.msk.f32.gmra.mrb[6].mxu0 %vm22267_vm10, %v11807_v15  ;;  %vm22278_vm9 = vmmov %vm22270_vm0  ;;  %v11802_v30 = vld [vmem:[%s18668_s22 + $0x6f] sm:$0xff]  ;;  %v11803_v61 = vld [vmem:[%s18668_s22 + $0x77] sm:$0xff] }
 0x40e   : > { %14276 = vmatmul.mubr.msk.f32.gmra.mrb[6].mxu1 %vm22268_vm6, %v11792_v16  ;;  %14229 = vmatprep.mubr.msk.f32.mxu0 %vm16030_vm13, %v16031_v55  ;;  %vm22279_vm2 = vmmov %vm22270_vm0  ;;  %v11859_v27 = vld [vmem:[%s18668_s22 + $0x7f] sm:$0xff]  ;;  %v11860_v43 = vld [vmem:[%s18668_s22 + $0x87] sm:$0xff] }
 0x40f   : > { %14278 = vmatprep.mubr.msk.f32.mxu1 %vm16030_vm13, %v16031_v55  ;;  %vm22280_vm11 = vmmov %vm22270_vm0  ;;  %v11889_v53 = vld [vmem:[%s18668_s22 + $0x80] sm:$0xff]  ;;  %v11890_v23 = vld [vmem:[%s18668_s22 + $0x88] sm:$0xff] }
 0x410   : > { %vm22281_vm5 = vmmov %vm22270_vm0  ;;  %v11861_v28 = vld [vmem:[%s18668_s22 + $0x8f] sm:$0xff]  ;;  %v11862_v17 = vld [vmem:[%s18668_s22 + $0x97] sm:$0xff] }
 0x411   : > { %14230 = vmatmul.mubr.msk.f32.gmra.mrb[8].mxu0 %vm22269_vm15, %v11808_v56  ;;  %vm22282_vm10 = vmmov %vm22270_vm0  ;;  %v11891_v45 = vld [vmem:[%s18668_s22 + $0x90] sm:$0xff]  ;;  %v11892_v7 = vld [vmem:[%s18668_s22 + $0x98] sm:$0xff] }
 0x412   : > { %14279 = vmatmul.mubr.msk.f32.gmra.mrb[8].mxu1 %vm22270_vm0, %v11793_v44  ;;  %14232 = vmatprep.mubr.msk.f32.mxu0 %vm16030_vm13, %v16031_v55  ;;  %vm22283_vm6 = vmmov %vm22270_vm0  ;;  %v11863_v51 = vld [vmem:[%s18668_s22 + $0x9f] sm:$0xff] }
 0x413   : > { %14281 = vmatprep.mubr.msk.f32.mxu1 %vm16030_vm13, %v16031_v55  ;;  %vm22284_vm15 = vmmov %vm22270_vm0  ;;  %v11893_v52 = vld [vmem:[%s18668_s22 + $0xa0] sm:$0xff] }
 0x415   : > { %14233 = vmatmul.mubr.msk.f32.gmra.mrb[10].mxu0 %vm22271_vm8, %v11809_v13  ;;  %vm22285_vm8 = vmmov %vm22270_vm0 }
 0x416   : > { %14282 = vmatmul.mubr.msk.f32.gmra.mrb[10].mxu1 %vm22272_vm14, %v11794_v1  ;;  %14235 = vmatprep.mubr.msk.f32.mxu0 %vm16030_vm13, %v16031_v55  ;;  %vm22286_vm14 = vmmov %vm22270_vm0 }
 0x417   : > { %14284 = vmatprep.mubr.msk.f32.mxu1 %vm16030_vm13, %v16031_v55 }
 0x419   : > { %14236 = vmatmul.mubr.msk.f32.gmra.mrb[12].mxu0 %vm22273_vm3, %v11810_v0  ;;  %vm22287_vm3 = vmmov %vm22270_vm0 }
 0x41a   : > { %14285 = vmatmul.mubr.msk.f32.gmra.mrb[12].mxu1 %vm22274_vm4, %v11795_v10  ;;  %14238 = vmatprep.mubr.msk.f32.mxu0 %vm16030_vm13, %v16031_v55  ;;  %vm22288_vm4 = vmmov %vm22270_vm0 }
 0x41b   : > { %14287 = vmatprep.mubr.msk.f32.mxu1 %vm16030_vm13, %v16031_v55 }
 0x41d   : > { %14239 = vmatmul.mubr.msk.f32.gmra.mrb[14].mxu0 %vm22275_vm12, %v11811_v24  ;;  %vm22289_vm12 = vmmov %vm22270_vm0 }
 0x41e   : > { %14288 = vmatmul.mubr.msk.f32.gmra.mrb[14].mxu1 %vm22276_vm1, %v11796_v50  ;;  %14241 = vmatprep.mubr.msk.f32.mxu0 %vm16030_vm13, %v16031_v55  ;;  %vm22290_vm1 = vmmov %vm22270_vm0 }
 0x41f   : > { %14290 = vmatprep.mubr.msk.f32.mxu1 %vm16030_vm13, %v16031_v55 }
 0x421   : > { %14242 = vmatmul.mubr.msk.f32.gmra.mrb[16].mxu0 %vm22277_vm7, %v11812_v4  ;;  %vm22291_vm7 = vmmov %vm22270_vm0 }
 0x422   : > { %14291 = vmatmul.mubr.msk.f32.gmra.mrb[16].mxu1 %vm22278_vm9, %v11797_v58  ;;  %14244 = vmatprep.mubr.msk.f32.mxu0 %vm16030_vm13, %v16031_v55  ;;  %vm22292_vm9 = vmmov %vm22270_vm0 }
 0x423   : > { %14293 = vmatprep.mubr.msk.f32.mxu1 %vm16030_vm13, %v16031_v55 }
 0x425   : > { %14245 = vmatmul.mubr.msk.f32.gmra.mrb[18].mxu0 %vm22279_vm2, %v11813_v9  ;;  %vm22293_vm2 = vmmov %vm22270_vm0 }
 0x426   : > { %14294 = vmatmul.mubr.msk.f32.gmra.mrb[18].mxu1 %vm22280_vm11, %v11798_v2  ;;  %14247 = vmatprep.mubr.msk.f32.mxu0 %vm16030_vm13, %v16031_v55  ;;  %vm22294_vm11 = vmmov %vm22270_vm0 }
 0x427   : > { %14296 = vmatprep.mubr.msk.f32.mxu1 %vm16030_vm13, %v16031_v55 }
 0x429   : > { %14248 = vmatmul.mubr.msk.f32.gmra.mrb[20].mxu0 %vm22281_vm5, %v11814_v18  ;;  %vm22295_vm5 = vmmov %vm22270_vm0 }
 0x42a   : > { %14297 = vmatmul.mubr.msk.f32.gmra.mrb[20].mxu1 %vm22282_vm10, %v11799_v60  ;;  %14250 = vmatprep.mubr.msk.f32.mxu0 %vm16030_vm13, %v16031_v55  ;;  %vm22296_vm10 = vmmov %vm22270_vm0 }
 0x42b   : > { %14299 = vmatprep.mubr.msk.f32.mxu1 %vm16030_vm13, %v16031_v55 }
 0x42d   : > { %14251 = vmatmul.mubr.msk.f32.gmra.mrb[22].mxu0 %vm22283_vm6, %v11815_v59  ;;  %vm22297_vm6 = vmmov %vm22270_vm0 }
 0x42e   : > { %14300 = vmatmul.mubr.msk.f32.gmra.mrb[22].mxu1 %vm22284_vm15, %v11800_v34  ;;  %14253 = vmatprep.mubr.msk.f32.mxu0 %vm16030_vm13, %v16031_v55  ;;  %vm22298_vm15 = vmmov %vm22270_vm0 }
 0x42f   : > { %14302 = vmatprep.mubr.msk.f32.mxu1 %vm16030_vm13, %v16031_v55 }
 0x431   : > { %14254 = vmatmul.mubr.msk.f32.gmra.mrb[24].mxu0 %vm22270_vm0, %v11816_v49 }
 0x432   : > { %14303 = vmatmul.mubr.msk.f32.gmra.mrb[24].mxu1 %vm22285_vm8, %v11801_v36  ;;  %14256 = vmatprep.mubr.msk.f32.mxu0 %vm16030_vm13, %v16031_v55  ;;  %vm22299_vm8 = vmmov %vm22270_vm0 }
 0x433   : > { %14305 = vmatprep.mubr.msk.f32.mxu1 %vm16030_vm13, %v16031_v55 }
 0x435   : > { %14257 = vmatmul.mubr.msk.f32.gmra.mrb[26].mxu0 %vm22286_vm14, %v11817_v11  ;;  %vm22300_vm14 = vmmov %vm22270_vm0 }
 0x436   : > { %14306 = vmatmul.mubr.msk.f32.gmra.mrb[26].mxu1 %vm22287_vm3, %v11802_v30  ;;  %14259 = vmatprep.mubr.msk.f32.mxu0 %vm16030_vm13, %v16031_v55  ;;  %vm22301_vm3 = vmmov %vm22270_vm0 }
 0x437   : > { %14308 = vmatprep.mubr.msk.f32.mxu1 %vm16030_vm13, %v16031_v55 }
 0x439   : > { %14260 = vmatmul.mubr.msk.f32.gmra.mrb[28].mxu0 %vm22288_vm4, %v11818_v22  ;;  %vm22302_vm4 = vmmov %vm22270_vm0 }
 0x43a   : > { %14309 = vmatmul.mubr.msk.f32.gmra.mrb[28].mxu1 %vm22289_vm12, %v11803_v61  ;;  %14315 = vmatprep.mubr.msk.f32.mxu0 %vm16030_vm13, %v16031_v55  ;;  %vm22303_vm12 = vmmov %vm22270_vm0 }
 0x43b   : > { %14364 = vmatprep.mubr.msk.f32.mxu1 %vm16030_vm13, %v16031_v55 }
 0x43d   : > { %14316 = vmatmul.mubr.msk.f32.vlgmr.msra.gmra.mrb[30].mxu0 %vm22290_vm1, %v11794_v1  ;;  %vm22304_vm1 = vmmov %vm22270_vm0 }
 0x43e   : > { %14365 = vmatmul.mubr.msk.f32.vlgmr.msra.gmra.mrb[30].mxu1 %vm22291_vm7, %v11809_v13  ;;  %14318 = vmatprep.mubr.msk.f32.mxu0 %vm16030_vm13, %v16031_v55  ;;  %vm22305_vm7 = vmmov %vm22270_vm0 }
 0x43f   : > { %14367 = vmatprep.mubr.msk.f32.mxu1 %vm16030_vm13, %v16031_v55 }
 0x441   : > { %14319 = vmatmul.mubr.msk.f32.gmra.mrb[32].mxu0 %vm22292_vm9, %v11795_v10  ;;  %vm22306_vm9 = vmmov %vm22270_vm0 }
 0x442   : > { %14368 = vmatmul.mubr.msk.f32.gmra.mrb[32].mxu1 %vm22293_vm2, %v11810_v0  ;;  %14321 = vmatprep.mubr.msk.f32.mxu0 %vm16030_vm13, %v16031_v55  ;;  %vm22307_vm2 = vmmov %vm22270_vm0 }
 0x443   : > { %14370 = vmatprep.mubr.msk.f32.mxu1 %vm16030_vm13, %v16031_v55 }
 0x445   : > { %14322 = vmatmul.mubr.msk.f32.gmra.mrb[34].mxu0 %vm22294_vm11, %v11796_v50  ;;  %vm22308_vm11 = vmmov %vm22270_vm0 }
 0x446   : > { %14371 = vmatmul.mubr.msk.f32.gmra.mrb[34].mxu1 %vm22295_vm5, %v11811_v24  ;;  %14324 = vmatprep.mubr.msk.f32.mxu0 %vm16030_vm13, %v16031_v55  ;;  %vm22309_vm5 = vmmov %vm22270_vm0 }
 0x447   : > { %14373 = vmatprep.mubr.msk.f32.mxu1 %vm16030_vm13, %v16031_v55 }
 0x449   : > { %14325 = vmatmul.mubr.msk.f32.gmra.mrb[36].mxu0 %vm22296_vm10, %v11797_v58  ;;  %vm22310_vm10 = vmmov %vm22270_vm0 }
 0x44a   : > { %14374 = vmatmul.mubr.msk.f32.gmra.mrb[36].mxu1 %vm22297_vm6, %v11812_v4  ;;  %14327 = vmatprep.mubr.msk.f32.mxu0 %vm16030_vm13, %v16031_v55  ;;  %vm22311_vm6 = vmmov %vm22270_vm0 }
 0x44b   : > { %14376 = vmatprep.mubr.msk.f32.mxu1 %vm16030_vm13, %v16031_v55 }
 0x44d   : > { %14328 = vmatmul.mubr.msk.f32.gmra.mrb[38].mxu0 %vm22298_vm15, %v11798_v2  ;;  %vm22312_vm15 = vmmov %vm22270_vm0 }
 0x44e   : > { %14377 = vmatmul.mubr.msk.f32.gmra.mrb[38].mxu1 %vm22270_vm0, %v11813_v9  ;;  %14330 = vmatprep.mubr.msk.f32.mxu0 %vm16030_vm13, %v16031_v55 }
 0x44f   : > { %14379 = vmatprep.mubr.msk.f32.mxu1 %vm16030_vm13, %v16031_v55 }
 0x451   : > { %14331 = vmatmul.mubr.msk.f32.gmra.mrb[40].mxu0 %vm22299_vm8, %v11799_v60  ;;  %vm22313_vm8 = vmmov %vm22270_vm0 }
 0x452   : > { %14380 = vmatmul.mubr.msk.f32.gmra.mrb[40].mxu1 %vm22300_vm14, %v11814_v18  ;;  %14333 = vmatprep.mubr.msk.f32.mxu0 %vm16030_vm13, %v16031_v55  ;;  %vm22314_vm14 = vmmov %vm22270_vm0 }
 0x453   : > { %14382 = vmatprep.mubr.msk.f32.mxu1 %vm16030_vm13, %v16031_v55 }
 0x455   : > { %14334 = vmatmul.mubr.msk.f32.gmra.mrb[42].mxu0 %vm22301_vm3, %v11800_v34  ;;  %vm22315_vm3 = vmmov %vm22270_vm0 }
 0x456   : > { %14383 = vmatmul.mubr.msk.f32.gmra.mrb[42].mxu1 %vm22302_vm4, %v11815_v59  ;;  %14336 = vmatprep.mubr.msk.f32.mxu0 %vm16030_vm13, %v16031_v55  ;;  %vm22316_vm4 = vmmov %vm22270_vm0 }
 0x457   : > { %14385 = vmatprep.mubr.msk.f32.mxu1 %vm16030_vm13, %v16031_v55 }
 0x459   : > { %14337 = vmatmul.mubr.msk.f32.gmra.mrb[44].mxu0 %vm22303_vm12, %v11801_v36  ;;  %vm22317_vm12 = vmmov %vm22270_vm0 }
 0x45a   : > { %14386 = vmatmul.mubr.msk.f32.gmra.mrb[44].mxu1 %vm22304_vm1, %v11816_v49  ;;  %14339 = vmatprep.mubr.msk.f32.mxu0 %vm16030_vm13, %v16031_v55 }
 0x45b   : > { %14388 = vmatprep.mubr.msk.f32.mxu1 %vm16030_vm13, %v16031_v55 }
 0x45d   : > { %14340 = vmatmul.mubr.msk.f32.gmra.mrb[46].mxu0 %vm22305_vm7, %v11802_v30 }
 0x45e   : > { %14389 = vmatmul.mubr.msk.f32.gmra.mrb[46].mxu1 %vm22306_vm9, %v11817_v11  ;;  %14342 = vmatprep.mubr.msk.f32.mxu0 %vm16030_vm13, %v16031_v55 }
 0x45f   : > { %14391 = vmatprep.mubr.msk.f32.mxu1 %vm16030_vm13, %v16031_v55 }
 0x461   : > { %14343 = vmatmul.mubr.msk.f32.gmra.mrb[48].mxu0 %vm22307_vm2, %v11803_v61 }
 0x462   : > { %14392 = vmatmul.mubr.msk.f32.gmra.mrb[48].mxu1 %vm22308_vm11, %v11818_v22  ;;  %14345 = vmatprep.mubr.msk.f32.mxu0 %vm16030_vm13, %v16031_v55 }
 0x463   : > { %14394 = vmatprep.mubr.msk.f32.mxu1 %vm16030_vm13, %v16031_v55 }
 0x465   : > { %14346 = vmatmul.mubr.msk.f32.gmra.mrb[50].mxu0 %vm22309_vm5, %v11859_v27 }
 0x466   : > { %14395 = vmatmul.mubr.msk.f32.gmra.mrb[50].mxu1 %vm22310_vm10, %v11889_v53  ;;  %14348 = vmatprep.mubr.msk.f32.mxu0 %vm16030_vm13, %v16031_v55 }
 0x467   : > { %14397 = vmatprep.mubr.msk.f32.mxu1 %vm16030_vm13, %v16031_v55 }
 0x469   : > { %14349 = vmatmul.mubr.msk.f32.gmra.mrb[52].mxu0 %vm22311_vm6, %v11860_v43 }
 0x46a   : > { %14398 = vmatmul.mubr.msk.f32.gmra.mrb[52].mxu1 %vm22312_vm15, %v11890_v23  ;;  %14351 = vmatprep.mubr.msk.f32.mxu0 %vm16030_vm13, %v16031_v55 }
 0x46b   : > { %14400 = vmatprep.mubr.msk.f32.mxu1 %vm16030_vm13, %v16031_v55 }
 0x46d   : > { %14352 = vmatmul.mubr.msk.f32.gmra.mrb[54].mxu0 %vm22270_vm0, %v11861_v28 }
 0x46e   : > { %14401 = vmatmul.mubr.msk.f32.gmra.mrb[54].mxu1 %vm22313_vm8, %v11891_v45  ;;  %14354 = vmatprep.mubr.msk.f32.mxu0 %vm16030_vm13, %v16031_v55 }
 0x46f   : > { %14403 = vmatprep.mubr.msk.f32.mxu1 %vm16030_vm13, %v16031_v55 }
 0x471   : > { %14355 = vmatmul.mubr.msk.f32.gmra.mrb[56].mxu0 %vm22314_vm14, %v11862_v17 }
 0x472   : > { %14404 = vmatmul.mubr.msk.f32.gmra.mrb[56].mxu1 %vm22315_vm3, %v11892_v7  ;;  %14357 = vmatprep.mubr.msk.f32.mxu0 %vm16030_vm13, %v16031_v55 }
 0x473   : > { %14406 = vmatprep.mubr.msk.f32.mxu1 %vm16030_vm13, %v16031_v55  ;;  %vm22318_vm13 = vcmask 261120  }
 0x474   : > { %vm22319_vm1 = vmmov %vm22318_vm13 }
 0x475   : > { %14358 = vmatmul.mubr.msk.f32.gmra.mrb[58].mxu0 %vm22316_vm4, %v11863_v51  ;;  %vm22320_vm7 = vmmov %vm22319_vm1 }
 0x476   : > { %14407 = vmatmul.mubr.msk.f32.gmra.mrb[58].mxu1 %vm22317_vm12, %v11893_v52  ;;  %vm22321_vm9 = vmmov %vm22319_vm1 }
 0x477   : > { %vm22322_vm2 = vmmov %vm22319_vm1 }
 0x478   : > { %vm22323_vm11 = vmmov %vm22319_vm1 }
 0x479   : > { %vm22324_vm5 = vmmov %vm22319_vm1 }
 0x47a   : > { %vm22325_vm10 = vmmov %vm22319_vm1 }
 0x47b   : > { %vm22326_vm6 = vmmov %vm22319_vm1 }
 0x47c   : > { %vm22327_vm15 = vmmov %vm22319_vm1 }
 0x47d   : > { %vm22328_vm0 = vmmov %vm22319_vm1 }
 0x47e   : > { %vm22329_vm8 = vmmov %vm22328_vm0 }
 0x47f   : > { %vm22330_vm14 = vmmov %vm22328_vm0 }
 0x480   : > { %vm22331_vm3 = vmmov %vm22328_vm0 }
 0x481   : > { %vm22332_vm4 = vmmov %vm22328_vm0 }
 0x4d4   : > { %v4727_v32 = vpop.f32.mrb[0].mxu0 }
 0x4d5   : > { %v4912_v47 = vpop.f32.mrb[0].mxu1  ;;  %v14219_v35 = vpop.f32.mrb[1].mxu0 }
 0x4d6   : > { %v18886_v21 = vadd.f32 %v4912_v47, %v4727_v32  ;;  %v14268_v46 = vpop.f32.mrb[1].mxu1 }
 0x4d8   : > { %v4732_v41 = vpop.f32.mrb[2].mxu0 }
 0x4d9   : > { %v4917_v26 = vpop.f32.mrb[2].mxu1  ;;  %v14222_v39 = vpop.f32.mrb[3].mxu0 }
 0x4da   : > { %v18888_v40 = vadd.f32 %v4917_v26, %v4732_v41  ;;  %v14271_v37 = vpop.f32.mrb[3].mxu1 }
 0x4dc   : > { %v4737_v38 = vpop.f32.mrb[4].mxu0 }
 0x4dd   : > { %v4922_v20 = vpop.f32.mrb[4].mxu1  ;;  %v14225_v3 = vpop.f32.mrb[5].mxu0 }
 0x4de   : > { %v18890_v55 = vadd.f32 %v4922_v20, %v4737_v38  ;;  %v14274_v15 = vpop.f32.mrb[5].mxu1 }
 0x4e0   : > { %v4742_v16 = vpop.f32.mrb[6].mxu0 }
 0x4e1   : > { %v4927_v56 = vpop.f32.mrb[6].mxu1  ;;  %v14228_v13 = vpop.f32.mrb[7].mxu0 }
 0x4e2   : > { %v18892_v44 = vadd.f32 %v4927_v56, %v4742_v16  ;;  %v14277_v1 = vpop.f32.mrb[7].mxu1 }
 0x4e4   : > { %v4747_v0 = vpop.f32.mrb[8].mxu0 }
 0x4e5   : > { %v4932_v10 = vpop.f32.mrb[8].mxu1  ;;  %v14231_v50 = vpop.f32.mrb[9].mxu0 }
 0x4e6   : > { %v18894_v24 = vadd.f32 %v4932_v10, %v4747_v0  ;;  %v14280_v4 = vpop.f32.mrb[9].mxu1 }
 0x4e8   : > { %v4752_v58 = vpop.f32.mrb[10].mxu0 }
 0x4e9   : > { %v4937_v9 = vpop.f32.mrb[10].mxu1  ;;  %v14234_v18 = vpop.f32.mrb[11].mxu0 }
 0x4ea   : > { %v18896_v2 = vadd.f32 %v4937_v9, %v4752_v58  ;;  %v14283_v60 = vpop.f32.mrb[11].mxu1 }
 0x4ec   : > { %v4757_v59 = vpop.f32.mrb[12].mxu0 }
 0x4ed   : > { %v4942_v34 = vpop.f32.mrb[12].mxu1  ;;  %v14237_v36 = vpop.f32.mrb[13].mxu0 }
 0x4ee   : > { %v18898_v49 = vadd.f32 %v4942_v34, %v4757_v59  ;;  %v14286_v11 = vpop.f32.mrb[13].mxu1 }
 0x4f0   : > { %v4762_v30 = vpop.f32.mrb[14].mxu0 }
 0x4f1   : > { %v4947_v22 = vpop.f32.mrb[14].mxu1  ;;  %v14240_v27 = vpop.f32.mrb[15].mxu0 }
 0x4f2   : > { %v18900_v61 = vadd.f32 %v4947_v22, %v4762_v30  ;;  %v14289_v53 = vpop.f32.mrb[15].mxu1 }
 0x4f4   : > { %v4767_v43 = vpop.f32.mrb[16].mxu0 }
 0x4f5   : > { %v4952_v23 = vpop.f32.mrb[16].mxu1  ;;  %v14243_v45 = vpop.f32.mrb[17].mxu0 }
 0x4f6   : > { %v18902_v28 = vadd.f32 %v4952_v23, %v4767_v43  ;;  %v14292_v17 = vpop.f32.mrb[17].mxu1 }
 0x4f8   : > { %v4772_v7 = vpop.f32.mrb[18].mxu0 }
 0x4f9   : > { %v4957_v51 = vpop.f32.mrb[18].mxu1  ;;  %v14246_v32 = vpop.f32.mrb[19].mxu0 }
 0x4fa   : > { %v18904_v52 = vadd.f32 %v4957_v51, %v4772_v7  ;;  %v14295_v47 = vpop.f32.mrb[19].mxu1 }
 0x4fc   : > { %v4777_v35 = vpop.f32.mrb[20].mxu0 }
 0x4fd   : > { %v4962_v46 = vpop.f32.mrb[20].mxu1  ;;  %v14249_v26 = vpop.f32.mrb[21].mxu0 }
 0x4fe   : > { %v18906_v41 = vadd.f32 %v4962_v46, %v4777_v35  ;;  %v14298_v39 = vpop.f32.mrb[21].mxu1 }
 0x500   : > { %v4782_v37 = vpop.f32.mrb[22].mxu0 }
 0x501   : > { %v4967_v38 = vpop.f32.mrb[22].mxu1  ;;  %v14252_v3 = vpop.f32.mrb[23].mxu0 }
 0x502   : > { %v18908_v20 = vadd.f32 %v4967_v38, %v4782_v37  ;;  %v14301_v15 = vpop.f32.mrb[23].mxu1 }
 0x504   : > { %v4787_v16 = vpop.f32.mrb[24].mxu0 }
 0x505   : > { %v4972_v56 = vpop.f32.mrb[24].mxu1  ;;  %v14255_v1 = vpop.f32.mrb[25].mxu0 }
 0x506   : > { %v18910_v13 = vadd.f32 %v4972_v56, %v4787_v16  ;;  %v14304_v0 = vpop.f32.mrb[25].mxu1 }
 0x508   : > { %v4792_v10 = vpop.f32.mrb[26].mxu0 }
 0x509   : > { %v4977_v50 = vpop.f32.mrb[26].mxu1  ;;  %v14258_v58 = vpop.f32.mrb[27].mxu0 }
 0x50a   : > { %v18912_v4 = vadd.f32 %v4977_v50, %v4792_v10  ;;  %v14307_v9 = vpop.f32.mrb[27].mxu1 }
 0x50c   : > { %v4797_v18 = vpop.f32.mrb[28].mxu0 }
 0x50d   : > { %v4982_v60 = vpop.f32.mrb[28].mxu1  ;;  %v14261_v34 = vpop.f32.mrb[29].mxu0 }
 0x50e   : > { %v18914_v59 = vadd.f32 %v4982_v60, %v4797_v18  ;;  %v14310_v36 = vpop.f32.mrb[29].mxu1 }
 0x510   : > { %v5116_v11 = vpop.f32.mrb[30].mxu0 }
 0x511   : > { %v5335_v30 = vpop.f32.mrb[30].mxu1  ;;  %v5190_v22 = vadd.f32 %v5116_v11, %v18886_v21  ;;  %v14317_v27 = vpop.f32.mrb[31].mxu0 }
 0x512   : > { %v14366_v53 = vpop.f32.mrb[31].mxu1 }
 0x513   : > { %v5409_v43 = vadd.f32 %v5335_v30, %v5190_v22 }
 0x514   : > { %v5121_v23 = vpop.f32.mrb[32].mxu0 }
 0x515   : > { %v5340_v45 = vpop.f32.mrb[32].mxu1  ;;  %v5430_v17 = vadd.f32 %v18569_v14, %v5409_v43  ;;  %v5191_v7 = vadd.f32 %v5121_v23, %v18888_v40  ;;  %v14320_v51 = vpop.f32.mrb[33].mxu0 }
 0x516   : > { %v14369_v32 = vpop.f32.mrb[33].mxu1 }
 0x517   : > { %v5445_v47 = vmul.f32 %v18587_v5, %v5430_v17  ;;  %v5410_v35 = vadd.f32 %v5340_v45, %v5191_v7 }
 0x518   : > { %v5126_v46 = vpop.f32.mrb[34].mxu0 }
 0x519   : > { %v5345_v26 = vpop.f32.mrb[34].mxu1  ;;  %11910 = vst.msk [vmem:[%s18921_s23 + $0x30] sm:$0xff] %vm22318_vm13, %v5445_v47  ;;  %v5431_v21 = vadd.f32 %v18569_v14, %v5410_v35  ;;  %v5192_v39 = vadd.f32 %v5126_v46, %v18890_v55  ;;  %v14323_v37 = vpop.f32.mrb[35].mxu0 }
 0x51a   : > { %v14372_v40 = vpop.f32.mrb[35].mxu1 }
 0x51b   : > { %v5446_v38 = vmul.f32 %v18590_v54, %v5431_v21  ;;  %v5411_v3 = vadd.f32 %v5345_v26, %v5192_v39 }
 0x51c   : > { %v5131_v15 = vpop.f32.mrb[36].mxu0 }
 0x51d   : > { %v5350_v16 = vpop.f32.mrb[36].mxu1  ;;  %11911 = vst.msk [vmem:[%s18921_s23 + $0x38] sm:$0xff] %vm22319_vm1, %v5446_v38  ;;  %v5432_v56 = vadd.f32 %v18569_v14, %v5411_v3  ;;  %v5193_v1 = vadd.f32 %v5131_v15, %v18892_v44  ;;  %v14326_v0 = vpop.f32.mrb[37].mxu0 }
 0x51e   : > { %v14375_v10 = vpop.f32.mrb[37].mxu1 }
 0x51f   : > { %v5447_v50 = vmul.f32 %v18593_v31, %v5432_v56  ;;  %v5412_v55 = vadd.f32 %v5350_v16, %v5193_v1 }
 0x520   : > { %v5136_v58 = vpop.f32.mrb[38].mxu0 }
 0x521   : > { %v5355_v9 = vpop.f32.mrb[38].mxu1  ;;  %11912 = vst.msk [vmem:[%s18921_s23 + $0x40] sm:$0xff] %vm22320_vm7, %v5447_v50  ;;  %v5433_v18 = vadd.f32 %v18569_v14, %v5412_v55  ;;  %v5194_v60 = vadd.f32 %v5136_v58, %v18894_v24  ;;  %v14329_v34 = vpop.f32.mrb[39].mxu0 }
 0x522   : > { %v14378_v36 = vpop.f32.mrb[39].mxu1 }
 0x523   : > { %v5448_v11 = vmul.f32 %v18596_v42, %v5433_v18  ;;  %v5413_v44 = vadd.f32 %v5355_v9, %v5194_v60 }
 0x524   : > { %v5141_v30 = vpop.f32.mrb[40].mxu0 }
 0x525   : > { %v5360_v22 = vpop.f32.mrb[40].mxu1  ;;  %11913 = vst.msk [vmem:[%s18921_s23 + $0x48] sm:$0xff] %vm22321_vm9, %v5448_v11  ;;  %v5434_v27 = vadd.f32 %v18569_v14, %v5413_v44  ;;  %v5195_v53 = vadd.f32 %v5141_v30, %v18896_v2  ;;  %v14332_v43 = vpop.f32.mrb[41].mxu0 }
 0x526   : > { %v14381_v23 = vpop.f32.mrb[41].mxu1 }
 0x527   : > { %v5449_v45 = vmul.f32 %v18599_v12, %v5434_v27  ;;  %v5414_v24 = vadd.f32 %v5360_v22, %v5195_v53 }
 0x528   : > { %v5146_v17 = vpop.f32.mrb[42].mxu0 }
 0x529   : > { %v5365_v7 = vpop.f32.mrb[42].mxu1  ;;  %11914 = vst.msk [vmem:[%s18921_s23 + $0x50] sm:$0xff] %vm22322_vm2, %v5449_v45  ;;  %v5435_v51 = vadd.f32 %v18569_v14, %v5414_v24  ;;  %v5196_v32 = vadd.f32 %v5146_v17, %v18898_v49  ;;  %v14335_v47 = vpop.f32.mrb[43].mxu0 }
 0x52a   : > { %v14384_v35 = vpop.f32.mrb[43].mxu1 }
 0x52b   : > { %v5450_v46 = vmul.f32 %v18602_v8, %v5435_v51  ;;  %v5415_v2 = vadd.f32 %v5365_v7, %v5196_v32 }
 0x52c   : > { %v5151_v26 = vpop.f32.mrb[44].mxu0 }
 0x52d   : > { %v5370_v21 = vpop.f32.mrb[44].mxu1  ;;  %11915 = vst.msk [vmem:[%s18921_s23 + $0x58] sm:$0xff] %vm22323_vm11, %v5450_v46  ;;  %v5436_v39 = vadd.f32 %v18569_v14, %v5415_v2  ;;  %v5197_v37 = vadd.f32 %v5151_v26, %v18900_v61  ;;  %v14338_v40 = vpop.f32.mrb[45].mxu0 }
 0x52e   : > { %v14387_v38 = vpop.f32.mrb[45].mxu1 }
 0x52f   : > { %v5451_v3 = vmul.f32 %v18605_v19, %v5436_v39  ;;  %v5416_v49 = vadd.f32 %v5370_v21, %v5197_v37 }
 0x530   : > { %v5156_v15 = vpop.f32.mrb[46].mxu0 }
 0x531   : > { %v5375_v16 = vpop.f32.mrb[46].mxu1  ;;  %11916 = vst.msk [vmem:[%s18921_s23 + $0x60] sm:$0xff] %vm22324_vm5, %v5451_v3  ;;  %v5437_v56 = vadd.f32 %v18569_v14, %v5416_v49  ;;  %v5198_v1 = vadd.f32 %v5156_v15, %v18902_v28  ;;  %v14341_v0 = vpop.f32.mrb[47].mxu0 }
 0x532   : > { %v14390_v10 = vpop.f32.mrb[47].mxu1 }
 0x533   : > { %v5452_v50 = vmul.f32 %v18608_v6, %v5437_v56  ;;  %v5417_v61 = vadd.f32 %v5375_v16, %v5198_v1 }
 0x534   : > { %v5161_v55 = vpop.f32.mrb[48].mxu0 }
 0x535   : > { %v5380_v58 = vpop.f32.mrb[48].mxu1  ;;  %11917 = vst.msk [vmem:[%s18921_s23 + $0x68] sm:$0xff] %vm22325_vm10, %v5452_v50  ;;  %v5438_v9 = vadd.f32 %v18569_v14, %v5417_v61  ;;  %v5199_v18 = vadd.f32 %v5161_v55, %v18904_v52  ;;  %v14344_v60 = vpop.f32.mrb[49].mxu0 }
 0x536   : > { %v14393_v34 = vpop.f32.mrb[49].mxu1 }
 0x537   : > { %v5453_v36 = vmul.f32 %v18611_v62, %v5438_v9  ;;  %v5418_v28 = vadd.f32 %v5380_v58, %v5199_v18 }
 0x538   : > { %v5166_v11 = vpop.f32.mrb[50].mxu0 }
 0x539   : > { %v5385_v44 = vpop.f32.mrb[50].mxu1  ;;  %11918 = vst.msk [vmem:[%s18921_s23 + $0x70] sm:$0xff] %vm22326_vm6, %v5453_v36  ;;  %v5439_v30 = vadd.f32 %v18569_v14, %v5418_v28  ;;  %v5200_v22 = vadd.f32 %v5166_v11, %v18906_v41  ;;  %v14347_v27 = vpop.f32.mrb[51].mxu0 }
 0x53a   : > { %v14396_v53 = vpop.f32.mrb[51].mxu1 }
 0x53b   : > { %v5454_v43 = vmul.f32 %v18614_v29, %v5439_v30  ;;  %v5419_v52 = vadd.f32 %v5385_v44, %v5200_v22 }
 0x53c   : > { %v5171_v23 = vpop.f32.mrb[52].mxu0 }
 0x53d   : > { %v5390_v45 = vpop.f32.mrb[52].mxu1  ;;  %11919 = vst.msk [vmem:[%s18921_s23 + $0x78] sm:$0xff] %vm22327_vm15, %v5454_v43  ;;  %v5440_v24 = vadd.f32 %v18569_v14, %v5419_v52  ;;  %v5201_v17 = vadd.f32 %v5171_v23, %v18908_v20  ;;  %v14350_v7 = vpop.f32.mrb[53].mxu0 }
 0x53e   : > { %v14399_v51 = vpop.f32.mrb[53].mxu1 }
 0x53f   : > { %v5455_v32 = vmul.f32 %v18617_v48, %v5440_v24  ;;  %v5420_v41 = vadd.f32 %v5390_v45, %v5201_v17 }
 0x540   : > { %v5176_v47 = vpop.f32.mrb[54].mxu0 }
 0x541   : > { %v5395_v35 = vpop.f32.mrb[54].mxu1  ;;  %11920 = vst.msk [vmem:[%s18921_s23 + $0x80] sm:$0xff] %vm22328_vm0, %v5455_v32  ;;  %v5441_v46 = vadd.f32 %v18569_v14, %v5420_v41  ;;  %v5202_v2 = vadd.f32 %v5176_v47, %v18910_v13  ;;  %v14353_v26 = vpop.f32.mrb[55].mxu0 }
 0x542   : > { %v14402_v21 = vpop.f32.mrb[55].mxu1 }
 0x543   : > { %v5456_v39 = vmul.f32 %v18620_v25, %v5441_v46  ;;  %v5421_v20 = vadd.f32 %v5395_v35, %v5202_v2 }
 0x544   : > { %v5181_v37 = vpop.f32.mrb[56].mxu0 }
 0x545   : > { %v5400_v40 = vpop.f32.mrb[56].mxu1  ;;  %11921 = vst.msk [vmem:[%s18921_s23 + $0x88] sm:$0xff] %vm22329_vm8, %v5456_v39  ;;  %v5442_v38 = vadd.f32 %v18569_v14, %v5421_v20  ;;  %v5203_v3 = vadd.f32 %v5181_v37, %v18912_v4  ;;  %v14356_v49 = vpop.f32.mrb[57].mxu0 }
 0x546   : > { %v14405_v15 = vpop.f32.mrb[57].mxu1 }
 0x547   : > { %v5457_v13 = vmul.f32 %v18623_v63, %v5442_v38  ;;  %v5422_v16 = vadd.f32 %v5400_v40, %v5203_v3 }
 0x548   : > { %v5186_v56 = vpop.f32.mrb[58].mxu0 }
 0x549   : > { %v5405_v1 = vpop.f32.mrb[58].mxu1  ;;  %11922 = vst.msk [vmem:[%s18921_s23 + $0x90] sm:$0xff] %vm22330_vm14, %v5457_v13  ;;  %v5443_v0 = vadd.f32 %v18569_v14, %v5422_v16  ;;  %v5204_v10 = vadd.f32 %v5186_v56, %v18914_v59  ;;  %v14359_v50 = vpop.f32.mrb[59].mxu0  ;;  %v19000_v59 = vld [vmem:[%s21855_s8] ss:$0 sm:$0xff] (%p4571_p5) }
 0x54a   : > { %v14408_v61 = vpop.f32.mrb[59].mxu1 }
 0x54b   : > { %v5458_v55 = vmul.f32 %v18626_v57, %v5443_v0  ;;  %v5423_v58 = vadd.f32 %v5405_v1, %v5204_v10  ;;  %4573 = sbr.rel (!%p4571_p5) target bundleno = 1017 (0x3f9), region = 175 }
 0x54d   : > { %11923 = vst.msk [vmem:[%s18921_s23 + $0x98] sm:$0xff] %vm22331_vm3, %v5458_v55  ;;  %v5444_v4 = vadd.f32 %v18569_v14, %v5423_v58 }
 0x54f   : > { %v5459_v9 = vmul.f32 %v18629_v33, %v5444_v4 }
 0x551   : > { %11924 = vst.msk [vmem:[%s18921_s23 + $0xa0] sm:$0xff] %vm22332_vm4, %v5459_v9 }
 0x552 LB: > { %v5524_v18 = vld [vmem:[%s21854_s7 + $0x20] sm:$0xff]  ;;  %v5525_v14 = vld [vmem:[%s21854_s7 + $0x28] sm:$0xff]  ;;  %v16032_v54 = vmov 0.0|0.0   ;;  %v5526_v12 = vld [vmem:[%s21854_s7 + $0x30] sm:$0xff]  ;;  %vm16033_vm12 = vmmov 0   ;;  %v16034_v29 = vmov 0.0   ;;  %s16019_s21 = sphi %s19002_s21, %s5482_s21  }
 0x553   : > { %v5503_v5 = vld [vmem:[%s21854_s7] sm:$0xff]  ;;  %15746 = vmatprep.subr.bf16.mxu0 %v16032_v54  ;;  %v15747_v31 = vpack.c.bf16 %v5525_v14, %v5524_v18  ;;  %15752 = vmatprep.subr.bf16.mxu1 %v16032_v54  ;;  %v5504_v42 = vld [vmem:[%s21854_s7 + $0x8] sm:$0xff]  ;;  %v5527_v8 = vld [vmem:[%s21854_s7 + $0x38] sm:$0xff]  ;;  %s5483_s15 = smul.u32 120, %s16019_s21  ;;  %vm22333_vm13 = vcmask 261120   ;;  %s5482_s21 = sadd.s32 1, %s16019_s21  }
 0x554   : > { %v15753_v19 = vpack.c.bf16 %v5504_v42, %v5503_v5  ;;  %v5505_v6 = vld [vmem:[%s21854_s7 + $0x10] sm:$0xff]  ;;  %v5506_v62 = vld [vmem:[%s21854_s7 + $0x18] sm:$0xff]  ;;  %14417 = vmatprep.mubr.msk.f32.mxu0 %vm16033_vm12, %v16034_v29  ;;  %14470 = vmatprep.mubr.msk.f32.mxu1 %vm16033_vm12, %v16034_v29  ;;  %v15750_v48 = vpack.c.bf16 %v5527_v8, %v5526_v12  ;;  %v5915_v63 = vld [vmem:[%s21854_s7 + $0x40] sm:$0xff]  ;;  %p5479_p7 = scmp.ge.s32.totalorder %s5482_s21, 11  }
 0x555   : > { %15748 = vmatpush3.bf16.msra.mxu0 %v15747_v31  ;;  %v15756_v25 = vpack.c.bf16 %v5506_v62, %v5505_v6  ;;  %p5484_p6 = scmp.lt.s32.totalorder %s5483_s15, 1160  ;;  %v5916_v57 = vld [vmem:[%s21854_s7 + $0x48] sm:$0xff]  ;;  %v6136_v33 = vld [vmem:[%s21854_s7 + $0x60] sm:$0xff]  ;;  %v5917_v28 = vld [vmem:[%s21854_s7 + $0x50] sm:$0xff]  ;;  %s20808_s29 = smov (%p5479_p7), 0  }
 0x556   : > { %15754 = vmatpush3.bf16.msra.mxu1 %v15753_v19  ;;  %15749 = vmatprep.subr.bf16.mxu0 %v16032_v54  ;;  %v6137_v60 = vld [vmem:[%s21854_s7 + $0x68] sm:$0xff]  ;;  %v15759_v34 = vpack.c.bf16 %v5916_v57, %v5915_v63  ;;  %v5918_v30 = vld [vmem:[%s21854_s7 + $0x58] sm:$0xff]  ;;  %v6138_v22 = vld [vmem:[%s21854_s7 + $0x70] sm:$0xff] }
 0x557   : > { %15755 = vmatprep.subr.bf16.mxu1 %v16032_v54  ;;  %s22706_s15 = smov (!%p5484_p6, %s5483_s15), 1160  ;;  %v15765_v36 = vpack.c.bf16 %v6137_v60, %v6136_v33  ;;  %v6139_v27 = vld [vmem:[%s21854_s7 + $0x78] sm:$0xff]  ;;  %vm22334_vm1 = vmmov %vm22333_vm13  ;;  %v15762_v52 = vpack.c.bf16 %v5918_v30, %v5917_v28  ;;  %v6357_v10 = vld [vmem:[%s21854_s7 + $0x80] sm:$0xff] }
 0x558   : > { %s19059_s26 = scalar_lea.vmem [#allocation4], %s22706_s15  ;;  %v15768_v23 = vpack.c.bf16 %v6139_v27, %v6138_v22  ;;  %vm22335_vm7 = vmmov %vm22334_vm1  ;;  %v6358_v50 = vld [vmem:[%s21854_s7 + $0x88] sm:$0xff]  ;;  %v6578_v61 = vld [vmem:[%s21854_s7 + $0xa0] sm:$0xff] }
 0x559   : > { %15751 = vmatpush3.bf16.msra.mxu0 %v15750_v48  ;;  %v11940_v11 = vld [vmem:[%s19059_s26 + $0x8] sm:$0xff]  ;;  %v11941_v53 = vld [vmem:[%s19059_s26 + $0x10] sm:$0xff]  ;;  %vm22336_vm9 = vmmov %vm22334_vm1  ;;  %v15771_v4 = vpack.c.bf16 %v6358_v50, %v6357_v10 }
 0x55a   : > { %15757 = vmatpush3.bf16.msra.mxu1 %v15756_v25  ;;  %15758 = vmatprep.subr.bf16.mxu0 %v16032_v54  ;;  %v11925_v44 = vld [vmem:[%s19059_s26 + $0x7] sm:$0xff]  ;;  %v11926_v43 = vld [vmem:[%s19059_s26 + $0xf] sm:$0xff]  ;;  %v11942_v45 = vld [vmem:[%s19059_s26 + $0x18] sm:$0xff] }
 0x55b   : > { %15764 = vmatprep.subr.bf16.mxu1 %v16032_v54  ;;  %v11927_v24 = vld [vmem:[%s19059_s26 + $0x17] sm:$0xff]  ;;  %vm22337_vm2 = vmmov %vm22334_vm1  ;;  %v11943_v17 = vld [vmem:[%s19059_s26 + $0x20] sm:$0xff] }
 0x55c   : > { %14418 = vmatmul.mubr.msk.f32.vlgmr.msra.gmra.mrb[0].mxu0 %vm22333_vm13, %v11940_v11  ;;  %vm22338_vm11 = vmmov %vm22334_vm1  ;;  %v11928_v7 = vld [vmem:[%s19059_s26 + $0x1f] sm:$0xff]  ;;  %v11944_v51 = vld [vmem:[%s19059_s26 + $0x28] sm:$0xff] }
 0x55d   : > { %14471 = vmatmul.mubr.msk.f32.vlgmr.msra.gmra.mrb[0].mxu1 %vm22334_vm1, %v11925_v44  ;;  %15760 = vmatpush3.bf16.msra.mxu0 %v15759_v34  ;;  %vm22339_vm5 = vmmov %vm22334_vm1  ;;  %v11929_v32 = vld [vmem:[%s19059_s26 + $0x27] sm:$0xff]  ;;  %v19114_v41 = vld [vmem:[%s19059_s26 + $0x30] sm:$0xff] }
 0x55e   : > { %14420 = vmatprep.mubr.msk.f32.mxu0 %vm16033_vm12, %v16034_v29  ;;  %15766 = vmatpush3.bf16.msra.mxu1 %v15765_v36  ;;  %vm22340_vm10 = vmmov %vm22334_vm1  ;;  %v19119_v47 = vld [vmem:[%s19059_s26 + $0x2f] sm:$0xff]  ;;  %v19128_v35 = vld [vmem:[%s19059_s26 + $0x38] sm:$0xff] }
 0x55f   : > { %14473 = vmatprep.mubr.msk.f32.mxu1 %vm16033_vm12, %v16034_v29  ;;  %15761 = vmatprep.subr.bf16.mxu0 %v16032_v54  ;;  %vm22341_vm6 = vmmov %vm22334_vm1  ;;  %v19133_v46 = vld [vmem:[%s19059_s26 + $0x37] sm:$0xff]  ;;  %v19142_v2 = vld [vmem:[%s19059_s26 + $0x40] sm:$0xff] }
 0x560   : > { %14421 = vmatmul.mubr.msk.f32.gmra.mrb[2].mxu0 %vm22335_vm7, %v11941_v53  ;;  %15767 = vmatprep.subr.bf16.mxu1 %v16032_v54  ;;  %vm22342_vm15 = vmmov %vm22334_vm1  ;;  %v19147_v26 = vld [vmem:[%s19059_s26 + $0x3f] sm:$0xff]  ;;  %v19156_v21 = vld [vmem:[%s19059_s26 + $0x48] sm:$0xff] }
 0x561   : > { %14474 = vmatmul.mubr.msk.f32.gmra.mrb[2].mxu1 %vm22336_vm9, %v11926_v43  ;;  %14423 = vmatprep.mubr.msk.f32.mxu0 %vm16033_vm12, %v16034_v29  ;;  %vm22343_vm0 = vmmov %vm22334_vm1  ;;  %v19161_v39 = vld [vmem:[%s19059_s26 + $0x47] sm:$0xff]  ;;  %v19170_v20 = vld [vmem:[%s19059_s26 + $0x50] sm:$0xff] }
 0x562   : > { %14476 = vmatprep.mubr.msk.f32.mxu1 %vm16033_vm12, %v16034_v29  ;;  %15763 = vmatpush3.bf16.msra.mxu0 %v15762_v52  ;;  %vm22344_vm8 = vmmov %vm22343_vm0  ;;  %v19175_v37 = vld [vmem:[%s19059_s26 + $0x4f] sm:$0xff]  ;;  %v19184_v40 = vld [vmem:[%s19059_s26 + $0x58] sm:$0xff] }
 0x563   : > { %15769 = vmatpush3.bf16.msra.mxu1 %v15768_v23  ;;  %15770 = vmatprep.subr.bf16.mxu0 %v16032_v54  ;;  %vm22345_vm14 = vmmov %vm22343_vm0  ;;  %v19189_v38 = vld [vmem:[%s19059_s26 + $0x57] sm:$0xff]  ;;  %v19198_v3 = vld [vmem:[%s19059_s26 + $0x60] sm:$0xff] }
 0x564   : > { %14424 = vmatmul.mubr.msk.f32.gmra.mrb[4].mxu0 %vm22337_vm2, %v11942_v45  ;;  %15776 = vmatprep.subr.bf16.mxu1 %v16032_v54  ;;  %vm22346_vm3 = vmmov %vm22343_vm0  ;;  %v19203_v49 = vld [vmem:[%s19059_s26 + $0x5f] sm:$0xff]  ;;  %v19212_v15 = vld [vmem:[%s19059_s26 + $0x68] sm:$0xff] }
 0x565   : > { %14477 = vmatmul.mubr.msk.f32.gmra.mrb[4].mxu1 %vm22338_vm11, %v11927_v24  ;;  %14426 = vmatprep.mubr.msk.f32.mxu0 %vm16033_vm12, %v16034_v29  ;;  %vm22347_vm4 = vmmov %vm22343_vm0  ;;  %v19217_v13 = vld [vmem:[%s19059_s26 + $0x67] sm:$0xff]  ;;  %v19226_v16 = vld [vmem:[%s19059_s26 + $0x70] sm:$0xff] }
 0x566   : > { %14479 = vmatprep.mubr.msk.f32.mxu1 %vm16033_vm12, %v16034_v29  ;;  %vm22348_vm13 = vmmov %vm22343_vm0  ;;  %v19231_v56 = vld [vmem:[%s19059_s26 + $0x6f] sm:$0xff]  ;;  %v19240_v1 = vld [vmem:[%s19059_s26 + $0x78] sm:$0xff] }
 0x567   : > { %vm22349_vm1 = vmmov %vm22343_vm0  ;;  %v19245_v0 = vld [vmem:[%s19059_s26 + $0x77] sm:$0xff]  ;;  %v6579_v55 = vld [vmem:[%s21854_s7 + $0xa8] sm:$0xff] }
 0x568   : > { %14427 = vmatmul.mubr.msk.f32.gmra.mrb[6].mxu0 %vm22339_vm5, %v11943_v17  ;;  %vm22350_vm7 = vmmov %vm22343_vm0  ;;  %v11985_v58 = vld [vmem:[%s19059_s26 + $0x9] sm:$0xff]  ;;  %v15777_v18 = vpack.c.bf16 %v6579_v55, %v6578_v61  ;;  %v6360_v5 = vld [vmem:[%s21854_s7 + $0x98] sm:$0xff] }
 0x569   : > { %14480 = vmatmul.mubr.msk.f32.gmra.mrb[6].mxu1 %vm22340_vm10, %v11928_v7  ;;  %14429 = vmatprep.mubr.msk.f32.mxu0 %vm16033_vm12, %v16034_v29  ;;  %vm22351_vm9 = vmmov %vm22343_vm0  ;;  %v12015_v9 = vld [vmem:[%s19059_s26 + $0xa] sm:$0xff]  ;;  %v6581_v42 = vld [vmem:[%s21854_s7 + $0xb8] sm:$0xff] }
 0x56a   : > { %14482 = vmatprep.mubr.msk.f32.mxu1 %vm16033_vm12, %v16034_v29  ;;  %vm22352_vm2 = vmmov %vm22343_vm0  ;;  %v6359_v14 = vld [vmem:[%s21854_s7 + $0x90] sm:$0xff]  ;;  %v11987_v62 = vld [vmem:[%s19059_s26 + $0x19] sm:$0xff] }
 0x56b   : > { %vm22353_vm11 = vmmov %vm22343_vm0  ;;  %v6580_v31 = vld [vmem:[%s21854_s7 + $0xb0] sm:$0xff]  ;;  %v15774_v19 = vpack.c.bf16 %v6360_v5, %v6359_v14  ;;  %v12017_v48 = vld [vmem:[%s19059_s26 + $0x1a] sm:$0xff] }
 0x56c   : > { %14430 = vmatmul.mubr.msk.f32.gmra.mrb[8].mxu0 %vm22341_vm6, %v11944_v51  ;;  %vm22354_vm5 = vmmov %vm22343_vm0  ;;  %v11986_v12 = vld [vmem:[%s19059_s26 + $0x11] sm:$0xff]  ;;  %v15780_v6 = vpack.c.bf16 %v6581_v42, %v6580_v31  ;;  %v11988_v25 = vld [vmem:[%s19059_s26 + $0x21] sm:$0xff] }
 0x56d   : > { %14483 = vmatmul.mubr.msk.f32.gmra.mrb[8].mxu1 %vm22342_vm15, %v11929_v32  ;;  %14432 = vmatprep.mubr.msk.f32.mxu0 %vm16033_vm12, %v16034_v29  ;;  %vm22355_vm10 = vmmov %vm22343_vm0  ;;  %v12016_v8 = vld [vmem:[%s19059_s26 + $0x12] sm:$0xff]  ;;  %v12018_v63 = vld [vmem:[%s19059_s26 + $0x22] sm:$0xff] }
 0x56e   : > { %14485 = vmatprep.mubr.msk.f32.mxu1 %vm16033_vm12, %v16034_v29  ;;  %vm22356_vm6 = vmmov %vm22343_vm0  ;;  %v11989_v57 = vld [vmem:[%s19059_s26 + $0x29] sm:$0xff]  ;;  %v19322_v60 = vld [vmem:[%s19059_s26 + $0x31] sm:$0xff] }
 0x56f   : > { %vm22357_vm15 = vmmov %vm22343_vm0  ;;  %v12019_v33 = vld [vmem:[%s19059_s26 + $0x2a] sm:$0xff]  ;;  %v19327_v34 = vld [vmem:[%s19059_s26 + $0x32] sm:$0xff] }
 0x570   : > { %14433 = vmatmul.mubr.msk.f32.gmra.mrb[10].mxu0 %vm22343_vm0, %v19114_v41  ;;  %v19336_v36 = vld [vmem:[%s19059_s26 + $0x39] sm:$0xff]  ;;  %v19350_v11 = vld [vmem:[%s19059_s26 + $0x41] sm:$0xff]  ;;  %v19364_v30 = vld [vmem:[%s19059_s26 + $0x49] sm:$0xff] }
 0x571   : > { %14486 = vmatmul.mubr.msk.f32.gmra.mrb[10].mxu1 %vm22344_vm8, %v19119_v47  ;;  %14435 = vmatprep.mubr.msk.f32.mxu0 %vm16033_vm12, %v16034_v29  ;;  %vm22358_vm8 = vmmov %vm22343_vm0  ;;  %v19341_v28 = vld [vmem:[%s19059_s26 + $0x3a] sm:$0xff]  ;;  %v19355_v44 = vld [vmem:[%s19059_s26 + $0x42] sm:$0xff] }
 0x572   : > { %14488 = vmatprep.mubr.msk.f32.mxu1 %vm16033_vm12, %v16034_v29  ;;  %v19369_v22 = vld [vmem:[%s19059_s26 + $0x4a] sm:$0xff]  ;;  %v19383_v53 = vld [vmem:[%s19059_s26 + $0x52] sm:$0xff]  ;;  %v19397_v52 = vld [vmem:[%s19059_s26 + $0x5a] sm:$0xff] }
 0x573   : > { %v19378_v27 = vld [vmem:[%s19059_s26 + $0x51] sm:$0xff]  ;;  %v19392_v43 = vld [vmem:[%s19059_s26 + $0x59] sm:$0xff]  ;;  %v19406_v23 = vld [vmem:[%s19059_s26 + $0x61] sm:$0xff] }
 0x574   : > { %14436 = vmatmul.mubr.msk.f32.gmra.mrb[12].mxu0 %vm22345_vm14, %v19128_v35  ;;  %vm22359_vm14 = vmmov %vm22343_vm0  ;;  %v19411_v45 = vld [vmem:[%s19059_s26 + $0x62] sm:$0xff]  ;;  %v19425_v17 = vld [vmem:[%s19059_s26 + $0x6a] sm:$0xff] }
 0x575   : > { %14489 = vmatmul.mubr.msk.f32.gmra.mrb[12].mxu1 %vm22346_vm3, %v19133_v46  ;;  %14438 = vmatprep.mubr.msk.f32.mxu0 %vm16033_vm12, %v16034_v29  ;;  %vm22360_vm3 = vmmov %vm22343_vm0  ;;  %v19420_v24 = vld [vmem:[%s19059_s26 + $0x69] sm:$0xff]  ;;  %v19434_v7 = vld [vmem:[%s19059_s26 + $0x71] sm:$0xff] }
 0x576   : > { %14491 = vmatprep.mubr.msk.f32.mxu1 %vm16033_vm12, %v16034_v29  ;;  %v19439_v51 = vld [vmem:[%s19059_s26 + $0x72] sm:$0xff]  ;;  %v19453_v10 = vld [vmem:[%s19059_s26 + $0x7a] sm:$0xff]  ;;  %v6800_v61 = vld [vmem:[%s21854_s7 + $0xc8] sm:$0xff] }
 0x577   : > { %v19448_v32 = vld [vmem:[%s19059_s26 + $0x79] sm:$0xff]  ;;  %v7022_v5 = vld [vmem:[%s21854_s7 + $0xf0] sm:$0xff] }
 0x578   : > { %14439 = vmatmul.mubr.msk.f32.gmra.mrb[14].mxu0 %vm22347_vm4, %v19142_v2  ;;  %vm22361_vm4 = vmmov %vm22343_vm0  ;;  %v6799_v50 = vld [vmem:[%s21854_s7 + $0xc0] sm:$0xff]  ;;  %v6802_v14 = vld [vmem:[%s21854_s7 + $0xd8] sm:$0xff] }
 0x579   : > { %14492 = vmatmul.mubr.msk.f32.gmra.mrb[14].mxu1 %vm22348_vm13, %v19147_v26  ;;  %14441 = vmatprep.mubr.msk.f32.mxu0 %vm16033_vm12, %v16034_v29  ;;  %vm22362_vm13 = vmmov %vm22343_vm0  ;;  %v7020_v55 = vld [vmem:[%s21854_s7 + $0xe0] sm:$0xff]  ;;  %v7023_v31 = vld [vmem:[%s21854_s7 + $0xf8] sm:$0xff] }
 0x57a   : > { %14494 = vmatprep.mubr.msk.f32.mxu1 %vm16033_vm12, %v16034_v29 }
 0x57c   : > { %14442 = vmatmul.mubr.msk.f32.gmra.mrb[16].mxu0 %vm22349_vm1, %v19156_v21  ;;  %vm22363_vm1 = vmmov %vm22343_vm0 }
 0x57d   : > { %14495 = vmatmul.mubr.msk.f32.gmra.mrb[16].mxu1 %vm22350_vm7, %v19161_v39  ;;  %14444 = vmatprep.mubr.msk.f32.mxu0 %vm16033_vm12, %v16034_v29  ;;  %vm22364_vm7 = vmmov %vm22343_vm0 }
 0x57e   : > { %14497 = vmatprep.mubr.msk.f32.mxu1 %vm16033_vm12, %v16034_v29 }
 0x580   : > { %14445 = vmatmul.mubr.msk.f32.gmra.mrb[18].mxu0 %vm22351_vm9, %v19170_v20  ;;  %vm22365_vm9 = vmmov %vm22343_vm0 }
 0x581   : > { %14498 = vmatmul.mubr.msk.f32.gmra.mrb[18].mxu1 %vm22352_vm2, %v19175_v37  ;;  %14447 = vmatprep.mubr.msk.f32.mxu0 %vm16033_vm12, %v16034_v29  ;;  %vm22366_vm2 = vmmov %vm22343_vm0 }
 0x582   : > { %14500 = vmatprep.mubr.msk.f32.mxu1 %vm16033_vm12, %v16034_v29 }
 0x584   : > { %14448 = vmatmul.mubr.msk.f32.gmra.mrb[20].mxu0 %vm22353_vm11, %v19184_v40  ;;  %vm22367_vm11 = vmmov %vm22343_vm0 }
 0x585   : > { %14501 = vmatmul.mubr.msk.f32.gmra.mrb[20].mxu1 %vm22354_vm5, %v19189_v38  ;;  %14450 = vmatprep.mubr.msk.f32.mxu0 %vm16033_vm12, %v16034_v29  ;;  %vm22368_vm5 = vmmov %vm22343_vm0 }
 0x586   : > { %14503 = vmatprep.mubr.msk.f32.mxu1 %vm16033_vm12, %v16034_v29 }
 0x588   : > { %14451 = vmatmul.mubr.msk.f32.gmra.mrb[22].mxu0 %vm22355_vm10, %v19198_v3  ;;  %vm22369_vm10 = vmmov %vm22343_vm0 }
 0x589   : > { %14504 = vmatmul.mubr.msk.f32.gmra.mrb[22].mxu1 %vm22356_vm6, %v19203_v49  ;;  %14453 = vmatprep.mubr.msk.f32.mxu0 %vm16033_vm12, %v16034_v29  ;;  %vm22370_vm6 = vmmov %vm22343_vm0 }
 0x58a   : > { %14506 = vmatprep.mubr.msk.f32.mxu1 %vm16033_vm12, %v16034_v29 }
 0x58c   : > { %14454 = vmatmul.mubr.msk.f32.gmra.mrb[24].mxu0 %vm22357_vm15, %v19212_v15  ;;  %vm22371_vm15 = vmmov %vm22343_vm0 }
 0x58d   : > { %14507 = vmatmul.mubr.msk.f32.gmra.mrb[24].mxu1 %vm22343_vm0, %v19217_v13  ;;  %14456 = vmatprep.mubr.msk.f32.mxu0 %vm16033_vm12, %v16034_v29 }
 0x58e   : > { %14509 = vmatprep.mubr.msk.f32.mxu1 %vm16033_vm12, %v16034_v29 }
 0x590   : > { %14457 = vmatmul.mubr.msk.f32.gmra.mrb[26].mxu0 %vm22358_vm8, %v19226_v16  ;;  %vm22372_vm8 = vmmov %vm22343_vm0 }
 0x591   : > { %14510 = vmatmul.mubr.msk.f32.gmra.mrb[26].mxu1 %vm22359_vm14, %v19231_v56  ;;  %14459 = vmatprep.mubr.msk.f32.mxu0 %vm16033_vm12, %v16034_v29  ;;  %vm22373_vm14 = vmmov %vm22343_vm0 }
 0x592   : > { %14512 = vmatprep.mubr.msk.f32.mxu1 %vm16033_vm12, %v16034_v29 }
 0x594   : > { %14460 = vmatmul.mubr.msk.f32.gmra.mrb[28].mxu0 %vm22360_vm3, %v19240_v1  ;;  %vm22374_vm3 = vmmov %vm22343_vm0 }
 0x595   : > { %14513 = vmatmul.mubr.msk.f32.gmra.mrb[28].mxu1 %vm22361_vm4, %v19245_v0  ;;  %14523 = vmatprep.mubr.msk.f32.mxu0 %vm16033_vm12, %v16034_v29  ;;  %vm22375_vm4 = vmmov %vm22343_vm0 }
 0x596   : > { %14576 = vmatprep.mubr.msk.f32.mxu1 %vm16033_vm12, %v16034_v29 }
 0x598   : > { %14524 = vmatmul.mubr.msk.f32.vlgmr.msra.gmra.mrb[30].mxu0 %vm22362_vm13, %v11985_v58  ;;  %vm22376_vm13 = vmmov %vm22343_vm0  ;;  %v7021_v58 = vld [vmem:[%s21854_s7 + $0xe8] sm:$0xff] }
 0x599   : > { %15772 = vmatpush3.bf16.msra.mxu0 %v15771_v4  ;;  %14577 = vmatmul.mubr.msk.f32.vlgmr.msra.gmra.mrb[30].mxu1 %vm22363_vm1, %v12015_v9  ;;  %vm22377_vm1 = vmmov %vm22343_vm0  ;;  %v15783_v4 = vpack.c.bf16 %v6800_v61, %v6799_v50  ;;  %v15789_v9 = vpack.c.bf16 %v7021_v58, %v7020_v55  ;;  %v7465_v50 = vld [vmem:[%s21854_s7 + $0x138] sm:$0xff]  ;;  %v19752_v58 = vld [vmem:[%s19059_s26 + $0x81] sm:$0xff] }
 0x59a   : > { %14526 = vmatprep.mubr.msk.f32.mxu0 %vm16033_vm12, %v16034_v29  ;;  %15778 = vmatpush3.bf16.msra.mxu1 %v15777_v18  ;;  %v6801_v18 = vld [vmem:[%s21854_s7 + $0xd0] sm:$0xff] }
 0x59b   : > { %14579 = vmatprep.mubr.msk.f32.mxu1 %vm16033_vm12, %v16034_v29  ;;  %15773 = vmatprep.subr.bf16.mxu0 %v16032_v54  ;;  %v15786_v42 = vpack.c.bf16 %v6802_v14, %v6801_v18 }
 0x59c   : > { %14527 = vmatmul.mubr.msk.f32.gmra.mrb[32].mxu0 %vm22364_vm7, %v11986_v12  ;;  %15779 = vmatprep.subr.bf16.mxu1 %v16032_v54  ;;  %vm22378_vm7 = vmmov %vm22343_vm0  ;;  %v19631_v12 = vld [vmem:[%s19059_s26 + $0xa0] sm:$0xff] }
 0x59d   : > { %14580 = vmatmul.mubr.msk.f32.gmra.mrb[32].mxu1 %vm22365_vm9, %v12016_v8  ;;  %14529 = vmatprep.mubr.msk.f32.mxu0 %vm16033_vm12, %v16034_v29  ;;  %vm22379_vm9 = vmmov %vm22343_vm0  ;;  %v7241_v8 = vld [vmem:[%s21854_s7 + $0x100] sm:$0xff] }
 0x59e   : > { %14582 = vmatprep.mubr.msk.f32.mxu1 %vm16033_vm12, %v16034_v29  ;;  %15775 = vmatpush3.bf16.msra.mxu0 %v15774_v19  ;;  %v7242_v19 = vld [vmem:[%s21854_s7 + $0x108] sm:$0xff] }
 0x59f   : > { %15781 = vmatpush3.bf16.msra.mxu1 %v15780_v6  ;;  %15782 = vmatprep.subr.bf16.mxu0 %v16032_v54  ;;  %v7462_v6 = vld [vmem:[%s21854_s7 + $0x120] sm:$0xff] }
 0x5a0   : > { %14530 = vmatmul.mubr.msk.f32.gmra.mrb[34].mxu0 %vm22366_vm2, %v11987_v62  ;;  %15788 = vmatprep.subr.bf16.mxu1 %v16032_v54  ;;  %vm22380_vm2 = vmmov %vm22343_vm0  ;;  %v7463_v62 = vld [vmem:[%s21854_s7 + $0x128] sm:$0xff] }
 0x5a1   : > { %14583 = vmatmul.mubr.msk.f32.gmra.mrb[34].mxu1 %vm22367_vm11, %v12017_v48  ;;  %14532 = vmatprep.mubr.msk.f32.mxu0 %vm16033_vm12, %v16034_v29  ;;  %vm22381_vm11 = vmmov %vm22343_vm0  ;;  %v15795_v48 = vpack.c.bf16 %v7242_v19, %v7241_v8 }
 0x5a2   : > { %14585 = vmatprep.mubr.msk.f32.mxu1 %vm16033_vm12, %v16034_v29 }
 0x5a4   : > { %14533 = vmatmul.mubr.msk.f32.gmra.mrb[36].mxu0 %vm22368_vm5, %v11988_v25  ;;  %vm22382_vm5 = vmmov %vm22343_vm0  ;;  %v15801_v25 = vpack.c.bf16 %v7463_v62, %v7462_v6  ;;  %v19784_v62 = vld [vmem:[%s19059_s26 + $0x91] sm:$0xff] }
 0x5a5   : > { %14586 = vmatmul.mubr.msk.f32.gmra.mrb[36].mxu1 %vm22369_vm10, %v12018_v63  ;;  %14535 = vmatprep.mubr.msk.f32.mxu0 %vm16033_vm12, %v16034_v29  ;;  %vm22383_vm10 = vmmov %vm22343_vm0  ;;  %v7243_v63 = vld [vmem:[%s21854_s7 + $0x110] sm:$0xff] }
 0x5a6   : > { %14588 = vmatprep.mubr.msk.f32.mxu1 %vm16033_vm12, %v16034_v29 }
 0x5a8   : > { %14536 = vmatmul.mubr.msk.f32.gmra.mrb[38].mxu0 %vm22370_vm6, %v11989_v57  ;;  %vm22384_vm6 = vmmov %vm22343_vm0  ;;  %v7244_v57 = vld [vmem:[%s21854_s7 + $0x118] sm:$0xff] }
 0x5a9   : > { %14589 = vmatmul.mubr.msk.f32.gmra.mrb[38].mxu1 %vm22371_vm15, %v12019_v33  ;;  %14538 = vmatprep.mubr.msk.f32.mxu0 %vm16033_vm12, %v16034_v29  ;;  %vm22385_vm15 = vmmov %vm22343_vm0  ;;  %v7464_v33 = vld [vmem:[%s21854_s7 + $0x130] sm:$0xff]  ;;  %v15798_v61 = vpack.c.bf16 %v7244_v57, %v7243_v63 }
 0x5aa   : > { %14591 = vmatprep.mubr.msk.f32.mxu1 %vm16033_vm12, %v16034_v29 }
 0x5ac   : > { %14539 = vmatmul.mubr.msk.f32.gmra.mrb[40].mxu0 %vm22343_vm0, %v19322_v60 }
 0x5ad   : > { %14592 = vmatmul.mubr.msk.f32.gmra.mrb[40].mxu1 %vm22372_vm8, %v19327_v34  ;;  %14541 = vmatprep.mubr.msk.f32.mxu0 %vm16033_vm12, %v16034_v29  ;;  %vm22386_vm8 = vmmov %vm22343_vm0 }
 0x5ae   : > { %14594 = vmatprep.mubr.msk.f32.mxu1 %vm16033_vm12, %v16034_v29 }
 0x5b0   : > { %14542 = vmatmul.mubr.msk.f32.gmra.mrb[42].mxu0 %vm22373_vm14, %v19336_v36  ;;  %vm22387_vm14 = vmmov %vm22343_vm0 }
 0x5b1   : > { %14595 = vmatmul.mubr.msk.f32.gmra.mrb[42].mxu1 %vm22374_vm3, %v19341_v28  ;;  %14544 = vmatprep.mubr.msk.f32.mxu0 %vm16033_vm12, %v16034_v29  ;;  %vm22388_vm3 = vmmov %vm22343_vm0 }
 0x5b2   : > { %14597 = vmatprep.mubr.msk.f32.mxu1 %vm16033_vm12, %v16034_v29 }
 0x5b4   : > { %14545 = vmatmul.mubr.msk.f32.gmra.mrb[44].mxu0 %vm22375_vm4, %v19350_v11  ;;  %vm22389_vm4 = vmmov %vm22343_vm0 }
 0x5b5   : > { %14598 = vmatmul.mubr.msk.f32.gmra.mrb[44].mxu1 %vm22376_vm13, %v19355_v44  ;;  %14547 = vmatprep.mubr.msk.f32.mxu0 %vm16033_vm12, %v16034_v29  ;;  %vm22390_vm13 = vmmov %vm22343_vm0 }
 0x5b6   : > { %14600 = vmatprep.mubr.msk.f32.mxu1 %vm16033_vm12, %v16034_v29 }
 0x5b8   : > { %14548 = vmatmul.mubr.msk.f32.gmra.mrb[46].mxu0 %vm22377_vm1, %v19364_v30  ;;  %vm22391_vm1 = vmmov %vm22343_vm0 }
 0x5b9   : > { %14601 = vmatmul.mubr.msk.f32.gmra.mrb[46].mxu1 %vm22378_vm7, %v19369_v22  ;;  %14550 = vmatprep.mubr.msk.f32.mxu0 %vm16033_vm12, %v16034_v29  ;;  %vm22392_vm7 = vmmov %vm22343_vm0 }
 0x5ba   : > { %14603 = vmatprep.mubr.msk.f32.mxu1 %vm16033_vm12, %v16034_v29 }
 0x5bc   : > { %14551 = vmatmul.mubr.msk.f32.gmra.mrb[48].mxu0 %vm22379_vm9, %v19378_v27  ;;  %vm22393_vm9 = vmmov %vm22343_vm0 }
 0x5bd   : > { %14604 = vmatmul.mubr.msk.f32.gmra.mrb[48].mxu1 %vm22380_vm2, %v19383_v53  ;;  %14553 = vmatprep.mubr.msk.f32.mxu0 %vm16033_vm12, %v16034_v29  ;;  %vm22394_vm2 = vmmov %vm22343_vm0 }
 0x5be   : > { %14606 = vmatprep.mubr.msk.f32.mxu1 %vm16033_vm12, %v16034_v29 }
 0x5c0   : > { %14554 = vmatmul.mubr.msk.f32.gmra.mrb[50].mxu0 %vm22381_vm11, %v19392_v43  ;;  %vm22395_vm11 = vmmov %vm22343_vm0 }
 0x5c1   : > { %14607 = vmatmul.mubr.msk.f32.gmra.mrb[50].mxu1 %vm22382_vm5, %v19397_v52  ;;  %14556 = vmatprep.mubr.msk.f32.mxu0 %vm16033_vm12, %v16034_v29  ;;  %vm22396_vm5 = vmmov %vm22343_vm0 }
 0x5c2   : > { %14609 = vmatprep.mubr.msk.f32.mxu1 %vm16033_vm12, %v16034_v29 }
 0x5c4   : > { %14557 = vmatmul.mubr.msk.f32.gmra.mrb[52].mxu0 %vm22383_vm10, %v19406_v23  ;;  %vm22397_vm10 = vmmov %vm22343_vm0 }
 0x5c5   : > { %14610 = vmatmul.mubr.msk.f32.gmra.mrb[52].mxu1 %vm22384_vm6, %v19411_v45  ;;  %14559 = vmatprep.mubr.msk.f32.mxu0 %vm16033_vm12, %v16034_v29  ;;  %vm22398_vm6 = vmmov %vm22343_vm0 }
 0x5c6   : > { %14612 = vmatprep.mubr.msk.f32.mxu1 %vm16033_vm12, %v16034_v29 }
 0x5c8   : > { %14560 = vmatmul.mubr.msk.f32.gmra.mrb[54].mxu0 %vm22385_vm15, %v19420_v24  ;;  %vm22399_vm15 = vmmov %vm22343_vm0 }
 0x5c9   : > { %14613 = vmatmul.mubr.msk.f32.gmra.mrb[54].mxu1 %vm22343_vm0, %v19425_v17  ;;  %14562 = vmatprep.mubr.msk.f32.mxu0 %vm16033_vm12, %v16034_v29 }
 0x5ca   : > { %14615 = vmatprep.mubr.msk.f32.mxu1 %vm16033_vm12, %v16034_v29 }
 0x5cc   : > { %14563 = vmatmul.mubr.msk.f32.gmra.mrb[56].mxu0 %vm22386_vm8, %v19434_v7  ;;  %vm22400_vm8 = vmmov %vm22343_vm0 }
 0x5cd   : > { %14616 = vmatmul.mubr.msk.f32.gmra.mrb[56].mxu1 %vm22387_vm14, %v19439_v51  ;;  %14565 = vmatprep.mubr.msk.f32.mxu0 %vm16033_vm12, %v16034_v29  ;;  %vm22401_vm14 = vmmov %vm22343_vm0 }
 0x5ce   : > { %14618 = vmatprep.mubr.msk.f32.mxu1 %vm16033_vm12, %v16034_v29 }
 0x5d0   : > { %14566 = vmatmul.mubr.msk.f32.gmra.mrb[58].mxu0 %vm22388_vm3, %v19448_v32  ;;  %vm22402_vm3 = vmmov %vm22343_vm0 }
 0x5d1   : > { %14619 = vmatmul.mubr.msk.f32.gmra.mrb[58].mxu1 %vm22389_vm4, %v19453_v10  ;;  %14629 = vmatprep.mubr.msk.f32.mxu0 %vm16033_vm12, %v16034_v29  ;;  %vm22403_vm4 = vmmov %vm22343_vm0 }
 0x5d2   : > { %14682 = vmatprep.mubr.msk.f32.mxu1 %vm16033_vm12, %v16034_v29 }
 0x5d4   : > { %14630 = vmatmul.mubr.msk.f32.vlgmr.msra.gmra.mrb[60].mxu0 %vm22390_vm13, %v19119_v47  ;;  %v15792_v47 = vpack.c.bf16 %v7023_v31, %v7022_v5  ;;  %vm22404_vm13 = vmmov %vm22343_vm0  ;;  %v19768_v5 = vld [vmem:[%s19059_s26 + $0x89] sm:$0xff] }
 0x5d5   : > { %15784 = vmatpush3.bf16.msra.mxu0 %v15783_v4  ;;  %14683 = vmatmul.mubr.msk.f32.vlgmr.msra.gmra.mrb[60].mxu1 %vm22391_vm1, %v19114_v41  ;;  %vm22405_vm1 = vmmov %vm22343_vm0  ;;  %v19570_v41 = vld [vmem:[%s19059_s26 + $0x7f] sm:$0xff]  ;;  %v19773_v31 = vld [vmem:[%s19059_s26 + $0x8a] sm:$0xff] }
 0x5d6   : > { %14632 = vmatprep.mubr.msk.f32.mxu0 %vm16033_vm12, %v16034_v29  ;;  %15790 = vmatpush3.bf16.msra.mxu1 %v15789_v9  ;;  %v19757_v4 = vld [vmem:[%s19059_s26 + $0x82] sm:$0xff] }
 0x5d7   : > { %14685 = vmatprep.mubr.msk.f32.mxu1 %vm16033_vm12, %v16034_v29  ;;  %15785 = vmatprep.subr.bf16.mxu0 %v16032_v54 }
 0x5d8   : > { %14633 = vmatmul.mubr.msk.f32.gmra.mrb[62].mxu0 %vm22392_vm7, %v19133_v46  ;;  %15791 = vmatprep.subr.bf16.mxu1 %v16032_v54  ;;  %vm22406_vm7 = vmmov %vm22343_vm0  ;;  %v19584_v46 = vld [vmem:[%s19059_s26 + $0x87] sm:$0xff] }
 0x5d9   : > { %14686 = vmatmul.mubr.msk.f32.gmra.mrb[62].mxu1 %vm22393_vm9, %v19128_v35  ;;  %14635 = vmatprep.mubr.msk.f32.mxu0 %vm16033_vm12, %v16034_v29  ;;  %vm22407_vm9 = vmmov %vm22343_vm0  ;;  %v19575_v35 = vld [vmem:[%s19059_s26 + $0x80] sm:$0xff] }
 0x5da   : > { %14688 = vmatprep.mubr.msk.f32.mxu1 %vm16033_vm12, %v16034_v29  ;;  %15787 = vmatpush3.bf16.msra.mxu0 %v15786_v42 }
 0x5db   : > { %15793 = vmatpush3.bf16.msra.mxu1 %v15792_v47  ;;  %15794 = vmatprep.subr.bf16.mxu0 %v16032_v54 }
 0x5dc   : > { %14636 = vmatmul.mubr.msk.f32.gmra.mrb[64].mxu0 %vm22394_vm2, %v19147_v26  ;;  %15800 = vmatprep.subr.bf16.mxu1 %v16032_v54  ;;  %vm22408_vm2 = vmmov %vm22343_vm0  ;;  %v19598_v26 = vld [vmem:[%s19059_s26 + $0x8f] sm:$0xff] }
 0x5dd   : > { %14689 = vmatmul.mubr.msk.f32.gmra.mrb[64].mxu1 %vm22395_vm11, %v19142_v2  ;;  %14638 = vmatprep.mubr.msk.f32.mxu0 %vm16033_vm12, %v16034_v29  ;;  %vm22409_vm11 = vmmov %vm22343_vm0  ;;  %v19589_v2 = vld [vmem:[%s19059_s26 + $0x88] sm:$0xff] }
 0x5de   : > { %14691 = vmatprep.mubr.msk.f32.mxu1 %vm16033_vm12, %v16034_v29 }
 0x5e0   : > { %14639 = vmatmul.mubr.msk.f32.gmra.mrb[66].mxu0 %vm22396_vm5, %v19161_v39  ;;  %vm22410_vm5 = vmmov %vm22343_vm0  ;;  %v19612_v39 = vld [vmem:[%s19059_s26 + $0x97] sm:$0xff] }
 0x5e1   : > { %14692 = vmatmul.mubr.msk.f32.gmra.mrb[66].mxu1 %vm22397_vm10, %v19156_v21  ;;  %14641 = vmatprep.mubr.msk.f32.mxu0 %vm16033_vm12, %v16034_v29  ;;  %vm22411_vm10 = vmmov %vm22343_vm0  ;;  %v19603_v21 = vld [vmem:[%s19059_s26 + $0x90] sm:$0xff] }
 0x5e2   : > { %14694 = vmatprep.mubr.msk.f32.mxu1 %vm16033_vm12, %v16034_v29 }
 0x5e4   : > { %14642 = vmatmul.mubr.msk.f32.gmra.mrb[68].mxu0 %vm22398_vm6, %v19175_v37  ;;  %vm22412_vm6 = vmmov %vm22343_vm0  ;;  %v19626_v37 = vld [vmem:[%s19059_s26 + $0x9f] sm:$0xff] }
 0x5e5   : > { %14695 = vmatmul.mubr.msk.f32.gmra.mrb[68].mxu1 %vm22399_vm15, %v19170_v20  ;;  %14644 = vmatprep.mubr.msk.f32.mxu0 %vm16033_vm12, %v16034_v29  ;;  %vm22413_vm15 = vmmov %vm22343_vm0  ;;  %v19617_v20 = vld [vmem:[%s19059_s26 + $0x98] sm:$0xff] }
 0x5e6   : > { %14697 = vmatprep.mubr.msk.f32.mxu1 %vm16033_vm12, %v16034_v29 }
 0x5e8   : > { %14645 = vmatmul.mubr.msk.f32.gmra.mrb[70].mxu0 %vm22343_vm0, %v19189_v38 }
 0x5e9   : > { %14698 = vmatmul.mubr.msk.f32.gmra.mrb[70].mxu1 %vm22400_vm8, %v19184_v40  ;;  %14647 = vmatprep.mubr.msk.f32.mxu0 %vm16033_vm12, %v16034_v29  ;;  %vm22414_vm8 = vmmov %vm22343_vm0 }
 0x5ea   : > { %14700 = vmatprep.mubr.msk.f32.mxu1 %vm16033_vm12, %v16034_v29 }
 0x5ec   : > { %14648 = vmatmul.mubr.msk.f32.gmra.mrb[72].mxu0 %vm22401_vm14, %v19203_v49  ;;  %vm22415_vm14 = vmmov %vm22343_vm0 }
 0x5ed   : > { %14701 = vmatmul.mubr.msk.f32.gmra.mrb[72].mxu1 %vm22402_vm3, %v19198_v3  ;;  %14650 = vmatprep.mubr.msk.f32.mxu0 %vm16033_vm12, %v16034_v29  ;;  %vm22416_vm3 = vmmov %vm22343_vm0 }
 0x5ee   : > { %14703 = vmatprep.mubr.msk.f32.mxu1 %vm16033_vm12, %v16034_v29 }
 0x5f0   : > { %14651 = vmatmul.mubr.msk.f32.gmra.mrb[74].mxu0 %vm22403_vm4, %v19217_v13  ;;  %vm22417_vm4 = vmmov %vm22343_vm0 }
 0x5f1   : > { %14704 = vmatmul.mubr.msk.f32.gmra.mrb[74].mxu1 %vm22404_vm13, %v19212_v15  ;;  %14653 = vmatprep.mubr.msk.f32.mxu0 %vm16033_vm12, %v16034_v29  ;;  %vm22418_vm13 = vmmov %vm22343_vm0 }
 0x5f2   : > { %14706 = vmatprep.mubr.msk.f32.mxu1 %vm16033_vm12, %v16034_v29 }
 0x5f4   : > { %14654 = vmatmul.mubr.msk.f32.gmra.mrb[76].mxu0 %vm22405_vm1, %v19231_v56  ;;  %vm22419_vm1 = vmmov %vm22343_vm0 }
 0x5f5   : > { %14707 = vmatmul.mubr.msk.f32.gmra.mrb[76].mxu1 %vm22406_vm7, %v19226_v16  ;;  %14656 = vmatprep.mubr.msk.f32.mxu0 %vm16033_vm12, %v16034_v29  ;;  %vm22420_vm7 = vmmov %vm22343_vm0 }
 0x5f6   : > { %14709 = vmatprep.mubr.msk.f32.mxu1 %vm16033_vm12, %v16034_v29 }
 0x5f8   : > { %14657 = vmatmul.mubr.msk.f32.gmra.mrb[78].mxu0 %vm22407_vm9, %v19245_v0  ;;  %vm22421_vm9 = vmmov %vm22343_vm0 }
 0x5f9   : > { %14710 = vmatmul.mubr.msk.f32.gmra.mrb[78].mxu1 %vm22408_vm2, %v19240_v1  ;;  %14659 = vmatprep.mubr.msk.f32.mxu0 %vm16033_vm12, %v16034_v29  ;;  %vm22422_vm2 = vmmov %vm22343_vm0 }
 0x5fa   : > { %14712 = vmatprep.mubr.msk.f32.mxu1 %vm16033_vm12, %v16034_v29 }
 0x5fc   : > { %14660 = vmatmul.mubr.msk.f32.gmra.mrb[80].mxu0 %vm22409_vm11, %v19570_v41  ;;  %vm22423_vm11 = vmmov %vm22343_vm0 }
 0x5fd   : > { %14713 = vmatmul.mubr.msk.f32.gmra.mrb[80].mxu1 %vm22410_vm5, %v19575_v35  ;;  %14662 = vmatprep.mubr.msk.f32.mxu0 %vm16033_vm12, %v16034_v29  ;;  %vm22424_vm5 = vmmov %vm22343_vm0 }
 0x5fe   : > { %14715 = vmatprep.mubr.msk.f32.mxu1 %vm16033_vm12, %v16034_v29 }
 0x600   : > { %14663 = vmatmul.mubr.msk.f32.gmra.mrb[82].mxu0 %vm22411_vm10, %v19584_v46  ;;  %vm22425_vm10 = vmmov %vm22343_vm0 }
 0x601   : > { %14716 = vmatmul.mubr.msk.f32.gmra.mrb[82].mxu1 %vm22412_vm6, %v19589_v2  ;;  %14665 = vmatprep.mubr.msk.f32.mxu0 %vm16033_vm12, %v16034_v29  ;;  %vm22426_vm6 = vmmov %vm22343_vm0 }
 0x602   : > { %14718 = vmatprep.mubr.msk.f32.mxu1 %vm16033_vm12, %v16034_v29 }
 0x604   : > { %14666 = vmatmul.mubr.msk.f32.gmra.mrb[84].mxu0 %vm22413_vm15, %v19598_v26  ;;  %vm22427_vm15 = vmmov %vm22343_vm0 }
 0x605   : > { %14719 = vmatmul.mubr.msk.f32.gmra.mrb[84].mxu1 %vm22343_vm0, %v19603_v21  ;;  %14668 = vmatprep.mubr.msk.f32.mxu0 %vm16033_vm12, %v16034_v29 }
 0x606   : > { %14721 = vmatprep.mubr.msk.f32.mxu1 %vm16033_vm12, %v16034_v29 }
 0x608   : > { %14669 = vmatmul.mubr.msk.f32.gmra.mrb[86].mxu0 %vm22414_vm8, %v19612_v39  ;;  %vm22428_vm8 = vmmov %vm22343_vm0 }
 0x609   : > { %14722 = vmatmul.mubr.msk.f32.gmra.mrb[86].mxu1 %vm22415_vm14, %v19617_v20  ;;  %14671 = vmatprep.mubr.msk.f32.mxu0 %vm16033_vm12, %v16034_v29  ;;  %vm22429_vm14 = vmmov %vm22343_vm0 }
 0x60a   : > { %14724 = vmatprep.mubr.msk.f32.mxu1 %vm16033_vm12, %v16034_v29 }
 0x60c   : > { %14672 = vmatmul.mubr.msk.f32.gmra.mrb[88].mxu0 %vm22416_vm3, %v19626_v37  ;;  %vm22430_vm3 = vmmov %vm22343_vm0 }
 0x60d   : > { %14725 = vmatmul.mubr.msk.f32.gmra.mrb[88].mxu1 %vm22417_vm4, %v19631_v12  ;;  %14735 = vmatprep.mubr.msk.f32.mxu0 %vm16033_vm12, %v16034_v29  ;;  %vm22431_vm4 = vmmov %vm22343_vm0 }
 0x60e   : > { %14788 = vmatprep.mubr.msk.f32.mxu1 %vm16033_vm12, %v16034_v29 }
 0x610   : > { %14736 = vmatmul.mubr.msk.f32.vlgmr.msra.gmra.mrb[90].mxu0 %vm22418_vm13, %v19322_v60  ;;  %v15804_v60 = vpack.c.bf16 %v7465_v50, %v7464_v33  ;;  %vm22432_vm13 = vmmov %vm22343_vm0 }
 0x611   : > { %15796 = vmatpush3.bf16.msra.mxu0 %v15795_v48  ;;  %14789 = vmatmul.mubr.msk.f32.vlgmr.msra.gmra.mrb[90].mxu1 %vm22419_vm1, %v19327_v34  ;;  %vm22433_vm1 = vmmov %vm22343_vm0  ;;  %v19789_v48 = vld [vmem:[%s19059_s26 + $0x92] sm:$0xff] }
 0x612   : > { %14738 = vmatprep.mubr.msk.f32.mxu0 %vm16033_vm12, %v16034_v29  ;;  %15802 = vmatpush3.bf16.msra.mxu1 %v15801_v25 }
 0x613   : > { %14791 = vmatprep.mubr.msk.f32.mxu1 %vm16033_vm12, %v16034_v29  ;;  %15797 = vmatprep.subr.bf16.mxu0 %v16032_v54 }
 0x614   : > { %14739 = vmatmul.mubr.msk.f32.gmra.mrb[92].mxu0 %vm22420_vm7, %v19336_v36  ;;  %15803 = vmatprep.subr.bf16.mxu1 %v16032_v54  ;;  %vm22434_vm7 = vmmov %vm22343_vm0 }
 0x615   : > { %14792 = vmatmul.mubr.msk.f32.gmra.mrb[92].mxu1 %vm22421_vm9, %v19341_v28  ;;  %14741 = vmatprep.mubr.msk.f32.mxu0 %vm16033_vm12, %v16034_v29  ;;  %vm22435_vm9 = vmmov %vm22343_vm0 }
 0x616   : > { %14794 = vmatprep.mubr.msk.f32.mxu1 %vm16033_vm12, %v16034_v29  ;;  %15799 = vmatpush3.bf16.msra.mxu0 %v15798_v61  ;;  %v19800_v61 = vld [vmem:[%s19059_s26 + $0x99] sm:$0xff] }
 0x617   : > { %15805 = vmatpush3.bf16.msra.mxu1 %v15804_v60  ;;  %15806 = vmatprep.subr.bf16.mxu0 %v16032_v54  ;;  %v19805_v60 = vld [vmem:[%s19059_s26 + $0x9a] sm:$0xff] }
 0x618   : > { %14742 = vmatmul.mubr.msk.f32.gmra.mrb[94].mxu0 %vm22422_vm2, %v19350_v11  ;;  %15812 = vmatprep.subr.bf16.mxu1 %v16032_v54  ;;  %vm22436_vm2 = vmmov %vm22343_vm0 }
 0x619   : > { %14795 = vmatmul.mubr.msk.f32.gmra.mrb[94].mxu1 %vm22423_vm11, %v19355_v44  ;;  %14744 = vmatprep.mubr.msk.f32.mxu0 %vm16033_vm12, %v16034_v29  ;;  %vm22437_vm11 = vmmov %vm22343_vm0 }
 0x61a   : > { %14797 = vmatprep.mubr.msk.f32.mxu1 %vm16033_vm12, %v16034_v29 }
 0x61c   : > { %14745 = vmatmul.mubr.msk.f32.gmra.mrb[96].mxu0 %vm22424_vm5, %v19364_v30  ;;  %vm22438_vm5 = vmmov %vm22343_vm0 }
 0x61d   : > { %14798 = vmatmul.mubr.msk.f32.gmra.mrb[96].mxu1 %vm22425_vm10, %v19369_v22  ;;  %14747 = vmatprep.mubr.msk.f32.mxu0 %vm16033_vm12, %v16034_v29  ;;  %vm22439_vm10 = vmmov %vm22343_vm0 }
 0x61e   : > { %14800 = vmatprep.mubr.msk.f32.mxu1 %vm16033_vm12, %v16034_v29 }
 0x620   : > { %14748 = vmatmul.mubr.msk.f32.gmra.mrb[98].mxu0 %vm22426_vm6, %v19378_v27  ;;  %vm22440_vm6 = vmmov %vm22343_vm0 }
 0x621   : > { %14801 = vmatmul.mubr.msk.f32.gmra.mrb[98].mxu1 %vm22427_vm15, %v19383_v53  ;;  %14750 = vmatprep.mubr.msk.f32.mxu0 %vm16033_vm12, %v16034_v29  ;;  %vm22441_vm15 = vmmov %vm22343_vm0 }
 0x622   : > { %14803 = vmatprep.mubr.msk.f32.mxu1 %vm16033_vm12, %v16034_v29 }
 0x624   : > { %14751 = vmatmul.mubr.msk.f32.gmra.mrb[100].mxu0 %vm22343_vm0, %v19392_v43 }
 0x625   : > { %14804 = vmatmul.mubr.msk.f32.gmra.mrb[100].mxu1 %vm22428_vm8, %v19397_v52  ;;  %14753 = vmatprep.mubr.msk.f32.mxu0 %vm16033_vm12, %v16034_v29  ;;  %vm22442_vm8 = vmmov %vm22343_vm0 }
 0x626   : > { %14806 = vmatprep.mubr.msk.f32.mxu1 %vm16033_vm12, %v16034_v29 }
 0x628   : > { %14754 = vmatmul.mubr.msk.f32.gmra.mrb[102].mxu0 %vm22429_vm14, %v19406_v23  ;;  %vm22443_vm14 = vmmov %vm22343_vm0 }
 0x629   : > { %14807 = vmatmul.mubr.msk.f32.gmra.mrb[102].mxu1 %vm22430_vm3, %v19411_v45  ;;  %14756 = vmatprep.mubr.msk.f32.mxu0 %vm16033_vm12, %v16034_v29  ;;  %vm22444_vm3 = vmmov %vm22343_vm0 }
 0x62a   : > { %14809 = vmatprep.mubr.msk.f32.mxu1 %vm16033_vm12, %v16034_v29 }
 0x62c   : > { %14757 = vmatmul.mubr.msk.f32.gmra.mrb[104].mxu0 %vm22431_vm4, %v19420_v24  ;;  %vm22445_vm4 = vmmov %vm22343_vm0 }
 0x62d   : > { %14810 = vmatmul.mubr.msk.f32.gmra.mrb[104].mxu1 %vm22432_vm13, %v19425_v17  ;;  %14759 = vmatprep.mubr.msk.f32.mxu0 %vm16033_vm12, %v16034_v29  ;;  %vm22446_vm13 = vmmov %vm22343_vm0 }
 0x62e   : > { %14812 = vmatprep.mubr.msk.f32.mxu1 %vm16033_vm12, %v16034_v29 }
 0x62f   : > { %v5639_v34 = vpop.f32.mrb[0].mxu0 }
 0x630   : > { %v14419_v36 = vpop.f32.mrb[1].mxu0  ;;  %v5824_v28 = vpop.f32.mrb[0].mxu1  ;;  %14760 = vmatmul.mubr.msk.f32.gmra.mrb[106].mxu0 %vm22433_vm1, %v19434_v7  ;;  %vm22447_vm1 = vmmov %vm22343_vm0 }
 0x631   : > { %v19735_v11 = vadd.f32 %v5824_v28, %v5639_v34  ;;  %v14472_v44 = vpop.f32.mrb[1].mxu1  ;;  %14813 = vmatmul.mubr.msk.f32.gmra.mrb[106].mxu1 %vm22434_vm7, %v19439_v51  ;;  %14762 = vmatprep.mubr.msk.f32.mxu0 %vm16033_vm12, %v16034_v29  ;;  %vm22448_vm7 = vmmov %vm22343_vm0 }
 0x632   : > { %14815 = vmatprep.mubr.msk.f32.mxu1 %vm16033_vm12, %v16034_v29 }
 0x633   : > { %v5644_v30 = vpop.f32.mrb[2].mxu0 }
 0x634   : > { %v14422_v22 = vpop.f32.mrb[3].mxu0  ;;  %v5829_v27 = vpop.f32.mrb[2].mxu1  ;;  %14763 = vmatmul.mubr.msk.f32.gmra.mrb[108].mxu0 %vm22435_vm9, %v19448_v32  ;;  %vm22449_vm9 = vmmov %vm22343_vm0 }
 0x635   : > { %v19745_v53 = vadd.f32 %v5829_v27, %v5644_v30  ;;  %v14475_v55 = vpop.f32.mrb[3].mxu1  ;;  %14816 = vmatmul.mubr.msk.f32.gmra.mrb[108].mxu1 %vm22436_vm2, %v19453_v10  ;;  %14765 = vmatprep.mubr.msk.f32.mxu0 %vm16033_vm12, %v16034_v29  ;;  %v19816_v22 = vld [vmem:[%s19059_s26 + $0xa1] sm:$0xff]  ;;  %vm22450_vm2 = vmmov %vm22343_vm0 }
 0x636   : > { %14818 = vmatprep.mubr.msk.f32.mxu1 %vm16033_vm12, %v16034_v29  ;;  %v19821_v27 = vld [vmem:[%s19059_s26 + $0xa2] sm:$0xff] }
 0x637   : > { %v5649_v9 = vpop.f32.mrb[4].mxu0  ;;  %v7683_v55 = vld [vmem:[%s21854_s7 + $0x140] sm:$0xff] }
 0x638   : > { %v14425_v32 = vpop.f32.mrb[5].mxu0  ;;  %v5834_v18 = vpop.f32.mrb[4].mxu1  ;;  %14766 = vmatmul.mubr.msk.f32.gmra.mrb[110].mxu0 %vm22437_vm11, %v19752_v58  ;;  %vm22451_vm11 = vmmov %vm22343_vm0 }
 0x639   : > { %v19761_v14 = vadd.f32 %v5834_v18, %v5649_v9  ;;  %v14478_v10 = vpop.f32.mrb[5].mxu1  ;;  %14819 = vmatmul.mubr.msk.f32.gmra.mrb[110].mxu1 %vm22438_vm5, %v19757_v4  ;;  %14768 = vmatprep.mubr.msk.f32.mxu0 %vm16033_vm12, %v16034_v29  ;;  %v7684_v9 = vld [vmem:[%s21854_s7 + $0x148] sm:$0xff]  ;;  %v7904_v18 = vld [vmem:[%s21854_s7 + $0x160] sm:$0xff]  ;;  %vm22452_vm5 = vmmov %vm22343_vm0 }
 0x63a   : > { %14821 = vmatprep.mubr.msk.f32.mxu1 %vm16033_vm12, %v16034_v29  ;;  %v7905_v10 = vld [vmem:[%s21854_s7 + $0x168] sm:$0xff] }
 0x63b   : > { %v5654_v42 = vpop.f32.mrb[6].mxu0 }
 0x63c   : > { %v14428_v47 = vpop.f32.mrb[7].mxu0  ;;  %v5839_v8 = vpop.f32.mrb[6].mxu1  ;;  %14769 = vmatmul.mubr.msk.f32.gmra.mrb[112].mxu0 %vm22439_vm10, %v19768_v5  ;;  %vm22453_vm10 = vmmov %vm22343_vm0 }
 0x63d   : > { %v19777_v19 = vadd.f32 %v5839_v8, %v5654_v42  ;;  %v14481_v6 = vpop.f32.mrb[7].mxu1  ;;  %14822 = vmatmul.mubr.msk.f32.gmra.mrb[112].mxu1 %vm22440_vm6, %v19773_v31  ;;  %14771 = vmatprep.mubr.msk.f32.mxu0 %vm16033_vm12, %v16034_v29  ;;  %vm22454_vm6 = vmmov %vm22343_vm0 }
 0x63e   : > { %14824 = vmatprep.mubr.msk.f32.mxu1 %vm16033_vm12, %v16034_v29 }
 0x63f   : > { %v5659_v25 = vpop.f32.mrb[8].mxu0 }
 0x640   : > { %v14431_v63 = vpop.f32.mrb[9].mxu0  ;;  %v5844_v57 = vpop.f32.mrb[8].mxu1  ;;  %14772 = vmatmul.mubr.msk.f32.gmra.mrb[114].mxu0 %vm22441_vm15, %v19784_v62  ;;  %vm22455_vm15 = vmmov %vm22343_vm0 }
 0x641   : > { %v19793_v33 = vadd.f32 %v5844_v57, %v5659_v25  ;;  %v14484_v50 = vpop.f32.mrb[9].mxu1  ;;  %14825 = vmatmul.mubr.msk.f32.gmra.mrb[114].mxu1 %vm22343_vm0, %v19789_v48  ;;  %14774 = vmatprep.mubr.msk.f32.mxu0 %vm16033_vm12, %v16034_v29  ;;  %v15807_v25 = vpack.c.bf16 %v7684_v9, %v7683_v55  ;;  %v15813_v63 = vpack.c.bf16 %v7905_v10, %v7904_v18  ;;  %v7907_v55 = vld [vmem:[%s21854_s7 + $0x178] sm:$0xff] }
 0x642   : > { %14827 = vmatprep.mubr.msk.f32.mxu1 %vm16033_vm12, %v16034_v29  ;;  %v7685_v50 = vld [vmem:[%s21854_s7 + $0x150] sm:$0xff] }
 0x643   : > { %v5664_v34 = vpop.f32.mrb[10].mxu0 }
 0x644   : > { %v14434_v36 = vpop.f32.mrb[11].mxu0  ;;  %v5849_v28 = vpop.f32.mrb[10].mxu1  ;;  %14775 = vmatmul.mubr.msk.f32.gmra.mrb[116].mxu0 %vm22442_vm8, %v19800_v61  ;;  %vm22456_vm8 = vmmov %vm22343_vm0 }
 0x645   : > { %v19809_v44 = vadd.f32 %v5849_v28, %v5664_v34  ;;  %v14487_v30 = vpop.f32.mrb[11].mxu1  ;;  %14828 = vmatmul.mubr.msk.f32.gmra.mrb[116].mxu1 %vm22443_vm14, %v19805_v60  ;;  %14777 = vmatprep.mubr.msk.f32.mxu0 %vm16033_vm12, %v16034_v29  ;;  %v7686_v34 = vld [vmem:[%s21854_s7 + $0x158] sm:$0xff]  ;;  %vm22457_vm14 = vmmov %vm22343_vm0 }
 0x646   : > { %14830 = vmatprep.mubr.msk.f32.mxu1 %vm16033_vm12, %v16034_v29  ;;  %v7906_v30 = vld [vmem:[%s21854_s7 + $0x170] sm:$0xff] }
 0x647   : > { %v5669_v32 = vpop.f32.mrb[12].mxu0  ;;  %v15816_v10 = vpack.c.bf16 %v7907_v55, %v7906_v30 }
 0x648   : > { %v14437_v42 = vpop.f32.mrb[13].mxu0  ;;  %v5854_v47 = vpop.f32.mrb[12].mxu1  ;;  %14778 = vmatmul.mubr.msk.f32.gmra.mrb[118].mxu0 %vm22444_vm3, %v19816_v22  ;;  %vm22458_vm3 = vmmov %vm22343_vm0 }
 0x649   : > { %v19837_v8 = vadd.f32 %v5854_v47, %v5669_v32  ;;  %v14490_v6 = vpop.f32.mrb[13].mxu1  ;;  %14831 = vmatmul.mubr.msk.f32.gmra.mrb[118].mxu1 %vm22445_vm4, %v19821_v27  ;;  %14841 = vmatprep.mubr.msk.f32.mxu0 %vm16033_vm12, %v16034_v29  ;;  %vm22459_vm4 = vmmov %vm22343_vm0 }
 0x64a   : > { %14894 = vmatprep.mubr.msk.f32.mxu1 %vm16033_vm12, %v16034_v29 }
 0x64b   : > { %v5674_v57 = vpop.f32.mrb[14].mxu0 }
 0x64c   : > { %v14440_v36 = vpop.f32.mrb[15].mxu0  ;;  %v5859_v28 = vpop.f32.mrb[14].mxu1  ;;  %14842 = vmatmul.mubr.msk.f32.vlgmr.msra.gmra.mrb[120].mxu0 %vm22446_vm13, %v19189_v38  ;;  %v15810_v38 = vpack.c.bf16 %v7686_v34, %v7685_v50  ;;  %vm22460_vm13 = vmmov %vm22343_vm0 }
 0x64d   : > { %v19859_v9 = vadd.f32 %v5859_v28, %v5674_v57  ;;  %15808 = vmatpush3.bf16.msra.mxu0 %v15807_v25  ;;  %v14493_v32 = vpop.f32.mrb[15].mxu1  ;;  %14895 = vmatmul.mubr.msk.f32.vlgmr.msra.gmra.mrb[120].mxu1 %vm22447_vm1, %v19184_v40  ;;  %vm22461_vm1 = vmmov %vm22343_vm0 }
 0x64e   : > { %14844 = vmatprep.mubr.msk.f32.mxu0 %vm16033_vm12, %v16034_v29  ;;  %15814 = vmatpush3.bf16.msra.mxu1 %v15813_v63 }
 0x64f   : > { %v5679_v18 = vpop.f32.mrb[16].mxu0  ;;  %14897 = vmatprep.mubr.msk.f32.mxu1 %vm16033_vm12, %v16034_v29  ;;  %15809 = vmatprep.subr.bf16.mxu0 %v16032_v54 }
 0x650   : > { %v14443_v42 = vpop.f32.mrb[17].mxu0  ;;  %v5864_v47 = vpop.f32.mrb[16].mxu1  ;;  %14845 = vmatmul.mubr.msk.f32.gmra.mrb[122].mxu0 %vm22448_vm7, %v19203_v49  ;;  %15815 = vmatprep.subr.bf16.mxu1 %v16032_v54  ;;  %vm22462_vm7 = vmmov %vm22343_vm0 }
 0x651   : > { %v19871_v40 = vadd.f32 %v5864_v47, %v5679_v18  ;;  %v14496_v6 = vpop.f32.mrb[17].mxu1  ;;  %14898 = vmatmul.mubr.msk.f32.gmra.mrb[122].mxu1 %vm22449_vm9, %v19198_v3  ;;  %14847 = vmatprep.mubr.msk.f32.mxu0 %vm16033_vm12, %v16034_v29  ;;  %vm22463_vm9 = vmmov %vm22343_vm0 }
 0x652   : > { %14900 = vmatprep.mubr.msk.f32.mxu1 %vm16033_vm12, %v16034_v29  ;;  %15811 = vmatpush3.bf16.msra.mxu0 %v15810_v38 }
 0x653   : > { %v5684_v25 = vpop.f32.mrb[18].mxu0  ;;  %15817 = vmatpush3.bf16.msra.mxu1 %v15816_v10  ;;  %15818 = vmatprep.subr.bf16.mxu0 %v16032_v54 }
 0x654   : > { %v14446_v49 = vpop.f32.mrb[19].mxu0  ;;  %v5869_v63 = vpop.f32.mrb[18].mxu1  ;;  %14848 = vmatmul.mubr.msk.f32.gmra.mrb[124].mxu0 %vm22450_vm2, %v19217_v13  ;;  %15824 = vmatprep.subr.bf16.mxu1 %v16032_v54  ;;  %vm22464_vm2 = vmmov %vm22343_vm0 }
 0x655   : > { %v19883_v57 = vadd.f32 %v5869_v63, %v5684_v25  ;;  %v14499_v3 = vpop.f32.mrb[19].mxu1  ;;  %14901 = vmatmul.mubr.msk.f32.gmra.mrb[124].mxu1 %vm22451_vm11, %v19212_v15  ;;  %14850 = vmatprep.mubr.msk.f32.mxu0 %vm16033_vm12, %v16034_v29  ;;  %vm22465_vm11 = vmmov %vm22343_vm0 }
 0x656   : > { %14903 = vmatprep.mubr.msk.f32.mxu1 %vm16033_vm12, %v16034_v29 }
 0x657   : > { %v5689_v50 = vpop.f32.mrb[20].mxu0 }
 0x658   : > { %v14449_v34 = vpop.f32.mrb[21].mxu0  ;;  %v5874_v36 = vpop.f32.mrb[20].mxu1  ;;  %14851 = vmatmul.mubr.msk.f32.gmra.mrb[126].mxu0 %vm22452_vm5, %v19231_v56  ;;  %vm22466_vm5 = vmmov %vm22343_vm0 }
 0x659   : > { %v19893_v13 = vadd.f32 %v5874_v36, %v5689_v50  ;;  %v14502_v28 = vpop.f32.mrb[21].mxu1  ;;  %14904 = vmatmul.mubr.msk.f32.gmra.mrb[126].mxu1 %vm22453_vm10, %v19226_v16  ;;  %14853 = vmatprep.mubr.msk.f32.mxu0 %vm16033_vm12, %v16034_v29  ;;  %vm22467_vm10 = vmmov %vm22343_vm0 }
 0x65a   : > { %14906 = vmatprep.mubr.msk.f32.mxu1 %vm16033_vm12, %v16034_v29 }
 0x65b   : > { %v5694_v15 = vpop.f32.mrb[22].mxu0 }
 0x65c   : > { %v14452_v30 = vpop.f32.mrb[23].mxu0  ;;  %v5879_v55 = vpop.f32.mrb[22].mxu1  ;;  %14854 = vmatmul.mubr.msk.f32.gmra.mrb[128].mxu0 %vm22454_vm6, %v19245_v0  ;;  %vm22468_vm6 = vmmov %vm22343_vm0 }
 0x65d   : > { %v19903_v32 = vadd.f32 %v5879_v55, %v5694_v15  ;;  %v14505_v56 = vpop.f32.mrb[23].mxu1  ;;  %14907 = vmatmul.mubr.msk.f32.gmra.mrb[128].mxu1 %vm22455_vm15, %v19240_v1  ;;  %14856 = vmatprep.mubr.msk.f32.mxu0 %vm16033_vm12, %v16034_v29  ;;  %vm22469_vm15 = vmmov %vm22343_vm0 }
 0x65e   : > { %14909 = vmatprep.mubr.msk.f32.mxu1 %vm16033_vm12, %v16034_v29 }
 0x65f   : > { %v5699_v16 = vpop.f32.mrb[24].mxu0 }
 0x660   : > { %v14455_v38 = vpop.f32.mrb[25].mxu0  ;;  %v5884_v18 = vpop.f32.mrb[24].mxu1  ;;  %14857 = vmatmul.mubr.msk.f32.gmra.mrb[130].mxu0 %vm22343_vm0, %v19570_v41 }
 0x661   : > { %v19913_v10 = vadd.f32 %v5884_v18, %v5699_v16  ;;  %v14508_v0 = vpop.f32.mrb[25].mxu1  ;;  %14910 = vmatmul.mubr.msk.f32.gmra.mrb[130].mxu1 %vm22456_vm8, %v19575_v35  ;;  %14859 = vmatprep.mubr.msk.f32.mxu0 %vm16033_vm12, %v16034_v29  ;;  %v19977_v38 = vld [vmem:[%s19059_s26 + $0xaf] sm:$0xff]  ;;  %vm22470_vm8 = vmmov %vm22343_vm0 }
 0x662   : > { %14912 = vmatprep.mubr.msk.f32.mxu1 %vm16033_vm12, %v16034_v29 }
 0x663   : > { %v5704_v1 = vpop.f32.mrb[26].mxu0 }
 0x664   : > { %v14458_v42 = vpop.f32.mrb[27].mxu0  ;;  %v5889_v47 = vpop.f32.mrb[26].mxu1  ;;  %14860 = vmatmul.mubr.msk.f32.gmra.mrb[132].mxu0 %vm22457_vm14, %v19584_v46  ;;  %vm22471_vm14 = vmmov %vm22343_vm0 }
 0x665   : > { %v19923_v6 = vadd.f32 %v5889_v47, %v5704_v1  ;;  %v14511_v41 = vpop.f32.mrb[27].mxu1  ;;  %14913 = vmatmul.mubr.msk.f32.gmra.mrb[132].mxu1 %vm22458_vm3, %v19589_v2  ;;  %14862 = vmatprep.mubr.msk.f32.mxu0 %vm16033_vm12, %v16034_v29  ;;  %vm22472_vm3 = vmmov %vm22343_vm0 }
 0x666   : > { %14915 = vmatprep.mubr.msk.f32.mxu1 %vm16033_vm12, %v16034_v29 }
 0x667   : > { %v5709_v35 = vpop.f32.mrb[28].mxu0 }
 0x668   : > { %v14461_v25 = vpop.f32.mrb[29].mxu0  ;;  %v5894_v49 = vpop.f32.mrb[28].mxu1  ;;  %14863 = vmatmul.mubr.msk.f32.gmra.mrb[134].mxu0 %vm22459_vm4, %v19598_v26  ;;  %vm22473_vm4 = vmmov %vm22343_vm0 }
 0x669   : > { %v19933_v63 = vadd.f32 %v5894_v49, %v5709_v35  ;;  %v14514_v46 = vpop.f32.mrb[29].mxu1  ;;  %14916 = vmatmul.mubr.msk.f32.gmra.mrb[134].mxu1 %vm22460_vm13, %v19603_v21  ;;  %14865 = vmatprep.mubr.msk.f32.mxu0 %vm16033_vm12, %v16034_v29  ;;  %v19994_v35 = vld [vmem:[%s19059_s26 + $0xb7] sm:$0xff]  ;;  %vm22474_vm13 = vmmov %vm22343_vm0 }
 0x66a   : > { %14918 = vmatprep.mubr.msk.f32.mxu1 %vm16033_vm12, %v16034_v29 }
 0x66b   : > { %v6030_v2 = vpop.f32.mrb[30].mxu0 }
 0x66c   : > { %v6104_v3 = vadd.f32 %v6030_v2, %v19735_v11  ;;  %v14525_v50 = vpop.f32.mrb[31].mxu0  ;;  %14866 = vmatmul.mubr.msk.f32.gmra.mrb[136].mxu0 %vm22461_vm1, %v19612_v39  ;;  %v6251_v26 = vpop.f32.mrb[30].mxu1  ;;  %vm22475_vm1 = vmmov %vm22343_vm0 }
 0x66d   : > { %v14578_v34 = vpop.f32.mrb[31].mxu1  ;;  %14919 = vmatmul.mubr.msk.f32.gmra.mrb[136].mxu1 %vm22462_vm7, %v19617_v20  ;;  %14868 = vmatprep.mubr.msk.f32.mxu0 %vm16033_vm12, %v16034_v29  ;;  %v19960_v20 = vld [vmem:[%s19059_s26 + $0xa7] sm:$0xff]  ;;  %vm22476_vm7 = vmmov %vm22343_vm0 }
 0x66e   : > { %v19948_v21 = vadd.f32 %v6251_v26, %v6104_v3  ;;  %14921 = vmatprep.mubr.msk.f32.mxu1 %vm16033_vm12, %v16034_v29  ;;  %v20011_v26 = vld [vmem:[%s19059_s26 + $0xbf] sm:$0xff] }
 0x66f   : > { %v6035_v11 = vpop.f32.mrb[32].mxu0 }
 0x670   : > { %v6105_v36 = vadd.f32 %v6035_v11, %v19745_v53  ;;  %v14528_v28 = vpop.f32.mrb[33].mxu0  ;;  %14869 = vmatmul.mubr.msk.f32.gmra.mrb[138].mxu0 %vm22463_vm9, %v19626_v37  ;;  %v6256_v39 = vpop.f32.mrb[32].mxu1  ;;  %v19967_v53 = vld [vmem:[%s19059_s26 + $0xa8] sm:$0xff]  ;;  %vm22477_vm9 = vmmov %vm22343_vm0 }
 0x671   : > { %v14581_v15 = vpop.f32.mrb[33].mxu1  ;;  %14922 = vmatmul.mubr.msk.f32.gmra.mrb[138].mxu1 %vm22464_vm2, %v19631_v12  ;;  %14871 = vmatprep.mubr.msk.f32.mxu0 %vm16033_vm12, %v16034_v29  ;;  %vm22478_vm2 = vmmov %vm22343_vm0 }
 0x672   : > { %v19962_v30 = vadd.f32 %v6256_v39, %v6105_v36  ;;  %14924 = vmatprep.mubr.msk.f32.mxu1 %vm16033_vm12, %v16034_v29 }
 0x673   : > { %v6040_v37 = vpop.f32.mrb[34].mxu0 }
 0x674   : > { %v6106_v55 = vadd.f32 %v6040_v37, %v19761_v14  ;;  %v14531_v56 = vpop.f32.mrb[35].mxu0  ;;  %14872 = vmatmul.mubr.msk.f32.gmra.mrb[140].mxu0 %vm22465_vm11, %v19960_v20  ;;  %v6261_v12 = vpop.f32.mrb[34].mxu1  ;;  %v19984_v14 = vld [vmem:[%s19059_s26 + $0xb0] sm:$0xff]  ;;  %v20028_v37 = vld [vmem:[%s19059_s26 + $0xc7] sm:$0xff]  ;;  %vm22479_vm11 = vmmov %vm22343_vm0 }
 0x675   : > { %v14584_v16 = vpop.f32.mrb[35].mxu1  ;;  %14925 = vmatmul.mubr.msk.f32.gmra.mrb[140].mxu1 %vm22466_vm5, %v19967_v53  ;;  %14874 = vmatprep.mubr.msk.f32.mxu0 %vm16033_vm12, %v16034_v29  ;;  %v8125_v56 = vld [vmem:[%s21854_s7 + $0x180] sm:$0xff]  ;;  %vm22480_vm5 = vmmov %vm22343_vm0 }
 0x676   : > { %v19979_v18 = vadd.f32 %v6261_v12, %v6106_v55  ;;  %14927 = vmatprep.mubr.msk.f32.mxu1 %vm16033_vm12, %v16034_v29  ;;  %v8126_v12 = vld [vmem:[%s21854_s7 + $0x188] sm:$0xff] }
 0x677   : > { %v6045_v0 = vpop.f32.mrb[36].mxu0 }
 0x678   : > { %v6107_v1 = vadd.f32 %v6045_v0, %v19777_v19  ;;  %v14534_v42 = vpop.f32.mrb[37].mxu0  ;;  %14875 = vmatmul.mubr.msk.f32.gmra.mrb[142].mxu0 %vm22467_vm10, %v19977_v38  ;;  %v6266_v47 = vpop.f32.mrb[36].mxu1  ;;  %v20001_v19 = vld [vmem:[%s19059_s26 + $0xb8] sm:$0xff]  ;;  %v8346_v0 = vld [vmem:[%s21854_s7 + $0x1a0] sm:$0xff]  ;;  %vm22481_vm10 = vmmov %vm22343_vm0 }
 0x679   : > { %v14587_v41 = vpop.f32.mrb[37].mxu1  ;;  %14928 = vmatmul.mubr.msk.f32.gmra.mrb[142].mxu1 %vm22468_vm6, %v19984_v14  ;;  %14877 = vmatprep.mubr.msk.f32.mxu0 %vm16033_vm12, %v16034_v29  ;;  %vm22482_vm6 = vmmov %vm22343_vm0 }
 0x67a   : > { %v19996_v25 = vadd.f32 %v6266_v47, %v6107_v1  ;;  %14930 = vmatprep.mubr.msk.f32.mxu1 %vm16033_vm12, %v16034_v29  ;;  %v8347_v1 = vld [vmem:[%s21854_s7 + $0x1a8] sm:$0xff] }
 0x67b   : > { %v6050_v49 = vpop.f32.mrb[38].mxu0 }
 0x67c   : > { %v6108_v46 = vadd.f32 %v6050_v49, %v19793_v33  ;;  %v14537_v2 = vpop.f32.mrb[39].mxu0  ;;  %14878 = vmatmul.mubr.msk.f32.gmra.mrb[144].mxu0 %vm22469_vm15, %v19994_v35  ;;  %v6271_v3 = vpop.f32.mrb[38].mxu1  ;;  %v20018_v33 = vld [vmem:[%s19059_s26 + $0xc0] sm:$0xff]  ;;  %vm22483_vm15 = vmmov %vm22343_vm0 }
 0x67d   : > { %v14590_v50 = vpop.f32.mrb[39].mxu1  ;;  %14931 = vmatmul.mubr.msk.f32.gmra.mrb[144].mxu1 %vm22343_vm0, %v20001_v19  ;;  %14880 = vmatprep.mubr.msk.f32.mxu0 %vm16033_vm12, %v16034_v29 }
 0x67e   : > { %v20013_v34 = vadd.f32 %v6271_v3, %v6108_v46  ;;  %14933 = vmatprep.mubr.msk.f32.mxu1 %vm16033_vm12, %v16034_v29  ;;  %v15819_v46 = vpack.c.bf16 %v8126_v12, %v8125_v56  ;;  %v15825_v3 = vpack.c.bf16 %v8347_v1, %v8346_v0  ;;  %v8127_v50 = vld [vmem:[%s21854_s7 + $0x190] sm:$0xff]  ;;  %v8349_v56 = vld [vmem:[%s21854_s7 + $0x1b8] sm:$0xff] }
 0x67f   : > { %v6055_v11 = vpop.f32.mrb[40].mxu0 }
 0x680   : > { %v6109_v36 = vadd.f32 %v6055_v11, %v19809_v44  ;;  %v14540_v28 = vpop.f32.mrb[41].mxu0  ;;  %14881 = vmatmul.mubr.msk.f32.gmra.mrb[146].mxu0 %vm22470_vm8, %v20011_v26  ;;  %v6276_v39 = vpop.f32.mrb[40].mxu1  ;;  %v20035_v44 = vld [vmem:[%s19059_s26 + $0xc8] sm:$0xff]  ;;  %v8128_v11 = vld [vmem:[%s21854_s7 + $0x198] sm:$0xff]  ;;  %vm22484_vm8 = vmmov %vm22343_vm0 }
 0x681   : > { %v14593_v15 = vpop.f32.mrb[41].mxu1  ;;  %14934 = vmatmul.mubr.msk.f32.gmra.mrb[146].mxu1 %vm22471_vm14, %v20018_v33  ;;  %14883 = vmatprep.mubr.msk.f32.mxu0 %vm16033_vm12, %v16034_v29  ;;  %vm22485_vm14 = vmmov %vm22343_vm0 }
 0x682   : > { %v20030_v55 = vadd.f32 %v6276_v39, %v6109_v36  ;;  %14936 = vmatprep.mubr.msk.f32.mxu1 %vm16033_vm12, %v16034_v29  ;;  %v8348_v15 = vld [vmem:[%s21854_s7 + $0x1b0] sm:$0xff] }
 0x683   : > { %v6060_v16 = vpop.f32.mrb[42].mxu0  ;;  %v15828_v0 = vpack.c.bf16 %v8349_v56, %v8348_v15 }
 0x684   : > { %v6110_v42 = vadd.f32 %v6060_v16, %v19837_v8  ;;  %v14543_v47 = vpop.f32.mrb[43].mxu0  ;;  %14884 = vmatmul.mubr.msk.f32.gmra.mrb[148].mxu0 %vm22472_vm3, %v20028_v37  ;;  %v6281_v41 = vpop.f32.mrb[42].mxu1  ;;  %vm22486_vm3 = vmmov %vm22343_vm0 }
 0x685   : > { %v14596_v49 = vpop.f32.mrb[43].mxu1  ;;  %14937 = vmatmul.mubr.msk.f32.gmra.mrb[148].mxu1 %vm22473_vm4, %v20035_v44  ;;  %14947 = vmatprep.mubr.msk.f32.mxu0 %vm16033_vm12, %v16034_v29  ;;  %vm22487_vm4 = vmmov %vm22343_vm0 }
 0x686   : > { %v20056_v2 = vadd.f32 %v6281_v41, %v6110_v42  ;;  %15000 = vmatprep.mubr.msk.f32.mxu1 %vm16033_vm12, %v16034_v29 }
 0x687   : > { %v6065_v8 = vpop.f32.mrb[44].mxu0 }
 0x688   : > { %v6111_v36 = vadd.f32 %v6065_v8, %v19859_v9  ;;  %v14546_v28 = vpop.f32.mrb[45].mxu0  ;;  %14948 = vmatmul.mubr.msk.f32.vlgmr.msra.gmra.mrb[150].mxu0 %vm22474_vm13, %v19392_v43  ;;  %v6286_v39 = vpop.f32.mrb[44].mxu1  ;;  %v15822_v43 = vpack.c.bf16 %v8128_v11, %v8127_v50  ;;  %vm22488_vm13 = vmmov %vm22343_vm0 }
 0x689   : > { %15820 = vmatpush3.bf16.msra.mxu0 %v15819_v46  ;;  %v14599_v12 = vpop.f32.mrb[45].mxu1  ;;  %15001 = vmatmul.mubr.msk.f32.vlgmr.msra.gmra.mrb[150].mxu1 %vm22475_vm1, %v19397_v52  ;;  %v12259_v28 = vld [vmem:[%s19059_s26 + $0x7a] sm:$0xff]  ;;  %vm22489_vm1 = vmmov %vm22343_vm0 }
 0x68a   : > { %v20077_v16 = vadd.f32 %v6286_v39, %v6111_v36  ;;  %14950 = vmatprep.mubr.msk.f32.mxu0 %vm16033_vm12, %v16034_v29  ;;  %15826 = vmatpush3.bf16.msra.mxu1 %v15825_v3 }
 0x68b   : > { %v6070_v9 = vpop.f32.mrb[46].mxu0  ;;  %15003 = vmatprep.mubr.msk.f32.mxu1 %vm16033_vm12, %v16034_v29  ;;  %15821 = vmatprep.subr.bf16.mxu0 %v16032_v54 }
 0x68c   : > { %v6112_v1 = vadd.f32 %v6070_v9, %v19871_v40  ;;  %v14549_v42 = vpop.f32.mrb[47].mxu0  ;;  %14951 = vmatmul.mubr.msk.f32.gmra.mrb[152].mxu0 %vm22476_vm7, %v19406_v23  ;;  %v6291_v52 = vpop.f32.mrb[46].mxu1  ;;  %15827 = vmatprep.subr.bf16.mxu1 %v16032_v54  ;;  %vm22490_vm7 = vmmov %vm22343_vm0 }
 0x68d   : > { %v14602_v47 = vpop.f32.mrb[47].mxu1  ;;  %15004 = vmatmul.mubr.msk.f32.gmra.mrb[152].mxu1 %vm22477_vm9, %v19411_v45  ;;  %14953 = vmatprep.mubr.msk.f32.mxu0 %vm16033_vm12, %v16034_v29  ;;  %vm22491_vm9 = vmmov %vm22343_vm0 }
 0x68e   : > { %v20092_v41 = vadd.f32 %v6291_v52, %v6112_v1  ;;  %15006 = vmatprep.mubr.msk.f32.mxu1 %vm16033_vm12, %v16034_v29  ;;  %15823 = vmatpush3.bf16.msra.mxu0 %v15822_v43 }
 0x68f   : > { %v6075_v40 = vpop.f32.mrb[48].mxu0  ;;  %15829 = vmatpush3.bf16.msra.mxu1 %v15828_v0  ;;  %15830 = vmatprep.subr.bf16.mxu0 %v16032_v54 }
 0x690   : > { %v6113_v23 = vadd.f32 %v6075_v40, %v19883_v57  ;;  %v14552_v49 = vpop.f32.mrb[49].mxu0  ;;  %14954 = vmatmul.mubr.msk.f32.gmra.mrb[154].mxu0 %vm22478_vm2, %v19420_v24  ;;  %v6296_v45 = vpop.f32.mrb[48].mxu1  ;;  %15836 = vmatprep.subr.bf16.mxu1 %v16032_v54  ;;  %vm22492_vm2 = vmmov %vm22343_vm0 }
 0x691   : > { %v14605_v46 = vpop.f32.mrb[49].mxu1  ;;  %15007 = vmatmul.mubr.msk.f32.gmra.mrb[154].mxu1 %vm22479_vm11, %v19425_v17  ;;  %14956 = vmatprep.mubr.msk.f32.mxu0 %vm16033_vm12, %v16034_v29  ;;  %v12229_v17 = vld [vmem:[%s19059_s26 + $0x79] sm:$0xff]  ;;  %vm22493_vm11 = vmmov %vm22343_vm0 }
 0x692   : > { %v20105_v3 = vadd.f32 %v6296_v45, %v6113_v23  ;;  %15009 = vmatprep.mubr.msk.f32.mxu1 %vm16033_vm12, %v16034_v29 }
 0x693   : > { %v6080_v57 = vpop.f32.mrb[50].mxu0 }
 0x694   : > { %v6114_v24 = vadd.f32 %v6080_v57, %v19893_v13  ;;  %v14555_v8 = vpop.f32.mrb[51].mxu0  ;;  %14957 = vmatmul.mubr.msk.f32.gmra.mrb[156].mxu0 %vm22480_vm5, %v19434_v7  ;;  %v6301_v50 = vpop.f32.mrb[50].mxu1  ;;  %vm22494_vm5 = vmmov %vm22343_vm0 }
 0x695   : > { %v14608_v11 = vpop.f32.mrb[51].mxu1  ;;  %15010 = vmatmul.mubr.msk.f32.gmra.mrb[156].mxu1 %vm22481_vm10, %v19439_v51  ;;  %14959 = vmatprep.mubr.msk.f32.mxu0 %vm16033_vm12, %v16034_v29  ;;  %vm22495_vm10 = vmmov %vm22343_vm0 }
 0x696   : > { %v20117_v36 = vadd.f32 %v6301_v50, %v6114_v24  ;;  %15012 = vmatprep.mubr.msk.f32.mxu1 %vm16033_vm12, %v16034_v29 }
 0x697   : > { %v6085_v13 = vpop.f32.mrb[52].mxu0 }
 0x698   : > { %v6115_v39 = vadd.f32 %v6085_v13, %v19903_v32  ;;  %v14558_v15 = vpop.f32.mrb[53].mxu0  ;;  %14960 = vmatmul.mubr.msk.f32.gmra.mrb[158].mxu0 %vm22482_vm6, %v12229_v17  ;;  %v6306_v7 = vpop.f32.mrb[52].mxu1  ;;  %vm22496_vm6 = vmmov %vm22343_vm0 }
 0x699   : > { %v14611_v56 = vpop.f32.mrb[53].mxu1  ;;  %15013 = vmatmul.mubr.msk.f32.gmra.mrb[158].mxu1 %vm22483_vm15, %v12259_v28  ;;  %14962 = vmatprep.mubr.msk.f32.mxu0 %vm16033_vm12, %v16034_v29  ;;  %vm22497_vm15 = vmmov %vm22343_vm0 }
 0x69a   : > { %v20127_v51 = vadd.f32 %v6306_v7, %v6115_v39  ;;  %15015 = vmatprep.mubr.msk.f32.mxu1 %vm16033_vm12, %v16034_v29  ;;  %v20200_v39 = vld [vmem:[%s19059_s26 + $0xb1] sm:$0xff] }
 0x69b   : > { %v6090_v12 = vpop.f32.mrb[54].mxu0 }
 0x69c   : > { %v6116_v43 = vadd.f32 %v6090_v12, %v19913_v10  ;;  %v14561_v9 = vpop.f32.mrb[55].mxu0  ;;  %14963 = vmatmul.mubr.msk.f32.gmra.mrb[160].mxu0 %vm22343_vm0, %v19752_v58  ;;  %v6311_v32 = vpop.f32.mrb[54].mxu1 }
 0x69d   : > { %v14614_v0 = vpop.f32.mrb[55].mxu1  ;;  %15016 = vmatmul.mubr.msk.f32.gmra.mrb[160].mxu1 %vm22484_vm8, %v19757_v4  ;;  %14965 = vmatprep.mubr.msk.f32.mxu0 %vm16033_vm12, %v16034_v29  ;;  %vm22498_vm8 = vmmov %vm22343_vm0 }
 0x69e   : > { %v20138_v1 = vadd.f32 %v6311_v32, %v6116_v43  ;;  %15018 = vmatprep.mubr.msk.f32.mxu1 %vm16033_vm12, %v16034_v29  ;;  %v20217_v32 = vld [vmem:[%s19059_s26 + $0xb9] sm:$0xff] }
 0x69f   : > { %v6095_v42 = vpop.f32.mrb[56].mxu0 }
 0x6a0   : > { %v6117_v10 = vadd.f32 %v6095_v42, %v19923_v6  ;;  %v14564_v52 = vpop.f32.mrb[57].mxu0  ;;  %14966 = vmatmul.mubr.msk.f32.gmra.mrb[162].mxu0 %vm22485_vm14, %v19768_v5  ;;  %v6316_v58 = vpop.f32.mrb[56].mxu1  ;;  %vm22499_vm14 = vmmov %vm22343_vm0 }
 0x6a1   : > { %v14617_v47 = vpop.f32.mrb[57].mxu1  ;;  %15019 = vmatmul.mubr.msk.f32.gmra.mrb[162].mxu1 %vm22486_vm3, %v19773_v31  ;;  %14968 = vmatprep.mubr.msk.f32.mxu0 %vm16033_vm12, %v16034_v29  ;;  %vm22500_vm3 = vmmov %vm22343_vm0 }
 0x6a2   : > { %v20149_v4 = vadd.f32 %v6316_v58, %v6117_v10  ;;  %15021 = vmatprep.mubr.msk.f32.mxu1 %vm16033_vm12, %v16034_v29 }
 0x6a3   : > { %v6100_v40 = vpop.f32.mrb[58].mxu0 }
 0x6a4   : > { %v6118_v6 = vadd.f32 %v6100_v40, %v19933_v63  ;;  %v14567_v23 = vpop.f32.mrb[59].mxu0  ;;  %14969 = vmatmul.mubr.msk.f32.gmra.mrb[164].mxu0 %vm22487_vm4, %v19784_v62  ;;  %v6321_v5 = vpop.f32.mrb[58].mxu1  ;;  %v20234_v40 = vld [vmem:[%s19059_s26 + $0xc1] sm:$0xff]  ;;  %vm22501_vm4 = vmmov %vm22343_vm0 }
 0x6a5   : > { %v14620_v49 = vpop.f32.mrb[59].mxu1  ;;  %15022 = vmatmul.mubr.msk.f32.gmra.mrb[164].mxu1 %vm22488_vm13, %v19789_v48  ;;  %14971 = vmatprep.mubr.msk.f32.mxu0 %vm16033_vm12, %v16034_v29  ;;  %vm22502_vm13 = vmmov %vm22343_vm0 }
 0x6a6   : > { %v20160_v31 = vadd.f32 %v6321_v5, %v6118_v6  ;;  %15024 = vmatprep.mubr.msk.f32.mxu1 %vm16033_vm12, %v16034_v29 }
 0x6a7   : > { %v6472_v45 = vpop.f32.mrb[60].mxu0 }
 0x6a8   : > { %v6546_v63 = vadd.f32 %v6472_v45, %v19948_v21  ;;  %v14631_v46 = vpop.f32.mrb[61].mxu0  ;;  %14972 = vmatmul.mubr.msk.f32.gmra.mrb[166].mxu0 %vm22489_vm1, %v19800_v61  ;;  %v6693_v62 = vpop.f32.mrb[60].mxu1  ;;  %vm22503_vm1 = vmmov %vm22343_vm0 }
 0x6a9   : > { %v14684_v57 = vpop.f32.mrb[61].mxu1  ;;  %15025 = vmatmul.mubr.msk.f32.gmra.mrb[166].mxu1 %vm22490_vm7, %v19805_v60  ;;  %14974 = vmatprep.mubr.msk.f32.mxu0 %vm16033_vm12, %v16034_v29  ;;  %v20183_v60 = vld [vmem:[%s19059_s26 + $0xa9] sm:$0xff]  ;;  %vm22504_vm7 = vmmov %vm22343_vm0 }
 0x6aa   : > { %v20171_v48 = vadd.f32 %v6693_v62, %v6546_v63  ;;  %15027 = vmatprep.mubr.msk.f32.mxu1 %vm16033_vm12, %v16034_v29  ;;  %v20251_v46 = vld [vmem:[%s19059_s26 + $0xc9] sm:$0xff]  ;;  %v8567_v57 = vld [vmem:[%s21854_s7 + $0x1c0] sm:$0xff] }
 0x6ab   : > { %v6477_v21 = vpop.f32.mrb[62].mxu0 }
 0x6ac   : > { %v6547_v24 = vadd.f32 %v6477_v21, %v19962_v30  ;;  %v14634_v8 = vpop.f32.mrb[63].mxu0  ;;  %14975 = vmatmul.mubr.msk.f32.gmra.mrb[168].mxu0 %vm22491_vm9, %v19816_v22  ;;  %v6698_v61 = vpop.f32.mrb[62].mxu1  ;;  %v20190_v30 = vld [vmem:[%s19059_s26 + $0xaa] sm:$0xff]  ;;  %vm22505_vm9 = vmmov %vm22343_vm0 }
 0x6ad   : > { %v14687_v50 = vpop.f32.mrb[63].mxu1  ;;  %15028 = vmatmul.mubr.msk.f32.gmra.mrb[168].mxu1 %vm22492_vm2, %v19821_v27  ;;  %14977 = vmatprep.mubr.msk.f32.mxu0 %vm16033_vm12, %v16034_v29  ;;  %v8568_v21 = vld [vmem:[%s21854_s7 + $0x1c8] sm:$0xff]  ;;  %v8788_v8 = vld [vmem:[%s21854_s7 + $0x1e0] sm:$0xff]  ;;  %vm22506_vm2 = vmmov %vm22343_vm0 }
 0x6ae   : > { %v20185_v11 = vadd.f32 %v6698_v61, %v6547_v24  ;;  %15030 = vmatprep.mubr.msk.f32.mxu1 %vm16033_vm12, %v16034_v29  ;;  %v8789_v61 = vld [vmem:[%s21854_s7 + $0x1e8] sm:$0xff] }
 0x6af   : > { %v6482_v22 = vpop.f32.mrb[64].mxu0 }
 0x6b0   : > { %v6548_v17 = vadd.f32 %v6482_v22, %v19979_v18  ;;  %v14637_v28 = vpop.f32.mrb[65].mxu0  ;;  %14978 = vmatmul.mubr.msk.f32.gmra.mrb[170].mxu0 %vm22493_vm11, %v20183_v60  ;;  %v6703_v27 = vpop.f32.mrb[64].mxu1  ;;  %v20207_v18 = vld [vmem:[%s19059_s26 + $0xb2] sm:$0xff]  ;;  %vm22507_vm11 = vmmov %vm22343_vm0 }
 0x6b1   : > { %v14690_v13 = vpop.f32.mrb[65].mxu1  ;;  %15031 = vmatmul.mubr.msk.f32.gmra.mrb[170].mxu1 %vm22494_vm5, %v20190_v30  ;;  %14980 = vmatprep.mubr.msk.f32.mxu0 %vm16033_vm12, %v16034_v29  ;;  %vm22508_vm5 = vmmov %vm22343_vm0 }
 0x6b2   : > { %v20202_v15 = vadd.f32 %v6703_v27, %v6548_v17  ;;  %15033 = vmatprep.mubr.msk.f32.mxu1 %vm16033_vm12, %v16034_v29  ;;  %v12285_v27 = vld [vmem:[%s19059_s26 + $0x7f] sm:$0xff]  ;;  %v15831_v13 = vpack.c.bf16 %v8568_v21, %v8567_v57 }
 0x6b3   : > { %v6487_v7 = vpop.f32.mrb[66].mxu0 }
 0x6b4   : > { %v6549_v56 = vadd.f32 %v6487_v7, %v19996_v25  ;;  %v14640_v12 = vpop.f32.mrb[67].mxu0  ;;  %14981 = vmatmul.mubr.msk.f32.gmra.mrb[172].mxu0 %vm22495_vm10, %v20200_v39  ;;  %v6708_v43 = vpop.f32.mrb[66].mxu1  ;;  %v20224_v25 = vld [vmem:[%s19059_s26 + $0xba] sm:$0xff]  ;;  %vm22509_vm10 = vmmov %vm22343_vm0 }
 0x6b5   : > { %v14693_v9 = vpop.f32.mrb[67].mxu1  ;;  %15034 = vmatmul.mubr.msk.f32.gmra.mrb[172].mxu1 %vm22496_vm6, %v20207_v18  ;;  %14983 = vmatprep.mubr.msk.f32.mxu0 %vm16033_vm12, %v16034_v29  ;;  %vm22510_vm6 = vmmov %vm22343_vm0 }
 0x6b6   : > { %v20219_v0 = vadd.f32 %v6708_v43, %v6549_v56  ;;  %15036 = vmatprep.mubr.msk.f32.mxu1 %vm16033_vm12, %v16034_v29  ;;  %v15837_v56 = vpack.c.bf16 %v8789_v61, %v8788_v8  ;;  %v8569_v43 = vld [vmem:[%s21854_s7 + $0x1d0] sm:$0xff]  ;;  %v8570_v9 = vld [vmem:[%s21854_s7 + $0x1d8] sm:$0xff] }
 0x6b7   : > { %v6492_v42 = vpop.f32.mrb[68].mxu0 }
 0x6b8   : > { %v6550_v10 = vadd.f32 %v6492_v42, %v20013_v34  ;;  %v14643_v52 = vpop.f32.mrb[69].mxu0  ;;  %14984 = vmatmul.mubr.msk.f32.gmra.mrb[174].mxu0 %vm22497_vm15, %v20217_v32  ;;  %v6713_v58 = vpop.f32.mrb[68].mxu1  ;;  %v20241_v34 = vld [vmem:[%s19059_s26 + $0xc2] sm:$0xff]  ;;  %vm22511_vm15 = vmmov %vm22343_vm0 }
 0x6b9   : > { %v14696_v47 = vpop.f32.mrb[69].mxu1  ;;  %15037 = vmatmul.mubr.msk.f32.gmra.mrb[174].mxu1 %vm22343_vm0, %v20224_v25  ;;  %14986 = vmatprep.mubr.msk.f32.mxu0 %vm16033_vm12, %v16034_v29 }
 0x6ba   : > { %v20236_v6 = vadd.f32 %v6713_v58, %v6550_v10  ;;  %15039 = vmatprep.mubr.msk.f32.mxu1 %vm16033_vm12, %v16034_v29  ;;  %v8790_v58 = vld [vmem:[%s21854_s7 + $0x1f0] sm:$0xff]  ;;  %v8791_v47 = vld [vmem:[%s21854_s7 + $0x1f8] sm:$0xff] }
 0x6bb   : > { %v6497_v23 = vpop.f32.mrb[70].mxu0  ;;  %v15840_v57 = vpack.c.bf16 %v8791_v47, %v8790_v58  ;;  %v12319_v47 = vld [vmem:[%s19059_s26 + $0xa0] sm:$0xff] }
 0x6bc   : > { %v6551_v5 = vadd.f32 %v6497_v23, %v20030_v55  ;;  %v14646_v49 = vpop.f32.mrb[71].mxu0  ;;  %14987 = vmatmul.mubr.msk.f32.gmra.mrb[176].mxu0 %vm22498_vm8, %v20234_v40  ;;  %v6718_v45 = vpop.f32.mrb[70].mxu1  ;;  %v20258_v55 = vld [vmem:[%s19059_s26 + $0xca] sm:$0xff]  ;;  %vm22512_vm8 = vmmov %vm22343_vm0 }
 0x6bd   : > { %v14699_v63 = vpop.f32.mrb[71].mxu1  ;;  %15040 = vmatmul.mubr.msk.f32.gmra.mrb[176].mxu1 %vm22499_vm14, %v20241_v34  ;;  %14989 = vmatprep.mubr.msk.f32.mxu0 %vm16033_vm12, %v16034_v29  ;;  %vm22513_vm14 = vmmov %vm22343_vm0 }
 0x6be   : > { %v20253_v62 = vadd.f32 %v6718_v45, %v6551_v5  ;;  %15042 = vmatprep.mubr.msk.f32.mxu1 %vm16033_vm12, %v16034_v29  ;;  %v12286_v5 = vld [vmem:[%s19059_s26 + $0x87] sm:$0xff]  ;;  %v15834_v45 = vpack.c.bf16 %v8570_v9, %v8569_v43 }
 0x6bf   : > { %v6502_v24 = vpop.f32.mrb[72].mxu0 }
 0x6c0   : > { %v6552_v50 = vadd.f32 %v6502_v24, %v20056_v2  ;;  %v14649_v22 = vpop.f32.mrb[73].mxu0  ;;  %14990 = vmatmul.mubr.msk.f32.gmra.mrb[178].mxu0 %vm22500_vm3, %v20251_v46  ;;  %v6723_v17 = vpop.f32.mrb[72].mxu1  ;;  %v12315_v2 = vld [vmem:[%s19059_s26 + $0x80] sm:$0xff]  ;;  %vm22514_vm3 = vmmov %vm22343_vm0 }
 0x6c1   : > { %v14702_v28 = vpop.f32.mrb[73].mxu1  ;;  %15043 = vmatmul.mubr.msk.f32.gmra.mrb[178].mxu1 %vm22501_vm4, %v20258_v55  ;;  %15053 = vmatprep.mubr.msk.f32.mxu0 %vm16033_vm12, %v16034_v29  ;;  %vm22515_vm4 = vmmov %vm22343_vm0 }
 0x6c2   : > { %v20280_v7 = vadd.f32 %v6723_v17, %v6552_v50  ;;  %15106 = vmatprep.mubr.msk.f32.mxu1 %vm16033_vm12, %v16034_v29  ;;  %v12287_v50 = vld [vmem:[%s19059_s26 + $0x8f] sm:$0xff] }
 0x6c3   : > { %v6507_v12 = vpop.f32.mrb[74].mxu0 }
 0x6c4   : > { %v6553_v42 = vadd.f32 %v6507_v12, %v20077_v16  ;;  %v14652_v10 = vpop.f32.mrb[75].mxu0  ;;  %15054 = vmatmul.mubr.msk.f32.vlgmr.msra.gmra.mrb[180].mxu0 %vm22502_vm13, %v12285_v27  ;;  %v6728_v52 = vpop.f32.mrb[74].mxu1  ;;  %v12316_v16 = vld [vmem:[%s19059_s26 + $0x88] sm:$0xff]  ;;  %v12318_v12 = vld [vmem:[%s19059_s26 + $0x98] sm:$0xff]  ;;  %vm22516_vm13 = vmmov %vm22343_vm0 }
 0x6c5   : > { %15832 = vmatpush3.bf16.msra.mxu0 %v15831_v13  ;;  %v14705_v23 = vpop.f32.mrb[75].mxu1  ;;  %15107 = vmatmul.mubr.msk.f32.vlgmr.msra.gmra.mrb[180].mxu1 %vm22503_vm1, %v12315_v2  ;;  %v12288_v2 = vld [vmem:[%s19059_s26 + $0x97] sm:$0xff]  ;;  %vm22517_vm1 = vmmov %vm22343_vm0 }
 0x6c6   : > { %v20301_v49 = vadd.f32 %v6728_v52, %v6553_v42  ;;  %15056 = vmatprep.mubr.msk.f32.mxu0 %vm16033_vm12, %v16034_v29  ;;  %15838 = vmatpush3.bf16.msra.mxu1 %v15837_v56  ;;  %v12289_v52 = vld [vmem:[%s19059_s26 + $0x9f] sm:$0xff] }
 0x6c7   : > { %v6512_v63 = vpop.f32.mrb[76].mxu0  ;;  %15109 = vmatprep.mubr.msk.f32.mxu1 %vm16033_vm12, %v16034_v29  ;;  %15833 = vmatprep.subr.bf16.mxu0 %v16032_v54 }
 0x6c8   : > { %v6554_v21 = vadd.f32 %v6512_v63, %v20092_v41  ;;  %v14655_v24 = vpop.f32.mrb[77].mxu0  ;;  %15057 = vmatmul.mubr.msk.f32.gmra.mrb[182].mxu0 %vm22504_vm7, %v12286_v5  ;;  %v6733_v8 = vpop.f32.mrb[76].mxu1  ;;  %15839 = vmatprep.subr.bf16.mxu1 %v16032_v54  ;;  %v12317_v41 = vld [vmem:[%s19059_s26 + $0x90] sm:$0xff]  ;;  %vm22518_vm7 = vmmov %vm22343_vm0 }
 0x6c9   : > { %v14708_v61 = vpop.f32.mrb[77].mxu1  ;;  %15110 = vmatmul.mubr.msk.f32.gmra.mrb[182].mxu1 %vm22505_vm9, %v12316_v16  ;;  %15059 = vmatprep.mubr.msk.f32.mxu0 %vm16033_vm12, %v16034_v29  ;;  %vm22519_vm9 = vmmov %vm22343_vm0 }
 0x6ca   : > { %v20316_v22 = vadd.f32 %v6733_v8, %v6554_v21  ;;  %15112 = vmatprep.mubr.msk.f32.mxu1 %vm16033_vm12, %v16034_v29  ;;  %15835 = vmatpush3.bf16.msra.mxu0 %v15834_v45 }
 0x6cb   : > { %v6517_v17 = vpop.f32.mrb[78].mxu0  ;;  %15841 = vmatpush3.bf16.msra.mxu1 %v15840_v57 }
 0x6cc   : > { %v6555_v54 = vadd.f32 %v6517_v17, %v20105_v3  ;;  %v14658_v28 = vpop.f32.mrb[79].mxu0  ;;  %15060 = vmatmul.mubr.msk.f32.gmra.mrb[184].mxu0 %vm22506_vm2, %v12287_v50  ;;  %v6738_v27 = vpop.f32.mrb[78].mxu1  ;;  %vm22520_vm2 = vmmov %vm22343_vm0 }
 0x6cd   : > { %v14711_v13 = vpop.f32.mrb[79].mxu1  ;;  %15113 = vmatmul.mubr.msk.f32.gmra.mrb[184].mxu1 %vm22507_vm11, %v12317_v41  ;;  %15062 = vmatprep.mubr.msk.f32.mxu0 %vm16033_vm12, %v16034_v29  ;;  %vm22521_vm11 = vmmov %vm22343_vm0 }
 0x6ce   : > { %v20327_v56 = vadd.f32 %v6738_v27, %v6555_v54  ;;  %15115 = vmatprep.mubr.msk.f32.mxu1 %vm16033_vm12, %v16034_v29 }
 0x6cf   : > { %v6522_v3 = vpop.f32.mrb[80].mxu0 }
 0x6d0   : > { %v6556_v43 = vadd.f32 %v6522_v3, %v20117_v36  ;;  %v14661_v9 = vpop.f32.mrb[81].mxu0  ;;  %15063 = vmatmul.mubr.msk.f32.gmra.mrb[186].mxu0 %vm22508_vm5, %v12288_v2  ;;  %v6743_v42 = vpop.f32.mrb[80].mxu1  ;;  %vm22522_vm5 = vmmov %vm22343_vm0 }
 0x6d1   : > { %v14714_v10 = vpop.f32.mrb[81].mxu1  ;;  %15116 = vmatmul.mubr.msk.f32.gmra.mrb[186].mxu1 %vm22509_vm10, %v12318_v12  ;;  %15065 = vmatprep.mubr.msk.f32.mxu0 %vm16033_vm12, %v16034_v29  ;;  %vm22523_vm10 = vmmov %vm22343_vm0 }
 0x6d2   : > { %v20338_v58 = vadd.f32 %v6743_v42, %v6556_v43  ;;  %15118 = vmatprep.mubr.msk.f32.mxu1 %vm16033_vm12, %v16034_v29 }
 0x6d3   : > { %v6527_v23 = vpop.f32.mrb[82].mxu0 }
 0x6d4   : > { %v6557_v36 = vadd.f32 %v6527_v23, %v20127_v51  ;;  %v14664_v5 = vpop.f32.mrb[83].mxu0  ;;  %15066 = vmatmul.mubr.msk.f32.gmra.mrb[188].mxu0 %vm22510_vm6, %v12289_v52  ;;  %v6748_v16 = vpop.f32.mrb[82].mxu1  ;;  %v12296_v23 = vld [vmem:[%s19059_s26 + $0xd7] sm:$0xff]  ;;  %vm22524_vm6 = vmmov %vm22343_vm0 }
 0x6d5   : > { %v14717_v45 = vpop.f32.mrb[83].mxu1  ;;  %15119 = vmatmul.mubr.msk.f32.gmra.mrb[188].mxu1 %vm22511_vm15, %v12319_v47  ;;  %15068 = vmatprep.mubr.msk.f32.mxu0 %vm16033_vm12, %v16034_v29  ;;  %v12326_v5 = vld [vmem:[%s19059_s26 + $0xd8] sm:$0xff]  ;;  %vm22525_vm15 = vmmov %vm22343_vm0 }
 0x6d6   : > { %v20348_v63 = vadd.f32 %v6748_v16, %v6557_v36  ;;  %15121 = vmatprep.mubr.msk.f32.mxu1 %vm16033_vm12, %v16034_v29 }
 0x6d7   : > { %v6532_v57 = vpop.f32.mrb[84].mxu0 }
 0x6d8   : > { %v6558_v21 = vadd.f32 %v6532_v57, %v20138_v1  ;;  %v14667_v24 = vpop.f32.mrb[85].mxu0  ;;  %15069 = vmatmul.mubr.msk.f32.gmra.mrb[190].mxu0 %vm22343_vm0, %v19960_v20  ;;  %v6753_v51 = vpop.f32.mrb[84].mxu1 }
 0x6d9   : > { %v14720_v8 = vpop.f32.mrb[85].mxu1  ;;  %15122 = vmatmul.mubr.msk.f32.gmra.mrb[190].mxu1 %vm22512_vm8, %v19967_v53  ;;  %15071 = vmatprep.mubr.msk.f32.mxu0 %vm16033_vm12, %v16034_v29  ;;  %v12297_v24 = vld [vmem:[%s19059_s26 + $0xdf] sm:$0xff]  ;;  %vm22526_vm8 = vmmov %vm22343_vm0 }
 0x6da   : > { %v20359_v61 = vadd.f32 %v6753_v51, %v6558_v21  ;;  %15124 = vmatprep.mubr.msk.f32.mxu1 %vm16033_vm12, %v16034_v29  ;;  %v12327_v8 = vld [vmem:[%s19059_s26 + $0xe0] sm:$0xff] }
 0x6db   : > { %v6537_v50 = vpop.f32.mrb[86].mxu0 }
 0x6dc   : > { %v6559_v1 = vadd.f32 %v6537_v50, %v20149_v4  ;;  %v14670_v41 = vpop.f32.mrb[87].mxu0  ;;  %15072 = vmatmul.mubr.msk.f32.gmra.mrb[192].mxu0 %vm22513_vm14, %v19977_v38  ;;  %v6758_v20 = vpop.f32.mrb[86].mxu1  ;;  %vm22527_vm14 = vmmov %vm22343_vm0 }
 0x6dd   : > { %v14723_v17 = vpop.f32.mrb[87].mxu1  ;;  %15125 = vmatmul.mubr.msk.f32.gmra.mrb[192].mxu1 %vm22514_vm3, %v19984_v14  ;;  %15074 = vmatprep.mubr.msk.f32.mxu0 %vm16033_vm12, %v16034_v29  ;;  %vm22528_vm3 = vmmov %vm22343_vm0 }
 0x6de   : > { %v20370_v53 = vadd.f32 %v6758_v20, %v6559_v1  ;;  %15127 = vmatprep.mubr.msk.f32.mxu1 %vm16033_vm12, %v16034_v29  ;;  %v12298_v17 = vld [vmem:[%s19059_s26 + $0xe7] sm:$0xff] }
 0x6df   : > { %v6542_v54 = vpop.f32.mrb[88].mxu0 }
 0x6e0   : > { %v6560_v4 = vadd.f32 %v6542_v54, %v20160_v31  ;;  %v14673_v28 = vpop.f32.mrb[89].mxu0  ;;  %15075 = vmatmul.mubr.msk.f32.gmra.mrb[194].mxu0 %vm22515_vm4, %v19994_v35  ;;  %v6763_v38 = vpop.f32.mrb[88].mxu1  ;;  %vm22529_vm4 = vmmov %vm22343_vm0 }
 0x6e1   : > { %v14726_v27 = vpop.f32.mrb[89].mxu1  ;;  %15128 = vmatmul.mubr.msk.f32.gmra.mrb[194].mxu1 %vm22516_vm13, %v20001_v19  ;;  %15077 = vmatprep.mubr.msk.f32.mxu0 %vm16033_vm12, %v16034_v29  ;;  %vm22530_vm13 = vmmov %vm22343_vm0 }
 0x6e2   : > { %v20381_v14 = vadd.f32 %v6763_v38, %v6560_v4  ;;  %15130 = vmatprep.mubr.msk.f32.mxu1 %vm16033_vm12, %v16034_v29  ;;  %v12328_v4 = vld [vmem:[%s19059_s26 + $0xe8] sm:$0xff] }
 0x6e3   : > { %v6914_v13 = vpop.f32.mrb[90].mxu0 }
 0x6e4   : > { %v6988_v31 = vadd.f32 %v6914_v13, %v20171_v48  ;;  %v14737_v2 = vpop.f32.mrb[91].mxu0  ;;  %15078 = vmatmul.mubr.msk.f32.gmra.mrb[196].mxu0 %vm22517_vm1, %v20011_v26  ;;  %v7135_v35 = vpop.f32.mrb[90].mxu1  ;;  %vm22531_vm1 = vmmov %vm22343_vm0 }
 0x6e5   : > { %v14790_v12 = vpop.f32.mrb[91].mxu1  ;;  %15131 = vmatmul.mubr.msk.f32.gmra.mrb[196].mxu1 %vm22518_vm7, %v20018_v33  ;;  %15080 = vmatprep.mubr.msk.f32.mxu0 %vm16033_vm12, %v16034_v29  ;;  %v12295_v33 = vld [vmem:[%s19059_s26 + $0xcf] sm:$0xff]  ;;  %vm22532_vm7 = vmmov %vm22343_vm0 }
 0x6e6   : > { %v20392_v19 = vadd.f32 %v7135_v35, %v6988_v31  ;;  %15133 = vmatprep.mubr.msk.f32.mxu1 %vm16033_vm12, %v16034_v29  ;;  %v12299_v31 = vld [vmem:[%s19059_s26 + $0xef] sm:$0xff] }
 0x6e7   : > { %v6919_v48 = vpop.f32.mrb[92].mxu0  ;;  %v12329_v35 = vld [vmem:[%s19059_s26 + $0xf0] sm:$0xff] }
 0x6e8   : > { %v6989_v3 = vadd.f32 %v6919_v48, %v20185_v11  ;;  %v14740_v43 = vpop.f32.mrb[93].mxu0  ;;  %15081 = vmatmul.mubr.msk.f32.gmra.mrb[198].mxu0 %vm22519_vm9, %v20028_v37  ;;  %v7140_v26 = vpop.f32.mrb[92].mxu1  ;;  %v12325_v11 = vld [vmem:[%s19059_s26 + $0xd0] sm:$0xff]  ;;  %vm22533_vm9 = vmmov %vm22343_vm0 }
 0x6e9   : > { %v14793_v9 = vpop.f32.mrb[93].mxu1  ;;  %15134 = vmatmul.mubr.msk.f32.gmra.mrb[198].mxu1 %vm22520_vm2, %v20035_v44  ;;  %15083 = vmatprep.mubr.msk.f32.mxu0 %vm16033_vm12, %v16034_v29  ;;  %vm22534_vm2 = vmmov %vm22343_vm0 }
 0x6ea   : > { %v20404_v42 = vadd.f32 %v7140_v26, %v6989_v3  ;;  %15136 = vmatprep.mubr.msk.f32.mxu1 %vm16033_vm12, %v16034_v29  ;;  %v12345_v26 = vld [vmem:[%s19059_s26 + $0x81] sm:$0xff] }
 0x6eb   : > { %v6924_v10 = vpop.f32.mrb[94].mxu0 }
 0x6ec   : > { %v6990_v37 = vadd.f32 %v6924_v10, %v20202_v15  ;;  %v14743_v52 = vpop.f32.mrb[95].mxu0  ;;  %15084 = vmatmul.mubr.msk.f32.gmra.mrb[200].mxu0 %vm22521_vm11, %v12295_v33  ;;  %v7145_v47 = vpop.f32.mrb[94].mxu1  ;;  %v12375_v33 = vld [vmem:[%s19059_s26 + $0x82] sm:$0xff]  ;;  %vm22535_vm11 = vmmov %vm22343_vm0 }
 0x6ed   : > { %v14796_v44 = vpop.f32.mrb[95].mxu1  ;;  %15137 = vmatmul.mubr.msk.f32.gmra.mrb[200].mxu1 %vm22522_vm5, %v12325_v11  ;;  %15086 = vmatprep.mubr.msk.f32.mxu0 %vm16033_vm12, %v16034_v29  ;;  %vm22536_vm5 = vmmov %vm22343_vm0 }
 0x6ee   : > { %v20415_v36 = vadd.f32 %v7145_v47, %v6990_v37  ;;  %15139 = vmatprep.mubr.msk.f32.mxu1 %vm16033_vm12, %v16034_v29  ;;  %v12346_v47 = vld [vmem:[%s19059_s26 + $0x89] sm:$0xff] }
 0x6ef   : > { %v6929_v15 = vpop.f32.mrb[96].mxu0 }
 0x6f0   : > { %v6991_v16 = vadd.f32 %v6929_v15, %v20219_v0  ;;  %v14746_v45 = vpop.f32.mrb[97].mxu0  ;;  %15087 = vmatmul.mubr.msk.f32.gmra.mrb[202].mxu0 %vm22523_vm10, %v12296_v23  ;;  %v7150_v57 = vpop.f32.mrb[96].mxu1  ;;  %v12376_v23 = vld [vmem:[%s19059_s26 + $0x8a] sm:$0xff]  ;;  %vm22537_vm10 = vmmov %vm22343_vm0 }
 0x6f1   : > { %v14799_v21 = vpop.f32.mrb[97].mxu1  ;;  %15140 = vmatmul.mubr.msk.f32.gmra.mrb[202].mxu1 %vm22524_vm6, %v12326_v5  ;;  %15089 = vmatprep.mubr.msk.f32.mxu0 %vm16033_vm12, %v16034_v29  ;;  %vm22538_vm6 = vmmov %vm22343_vm0 }
 0x6f2   : > { %v20426_v51 = vadd.f32 %v7150_v57, %v6991_v16  ;;  %15142 = vmatprep.mubr.msk.f32.mxu1 %vm16033_vm12, %v16034_v29  ;;  %v12347_v57 = vld [vmem:[%s19059_s26 + $0x91] sm:$0xff] }
 0x6f3   : > { %v6934_v0 = vpop.f32.mrb[98].mxu0 }
 0x6f4   : > { %v6992_v50 = vadd.f32 %v6934_v0, %v20236_v6  ;;  %v14749_v1 = vpop.f32.mrb[99].mxu0  ;;  %15090 = vmatmul.mubr.msk.f32.gmra.mrb[204].mxu0 %vm22525_vm15, %v12297_v24  ;;  %v7155_v41 = vpop.f32.mrb[98].mxu1  ;;  %v12377_v24 = vld [vmem:[%s19059_s26 + $0x92] sm:$0xff]  ;;  %vm22539_vm15 = vmmov %vm22343_vm0 }
 0x6f5   : > { %v14802_v20 = vpop.f32.mrb[99].mxu1  ;;  %15143 = vmatmul.mubr.msk.f32.gmra.mrb[204].mxu1 %vm22343_vm0, %v12327_v8  ;;  %15092 = vmatprep.mubr.msk.f32.mxu0 %vm16033_vm12, %v16034_v29 }
 0x6f6   : > { %v20437_v54 = vadd.f32 %v7155_v41, %v6992_v50  ;;  %15145 = vmatprep.mubr.msk.f32.mxu1 %vm16033_vm12, %v16034_v29  ;;  %v12348_v41 = vld [vmem:[%s19059_s26 + $0x99] sm:$0xff] }
 0x6f7   : > { %v6939_v6 = vpop.f32.mrb[100].mxu0 }
 0x6f8   : > { %v6993_v28 = vadd.f32 %v6939_v6, %v20253_v62  ;;  %v14752_v38 = vpop.f32.mrb[101].mxu0  ;;  %15093 = vmatmul.mubr.msk.f32.gmra.mrb[206].mxu0 %vm22526_vm8, %v12298_v17  ;;  %v7160_v27 = vpop.f32.mrb[100].mxu1  ;;  %v12378_v17 = vld [vmem:[%s19059_s26 + $0x9a] sm:$0xff]  ;;  %vm22540_vm8 = vmmov %vm22343_vm0 }
 0x6f9   : > { %v14805_v13 = vpop.f32.mrb[101].mxu1  ;;  %15146 = vmatmul.mubr.msk.f32.gmra.mrb[206].mxu1 %vm22527_vm14, %v12328_v4  ;;  %15095 = vmatprep.mubr.msk.f32.mxu0 %vm16033_vm12, %v16034_v29  ;;  %vm22541_vm14 = vmmov %vm22343_vm0 }
 0x6fa   : > { %v20448_v2 = vadd.f32 %v7160_v27, %v6993_v28  ;;  %15148 = vmatprep.mubr.msk.f32.mxu1 %vm16033_vm12, %v16034_v29  ;;  %v12349_v27 = vld [vmem:[%s19059_s26 + $0xa1] sm:$0xff] }
 0x6fb   : > { %v6944_v62 = vpop.f32.mrb[102].mxu0 }
 0x6fc   : > { %v6994_v12 = vadd.f32 %v6944_v62, %v20280_v7  ;;  %v14755_v48 = vpop.f32.mrb[103].mxu0  ;;  %15096 = vmatmul.mubr.msk.f32.gmra.mrb[208].mxu0 %vm22528_vm3, %v12299_v31  ;;  %v7165_v3 = vpop.f32.mrb[102].mxu1  ;;  %v12379_v31 = vld [vmem:[%s19059_s26 + $0xa2] sm:$0xff]  ;;  %vm22542_vm3 = vmmov %vm22343_vm0 }
 0x6fd   : > { %v14808_v43 = vpop.f32.mrb[103].mxu1  ;;  %15149 = vmatmul.mubr.msk.f32.gmra.mrb[208].mxu1 %vm22529_vm4, %v12329_v35  ;;  %15159 = vmatprep.mubr.msk.f32.mxu0 %vm16033_vm12, %v16034_v29  ;;  %vm22543_vm4 = vmmov %vm22343_vm0 }
 0x6fe   : > { %v20459_v9 = vadd.f32 %v7165_v3, %v6994_v12  ;;  %15212 = vmatprep.mubr.msk.f32.mxu1 %vm16033_vm12, %v16034_v29 }
 0x6ff   : > { %v6949_v7 = vpop.f32.mrb[104].mxu0 }
 0x700   : > { %v6995_v11 = vadd.f32 %v6949_v7, %v20301_v49  ;;  %v14758_v10 = vpop.f32.mrb[105].mxu0  ;;  %15160 = vmatmul.mubr.msk.f32.vlgmr.msra.gmra.mrb[210].mxu0 %vm22530_vm13, %v12345_v26  ;;  %v7170_v37 = vpop.f32.mrb[104].mxu1  ;;  %vm22544_vm13 = vmmov %vm22343_vm0 }
 0x701   : > { %v14811_v52 = vpop.f32.mrb[105].mxu1  ;;  %15213 = vmatmul.mubr.msk.f32.vlgmr.msra.gmra.mrb[210].mxu1 %vm22531_vm1, %v12375_v33  ;;  %15162 = vmatprep.mubr.msk.f32.mxu0 %vm16033_vm12, %v16034_v29  ;;  %vm22545_vm1 = vmmov %vm22343_vm0 }
 0x702   : > { %v20470_v44 = vadd.f32 %v7170_v37, %v6995_v11  ;;  %15215 = vmatprep.mubr.msk.f32.mxu1 %vm16033_vm12, %v16034_v29 }
 0x703   : > { %v6954_v49 = vpop.f32.mrb[106].mxu0 }
 0x704   : > { %v6996_v5 = vadd.f32 %v6954_v49, %v20316_v22  ;;  %v14761_v15 = vpop.f32.mrb[107].mxu0  ;;  %15163 = vmatmul.mubr.msk.f32.gmra.mrb[212].mxu0 %vm22532_vm7, %v12346_v47  ;;  %v7175_v16 = vpop.f32.mrb[106].mxu1  ;;  %vm22546_vm7 = vmmov %vm22343_vm0 }
 0x705   : > { %v14814_v45 = vpop.f32.mrb[107].mxu1  ;;  %15216 = vmatmul.mubr.msk.f32.gmra.mrb[212].mxu1 %vm22533_vm9, %v12376_v23  ;;  %15165 = vmatprep.mubr.msk.f32.mxu0 %vm16033_vm12, %v16034_v29  ;;  %vm22547_vm9 = vmmov %vm22343_vm0 }
 0x706   : > { %v20481_v21 = vadd.f32 %v7175_v16, %v6996_v5  ;;  %15218 = vmatprep.mubr.msk.f32.mxu1 %vm16033_vm12, %v16034_v29 }
 0x707   : > { %v6959_v22 = vpop.f32.mrb[108].mxu0 }
 0x708   : > { %v6997_v8 = vadd.f32 %v6959_v22, %v20327_v56  ;;  %v14764_v0 = vpop.f32.mrb[109].mxu0  ;;  %15166 = vmatmul.mubr.msk.f32.gmra.mrb[214].mxu0 %vm22534_vm2, %v12347_v57  ;;  %v7180_v50 = vpop.f32.mrb[108].mxu1  ;;  %vm22548_vm2 = vmmov %vm22343_vm0 }
 0x709   : > { %v14817_v1 = vpop.f32.mrb[109].mxu1  ;;  %15219 = vmatmul.mubr.msk.f32.gmra.mrb[214].mxu1 %vm22535_vm11, %v12377_v24  ;;  %15168 = vmatprep.mubr.msk.f32.mxu0 %vm16033_vm12, %v16034_v29  ;;  %vm22549_vm11 = vmmov %vm22343_vm0 }
 0x70a   : > { %v20492_v20 = vadd.f32 %v7180_v50, %v6997_v8  ;;  %15221 = vmatprep.mubr.msk.f32.mxu1 %vm16033_vm12, %v16034_v29  ;;  %v12356_v1 = vld [vmem:[%s19059_s26 + $0xd9] sm:$0xff] }
 0x70b   : > { %v6964_v56 = vpop.f32.mrb[110].mxu0 }
 0x70c   : > { %v6998_v4 = vadd.f32 %v6964_v56, %v20338_v58  ;;  %v14767_v6 = vpop.f32.mrb[111].mxu0  ;;  %15169 = vmatmul.mubr.msk.f32.gmra.mrb[216].mxu0 %vm22536_vm5, %v12348_v41  ;;  %v7185_v28 = vpop.f32.mrb[110].mxu1  ;;  %vm22550_vm5 = vmmov %vm22343_vm0 }
 0x70d   : > { %v14820_v38 = vpop.f32.mrb[111].mxu1  ;;  %15222 = vmatmul.mubr.msk.f32.gmra.mrb[216].mxu1 %vm22537_vm10, %v12378_v17  ;;  %15171 = vmatprep.mubr.msk.f32.mxu0 %vm16033_vm12, %v16034_v29  ;;  %v12386_v17 = vld [vmem:[%s19059_s26 + $0xda] sm:$0xff]  ;;  %vm22551_vm10 = vmmov %vm22343_vm0 }
 0x70e   : > { %v20503_v13 = vadd.f32 %v7185_v28, %v6998_v4  ;;  %15224 = vmatprep.mubr.msk.f32.mxu1 %vm16033_vm12, %v16034_v29  ;;  %v12357_v38 = vld [vmem:[%s19059_s26 + $0xe1] sm:$0xff] }
 0x70f   : > { %v6969_v35 = vpop.f32.mrb[112].mxu0 }
 0x710   : > { %v6999_v58 = vadd.f32 %v6969_v35, %v20348_v63  ;;  %v14770_v62 = vpop.f32.mrb[113].mxu0  ;;  %15172 = vmatmul.mubr.msk.f32.gmra.mrb[218].mxu0 %vm22538_vm6, %v12349_v27  ;;  %v7190_v12 = vpop.f32.mrb[112].mxu1  ;;  %vm22552_vm6 = vmmov %vm22343_vm0 }
 0x711   : > { %v14823_v48 = vpop.f32.mrb[113].mxu1  ;;  %15225 = vmatmul.mubr.msk.f32.gmra.mrb[218].mxu1 %vm22539_vm15, %v12379_v31  ;;  %15174 = vmatprep.mubr.msk.f32.mxu0 %vm16033_vm12, %v16034_v29  ;;  %v12387_v31 = vld [vmem:[%s19059_s26 + $0xe2] sm:$0xff]  ;;  %vm22553_vm15 = vmmov %vm22343_vm0 }
 0x712   : > { %v20513_v3 = vadd.f32 %v7190_v12, %v6999_v58  ;;  %15227 = vmatprep.mubr.msk.f32.mxu1 %vm16033_vm12, %v16034_v29  ;;  %v12358_v48 = vld [vmem:[%s19059_s26 + $0xe9] sm:$0xff] }
 0x713   : > { %v6974_v43 = vpop.f32.mrb[114].mxu0 }
 0x714   : > { %v7000_v26 = vadd.f32 %v6974_v43, %v20359_v61  ;;  %v14773_v33 = vpop.f32.mrb[115].mxu0  ;;  %15175 = vmatmul.mubr.msk.f32.gmra.mrb[220].mxu0 %vm22343_vm0, %v20183_v60  ;;  %v7195_v63 = vpop.f32.mrb[114].mxu1 }
 0x715   : > { %v14826_v7 = vpop.f32.mrb[115].mxu1  ;;  %15228 = vmatmul.mubr.msk.f32.gmra.mrb[220].mxu1 %vm22540_vm8, %v20190_v30  ;;  %15177 = vmatprep.mubr.msk.f32.mxu0 %vm16033_vm12, %v16034_v29  ;;  %vm22554_vm8 = vmmov %vm22343_vm0 }
 0x716   : > { %v20524_v11 = vadd.f32 %v7195_v63, %v7000_v26  ;;  %15230 = vmatprep.mubr.msk.f32.mxu1 %vm16033_vm12, %v16034_v29  ;;  %v12388_v26 = vld [vmem:[%s19059_s26 + $0xea] sm:$0xff] }
 0x717   : > { %v6979_v10 = vpop.f32.mrb[116].mxu0 }
 0x718   : > { %v7001_v61 = vadd.f32 %v6979_v10, %v20370_v53  ;;  %v14776_v37 = vpop.f32.mrb[117].mxu0  ;;  %15178 = vmatmul.mubr.msk.f32.gmra.mrb[222].mxu0 %vm22541_vm14, %v20200_v39  ;;  %v7200_v60 = vpop.f32.mrb[116].mxu1  ;;  %vm22555_vm14 = vmmov %vm22343_vm0 }
 0x719   : > { %v14829_v52 = vpop.f32.mrb[117].mxu1  ;;  %15231 = vmatmul.mubr.msk.f32.gmra.mrb[222].mxu1 %vm22542_vm3, %v20207_v18  ;;  %15180 = vmatprep.mubr.msk.f32.mxu0 %vm16033_vm12, %v16034_v29  ;;  %vm22556_vm3 = vmmov %vm22343_vm0 }
 0x71a   : > { %v20535_v30 = vadd.f32 %v7200_v60, %v7001_v61  ;;  %15233 = vmatprep.mubr.msk.f32.mxu1 %vm16033_vm12, %v16034_v29  ;;  %v12359_v61 = vld [vmem:[%s19059_s26 + $0xf1] sm:$0xff] }
 0x71b   : > { %v6984_v47 = vpop.f32.mrb[118].mxu0  ;;  %v12389_v60 = vld [vmem:[%s19059_s26 + $0xf2] sm:$0xff] }
 0x71c   : > { %v7002_v53 = vadd.f32 %v6984_v47, %v20381_v14  ;;  %v14779_v23 = vpop.f32.mrb[119].mxu0  ;;  %15181 = vmatmul.mubr.msk.f32.gmra.mrb[224].mxu0 %vm22543_vm4, %v20217_v32  ;;  %v7205_v39 = vpop.f32.mrb[118].mxu1  ;;  %vm22557_vm4 = vmmov %vm22343_vm0 }
 0x71d   : > { %v14832_v49 = vpop.f32.mrb[119].mxu1  ;;  %15234 = vmatmul.mubr.msk.f32.gmra.mrb[224].mxu1 %vm22544_vm13, %v20224_v25  ;;  %15183 = vmatprep.mubr.msk.f32.mxu0 %vm16033_vm12, %v16034_v29  ;;  %vm22559_vm13 = vmmov %vm22343_vm0 }
 0x71e   : > { %v20546_v18 = vadd.f32 %v7205_v39, %v7002_v53  ;;  %15236 = vmatprep.mubr.msk.f32.mxu1 %vm16033_vm12, %v16034_v29 }
 0x71f   : > { %v7356_v5 = vpop.f32.mrb[120].mxu0 }
 0x720   : > { %v7430_v14 = vadd.f32 %v7356_v5, %v20392_v19  ;;  %v14843_v15 = vpop.f32.mrb[121].mxu0  ;;  %15184 = vmatmul.mubr.msk.f32.gmra.mrb[226].mxu0 %vm22545_vm1, %v20234_v40  ;;  %v7577_v32 = vpop.f32.mrb[120].mxu1  ;;  %vm22560_vm1 = vmmov %vm22343_vm0 }
 0x721   : > { %v14896_v16 = vpop.f32.mrb[121].mxu1  ;;  %15237 = vmatmul.mubr.msk.f32.gmra.mrb[226].mxu1 %vm22546_vm7, %v20241_v34  ;;  %15186 = vmatprep.mubr.msk.f32.mxu0 %vm16033_vm12, %v16034_v29  ;;  %v12355_v34 = vld [vmem:[%s19059_s26 + $0xd1] sm:$0xff]  ;;  %vm22561_vm7 = vmmov %vm22343_vm0 }
 0x722   : > { %v20557_v25 = vadd.f32 %v7577_v32, %v7430_v14  ;;  %15239 = vmatprep.mubr.msk.f32.mxu1 %vm16033_vm12, %v16034_v29 }
 0x723   : > { %v7361_v19 = vpop.f32.mrb[122].mxu0 }
 0x724   : > { %v7431_v45 = vadd.f32 %v7361_v19, %v20404_v42  ;;  %v14846_v57 = vpop.f32.mrb[123].mxu0  ;;  %15187 = vmatmul.mubr.msk.f32.gmra.mrb[228].mxu0 %vm22547_vm9, %v20251_v46  ;;  %v7582_v40 = vpop.f32.mrb[122].mxu1  ;;  %v12385_v42 = vld [vmem:[%s19059_s26 + $0xd2] sm:$0xff]  ;;  %s20741_s26 = scalar_lea.vmem [#allocation5], %s22706_s15  ;;  %vm22562_vm9 = vmmov %vm22343_vm0 }
 0x725   : > { %v14899_v24 = vpop.f32.mrb[123].mxu1  ;;  %15240 = vmatmul.mubr.msk.f32.gmra.mrb[228].mxu1 %vm22548_vm2, %v20258_v55  ;;  %15189 = vmatprep.mubr.msk.f32.mxu0 %vm16033_vm12, %v16034_v29  ;;  %vm22563_vm2 = vmmov %vm22343_vm0 }
 0x726   : > { %v20569_v22 = vadd.f32 %v7582_v40, %v7431_v45  ;;  %15242 = vmatprep.mubr.msk.f32.mxu1 %vm16033_vm12, %v16034_v29 }
 0x727   : > { %v7366_v8 = vpop.f32.mrb[124].mxu0 }
 0x728   : > { %v7432_v46 = vadd.f32 %v7366_v8, %v20415_v36  ;;  %v14849_v0 = vpop.f32.mrb[125].mxu0  ;;  %15190 = vmatmul.mubr.msk.f32.gmra.mrb[230].mxu0 %vm22549_vm11, %v12355_v34  ;;  %v7587_v50 = vpop.f32.mrb[124].mxu1  ;;  %vm22564_vm11 = vmmov %vm22343_vm0 }
 0x729   : > { %v14902_v55 = vpop.f32.mrb[125].mxu1  ;;  %15243 = vmatmul.mubr.msk.f32.gmra.mrb[230].mxu1 %vm22550_vm5, %v12385_v42  ;;  %15192 = vmatprep.mubr.msk.f32.mxu0 %vm16033_vm12, %v16034_v29  ;;  %vm22565_vm5 = vmmov %vm22343_vm0 }
 0x72a   : > { %v20580_v41 = vadd.f32 %v7587_v50, %v7432_v46  ;;  %15245 = vmatprep.mubr.msk.f32.mxu1 %vm16033_vm12, %v16034_v29 }
 0x72b   : > { %v7371_v36 = vpop.f32.mrb[126].mxu0 }
 0x72c   : > { %v7433_v56 = vadd.f32 %v7371_v36, %v20426_v51  ;;  %v14852_v4 = vpop.f32.mrb[127].mxu0  ;;  %15193 = vmatmul.mubr.msk.f32.gmra.mrb[232].mxu0 %vm22551_vm10, %v12356_v1  ;;  %v7592_v6 = vpop.f32.mrb[126].mxu1  ;;  %vm22566_vm10 = vmmov %vm22343_vm0 }
 0x72d   : > { %v14905_v28 = vpop.f32.mrb[127].mxu1  ;;  %15246 = vmatmul.mubr.msk.f32.gmra.mrb[232].mxu1 %vm22552_vm6, %v12386_v17  ;;  %15195 = vmatprep.mubr.msk.f32.mxu0 %vm16033_vm12, %v16034_v29  ;;  %vm22567_vm6 = vmmov %vm22343_vm0 }
 0x72e   : > { %v20591_v27 = vadd.f32 %v7592_v6, %v7433_v56  ;;  %15248 = vmatprep.mubr.msk.f32.mxu1 %vm16033_vm12, %v16034_v29 }
 0x72f   : > { %v7376_v51 = vpop.f32.mrb[128].mxu0 }
 0x730   : > { %v7434_v35 = vadd.f32 %v7376_v51, %v20437_v54  ;;  %v14855_v58 = vpop.f32.mrb[129].mxu0  ;;  %15196 = vmatmul.mubr.msk.f32.gmra.mrb[234].mxu0 %vm22553_vm15, %v12357_v38  ;;  %v7597_v62 = vpop.f32.mrb[128].mxu1  ;;  %vm22568_vm15 = vmmov %vm22343_vm0 }
 0x731   : > { %v14908_v12 = vpop.f32.mrb[129].mxu1  ;;  %15249 = vmatmul.mubr.msk.f32.gmra.mrb[234].mxu1 %vm22343_vm0, %v12387_v31  ;;  %15198 = vmatprep.mubr.msk.f32.mxu0 %vm16033_vm12, %v16034_v29 }
 0x732   : > { %v20602_v43 = vadd.f32 %v7597_v62, %v7434_v35  ;;  %15251 = vmatprep.mubr.msk.f32.mxu1 %vm16033_vm12, %v16034_v29 }
 0x733   : > { %v7381_v54 = vpop.f32.mrb[130].mxu0 }
 0x734   : > { %v7435_v33 = vadd.f32 %v7381_v54, %v20448_v2  ;;  %v14858_v63 = vpop.f32.mrb[131].mxu0  ;;  %15199 = vmatmul.mubr.msk.f32.gmra.mrb[236].mxu0 %vm22554_vm8, %v12358_v48  ;;  %v7602_v7 = vpop.f32.mrb[130].mxu1  ;;  %vm22569_vm8 = vmmov %vm22343_vm0 }
 0x735   : > { %v14911_v10 = vpop.f32.mrb[131].mxu1  ;;  %15252 = vmatmul.mubr.msk.f32.gmra.mrb[236].mxu1 %vm22555_vm14, %v12388_v26  ;;  %15201 = vmatprep.mubr.msk.f32.mxu0 %vm16033_vm12, %v16034_v29  ;;  %vm22570_vm14 = vmmov %vm22343_vm0 }
 0x736   : > { %v20613_v37 = vadd.f32 %v7602_v7, %v7435_v33  ;;  %15254 = vmatprep.mubr.msk.f32.mxu1 %vm16033_vm12, %v16034_v29  ;;  %vm22558_vm12 = vmmov %vm22343_vm0 }
 0x737   : > { %v7386_v52 = vpop.f32.mrb[132].mxu0 }
 0x738   : > { %v7436_v2 = vadd.f32 %v7386_v52, %v20459_v9  ;;  %v14861_v47 = vpop.f32.mrb[133].mxu0  ;;  %15202 = vmatmul.mubr.msk.f32.gmra.mrb[238].mxu0 %vm22556_vm3, %v12359_v61  ;;  %v7607_v53 = vpop.f32.mrb[132].mxu1  ;;  %vm22571_vm3 = vmmov %vm22343_vm0 }
 0x739   : > { %v14914_v23 = vpop.f32.mrb[133].mxu1  ;;  %15255 = vmatmul.mubr.msk.f32.gmra.mrb[238].mxu1 %vm22557_vm4, %v12389_v60 }
 0x73a   : > { %v20621_v39 = vadd.f32 %v7607_v53, %v7436_v2 }
 0x73b   : > { %v7391_v49 = vpop.f32.mrb[134].mxu0 }
 0x73c   : > { %v7437_v5 = vadd.f32 %v7391_v49, %v20470_v44  ;;  %v14864_v14 = vpop.f32.mrb[135].mxu0  ;;  %v7612_v15 = vpop.f32.mrb[134].mxu1 }
 0x73d   : > { %v14917_v32 = vpop.f32.mrb[135].mxu1 }
 0x73e   : > { %v20624_v29 = vadd.f32 %v7612_v15, %v7437_v5 }
 0x73f   : > { %v7396_v16 = vpop.f32.mrb[136].mxu0 }
 0x740   : > { %v7438_v9 = vadd.f32 %v7396_v16, %v20481_v21  ;;  %v14867_v19 = vpop.f32.mrb[137].mxu0  ;;  %v7617_v45 = vpop.f32.mrb[136].mxu1 }
 0x741   : > { %v14920_v57 = vpop.f32.mrb[137].mxu1 }
 0x742   : > { %v20627_v40 = vadd.f32 %v7617_v45, %v7438_v9 }
 0x743   : > { %v7401_v24 = vpop.f32.mrb[138].mxu0 }
 0x744   : > { %v7439_v34 = vadd.f32 %v7401_v24, %v20492_v20  ;;  %v14870_v42 = vpop.f32.mrb[139].mxu0  ;;  %v7622_v8 = vpop.f32.mrb[138].mxu1 }
 0x745   : > { %v14923_v46 = vpop.f32.mrb[139].mxu1 }
 0x746   : > { %v20630_v44 = vadd.f32 %v7622_v8, %v7439_v34 }
 0x747   : > { %v7406_v0 = vpop.f32.mrb[140].mxu0 }
 0x748   : > { %v7440_v50 = vadd.f32 %v7406_v0, %v20503_v13  ;;  %v14873_v55 = vpop.f32.mrb[141].mxu0  ;;  %v7627_v1 = vpop.f32.mrb[140].mxu1 }
 0x749   : > { %v14926_v17 = vpop.f32.mrb[141].mxu1 }
 0x74a   : > { %v20633_v21 = vadd.f32 %v7627_v1, %v7440_v50 }
 0x74b   : > { %v7411_v36 = vpop.f32.mrb[142].mxu0 }
 0x74c   : > { %v7441_v56 = vadd.f32 %v7411_v36, %v20513_v3  ;;  %v14876_v4 = vpop.f32.mrb[143].mxu0  ;;  %v7632_v6 = vpop.f32.mrb[142].mxu1 }
 0x74d   : > { %v14929_v28 = vpop.f32.mrb[143].mxu1 }
 0x74e   : > { %v20636_v20 = vadd.f32 %v7632_v6, %v7441_v56 }
 0x74f   : > { %v7416_v38 = vpop.f32.mrb[144].mxu0 }
 0x750   : > { %v7442_v31 = vadd.f32 %v7416_v38, %v20524_v11  ;;  %v14879_v51 = vpop.f32.mrb[145].mxu0  ;;  %v7637_v35 = vpop.f32.mrb[144].mxu1 }
 0x751   : > { %v14932_v58 = vpop.f32.mrb[145].mxu1 }
 0x752   : > { %v20639_v13 = vadd.f32 %v7637_v35, %v7442_v31 }
 0x753   : > { %v7421_v62 = vpop.f32.mrb[146].mxu0 }
 0x754   : > { %v7443_v12 = vadd.f32 %v7421_v62, %v20535_v30  ;;  %v14882_v48 = vpop.f32.mrb[147].mxu0  ;;  %v7642_v26 = vpop.f32.mrb[146].mxu1 }
 0x755   : > { %v14935_v54 = vpop.f32.mrb[147].mxu1 }
 0x756   : > { %v20642_v3 = vadd.f32 %v7642_v26, %v7443_v12 }
 0x757   : > { %v7426_v33 = vpop.f32.mrb[148].mxu0 }
 0x758   : > { %v7444_v63 = vadd.f32 %v7426_v33, %v20546_v18  ;;  %v14885_v7 = vpop.f32.mrb[149].mxu0  ;;  %v7647_v10 = vpop.f32.mrb[148].mxu1 }
 0x759   : > { %v14938_v61 = vpop.f32.mrb[149].mxu1 }
 0x75a   : > { %v20645_v11 = vadd.f32 %v7647_v10, %v7444_v63 }
 0x75b   : > { %v7798_v60 = vpop.f32.mrb[150].mxu0 }
 0x75c   : > { %v7872_v52 = vadd.f32 %v7798_v60, %v20557_v25  ;;  %v14949_v2 = vpop.f32.mrb[151].mxu0  ;;  %v8019_v47 = vpop.f32.mrb[150].mxu1 }
 0x75d   : > { %v15002_v53 = vpop.f32.mrb[151].mxu1 }
 0x75e   : > { %v20648_v30 = vadd.f32 %v8019_v47, %v7872_v52 }
 0x75f   : > { %v7803_v23 = vpop.f32.mrb[152].mxu0 }
 0x760   : > { %v7873_v49 = vadd.f32 %v7803_v23, %v20569_v22  ;;  %v14952_v5 = vpop.f32.mrb[153].mxu0  ;;  %v8024_v14 = vpop.f32.mrb[152].mxu1 }
 0x761   : > { %v15005_v15 = vpop.f32.mrb[153].mxu1 }
 0x762   : > { %v20651_v18 = vadd.f32 %v8024_v14, %v7873_v49 }
 0x763   : > { %v7808_v32 = vpop.f32.mrb[154].mxu0 }
 0x764   : > { %v7874_v16 = vadd.f32 %v7808_v32, %v20580_v41  ;;  %v14955_v9 = vpop.f32.mrb[155].mxu0  ;;  %v8029_v19 = vpop.f32.mrb[154].mxu1 }
 0x765   : > { %v15008_v45 = vpop.f32.mrb[155].mxu1 }
 0x766   : > { %v20654_v25 = vadd.f32 %v8029_v19, %v7874_v16 }
 0x767   : > { %v7813_v57 = vpop.f32.mrb[156].mxu0 }
 0x768   : > { %v7875_v24 = vadd.f32 %v7813_v57, %v20591_v27  ;;  %v14958_v34 = vpop.f32.mrb[157].mxu0  ;;  %v8034_v42 = vpop.f32.mrb[156].mxu1 }
 0x769   : > { %v15011_v8 = vpop.f32.mrb[157].mxu1 }
 0x76a   : > { %v20657_v22 = vadd.f32 %v8034_v42, %v7875_v24 }
 0x76b   : > { %v7818_v46 = vpop.f32.mrb[158].mxu0 }
 0x76c   : > { %v7876_v0 = vadd.f32 %v7818_v46, %v20602_v43  ;;  %v14961_v50 = vpop.f32.mrb[159].mxu0  ;;  %v8039_v55 = vpop.f32.mrb[158].mxu1 }
 0x76d   : > { %v15014_v1 = vpop.f32.mrb[159].mxu1 }
 0x76e   : > { %v20660_v41 = vadd.f32 %v8039_v55, %v7876_v0 }
 0x76f   : > { %v7823_v17 = vpop.f32.mrb[160].mxu0 }
 0x770   : > { %v7877_v36 = vadd.f32 %v7823_v17, %v20613_v37  ;;  %v14964_v56 = vpop.f32.mrb[161].mxu0  ;;  %v8044_v4 = vpop.f32.mrb[160].mxu1 }
 0x771   : > { %v15017_v6 = vpop.f32.mrb[161].mxu1 }
 0x772   : > { %v20663_v27 = vadd.f32 %v8044_v4, %v7877_v36 }
 0x773   : > { %v7828_v28 = vpop.f32.mrb[162].mxu0 }
 0x774   : > { %v7878_v38 = vadd.f32 %v7828_v28, %v20621_v39  ;;  %v14967_v31 = vpop.f32.mrb[163].mxu0  ;;  %v8049_v51 = vpop.f32.mrb[162].mxu1 }
 0x775   : > { %v15020_v35 = vpop.f32.mrb[163].mxu1 }
 0x776   : > { %v20666_v43 = vadd.f32 %v8049_v51, %v7878_v38 }
 0x777   : > { %v7833_v58 = vpop.f32.mrb[164].mxu0 }
 0x778   : > { %v7879_v62 = vadd.f32 %v7833_v58, %v20624_v29  ;;  %v14970_v12 = vpop.f32.mrb[165].mxu0  ;;  %v8054_v48 = vpop.f32.mrb[164].mxu1 }
 0x779   : > { %v15023_v26 = vpop.f32.mrb[165].mxu1 }
 0x77a   : > { %v20669_v37 = vadd.f32 %v8054_v48, %v7879_v62 }
 0x77b   : > { %v7838_v54 = vpop.f32.mrb[166].mxu0 }
 0x77c   : > { %v7880_v33 = vadd.f32 %v7838_v54, %v20627_v40  ;;  %v14973_v63 = vpop.f32.mrb[167].mxu0  ;;  %v8059_v7 = vpop.f32.mrb[166].mxu1 }
 0x77d   : > { %v15026_v10 = vpop.f32.mrb[167].mxu1 }
 0x77e   : > { %v20672_v39 = vadd.f32 %v8059_v7, %v7880_v33 }
 0x77f   : > { %v7843_v61 = vpop.f32.mrb[168].mxu0 }
 0x780   : > { %v7881_v60 = vadd.f32 %v7843_v61, %v20630_v44  ;;  %v14976_v52 = vpop.f32.mrb[169].mxu0  ;;  %v8064_v2 = vpop.f32.mrb[168].mxu1 }
 0x781   : > { %v15029_v47 = vpop.f32.mrb[169].mxu1 }
 0x782   : > { %v20675_v29 = vadd.f32 %v8064_v2, %v7881_v60 }
 0x783   : > { %v7848_v53 = vpop.f32.mrb[170].mxu0 }
 0x784   : > { %v7882_v23 = vadd.f32 %v7848_v53, %v20633_v21  ;;  %v14979_v49 = vpop.f32.mrb[171].mxu0  ;;  %v8069_v5 = vpop.f32.mrb[170].mxu1 }
 0x785   : > { %v15032_v14 = vpop.f32.mrb[171].mxu1 }
 0x786   : > { %v20678_v40 = vadd.f32 %v8069_v5, %v7882_v23 }
 0x787   : > { %v7853_v15 = vpop.f32.mrb[172].mxu0 }
 0x788   : > { %v7883_v32 = vadd.f32 %v7853_v15, %v20636_v20  ;;  %v14982_v16 = vpop.f32.mrb[173].mxu0  ;;  %v8074_v9 = vpop.f32.mrb[172].mxu1 }
 0x789   : > { %v15035_v19 = vpop.f32.mrb[173].mxu1 }
 0x78a   : > { %v20681_v44 = vadd.f32 %v8074_v9, %v7883_v32 }
 0x78b   : > { %v7858_v45 = vpop.f32.mrb[174].mxu0 }
 0x78c   : > { %v7884_v57 = vadd.f32 %v7858_v45, %v20639_v13  ;;  %v14985_v24 = vpop.f32.mrb[175].mxu0  ;;  %v8079_v34 = vpop.f32.mrb[174].mxu1 }
 0x78d   : > { %v15038_v42 = vpop.f32.mrb[175].mxu1 }
 0x78e   : > { %v20684_v21 = vadd.f32 %v8079_v34, %v7884_v57 }
 0x78f   : > { %v7863_v8 = vpop.f32.mrb[176].mxu0 }
 0x790   : > { %v7885_v46 = vadd.f32 %v7863_v8, %v20642_v3  ;;  %v14988_v0 = vpop.f32.mrb[177].mxu0  ;;  %v8084_v50 = vpop.f32.mrb[176].mxu1 }
 0x791   : > { %v15041_v55 = vpop.f32.mrb[177].mxu1 }
 0x792   : > { %v20687_v20 = vadd.f32 %v8084_v50, %v7885_v46 }
 0x793   : > { %v7868_v1 = vpop.f32.mrb[178].mxu0 }
 0x794   : > { %v7886_v17 = vadd.f32 %v7868_v1, %v20645_v11  ;;  %v14991_v36 = vpop.f32.mrb[179].mxu0  ;;  %v8089_v56 = vpop.f32.mrb[178].mxu1 }
 0x795   : > { %v15044_v4 = vpop.f32.mrb[179].mxu1 }
 0x796   : > { %v20690_v13 = vadd.f32 %v8089_v56, %v7886_v17 }
 0x797   : > { %v8240_v6 = vpop.f32.mrb[180].mxu0 }
 0x798   : > { %v8314_v28 = vadd.f32 %v8240_v6, %v20648_v30  ;;  %v15055_v38 = vpop.f32.mrb[181].mxu0  ;;  %v8461_v31 = vpop.f32.mrb[180].mxu1 }
 0x799   : > { %v15108_v51 = vpop.f32.mrb[181].mxu1 }
 0x79a   : > { %v20693_v3 = vadd.f32 %v8461_v31, %v8314_v28 }
 0x79b   : > { %v8245_v35 = vpop.f32.mrb[182].mxu0 }
 0x79c   : > { %v8315_v58 = vadd.f32 %v8245_v35, %v20651_v18  ;;  %v15058_v62 = vpop.f32.mrb[183].mxu0  ;;  %v8466_v12 = vpop.f32.mrb[182].mxu1 }
 0x79d   : > { %v15111_v48 = vpop.f32.mrb[183].mxu1 }
 0x79e   : > { %v20696_v11 = vadd.f32 %v8466_v12, %v8315_v58 }
 0x79f   : > { %v8250_v26 = vpop.f32.mrb[184].mxu0 }
 0x7a0   : > { %v8316_v54 = vadd.f32 %v8250_v26, %v20654_v25  ;;  %v15061_v33 = vpop.f32.mrb[185].mxu0  ;;  %v8471_v63 = vpop.f32.mrb[184].mxu1 }
 0x7a1   : > { %v15114_v7 = vpop.f32.mrb[185].mxu1 }
 0x7a2   : > { %v20699_v30 = vadd.f32 %v8471_v63, %v8316_v54 }
 0x7a3   : > { %v8255_v10 = vpop.f32.mrb[186].mxu0 }
 0x7a4   : > { %v8317_v61 = vadd.f32 %v8255_v10, %v20657_v22  ;;  %v15064_v60 = vpop.f32.mrb[187].mxu0  ;;  %v8476_v52 = vpop.f32.mrb[186].mxu1 }
 0x7a5   : > { %v15117_v2 = vpop.f32.mrb[187].mxu1 }
 0x7a6   : > { %v20702_v18 = vadd.f32 %v8476_v52, %v8317_v61 }
 0x7a7   : > { %v8260_v47 = vpop.f32.mrb[188].mxu0 }
 0x7a8   : > { %v8318_v53 = vadd.f32 %v8260_v47, %v20660_v41  ;;  %v15067_v23 = vpop.f32.mrb[189].mxu0  ;;  %v8481_v49 = vpop.f32.mrb[188].mxu1 }
 0x7a9   : > { %v15120_v5 = vpop.f32.mrb[189].mxu1 }
 0x7aa   : > { %v20705_v25 = vadd.f32 %v8481_v49, %v8318_v53 }
 0x7ab   : > { %v8265_v14 = vpop.f32.mrb[190].mxu0 }
 0x7ac   : > { %v8319_v15 = vadd.f32 %v8265_v14, %v20663_v27  ;;  %v15070_v32 = vpop.f32.mrb[191].mxu0  ;;  %v8486_v16 = vpop.f32.mrb[190].mxu1 }
 0x7ad   : > { %v15123_v9 = vpop.f32.mrb[191].mxu1 }
 0x7ae   : > { %v20708_v22 = vadd.f32 %v8486_v16, %v8319_v15 }
 0x7af   : > { %v8270_v19 = vpop.f32.mrb[192].mxu0 }
 0x7b0   : > { %v8320_v45 = vadd.f32 %v8270_v19, %v20666_v43  ;;  %v15073_v57 = vpop.f32.mrb[193].mxu0  ;;  %v8491_v24 = vpop.f32.mrb[192].mxu1 }
 0x7b1   : > { %v15126_v34 = vpop.f32.mrb[193].mxu1 }
 0x7b2   : > { %v20711_v41 = vadd.f32 %v8491_v24, %v8320_v45 }
 0x7b3   : > { %v8275_v42 = vpop.f32.mrb[194].mxu0 }
 0x7b4   : > { %v8321_v8 = vadd.f32 %v8275_v42, %v20669_v37  ;;  %v15076_v46 = vpop.f32.mrb[195].mxu0  ;;  %v8496_v0 = vpop.f32.mrb[194].mxu1 }
 0x7b5   : > { %v15129_v50 = vpop.f32.mrb[195].mxu1 }
 0x7b6   : > { %v20714_v27 = vadd.f32 %v8496_v0, %v8321_v8 }
 0x7b7   : > { %v8280_v55 = vpop.f32.mrb[196].mxu0 }
 0x7b8   : > { %v8322_v1 = vadd.f32 %v8280_v55, %v20672_v39  ;;  %v15079_v17 = vpop.f32.mrb[197].mxu0  ;;  %v8501_v36 = vpop.f32.mrb[196].mxu1 }
 0x7b9   : > { %v15132_v56 = vpop.f32.mrb[197].mxu1 }
 0x7ba   : > { %v20717_v43 = vadd.f32 %v8501_v36, %v8322_v1 }
 0x7bb   : > { %v8285_v4 = vpop.f32.mrb[198].mxu0 }
 0x7bc   : > { %v8323_v6 = vadd.f32 %v8285_v4, %v20675_v29  ;;  %v15082_v28 = vpop.f32.mrb[199].mxu0  ;;  %v8506_v38 = vpop.f32.mrb[198].mxu1 }
 0x7bd   : > { %v15135_v31 = vpop.f32.mrb[199].mxu1 }
 0x7be   : > { %v20720_v37 = vadd.f32 %v8506_v38, %v8323_v6 }
 0x7bf   : > { %v8290_v51 = vpop.f32.mrb[200].mxu0 }
 0x7c0   : > { %v8324_v35 = vadd.f32 %v8290_v51, %v20678_v40  ;;  %v15085_v58 = vpop.f32.mrb[201].mxu0  ;;  %v8511_v62 = vpop.f32.mrb[200].mxu1 }
 0x7c1   : > { %v15138_v12 = vpop.f32.mrb[201].mxu1 }
 0x7c2   : > { %v20723_v39 = vadd.f32 %v8511_v62, %v8324_v35 }
 0x7c3   : > { %v8295_v48 = vpop.f32.mrb[202].mxu0 }
 0x7c4   : > { %v8325_v26 = vadd.f32 %v8295_v48, %v20681_v44  ;;  %v15088_v54 = vpop.f32.mrb[203].mxu0  ;;  %v8516_v33 = vpop.f32.mrb[202].mxu1 }
 0x7c5   : > { %v15141_v63 = vpop.f32.mrb[203].mxu1 }
 0x7c6   : > { %v20726_v29 = vadd.f32 %v8516_v33, %v8325_v26 }
 0x7c7   : > { %v8300_v7 = vpop.f32.mrb[204].mxu0 }
 0x7c8   : > { %v8326_v10 = vadd.f32 %v8300_v7, %v20684_v21  ;;  %v15091_v61 = vpop.f32.mrb[205].mxu0  ;;  %v8521_v60 = vpop.f32.mrb[204].mxu1 }
 0x7c9   : > { %v15144_v52 = vpop.f32.mrb[205].mxu1 }
 0x7ca   : > { %v20729_v40 = vadd.f32 %v8521_v60, %v8326_v10 }
 0x7cb   : > { %v8305_v2 = vpop.f32.mrb[206].mxu0 }
 0x7cc   : > { %v8327_v47 = vadd.f32 %v8305_v2, %v20687_v20  ;;  %v15094_v53 = vpop.f32.mrb[207].mxu0  ;;  %v8526_v23 = vpop.f32.mrb[206].mxu1 }
 0x7cd   : > { %v15147_v49 = vpop.f32.mrb[207].mxu1 }
 0x7ce   : > { %v20732_v44 = vadd.f32 %v8526_v23, %v8327_v47 }
 0x7cf   : > { %v8310_v5 = vpop.f32.mrb[208].mxu0 }
 0x7d0   : > { %v8328_v14 = vadd.f32 %v8310_v5, %v20690_v13  ;;  %v15097_v15 = vpop.f32.mrb[209].mxu0  ;;  %v8531_v32 = vpop.f32.mrb[208].mxu1 }
 0x7d1   : > { %v15150_v21 = vpop.f32.mrb[209].mxu1 }
 0x7d2   : > { %v20735_v16 = vadd.f32 %v8531_v32, %v8328_v14 }
 0x7d3   : > { %v8682_v9 = vpop.f32.mrb[210].mxu0 }
 0x7d4   : > { %v8756_v19 = vadd.f32 %v8682_v9, %v20693_v3  ;;  %v15161_v45 = vpop.f32.mrb[211].mxu0  ;;  %v8903_v57 = vpop.f32.mrb[210].mxu1 }
 0x7d5   : > { %v15214_v20 = vpop.f32.mrb[211].mxu1 }
 0x7d6   : > { %v8977_v24 = vadd.f32 %v8903_v57, %v8756_v19 }
 0x7d7   : > { %v8687_v34 = vpop.f32.mrb[212].mxu0 }
 0x7d8   : > { %v8998_v42 = vadd.f32 %v19000_v59, %v8977_v24  ;;  %v8757_v8 = vadd.f32 %v8687_v34, %v20696_v11  ;;  %v15164_v46 = vpop.f32.mrb[213].mxu0  ;;  %v8908_v13 = vpop.f32.mrb[212].mxu1 }
 0x7d9   : > { %v15217_v0 = vpop.f32.mrb[213].mxu1 }
 0x7da   : > { %9014 = vst.msk [vmem:[%s20741_s26] sm:$0xff] %vm22558_vm12, %v8998_v42  ;;  %v8978_v3 = vadd.f32 %v8908_v13, %v8757_v8 }
 0x7db   : > { %v8692_v50 = vpop.f32.mrb[214].mxu0 }
 0x7dc   : > { %v8999_v55 = vadd.f32 %v19000_v59, %v8978_v3  ;;  %v8758_v1 = vadd.f32 %v8692_v50, %v20699_v30  ;;  %v15167_v17 = vpop.f32.mrb[215].mxu0  ;;  %v8913_v36 = vpop.f32.mrb[214].mxu1 }
 0x7dd   : > { %v15220_v56 = vpop.f32.mrb[215].mxu1 }
 0x7de   : > { %9015 = vst.msk [vmem:[%s20741_s26 + $0x8] sm:$0xff] %vm22559_vm13, %v8999_v55  ;;  %v8979_v11 = vadd.f32 %v8913_v36, %v8758_v1 }
 0x7df   : > { %v8697_v4 = vpop.f32.mrb[216].mxu0 }
 0x7e0   : > { %v9000_v6 = vadd.f32 %v19000_v59, %v8979_v11  ;;  %v8759_v28 = vadd.f32 %v8697_v4, %v20702_v18  ;;  %v15170_v38 = vpop.f32.mrb[217].mxu0  ;;  %v8918_v31 = vpop.f32.mrb[216].mxu1 }
 0x7e1   : > { %v15223_v51 = vpop.f32.mrb[217].mxu1 }
 0x7e2   : > { %9016 = vst.msk [vmem:[%s20741_s26 + $0x10] sm:$0xff] %vm22560_vm1, %v9000_v6  ;;  %v8980_v35 = vadd.f32 %v8918_v31, %v8759_v28 }
 0x7e3   : > { %v8702_v30 = vpop.f32.mrb[218].mxu0 }
 0x7e4   : > { %v9001_v58 = vadd.f32 %v19000_v59, %v8980_v35  ;;  %v8760_v62 = vadd.f32 %v8702_v30, %v20705_v25  ;;  %v15173_v12 = vpop.f32.mrb[219].mxu0  ;;  %v8923_v48 = vpop.f32.mrb[218].mxu1 }
 0x7e5   : > { %v15226_v26 = vpop.f32.mrb[219].mxu1 }
 0x7e6   : > { %9017 = vst.msk [vmem:[%s20741_s26 + $0x18] sm:$0xff] %vm22561_vm7, %v9001_v58  ;;  %v8981_v54 = vadd.f32 %v8923_v48, %v8760_v62 }
 0x7e7   : > { %v8707_v18 = vpop.f32.mrb[220].mxu0 }
 0x7e8   : > { %v9002_v33 = vadd.f32 %v19000_v59, %v8981_v54  ;;  %v8761_v63 = vadd.f32 %v8707_v18, %v20708_v22  ;;  %v15176_v7 = vpop.f32.mrb[221].mxu0  ;;  %v8928_v10 = vpop.f32.mrb[220].mxu1 }
 0x7e9   : > { %v15229_v61 = vpop.f32.mrb[221].mxu1 }
 0x7ea   : > { %9018 = vst.msk [vmem:[%s20741_s26 + $0x20] sm:$0xff] %vm22562_vm9, %v9002_v33  ;;  %v8982_v60 = vadd.f32 %v8928_v10, %v8761_v63 }
 0x7eb   : > { %v8712_v25 = vpop.f32.mrb[222].mxu0 }
 0x7ec   : > { %v9003_v52 = vadd.f32 %v19000_v59, %v8982_v60  ;;  %v8762_v2 = vadd.f32 %v8712_v25, %v20711_v41  ;;  %v15179_v47 = vpop.f32.mrb[223].mxu0  ;;  %v8933_v53 = vpop.f32.mrb[222].mxu1 }
 0x7ed   : > { %v15232_v23 = vpop.f32.mrb[223].mxu1 }
 0x7ee   : > { %9019 = vst.msk [vmem:[%s20741_s26 + $0x28] sm:$0xff] %vm22563_vm2, %v9003_v52  ;;  %v8983_v49 = vadd.f32 %v8933_v53, %v8762_v2 }
 0x7ef   : > { %v8717_v22 = vpop.f32.mrb[224].mxu0 }
 0x7f0   : > { %v9004_v5 = vadd.f32 %v19000_v59, %v8983_v49  ;;  %v8763_v14 = vadd.f32 %v8717_v22, %v20714_v27  ;;  %v15182_v15 = vpop.f32.mrb[225].mxu0  ;;  %v8938_v32 = vpop.f32.mrb[224].mxu1 }
 0x7f1   : > { %v15235_v21 = vpop.f32.mrb[225].mxu1 }
 0x7f2   : > { %9020 = vst.msk [vmem:[%s20741_s26 + $0x30] sm:$0xff] %vm22564_vm11, %v9004_v5  ;;  %v8984_v9 = vadd.f32 %v8938_v32, %v8763_v14 }
 0x7f3   : > { %v8722_v41 = vpop.f32.mrb[226].mxu0 }
 0x7f4   : > { %v9005_v19 = vadd.f32 %v19000_v59, %v8984_v9  ;;  %v8764_v45 = vadd.f32 %v8722_v41, %v20717_v43  ;;  %v15185_v57 = vpop.f32.mrb[227].mxu0  ;;  %v8943_v20 = vpop.f32.mrb[226].mxu1 }
 0x7f5   : > { %v15238_v24 = vpop.f32.mrb[227].mxu1 }
 0x7f6   : > { %9021 = vst.msk [vmem:[%s20741_s26 + $0x38] sm:$0xff] %vm22565_vm5, %v9005_v19  ;;  %v8985_v34 = vadd.f32 %v8943_v20, %v8764_v45 }
 0x7f7   : > { %v8727_v27 = vpop.f32.mrb[228].mxu0 }
 0x7f8   : > { %v9006_v42 = vadd.f32 %v19000_v59, %v8985_v34  ;;  %v8765_v8 = vadd.f32 %v8727_v27, %v20720_v37  ;;  %v15188_v46 = vpop.f32.mrb[229].mxu0  ;;  %v8948_v13 = vpop.f32.mrb[228].mxu1 }
 0x7f9   : > { %v15241_v0 = vpop.f32.mrb[229].mxu1 }
 0x7fa   : > { %9022 = vst.msk [vmem:[%s20741_s26 + $0x40] sm:$0xff] %vm22566_vm10, %v9006_v42  ;;  %v8986_v3 = vadd.f32 %v8948_v13, %v8765_v8 }
 0x7fb   : > { %v8732_v43 = vpop.f32.mrb[230].mxu0 }
 0x7fc   : > { %v9007_v50 = vadd.f32 %v19000_v59, %v8986_v3  ;;  %v8766_v55 = vadd.f32 %v8732_v43, %v20723_v39  ;;  %v15191_v1 = vpop.f32.mrb[231].mxu0  ;;  %v8953_v17 = vpop.f32.mrb[230].mxu1 }
 0x7fd   : > { %v15244_v36 = vpop.f32.mrb[231].mxu1 }
 0x7fe   : > { %9023 = vst.msk [vmem:[%s20741_s26 + $0x48] sm:$0xff] %vm22567_vm6, %v9007_v50  ;;  %v8987_v56 = vadd.f32 %v8953_v17, %v8766_v55 }
 0x7ff   : > { %v8737_v37 = vpop.f32.mrb[232].mxu0 }
 0x800   : > { %v9008_v11 = vadd.f32 %v19000_v59, %v8987_v56  ;;  %v8767_v4 = vadd.f32 %v8737_v37, %v20726_v29  ;;  %v15194_v6 = vpop.f32.mrb[233].mxu0  ;;  %v8958_v28 = vpop.f32.mrb[232].mxu1 }
 0x801   : > { %v15247_v38 = vpop.f32.mrb[233].mxu1 }
 0x802   : > { %9024 = vst.msk [vmem:[%s20741_s26 + $0x50] sm:$0xff] %vm22568_vm15, %v9008_v11  ;;  %v8988_v31 = vadd.f32 %v8958_v28, %v8767_v4 }
 0x803   : > { %v8742_v39 = vpop.f32.mrb[234].mxu0 }
 0x804   : > { %v9009_v51 = vadd.f32 %v19000_v59, %v8988_v31  ;;  %v8768_v35 = vadd.f32 %v8742_v39, %v20729_v40  ;;  %v15197_v30 = vpop.f32.mrb[235].mxu0  ;;  %v8963_v58 = vpop.f32.mrb[234].mxu1 }
 0x805   : > { %v15250_v62 = vpop.f32.mrb[235].mxu1 }
 0x806   : > { %9025 = vst.msk [vmem:[%s20741_s26 + $0x58] sm:$0xff] %vm22343_vm0, %v9009_v51  ;;  %v8989_v12 = vadd.f32 %v8963_v58, %v8768_v35 }
 0x807   : > { %v8747_v29 = vpop.f32.mrb[236].mxu0 }
 0x808   : > { %v9010_v48 = vadd.f32 %v19000_v59, %v8989_v12  ;;  %v8769_v26 = vadd.f32 %v8747_v29, %v20732_v44  ;;  %v15200_v54 = vpop.f32.mrb[237].mxu0  ;;  %v8968_v18 = vpop.f32.mrb[236].mxu1  ;;  %v20806_v44 = vld [vmem:[%s21857_s10] ss:$0 sm:$0xff] (%p5479_p7) }
 0x809   : > { %v15253_v33 = vpop.f32.mrb[237].mxu1 }
 0x80a   : > { %9026 = vst.msk [vmem:[%s20741_s26 + $0x60] sm:$0xff] %vm22569_vm8, %v9010_v48  ;;  %v8990_v63 = vadd.f32 %v8968_v18, %v8769_v26 }
 0x80b   : > { %v8752_v40 = vpop.f32.mrb[238].mxu0 }
 0x80c   : > { %v9011_v7 = vadd.f32 %v19000_v59, %v8990_v63  ;;  %v8770_v10 = vadd.f32 %v8752_v40, %v20735_v16  ;;  %v15203_v61 = vpop.f32.mrb[239].mxu0  ;;  %v8973_v60 = vpop.f32.mrb[238].mxu1  ;;  %5481 = sbr.rel (!%p5479_p7) target bundleno = 1362 (0x552), region = 186 }
 0x80d   : > { %v15256_v25 = vpop.f32.mrb[239].mxu1 }
 0x80e   : > { %9027 = vst.msk [vmem:[%s20741_s26 + $0x68] sm:$0xff] %vm22570_vm14, %v9011_v7  ;;  %v8991_v52 = vadd.f32 %v8973_v60, %v8770_v10 }
 0x810   : > { %v9012_v2 = vadd.f32 %v19000_v59, %v8991_v52 }
 0x812   : > { %9028 = vst.msk [vmem:[%s20741_s26 + $0x70] sm:$0xff] %vm22571_vm3, %v9012_v2 }
 0x813 LB: > { %v9076_v16 = vld [vmem:[%s21856_s9 + $0x20] sm:$0xff]  ;;  %v9077_v59 = vld [vmem:[%s21856_s9 + $0x28] sm:$0xff]  ;;  %v9078_v47 = vld [vmem:[%s21856_s9 + $0x30] sm:$0xff]  ;;  %v16035_v53 = vmov 0.0|0.0   ;;  %vm16036_vm4 = vmmov 0   ;;  %v16037_v22 = vmov 0.0   ;;  %s16023_s29 = sphi %s20808_s29, %s9035_s29  }
 0x814   : > { %15842 = vmatprep.subr.bf16.mxu0 %v16035_v53  ;;  %15896 = vmatprep.subr.bf16.mxu1 %v16035_v53  ;;  %v15843_v23 = vpack.c.bf16 %v9077_v59, %v9076_v16  ;;  %v9079_v49 = vld [vmem:[%s21856_s9 + $0x38] sm:$0xff]  ;;  %s9036_s4 = smul.u32 120, %s16023_s29  ;;  %v9467_v14 = vld [vmem:[%s21856_s9 + $0x40] sm:$0xff]  ;;  %v9468_v15 = vld [vmem:[%s21856_s9 + $0x48] sm:$0xff]  ;;  %vm22572_vm12 = vcmask 261120   ;;  %s9035_s29 = sadd.s32 1, %s16023_s29  }
 0x815   : > { %15265 = vmatprep.mubr.msk.f32.mxu0 %vm16036_vm4, %v16037_v22  ;;  %15289 = vmatprep.mubr.msk.f32.mxu1 %vm16036_vm4, %v16037_v22  ;;  %v15846_v5 = vpack.c.bf16 %v9079_v49, %v9078_v47  ;;  %v9055_v32 = vld [vmem:[%s21856_s9] sm:$0xff]  ;;  %v9056_v21 = vld [vmem:[%s21856_s9 + $0x8] sm:$0xff]  ;;  %v15855_v9 = vpack.c.bf16 %v9468_v15, %v9467_v14  ;;  %v9057_v19 = vld [vmem:[%s21856_s9 + $0x10] sm:$0xff]  ;;  %p9032_p9 = scmp.ge.s32.totalorder %s9035_s29, 10  }
 0x816   : > { %15844 = vmatpush3.bf16.msra.mxu0 %v15843_v23  ;;  %15898 = vmatpush3.bf16.msra.mxu1 %v15843_v23  ;;  %p9037_p8 = scmp.lt.s32.totalorder %s9036_s4, 1080  ;;  %v15849_v41 = vpack.c.bf16 %v9056_v21, %v9055_v32  ;;  %v9058_v45 = vld [vmem:[%s21856_s9 + $0x18] sm:$0xff]  ;;  %v9469_v57 = vld [vmem:[%s21856_s9 + $0x50] sm:$0xff]  ;;  %vm22573_vm13 = vmmov %vm22572_vm12 }
 0x817   : > { %15845 = vmatprep.subr.bf16.mxu0 %v16035_v53  ;;  %15897 = vmatprep.subr.bf16.mxu1 %v16035_v53  ;;  %v9470_v34 = vld [vmem:[%s21856_s9 + $0x58] sm:$0xff]  ;;  %v15852_v8 = vpack.c.bf16 %v9058_v45, %v9057_v19  ;;  %vm22574_vm1 = vmmov %vm22572_vm12  ;;  %v9688_v37 = vld [vmem:[%s21856_s9 + $0x60] sm:$0xff] }
 0x818   : > { %s22708_s4 = smov (!%p9037_p8, %s9036_s4), 1080  ;;  %v15858_v46 = vpack.c.bf16 %v9470_v34, %v9469_v57  ;;  %vm22575_vm7 = vmmov %vm22574_vm1  ;;  %v9689_v11 = vld [vmem:[%s21856_s9 + $0x68] sm:$0xff]  ;;  %v9909_v38 = vld [vmem:[%s21856_s9 + $0x80] sm:$0xff] }
 0x819   : > { %s20860_s8 = scalar_lea.vmem [#allocation5], %s22708_s4  ;;  %vm22576_vm9 = vmmov %vm22574_vm1  ;;  %v15861_v28 = vpack.c.bf16 %v9689_v11, %v9688_v37  ;;  %v9910_v31 = vld [vmem:[%s21856_s9 + $0x88] sm:$0xff]  ;;  %v9690_v39 = vld [vmem:[%s21856_s9 + $0x70] sm:$0xff]  ;;  %s21785_s3 = scalar_lea.vmem %s21858_s11, %s22708_s4 }
 0x81a   : > { %15847 = vmatpush3.bf16.msra.mxu0 %v15846_v5  ;;  %15899 = vmatpush3.bf16.msra.mxu1 %v15846_v5  ;;  %v12406_v20 = vld [vmem:[%s20860_s8 + $0x1] sm:$0xff]  ;;  %v12407_v27 = vld [vmem:[%s20860_s8 + $0x9] sm:$0xff]  ;;  %v12408_v13 = vld [vmem:[%s20860_s8 + $0x11] sm:$0xff]  ;;  %v15867_v58 = vpack.c.bf16 %v9910_v31, %v9909_v38 }
 0x81b   : > { %15854 = vmatprep.subr.bf16.mxu0 %v16035_v53  ;;  %15848 = vmatprep.subr.bf16.mxu1 %v16035_v53  ;;  %v20864_v24 = vld [vmem:[%s20860_s8 + $0x41] sm:$0xff]  ;;  %v20876_v42 = vld [vmem:[%s20860_s8 + $0x49] sm:$0xff]  ;;  %v20891_v0 = vld [vmem:[%s20860_s8 + $0x51] sm:$0xff] }
 0x81c   : > { %vm22577_vm2 = vmmov %vm22574_vm1  ;;  %v12409_v3 = vld [vmem:[%s20860_s8 + $0x19] sm:$0xff]  ;;  %v12410_v50 = vld [vmem:[%s20860_s8 + $0x21] sm:$0xff] }
 0x81d   : > { %15266 = vmatmul.mubr.msk.f32.vlgmr.msra.gmra.mrb[0].mxu0 %vm22572_vm12, %v12406_v20  ;;  %15290 = vmatmul.mubr.msk.f32.vlgmr.msra.gmra.mrb[0].mxu1 %vm22573_vm13, %v20864_v24  ;;  %v20904_v43 = vld [vmem:[%s20860_s8 + $0x59] sm:$0xff]  ;;  %vm22578_vm11 = vmmov %vm22574_vm1  ;;  %v20915_v55 = vld [vmem:[%s20860_s8 + $0x61] sm:$0xff] }
 0x81e   : > { %15856 = vmatpush3.bf16.msra.mxu0 %v15855_v9  ;;  %15268 = vmatprep.mubr.msk.f32.mxu0 %vm16036_vm4, %v16037_v22  ;;  %vm22579_vm5 = vmmov %vm22574_vm1  ;;  %v20925_v1 = vld [vmem:[%s20860_s8 + $0x29] sm:$0xff]  ;;  %v20939_v36 = vld [vmem:[%s20860_s8 + $0x31] sm:$0xff] }
 0x81f   : > { %15292 = vmatprep.mubr.msk.f32.mxu1 %vm16036_vm4, %v16037_v22  ;;  %15850 = vmatpush3.bf16.msra.mxu1 %v15849_v41  ;;  %vm22580_vm10 = vmmov %vm22574_vm1  ;;  %v20928_v17 = vld [vmem:[%s20860_s8 + $0x69] sm:$0xff]  ;;  %v20942_v56 = vld [vmem:[%s20860_s8 + $0x71] sm:$0xff] }
 0x820   : > { %15851 = vmatprep.subr.bf16.mxu1 %v16035_v53  ;;  %15857 = vmatprep.subr.bf16.mxu0 %v16035_v53  ;;  %vm22581_vm6 = vmmov %vm22574_vm1  ;;  %v20959_v4 = vld [vmem:[%s20860_s8 + $0x39] sm:$0xff]  ;;  %v9041_v35 = vld [vmem:[%s20860_s8 + $0x8] sm:$0xff] }
 0x821   : > { %15269 = vmatmul.mubr.msk.f32.gmra.mrb[2].mxu0 %vm22574_vm1, %v12407_v27  ;;  %15293 = vmatmul.mubr.msk.f32.gmra.mrb[2].mxu1 %vm22575_vm7, %v20876_v42  ;;  %vm22582_vm15 = vmmov %vm22574_vm1  ;;  %v9040_v6 = vld [vmem:[%s20860_s8] sm:$0xff]  ;;  %v9691_v51 = vld [vmem:[%s21856_s9 + $0x78] sm:$0xff] }
 0x822   : > { %15271 = vmatprep.mubr.msk.f32.mxu0 %vm16036_vm4, %v16037_v22  ;;  %15295 = vmatprep.mubr.msk.f32.mxu1 %vm16036_vm4, %v16037_v22  ;;  %vm22583_vm0 = vmmov %vm22574_vm1  ;;  %v12451_v30 = vld [vmem:[%s20860_s8 + $0x2] sm:$0xff]  ;;  %v15864_v62 = vpack.c.bf16 %v9691_v51, %v9690_v39  ;;  %v9911_v12 = vld [vmem:[%s21856_s9 + $0x90] sm:$0xff] }
 0x823   : > { %15853 = vmatpush3.bf16.msra.mxu1 %v15852_v8  ;;  %15859 = vmatpush3.bf16.msra.mxu0 %v15858_v46  ;;  %vm22584_vm8 = vmmov %vm22583_vm0  ;;  %v9912_v29 = vld [vmem:[%s21856_s9 + $0x98] sm:$0xff]  ;;  %v9042_v48 = vld [vmem:[%s20860_s8 + $0x10] sm:$0xff] }
 0x824   : > { %15860 = vmatprep.subr.bf16.mxu1 %v16035_v53  ;;  %15866 = vmatprep.subr.bf16.mxu0 %v16035_v53  ;;  %vm22585_vm14 = vmmov %vm22583_vm0  ;;  %v12452_v26 = vld [vmem:[%s20860_s8 + $0xa] sm:$0xff]  ;;  %v15870_v54 = vpack.c.bf16 %v9912_v29, %v9911_v12  ;;  %v9043_v18 = vld [vmem:[%s20860_s8 + $0x18] sm:$0xff] }
 0x825   : > { %15272 = vmatmul.mubr.msk.f32.gmra.mrb[4].mxu0 %vm22576_vm9, %v12408_v13  ;;  %15296 = vmatmul.mubr.msk.f32.gmra.mrb[4].mxu1 %vm22577_vm2, %v20891_v0  ;;  %vm22586_vm3 = vmmov %vm22583_vm0  ;;  %v12453_v33 = vld [vmem:[%s20860_s8 + $0x12] sm:$0xff]  ;;  %v9044_v63 = vld [vmem:[%s20860_s8 + $0x20] sm:$0xff] }
 0x826   : > { %15274 = vmatprep.mubr.msk.f32.mxu0 %vm16036_vm4, %v16037_v22  ;;  %15298 = vmatprep.mubr.msk.f32.mxu1 %vm16036_vm4, %v16037_v22  ;;  %vm22587_vm12 = vmmov %vm22583_vm0  ;;  %v12454_v40 = vld [vmem:[%s20860_s8 + $0x1a] sm:$0xff]  ;;  %v21024_v7 = vld [vmem:[%s20860_s8 + $0x28] sm:$0xff] }
 0x827   : > { %vm22588_vm13 = vmmov %vm22583_vm0  ;;  %v12455_v10 = vld [vmem:[%s20860_s8 + $0x22] sm:$0xff]  ;;  %v21035_v61 = vld [vmem:[%s20860_s8 + $0x30] sm:$0xff] }
 0x828   : > { %vm22589_vm1 = vmmov %vm22583_vm0  ;;  %v21038_v60 = vld [vmem:[%s20860_s8 + $0x2a] sm:$0xff]  ;;  %v21049_v25 = vld [vmem:[%s20860_s8 + $0x38] sm:$0xff] }
 0x829   : > { %15275 = vmatmul.mubr.msk.f32.gmra.mrb[6].mxu0 %vm22578_vm11, %v12409_v3  ;;  %15299 = vmatmul.mubr.msk.f32.gmra.mrb[6].mxu1 %vm22579_vm5, %v20904_v43  ;;  %vm22590_vm7 = vmmov %vm22583_vm0  ;;  %v21052_v52 = vld [vmem:[%s20860_s8 + $0x32] sm:$0xff]  ;;  %v21063_v2 = vld [vmem:[%s20860_s8 + $0x40] sm:$0xff] }
 0x82a   : > { %15277 = vmatprep.mubr.msk.f32.mxu0 %vm16036_vm4, %v16037_v22  ;;  %15301 = vmatprep.mubr.msk.f32.mxu1 %vm16036_vm4, %v16037_v22  ;;  %vm22591_vm9 = vmmov %vm22583_vm0  ;;  %v21066_v16 = vld [vmem:[%s20860_s8 + $0x3a] sm:$0xff]  ;;  %v21077_v59 = vld [vmem:[%s20860_s8 + $0x48] sm:$0xff] }
 0x82b   : > { %vm22592_vm2 = vmmov %vm22583_vm0  ;;  %v21080_v47 = vld [vmem:[%s20860_s8 + $0x42] sm:$0xff]  ;;  %v21091_v23 = vld [vmem:[%s20860_s8 + $0x50] sm:$0xff] }
 0x82c   : > { %vm22593_vm11 = vmmov %vm22583_vm0  ;;  %v21094_v49 = vld [vmem:[%s20860_s8 + $0x4a] sm:$0xff]  ;;  %v21105_v5 = vld [vmem:[%s20860_s8 + $0x58] sm:$0xff] }
 0x82d   : > { %15278 = vmatmul.mubr.msk.f32.gmra.mrb[8].mxu0 %vm22580_vm10, %v12410_v50  ;;  %15302 = vmatmul.mubr.msk.f32.gmra.mrb[8].mxu1 %vm22581_vm6, %v20915_v55  ;;  %vm22594_vm5 = vmmov %vm22583_vm0  ;;  %v21108_v14 = vld [vmem:[%s20860_s8 + $0x52] sm:$0xff]  ;;  %v21119_v15 = vld [vmem:[%s20860_s8 + $0x60] sm:$0xff] }
 0x82e   : > { %15280 = vmatprep.mubr.msk.f32.mxu0 %vm16036_vm4, %v16037_v22  ;;  %15304 = vmatprep.mubr.msk.f32.mxu1 %vm16036_vm4, %v16037_v22  ;;  %vm22595_vm10 = vmmov %vm22583_vm0  ;;  %v21122_v32 = vld [vmem:[%s20860_s8 + $0x5a] sm:$0xff]  ;;  %v21133_v21 = vld [vmem:[%s20860_s8 + $0x68] sm:$0xff] }
 0x82f   : > { %vm22596_vm6 = vmmov %vm22583_vm0  ;;  %v21136_v9 = vld [vmem:[%s20860_s8 + $0x62] sm:$0xff]  ;;  %v21147_v41 = vld [vmem:[%s20860_s8 + $0x70] sm:$0xff] }
 0x830   : > { %v21150_v19 = vld [vmem:[%s20860_s8 + $0x6a] sm:$0xff]  ;;  %v10130_v45 = vld [vmem:[%s21856_s9 + $0xa0] sm:$0xff]  ;;  %v21167_v20 = vld [vmem:[%s20860_s8 + $0x72] sm:$0xff] }
 0x831   : > { %15281 = vmatmul.mubr.msk.f32.gmra.mrb[10].mxu0 %vm22582_vm15, %v20925_v1  ;;  %15305 = vmatmul.mubr.msk.f32.gmra.mrb[10].mxu1 %vm22583_vm0, %v20928_v17  ;;  %vm22597_vm15 = vmmov %vm22583_vm0  ;;  %v10131_v57 = vld [vmem:[%s21856_s9 + $0xa8] sm:$0xff]  ;;  %v10351_v27 = vld [vmem:[%s21856_s9 + $0xc0] sm:$0xff] }
 0x832   : > { %15283 = vmatprep.mubr.msk.f32.mxu0 %vm16036_vm4, %v16037_v22  ;;  %15307 = vmatprep.mubr.msk.f32.mxu1 %vm16036_vm4, %v16037_v22  ;;  %v15873_v34 = vpack.c.bf16 %v10131_v57, %v10130_v45  ;;  %v10352_v8 = vld [vmem:[%s21856_s9 + $0xc8] sm:$0xff]  ;;  %v10132_v46 = vld [vmem:[%s21856_s9 + $0xb0] sm:$0xff]  ;;  %v10133_v13 = vld [vmem:[%s21856_s9 + $0xb8] sm:$0xff] }
 0x833   : > { %v15879_v3 = vpack.c.bf16 %v10352_v8, %v10351_v27  ;;  %v15876_v50 = vpack.c.bf16 %v10133_v13, %v10132_v46  ;;  %v10353_v37 = vld [vmem:[%s21856_s9 + $0xd0] sm:$0xff]  ;;  %v10354_v11 = vld [vmem:[%s21856_s9 + $0xd8] sm:$0xff]  ;;  %v10572_v51 = vld [vmem:[%s21856_s9 + $0xe0] sm:$0xff] }
 0x834   : > { %v21314_v38 = vld [vmem:[%s20860_s8 + $0x89] sm:$0xff]  ;;  %v21325_v31 = vld [vmem:[%s20860_s8 + $0x98] sm:$0xff] }
 0x835   : > { %15284 = vmatmul.mubr.msk.f32.gmra.mrb[12].mxu0 %vm22584_vm8, %v20939_v36  ;;  %15308 = vmatmul.mubr.msk.f32.gmra.mrb[12].mxu1 %vm22585_vm14, %v20942_v56  ;;  %vm22598_vm8 = vmmov %vm22583_vm0  ;;  %v21328_v39 = vld [vmem:[%s20860_s8 + $0x91] sm:$0xff]  ;;  %v10794_v12 = vld [vmem:[%s21856_s9 + $0x108] sm:$0xff] }
 0x836   : > { %15286 = vmatprep.mubr.msk.f32.mxu0 %vm16036_vm4, %v16037_v22  ;;  %15318 = vmatprep.mubr.msk.f32.mxu1 %vm16036_vm4, %v16037_v22  ;;  %vm22599_vm14 = vmmov %vm22583_vm0  ;;  %v10574_v29 = vld [vmem:[%s21856_s9 + $0xf0] sm:$0xff] }
 0x839   : > { %15287 = vmatmul.mubr.msk.f32.gmra.mrb[14].mxu0 %vm22586_vm3, %v20959_v4  ;;  %15319 = vmatmul.mubr.msk.f32.vlgmr.msra.gmra.mrb[14].mxu1 %vm22587_vm12, %v9040_v6  ;;  %vm22600_vm3 = vmmov %vm22583_vm0  ;;  %v15882_v6 = vpack.c.bf16 %v10354_v11, %v10353_v37 }
 0x83a   : > { %15321 = vmatprep.mubr.msk.f32.mxu1 %vm16036_vm4, %v16037_v22  ;;  %15371 = vmatprep.mubr.msk.f32.mxu0 %vm16036_vm4, %v16037_v22  ;;  %vm22601_vm12 = vmmov %vm22583_vm0 }
 0x83b   : > { %15862 = vmatpush3.bf16.msra.mxu1 %v15861_v28  ;;  %v21311_v28 = vld [vmem:[%s20860_s8 + $0x90] sm:$0xff] }
 0x83c   : > { %15863 = vmatprep.subr.bf16.mxu1 %v16035_v53 }
 0x83d   : > { %15322 = vmatmul.mubr.msk.f32.gmra.mrb[16].mxu1 %vm22588_vm13, %v9041_v35  ;;  %15372 = vmatmul.mubr.msk.f32.vlgmr.msra.gmra.mrb[16].mxu0 %vm22589_vm1, %v12451_v30  ;;  %vm22602_vm13 = vmmov %vm22583_vm0  ;;  %v10573_v35 = vld [vmem:[%s21856_s9 + $0xe8] sm:$0xff]  ;;  %v21345_v30 = vld [vmem:[%s20860_s8 + $0x99] sm:$0xff] }
 0x83e   : > { %15868 = vmatpush3.bf16.msra.mxu0 %v15867_v58  ;;  %15324 = vmatprep.mubr.msk.f32.mxu1 %vm16036_vm4, %v16037_v22  ;;  %vm22603_vm1 = vmmov %vm22583_vm0  ;;  %v15885_v58 = vpack.c.bf16 %v10573_v35, %v10572_v51  ;;  %v12611_v51 = vld [vmem:[%s20860_s8 + $0xa1] sm:$0xff] }
 0x83f   : > { %15374 = vmatprep.mubr.msk.f32.mxu0 %vm16036_vm4, %v16037_v22  ;;  %15865 = vmatpush3.bf16.msra.mxu1 %v15864_v62  ;;  %v10793_v62 = vld [vmem:[%s21856_s9 + $0x100] sm:$0xff] }
 0x840   : > { %15869 = vmatprep.subr.bf16.mxu0 %v16035_v53  ;;  %15872 = vmatprep.subr.bf16.mxu1 %v16035_v53 }
 0x841   : > { %15325 = vmatmul.mubr.msk.f32.gmra.mrb[18].mxu1 %vm22590_vm7, %v9042_v48  ;;  %15375 = vmatmul.mubr.msk.f32.gmra.mrb[18].mxu0 %vm22591_vm9, %v12452_v26  ;;  %vm22604_vm7 = vmmov %vm22583_vm0  ;;  %v10575_v48 = vld [vmem:[%s21856_s9 + $0xf8] sm:$0xff]  ;;  %v15891_v26 = vpack.c.bf16 %v10794_v12, %v10793_v62 }
 0x842   : > { %15327 = vmatprep.mubr.msk.f32.mxu1 %vm16036_vm4, %v16037_v22  ;;  %15377 = vmatprep.mubr.msk.f32.mxu0 %vm16036_vm4, %v16037_v22  ;;  %vm22605_vm9 = vmmov %vm22583_vm0 }
 0x843   : > { %15871 = vmatpush3.bf16.msra.mxu0 %v15870_v54  ;;  %v15888_v54 = vpack.c.bf16 %v10575_v48, %v10574_v29  ;;  %v12612_v48 = vld [vmem:[%s20860_s8 + $0xa9] sm:$0xff] }
 0x844   : > { %15878 = vmatprep.subr.bf16.mxu0 %v16035_v53 }
 0x845   : > { %15328 = vmatmul.mubr.msk.f32.gmra.mrb[20].mxu1 %vm22592_vm2, %v9043_v18  ;;  %15378 = vmatmul.mubr.msk.f32.gmra.mrb[20].mxu0 %vm22593_vm11, %v12453_v33  ;;  %vm22606_vm2 = vmmov %vm22583_vm0  ;;  %v10795_v18 = vld [vmem:[%s21856_s9 + $0x110] sm:$0xff]  ;;  %v10796_v33 = vld [vmem:[%s21856_s9 + $0x118] sm:$0xff] }
 0x846   : > { %15330 = vmatprep.mubr.msk.f32.mxu1 %vm16036_vm4, %v16037_v22  ;;  %15380 = vmatprep.mubr.msk.f32.mxu0 %vm16036_vm4, %v16037_v22  ;;  %vm22607_vm11 = vmmov %vm22583_vm0 }
 0x849   : > { %15331 = vmatmul.mubr.msk.f32.gmra.mrb[22].mxu1 %vm22594_vm5, %v9044_v63  ;;  %15381 = vmatmul.mubr.msk.f32.gmra.mrb[22].mxu0 %vm22595_vm10, %v12454_v40  ;;  %vm22608_vm5 = vmmov %vm22583_vm0  ;;  %v15894_v63 = vpack.c.bf16 %v10796_v33, %v10795_v18  ;;  %v21459_v40 = vld [vmem:[%s20860_s8 + $0x82] sm:$0xff] }
 0x84a   : > { %15333 = vmatprep.mubr.msk.f32.mxu1 %vm16036_vm4, %v16037_v22  ;;  %15383 = vmatprep.mubr.msk.f32.mxu0 %vm16036_vm4, %v16037_v22  ;;  %vm22609_vm10 = vmmov %vm22583_vm0 }
 0x84d   : > { %15334 = vmatmul.mubr.msk.f32.gmra.mrb[24].mxu1 %vm22596_vm6, %v21024_v7  ;;  %15384 = vmatmul.mubr.msk.f32.gmra.mrb[24].mxu0 %vm22597_vm15, %v12455_v10  ;;  %vm22610_vm6 = vmmov %vm22583_vm0  ;;  %v21470_v10 = vld [vmem:[%s20860_s8 + $0x8a] sm:$0xff] }
 0x84e   : > { %15336 = vmatprep.mubr.msk.f32.mxu1 %vm16036_vm4, %v16037_v22  ;;  %15386 = vmatprep.mubr.msk.f32.mxu0 %vm16036_vm4, %v16037_v22  ;;  %vm22611_vm15 = vmmov %vm22583_vm0 }
 0x851   : > { %15337 = vmatmul.mubr.msk.f32.gmra.mrb[26].mxu1 %vm22583_vm0, %v21035_v61  ;;  %15387 = vmatmul.mubr.msk.f32.gmra.mrb[26].mxu0 %vm22598_vm8, %v21038_v60  ;;  %vm22612_vm8 = vmmov %vm22583_vm0 }
 0x852   : > { %15339 = vmatprep.mubr.msk.f32.mxu1 %vm16036_vm4, %v16037_v22  ;;  %15389 = vmatprep.mubr.msk.f32.mxu0 %vm16036_vm4, %v16037_v22 }
 0x855   : > { %15340 = vmatmul.mubr.msk.f32.gmra.mrb[28].mxu1 %vm22599_vm14, %v21049_v25  ;;  %15390 = vmatmul.mubr.msk.f32.gmra.mrb[28].mxu0 %vm22600_vm3, %v21052_v52  ;;  %vm22613_vm14 = vmmov %vm22583_vm0 }
 0x856   : > { %15342 = vmatprep.mubr.msk.f32.mxu1 %vm16036_vm4, %v16037_v22  ;;  %15392 = vmatprep.mubr.msk.f32.mxu0 %vm16036_vm4, %v16037_v22  ;;  %vm22614_vm3 = vmmov %vm22583_vm0 }
 0x859   : > { %15343 = vmatmul.mubr.msk.f32.gmra.mrb[30].mxu1 %vm22601_vm12, %v21063_v2  ;;  %15393 = vmatmul.mubr.msk.f32.gmra.mrb[30].mxu0 %vm22602_vm13, %v21066_v16  ;;  %vm22615_vm12 = vmmov %vm22583_vm0 }
 0x85a   : > { %15345 = vmatprep.mubr.msk.f32.mxu1 %vm16036_vm4, %v16037_v22  ;;  %15395 = vmatprep.mubr.msk.f32.mxu0 %vm16036_vm4, %v16037_v22  ;;  %vm22616_vm13 = vmmov %vm22583_vm0 }
 0x85d   : > { %15346 = vmatmul.mubr.msk.f32.gmra.mrb[32].mxu1 %vm22603_vm1, %v21077_v59  ;;  %15396 = vmatmul.mubr.msk.f32.gmra.mrb[32].mxu0 %vm22604_vm7, %v21080_v47  ;;  %vm22617_vm1 = vmmov %vm22583_vm0 }
 0x85e   : > { %15348 = vmatprep.mubr.msk.f32.mxu1 %vm16036_vm4, %v16037_v22  ;;  %15398 = vmatprep.mubr.msk.f32.mxu0 %vm16036_vm4, %v16037_v22  ;;  %vm22618_vm7 = vmmov %vm22583_vm0 }
 0x861   : > { %15349 = vmatmul.mubr.msk.f32.gmra.mrb[34].mxu1 %vm22605_vm9, %v21091_v23  ;;  %15399 = vmatmul.mubr.msk.f32.gmra.mrb[34].mxu0 %vm22606_vm2, %v21094_v49  ;;  %vm22619_vm9 = vmmov %vm22583_vm0 }
 0x862   : > { %15351 = vmatprep.mubr.msk.f32.mxu1 %vm16036_vm4, %v16037_v22  ;;  %15401 = vmatprep.mubr.msk.f32.mxu0 %vm16036_vm4, %v16037_v22  ;;  %vm22620_vm2 = vmmov %vm22583_vm0 }
 0x865   : > { %15352 = vmatmul.mubr.msk.f32.gmra.mrb[36].mxu1 %vm22607_vm11, %v21105_v5  ;;  %15402 = vmatmul.mubr.msk.f32.gmra.mrb[36].mxu0 %vm22608_vm5, %v21108_v14  ;;  %vm22621_vm11 = vmmov %vm22583_vm0 }
 0x866   : > { %15354 = vmatprep.mubr.msk.f32.mxu1 %vm16036_vm4, %v16037_v22  ;;  %15404 = vmatprep.mubr.msk.f32.mxu0 %vm16036_vm4, %v16037_v22  ;;  %vm22622_vm5 = vmmov %vm22583_vm0 }
 0x869   : > { %15355 = vmatmul.mubr.msk.f32.gmra.mrb[38].mxu1 %vm22609_vm10, %v21119_v15  ;;  %15405 = vmatmul.mubr.msk.f32.gmra.mrb[38].mxu0 %vm22610_vm6, %v21122_v32  ;;  %vm22623_vm10 = vmmov %vm22583_vm0 }
 0x86a   : > { %15357 = vmatprep.mubr.msk.f32.mxu1 %vm16036_vm4, %v16037_v22  ;;  %15407 = vmatprep.mubr.msk.f32.mxu0 %vm16036_vm4, %v16037_v22  ;;  %vm22624_vm6 = vmmov %vm22583_vm0 }
 0x86d   : > { %15358 = vmatmul.mubr.msk.f32.gmra.mrb[40].mxu1 %vm22611_vm15, %v21133_v21  ;;  %15408 = vmatmul.mubr.msk.f32.gmra.mrb[40].mxu0 %vm22583_vm0, %v21136_v9  ;;  %vm22625_vm15 = vmmov %vm22583_vm0 }
 0x86e   : > { %15360 = vmatprep.mubr.msk.f32.mxu1 %vm16036_vm4, %v16037_v22  ;;  %15410 = vmatprep.mubr.msk.f32.mxu0 %vm16036_vm4, %v16037_v22 }
 0x871   : > { %15361 = vmatmul.mubr.msk.f32.gmra.mrb[42].mxu1 %vm22612_vm8, %v21147_v41  ;;  %15411 = vmatmul.mubr.msk.f32.gmra.mrb[42].mxu0 %vm22613_vm14, %v21150_v19  ;;  %vm22626_vm8 = vmmov %vm22583_vm0 }
 0x872   : > { %15413 = vmatprep.mubr.msk.f32.mxu0 %vm16036_vm4, %v16037_v22  ;;  %15424 = vmatprep.mubr.msk.f32.mxu1 %vm16036_vm4, %v16037_v22  ;;  %vm22627_vm14 = vmmov %vm22583_vm0 }
 0x875   : > { %15414 = vmatmul.mubr.msk.f32.gmra.mrb[44].mxu0 %vm22614_vm3, %v21167_v20  ;;  %15425 = vmatmul.mubr.msk.f32.vlgmr.msra.gmra.mrb[44].mxu1 %vm22615_vm12, %v21024_v7  ;;  %vm22628_vm3 = vmmov %vm22583_vm0  ;;  %v12581_v7 = vld [vmem:[%s20860_s8 + $0xa0] sm:$0xff] }
 0x876   : > { %15427 = vmatprep.mubr.msk.f32.mxu1 %vm16036_vm4, %v16037_v22  ;;  %15477 = vmatprep.mubr.msk.f32.mxu0 %vm16036_vm4, %v16037_v22  ;;  %vm22629_vm12 = vmmov %vm22583_vm0 }
 0x877   : > { %15874 = vmatpush3.bf16.msra.mxu1 %v15873_v34 }
 0x878   : > { %15875 = vmatprep.subr.bf16.mxu1 %v16035_v53 }
 0x879   : > { %15428 = vmatmul.mubr.msk.f32.gmra.mrb[46].mxu1 %vm22616_vm13, %v21035_v61  ;;  %15478 = vmatmul.mubr.msk.f32.vlgmr.msra.gmra.mrb[46].mxu0 %vm22617_vm1, %v20925_v1  ;;  %vm22630_vm13 = vmmov %vm22583_vm0  ;;  %v21286_v1 = vld [vmem:[%s20860_s8 + $0x79] sm:$0xff]  ;;  %v12582_v61 = vld [vmem:[%s20860_s8 + $0xa8] sm:$0xff] }
 0x87a   : > { %15880 = vmatpush3.bf16.msra.mxu0 %v15879_v3  ;;  %15430 = vmatprep.mubr.msk.f32.mxu1 %vm16036_vm4, %v16037_v22  ;;  %vm22631_vm1 = vmmov %vm22583_vm0 }
 0x87b   : > { %15480 = vmatprep.mubr.msk.f32.mxu0 %vm16036_vm4, %v16037_v22  ;;  %15877 = vmatpush3.bf16.msra.mxu1 %v15876_v50 }
 0x87c   : > { %15881 = vmatprep.subr.bf16.mxu0 %v16035_v53  ;;  %15884 = vmatprep.subr.bf16.mxu1 %v16035_v53 }
 0x87d   : > { %15431 = vmatmul.mubr.msk.f32.gmra.mrb[48].mxu1 %vm22618_vm7, %v21049_v25  ;;  %15481 = vmatmul.mubr.msk.f32.gmra.mrb[48].mxu0 %vm22619_vm9, %v20939_v36  ;;  %vm22632_vm7 = vmmov %vm22583_vm0  ;;  %v21297_v36 = vld [vmem:[%s20860_s8 + $0x88] sm:$0xff]  ;;  %v12583_v25 = vld [vmem:[%s20860_s8 + $0xb0] sm:$0xff] }
 0x87e   : > { %15433 = vmatprep.mubr.msk.f32.mxu1 %vm16036_vm4, %v16037_v22  ;;  %15483 = vmatprep.mubr.msk.f32.mxu0 %vm16036_vm4, %v16037_v22  ;;  %vm22633_vm9 = vmmov %vm22583_vm0 }
 0x87f   : > { %15883 = vmatpush3.bf16.msra.mxu0 %v15882_v6 }
 0x880   : > { %15890 = vmatprep.subr.bf16.mxu0 %v16035_v53 }
 0x881   : > { %15434 = vmatmul.mubr.msk.f32.gmra.mrb[50].mxu1 %vm22620_vm2, %v21063_v2  ;;  %15484 = vmatmul.mubr.msk.f32.gmra.mrb[50].mxu0 %vm22621_vm11, %v20959_v4  ;;  %vm22634_vm2 = vmmov %vm22583_vm0  ;;  %v21300_v4 = vld [vmem:[%s20860_s8 + $0x81] sm:$0xff]  ;;  %v12584_v2 = vld [vmem:[%s20860_s8 + $0xb8] sm:$0xff] }
 0x882   : > { %15436 = vmatprep.mubr.msk.f32.mxu1 %vm16036_vm4, %v16037_v22  ;;  %15486 = vmatprep.mubr.msk.f32.mxu0 %vm16036_vm4, %v16037_v22  ;;  %vm22635_vm11 = vmmov %vm22583_vm0 }
 0x885   : > { %15437 = vmatmul.mubr.msk.f32.gmra.mrb[52].mxu1 %vm22622_vm5, %v21077_v59  ;;  %15487 = vmatmul.mubr.msk.f32.gmra.mrb[52].mxu0 %vm22623_vm10, %v20864_v24  ;;  %v21272_v24 = vld [vmem:[%s20860_s8 + $0x78] sm:$0xff]  ;;  %vm22636_vm5 = vmmov %vm22583_vm0 }
 0x886   : > { %15439 = vmatprep.mubr.msk.f32.mxu1 %vm16036_vm4, %v16037_v22  ;;  %15489 = vmatprep.mubr.msk.f32.mxu0 %vm16036_vm4, %v16037_v22  ;;  %vm22637_vm10 = vmmov %vm22583_vm0 }
 0x889   : > { %15440 = vmatmul.mubr.msk.f32.gmra.mrb[54].mxu1 %vm22624_vm6, %v21091_v23  ;;  %15490 = vmatmul.mubr.msk.f32.gmra.mrb[54].mxu0 %vm22625_vm15, %v20876_v42  ;;  %v21283_v42 = vld [vmem:[%s20860_s8 + $0x80] sm:$0xff]  ;;  %vm22638_vm6 = vmmov %vm22583_vm0 }
 0x88a   : > { %15442 = vmatprep.mubr.msk.f32.mxu1 %vm16036_vm4, %v16037_v22  ;;  %15492 = vmatprep.mubr.msk.f32.mxu0 %vm16036_vm4, %v16037_v22  ;;  %vm22639_vm15 = vmmov %vm22583_vm0 }
 0x88d   : > { %15443 = vmatmul.mubr.msk.f32.gmra.mrb[56].mxu1 %vm22583_vm0, %v21105_v5  ;;  %15493 = vmatmul.mubr.msk.f32.gmra.mrb[56].mxu0 %vm22626_vm8, %v20891_v0  ;;  %vm22640_vm8 = vmmov %vm22583_vm0 }
 0x88e   : > { %15445 = vmatprep.mubr.msk.f32.mxu1 %vm16036_vm4, %v16037_v22  ;;  %15495 = vmatprep.mubr.msk.f32.mxu0 %vm16036_vm4, %v16037_v22 }
 0x891   : > { %15446 = vmatmul.mubr.msk.f32.gmra.mrb[58].mxu1 %vm22627_vm14, %v21119_v15  ;;  %15496 = vmatmul.mubr.msk.f32.gmra.mrb[58].mxu0 %vm22628_vm3, %v20904_v43  ;;  %vm22641_vm14 = vmmov %vm22583_vm0 }
 0x892   : > { %15448 = vmatprep.mubr.msk.f32.mxu1 %vm16036_vm4, %v16037_v22  ;;  %15498 = vmatprep.mubr.msk.f32.mxu0 %vm16036_vm4, %v16037_v22  ;;  %vm22642_vm3 = vmmov %vm22583_vm0 }
 0x895   : > { %15449 = vmatmul.mubr.msk.f32.gmra.mrb[60].mxu1 %vm22629_vm12, %v21133_v21  ;;  %15499 = vmatmul.mubr.msk.f32.gmra.mrb[60].mxu0 %vm22630_vm13, %v20915_v55  ;;  %vm22643_vm12 = vmmov %vm22583_vm0 }
 0x896   : > { %15451 = vmatprep.mubr.msk.f32.mxu1 %vm16036_vm4, %v16037_v22  ;;  %15501 = vmatprep.mubr.msk.f32.mxu0 %vm16036_vm4, %v16037_v22  ;;  %vm22644_vm13 = vmmov %vm22583_vm0 }
 0x899   : > { %15452 = vmatmul.mubr.msk.f32.gmra.mrb[62].mxu1 %vm22631_vm1, %v21147_v41  ;;  %15502 = vmatmul.mubr.msk.f32.gmra.mrb[62].mxu0 %vm22632_vm7, %v20928_v17  ;;  %vm22645_vm1 = vmmov %vm22583_vm0 }
 0x89a   : > { %15454 = vmatprep.mubr.msk.f32.mxu1 %vm16036_vm4, %v16037_v22  ;;  %15504 = vmatprep.mubr.msk.f32.mxu0 %vm16036_vm4, %v16037_v22  ;;  %vm22646_vm7 = vmmov %vm22583_vm0 }
 0x89d   : > { %15455 = vmatmul.mubr.msk.f32.gmra.mrb[64].mxu1 %vm22633_vm9, %v21272_v24  ;;  %15505 = vmatmul.mubr.msk.f32.gmra.mrb[64].mxu0 %vm22634_vm2, %v20942_v56  ;;  %vm22647_vm9 = vmmov %vm22583_vm0 }
 0x89e   : > { %15457 = vmatprep.mubr.msk.f32.mxu1 %vm16036_vm4, %v16037_v22  ;;  %15507 = vmatprep.mubr.msk.f32.mxu0 %vm16036_vm4, %v16037_v22  ;;  %vm22648_vm2 = vmmov %vm22583_vm0 }
 0x8a1   : > { %15458 = vmatmul.mubr.msk.f32.gmra.mrb[66].mxu1 %vm22635_vm11, %v21283_v42  ;;  %15508 = vmatmul.mubr.msk.f32.gmra.mrb[66].mxu0 %vm22636_vm5, %v21286_v1  ;;  %vm22649_vm11 = vmmov %vm22583_vm0 }
 0x8a2   : > { %15460 = vmatprep.mubr.msk.f32.mxu1 %vm16036_vm4, %v16037_v22  ;;  %15510 = vmatprep.mubr.msk.f32.mxu0 %vm16036_vm4, %v16037_v22  ;;  %vm22650_vm5 = vmmov %vm22583_vm0 }
 0x8a5   : > { %15461 = vmatmul.mubr.msk.f32.gmra.mrb[68].mxu1 %vm22637_vm10, %v21297_v36  ;;  %15511 = vmatmul.mubr.msk.f32.gmra.mrb[68].mxu0 %vm22638_vm6, %v21300_v4  ;;  %vm22651_vm10 = vmmov %vm22583_vm0 }
 0x8a6   : > { %15463 = vmatprep.mubr.msk.f32.mxu1 %vm16036_vm4, %v16037_v22  ;;  %15513 = vmatprep.mubr.msk.f32.mxu0 %vm16036_vm4, %v16037_v22  ;;  %vm22652_vm6 = vmmov %vm22583_vm0 }
 0x8a9   : > { %15464 = vmatmul.mubr.msk.f32.gmra.mrb[70].mxu1 %vm22639_vm15, %v21311_v28  ;;  %15514 = vmatmul.mubr.msk.f32.gmra.mrb[70].mxu0 %vm22583_vm0, %v21314_v38  ;;  %vm22653_vm15 = vmmov %vm22583_vm0 }
 0x8aa   : > { %15466 = vmatprep.mubr.msk.f32.mxu1 %vm16036_vm4, %v16037_v22  ;;  %15516 = vmatprep.mubr.msk.f32.mxu0 %vm16036_vm4, %v16037_v22 }
 0x8ad   : > { %15467 = vmatmul.mubr.msk.f32.gmra.mrb[72].mxu1 %vm22640_vm8, %v21325_v31  ;;  %15517 = vmatmul.mubr.msk.f32.gmra.mrb[72].mxu0 %vm22641_vm14, %v21328_v39  ;;  %vm22654_vm8 = vmmov %vm22583_vm0 }
 0x8ae   : > { %15519 = vmatprep.mubr.msk.f32.mxu0 %vm16036_vm4, %v16037_v22  ;;  %15530 = vmatprep.mubr.msk.f32.mxu1 %vm16036_vm4, %v16037_v22  ;;  %vm22655_vm14 = vmmov %vm22583_vm0 }
 0x8b1   : > { %15520 = vmatmul.mubr.msk.f32.gmra.mrb[74].mxu0 %vm22642_vm3, %v21345_v30  ;;  %15531 = vmatmul.mubr.msk.f32.vlgmr.msra.gmra.mrb[74].mxu1 %vm22643_vm12, %v21038_v60  ;;  %vm22656_vm3 = vmmov %vm22583_vm0  ;;  %v21481_v60 = vld [vmem:[%s20860_s8 + $0x92] sm:$0xff] }
 0x8b2   : > { %15533 = vmatprep.mubr.msk.f32.mxu1 %vm16036_vm4, %v16037_v22  ;;  %15583 = vmatprep.mubr.msk.f32.mxu0 %vm16036_vm4, %v16037_v22  ;;  %vm22657_vm12 = vmmov %vm22583_vm0 }
 0x8b3   : > { %15886 = vmatpush3.bf16.msra.mxu1 %v15885_v58 }
 0x8b4   : > { %15887 = vmatprep.subr.bf16.mxu1 %v16035_v53 }
 0x8b5   : > { %15534 = vmatmul.mubr.msk.f32.gmra.mrb[76].mxu1 %vm22644_vm13, %v21052_v52  ;;  %15584 = vmatmul.mubr.msk.f32.vlgmr.msra.gmra.mrb[76].mxu0 %vm22645_vm1, %v21091_v23  ;;  %vm22658_vm13 = vmmov %vm22583_vm0  ;;  %v21492_v52 = vld [vmem:[%s20860_s8 + $0x9a] sm:$0xff] }
 0x8b6   : > { %15892 = vmatpush3.bf16.msra.mxu0 %v15891_v26  ;;  %15536 = vmatprep.mubr.msk.f32.mxu1 %vm16036_vm4, %v16037_v22  ;;  %vm22659_vm1 = vmmov %vm22583_vm0  ;;  %v12641_v26 = vld [vmem:[%s20860_s8 + $0xa2] sm:$0xff] }
 0x8b7   : > { %15586 = vmatprep.mubr.msk.f32.mxu0 %vm16036_vm4, %v16037_v22  ;;  %15889 = vmatpush3.bf16.msra.mxu1 %v15888_v54 }
 0x8b8   : > { %15893 = vmatprep.subr.bf16.mxu0 %v16035_v53  ;;  %v21448_v53 = vld [vmem:[%s20860_s8 + $0x7a] sm:$0xff] }
 0x8b9   : > { %15537 = vmatmul.mubr.msk.f32.gmra.mrb[78].mxu1 %vm22646_vm7, %v21066_v16  ;;  %15587 = vmatmul.mubr.msk.f32.gmra.mrb[78].mxu0 %vm22647_vm9, %v21105_v5  ;;  %vm22660_vm7 = vmmov %vm22583_vm0  ;;  %v12585_v16 = vld [vmem:[%s20860_s8 + $0xc0] sm:$0xff] }
 0x8ba   : > { %15539 = vmatprep.mubr.msk.f32.mxu1 %vm16036_vm4, %v16037_v22  ;;  %15589 = vmatprep.mubr.msk.f32.mxu0 %vm16036_vm4, %v16037_v22  ;;  %vm22661_vm9 = vmmov %vm22583_vm0 }
 0x8bb   : > { %15895 = vmatpush3.bf16.msra.mxu0 %v15894_v63 }
 0x8bd   : > { %15540 = vmatmul.mubr.msk.f32.gmra.mrb[80].mxu1 %vm22648_vm2, %v21080_v47  ;;  %15590 = vmatmul.mubr.msk.f32.gmra.mrb[80].mxu0 %vm22649_vm11, %v21119_v15  ;;  %vm22662_vm2 = vmmov %vm22583_vm0 }
 0x8be   : > { %15542 = vmatprep.mubr.msk.f32.mxu1 %vm16036_vm4, %v16037_v22  ;;  %15592 = vmatprep.mubr.msk.f32.mxu0 %vm16036_vm4, %v16037_v22  ;;  %vm22663_vm11 = vmmov %vm22583_vm0 }
 0x8c1   : > { %15543 = vmatmul.mubr.msk.f32.gmra.mrb[82].mxu1 %vm22650_vm5, %v21094_v49  ;;  %15593 = vmatmul.mubr.msk.f32.gmra.mrb[82].mxu0 %vm22651_vm10, %v21133_v21  ;;  %vm22664_vm5 = vmmov %vm22583_vm0 }
 0x8c2   : > { %15545 = vmatprep.mubr.msk.f32.mxu1 %vm16036_vm4, %v16037_v22  ;;  %15595 = vmatprep.mubr.msk.f32.mxu0 %vm16036_vm4, %v16037_v22  ;;  %vm22665_vm10 = vmmov %vm22583_vm0 }
 0x8c5   : > { %15546 = vmatmul.mubr.msk.f32.gmra.mrb[84].mxu1 %vm22652_vm6, %v21108_v14  ;;  %15596 = vmatmul.mubr.msk.f32.gmra.mrb[84].mxu0 %vm22653_vm15, %v21147_v41  ;;  %vm22666_vm6 = vmmov %vm22583_vm0 }
 0x8c6   : > { %15548 = vmatprep.mubr.msk.f32.mxu1 %vm16036_vm4, %v16037_v22  ;;  %15598 = vmatprep.mubr.msk.f32.mxu0 %vm16036_vm4, %v16037_v22  ;;  %vm22667_vm15 = vmmov %vm22583_vm0 }
 0x8c9   : > { %15549 = vmatmul.mubr.msk.f32.gmra.mrb[86].mxu1 %vm22583_vm0, %v21122_v32  ;;  %15599 = vmatmul.mubr.msk.f32.gmra.mrb[86].mxu0 %vm22654_vm8, %v21272_v24  ;;  %vm22668_vm8 = vmmov %vm22583_vm0 }
 0x8ca   : > { %15551 = vmatprep.mubr.msk.f32.mxu1 %vm16036_vm4, %v16037_v22  ;;  %15601 = vmatprep.mubr.msk.f32.mxu0 %vm16036_vm4, %v16037_v22 }
 0x8cd   : > { %15552 = vmatmul.mubr.msk.f32.gmra.mrb[88].mxu1 %vm22655_vm14, %v21136_v9  ;;  %15602 = vmatmul.mubr.msk.f32.gmra.mrb[88].mxu0 %vm22656_vm3, %v21283_v42  ;;  %vm22669_vm14 = vmmov %vm22583_vm0 }
 0x8ce   : > { %15554 = vmatprep.mubr.msk.f32.mxu1 %vm16036_vm4, %v16037_v22  ;;  %15604 = vmatprep.mubr.msk.f32.mxu0 %vm16036_vm4, %v16037_v22  ;;  %vm22670_vm3 = vmmov %vm22583_vm0 }
 0x8d1   : > { %15555 = vmatmul.mubr.msk.f32.gmra.mrb[90].mxu1 %vm22657_vm12, %v21150_v19  ;;  %15605 = vmatmul.mubr.msk.f32.gmra.mrb[90].mxu0 %vm22658_vm13, %v21297_v36  ;;  %vm22671_vm12 = vmmov %vm22583_vm0 }
 0x8d2   : > { %15557 = vmatprep.mubr.msk.f32.mxu1 %vm16036_vm4, %v16037_v22  ;;  %15607 = vmatprep.mubr.msk.f32.mxu0 %vm16036_vm4, %v16037_v22  ;;  %vm22672_vm13 = vmmov %vm22583_vm0 }
 0x8d5   : > { %15558 = vmatmul.mubr.msk.f32.gmra.mrb[92].mxu1 %vm22659_vm1, %v21167_v20  ;;  %15608 = vmatmul.mubr.msk.f32.gmra.mrb[92].mxu0 %vm22660_vm7, %v21311_v28  ;;  %vm22673_vm1 = vmmov %vm22583_vm0 }
 0x8d6   : > { %15560 = vmatprep.mubr.msk.f32.mxu1 %vm16036_vm4, %v16037_v22  ;;  %15610 = vmatprep.mubr.msk.f32.mxu0 %vm16036_vm4, %v16037_v22  ;;  %vm22674_vm7 = vmmov %vm22583_vm0 }
 0x8d9   : > { %15561 = vmatmul.mubr.msk.f32.gmra.mrb[94].mxu1 %vm22661_vm9, %v21448_v53  ;;  %15611 = vmatmul.mubr.msk.f32.gmra.mrb[94].mxu0 %vm22662_vm2, %v21325_v31  ;;  %vm22675_vm9 = vmmov %vm22583_vm0 }
 0x8da   : > { %15563 = vmatprep.mubr.msk.f32.mxu1 %vm16036_vm4, %v16037_v22  ;;  %15613 = vmatprep.mubr.msk.f32.mxu0 %vm16036_vm4, %v16037_v22  ;;  %vm22676_vm2 = vmmov %vm22583_vm0 }
 0x8dd   : > { %15564 = vmatmul.mubr.msk.f32.gmra.mrb[96].mxu1 %vm22663_vm11, %v21459_v40  ;;  %15614 = vmatmul.mubr.msk.f32.gmra.mrb[96].mxu0 %vm22664_vm5, %v12581_v7  ;;  %vm22677_vm11 = vmmov %vm22583_vm0  ;;  %v12613_v7 = vld [vmem:[%s20860_s8 + $0xb1] sm:$0xff] }
 0x8de   : > { %15566 = vmatprep.mubr.msk.f32.mxu1 %vm16036_vm4, %v16037_v22  ;;  %15616 = vmatprep.mubr.msk.f32.mxu0 %vm16036_vm4, %v16037_v22  ;;  %vm22678_vm5 = vmmov %vm22583_vm0 }
 0x8e1   : > { %15567 = vmatmul.mubr.msk.f32.gmra.mrb[98].mxu1 %vm22665_vm10, %v21470_v10  ;;  %15617 = vmatmul.mubr.msk.f32.gmra.mrb[98].mxu0 %vm22666_vm6, %v12582_v61  ;;  %vm22679_vm10 = vmmov %vm22583_vm0 }
 0x8e2   : > { %15569 = vmatprep.mubr.msk.f32.mxu1 %vm16036_vm4, %v16037_v22  ;;  %15619 = vmatprep.mubr.msk.f32.mxu0 %vm16036_vm4, %v16037_v22  ;;  %vm22680_vm6 = vmmov %vm22583_vm0 }
 0x8e5   : > { %15570 = vmatmul.mubr.msk.f32.gmra.mrb[100].mxu1 %vm22667_vm15, %v21481_v60  ;;  %15620 = vmatmul.mubr.msk.f32.gmra.mrb[100].mxu0 %vm22583_vm0, %v12583_v25  ;;  %vm22681_vm15 = vmmov %vm22583_vm0 }
 0x8e6   : > { %15572 = vmatprep.mubr.msk.f32.mxu1 %vm16036_vm4, %v16037_v22  ;;  %15622 = vmatprep.mubr.msk.f32.mxu0 %vm16036_vm4, %v16037_v22 }
 0x8e9   : > { %15573 = vmatmul.mubr.msk.f32.gmra.mrb[102].mxu1 %vm22668_vm8, %v21492_v52  ;;  %15623 = vmatmul.mubr.msk.f32.gmra.mrb[102].mxu0 %vm22669_vm14, %v12584_v2  ;;  %vm22682_vm8 = vmmov %vm22583_vm0 }
 0x8ea   : > { %15625 = vmatprep.mubr.msk.f32.mxu0 %vm16036_vm4, %v16037_v22  ;;  %15636 = vmatprep.mubr.msk.f32.mxu1 %vm16036_vm4, %v16037_v22  ;;  %vm22683_vm14 = vmmov %vm22583_vm0 }
 0x8ed   : > { %15626 = vmatmul.mubr.msk.f32.gmra.mrb[104].mxu0 %vm22670_vm3, %v12585_v16  ;;  %15637 = vmatmul.mubr.msk.f32.vlgmr.msra.gmra.mrb[104].mxu1 %vm22671_vm12, %v20891_v0  ;;  %vm22684_vm3 = vmmov %vm22583_vm0 }
 0x8ee   : > { %15639 = vmatprep.mubr.msk.f32.mxu1 %vm16036_vm4, %v16037_v22  ;;  %15689 = vmatprep.mubr.msk.f32.mxu0 %vm16036_vm4, %v16037_v22  ;;  %vm22685_vm12 = vmmov %vm22583_vm0 }
 0x8f0   : > { %v9191_v59 = vpop.f32.mrb[0].mxu0  ;;  %v21510_v47 = vpop.f32.mrb[0].mxu1 }
 0x8f1   : > { %v15267_v23 = vpop.f32.mrb[1].mxu0  ;;  %15640 = vmatmul.mubr.msk.f32.gmra.mrb[106].mxu1 %vm22672_vm13, %v20904_v43  ;;  %15690 = vmatmul.mubr.msk.f32.vlgmr.msra.gmra.mrb[106].mxu0 %vm22673_vm1, %v21108_v14  ;;  %v15291_v49 = vpop.f32.mrb[1].mxu1  ;;  %vm22686_vm13 = vmmov %vm22583_vm0 }
 0x8f2   : > { %15642 = vmatprep.mubr.msk.f32.mxu1 %vm16036_vm4, %v16037_v22  ;;  %15692 = vmatprep.mubr.msk.f32.mxu0 %vm16036_vm4, %v16037_v22  ;;  %vm22687_vm1 = vmmov %vm22583_vm0  ;;  %v12643_v23 = vld [vmem:[%s20860_s8 + $0xb2] sm:$0xff] }
 0x8f4   : > { %v9196_v0 = vpop.f32.mrb[2].mxu0  ;;  %v21520_v5 = vpop.f32.mrb[2].mxu1 }
 0x8f5   : > { %v15270_v15 = vpop.f32.mrb[3].mxu0  ;;  %15643 = vmatmul.mubr.msk.f32.gmra.mrb[108].mxu1 %vm22674_vm7, %v20915_v55  ;;  %15693 = vmatmul.mubr.msk.f32.gmra.mrb[108].mxu0 %vm22675_vm9, %v21122_v32  ;;  %v15294_v43 = vpop.f32.mrb[3].mxu1  ;;  %vm22688_vm7 = vmmov %vm22583_vm0 }
 0x8f6   : > { %15645 = vmatprep.mubr.msk.f32.mxu1 %vm16036_vm4, %v16037_v22  ;;  %15695 = vmatprep.mubr.msk.f32.mxu0 %vm16036_vm4, %v16037_v22  ;;  %vm22689_vm9 = vmmov %vm22583_vm0 }
 0x8f8   : > { %v9201_v14 = vpop.f32.mrb[4].mxu0  ;;  %v21530_v21 = vpop.f32.mrb[4].mxu1 }
 0x8f9   : > { %v15273_v41 = vpop.f32.mrb[5].mxu0  ;;  %15646 = vmatmul.mubr.msk.f32.gmra.mrb[110].mxu1 %vm22676_vm2, %v20928_v17  ;;  %15696 = vmatmul.mubr.msk.f32.gmra.mrb[110].mxu0 %vm22677_vm11, %v21136_v9  ;;  %v15297_v55 = vpop.f32.mrb[5].mxu1  ;;  %vm22690_vm2 = vmmov %vm22583_vm0 }
 0x8fa   : > { %15648 = vmatprep.mubr.msk.f32.mxu1 %vm16036_vm4, %v16037_v22  ;;  %15698 = vmatprep.mubr.msk.f32.mxu0 %vm16036_vm4, %v16037_v22  ;;  %vm22691_vm11 = vmmov %vm22583_vm0  ;;  %v12615_v55 = vld [vmem:[%s20860_s8 + $0xc1] sm:$0xff] }
 0x8fc   : > { %v21540_v32 = vpop.f32.mrb[6].mxu0  ;;  %v21542_v45 = vpop.f32.mrb[6].mxu1 }
 0x8fd   : > { %v15276_v57 = vpop.f32.mrb[7].mxu0  ;;  %15649 = vmatmul.mubr.msk.f32.gmra.mrb[112].mxu1 %vm22678_vm5, %v20942_v56  ;;  %15699 = vmatmul.mubr.msk.f32.gmra.mrb[112].mxu0 %vm22679_vm10, %v21150_v19  ;;  %v15300_v17 = vpop.f32.mrb[7].mxu1  ;;  %vm22692_vm5 = vmmov %vm22583_vm0 }
 0x8fe   : > { %15651 = vmatprep.mubr.msk.f32.mxu1 %vm16036_vm4, %v16037_v22  ;;  %15701 = vmatprep.mubr.msk.f32.mxu0 %vm16036_vm4, %v16037_v22  ;;  %vm22693_vm10 = vmmov %vm22583_vm0 }
 0x900   : > { %v21552_v9 = vpop.f32.mrb[8].mxu0  ;;  %v21554_v34 = vpop.f32.mrb[8].mxu1 }
 0x901   : > { %v15279_v27 = vpop.f32.mrb[9].mxu0  ;;  %15652 = vmatmul.mubr.msk.f32.gmra.mrb[114].mxu1 %vm22680_vm6, %v21286_v1  ;;  %15702 = vmatmul.mubr.msk.f32.gmra.mrb[114].mxu0 %vm22681_vm15, %v21167_v20  ;;  %v15303_v56 = vpop.f32.mrb[9].mxu1  ;;  %vm22694_vm6 = vmmov %vm22583_vm0 }
 0x902   : > { %15654 = vmatprep.mubr.msk.f32.mxu1 %vm16036_vm4, %v16037_v22  ;;  %15704 = vmatprep.mubr.msk.f32.mxu0 %vm16036_vm4, %v16037_v22  ;;  %vm22695_vm15 = vmmov %vm22583_vm0 }
 0x904   : > { %v21564_v19 = vpop.f32.mrb[10].mxu0  ;;  %v21566_v8 = vpop.f32.mrb[10].mxu1 }
 0x905   : > { %v15282_v46 = vpop.f32.mrb[11].mxu0  ;;  %15655 = vmatmul.mubr.msk.f32.gmra.mrb[116].mxu1 %vm22583_vm0, %v21300_v4  ;;  %15705 = vmatmul.mubr.msk.f32.gmra.mrb[116].mxu0 %vm22682_vm8, %v21448_v53  ;;  %v15306_v13 = vpop.f32.mrb[11].mxu1  ;;  %vm22696_vm8 = vmmov %vm22583_vm0 }
 0x906   : > { %15657 = vmatprep.mubr.msk.f32.mxu1 %vm16036_vm4, %v16037_v22  ;;  %15707 = vmatprep.mubr.msk.f32.mxu0 %vm16036_vm4, %v16037_v22  ;;  %v12645_v46 = vld [vmem:[%s20860_s8 + $0xc2] sm:$0xff] }
 0x908   : > { %v21576_v20 = vpop.f32.mrb[12].mxu0  ;;  %v21578_v3 = vpop.f32.mrb[12].mxu1 }
 0x909   : > { %v15285_v50 = vpop.f32.mrb[13].mxu0  ;;  %15658 = vmatmul.mubr.msk.f32.gmra.mrb[118].mxu1 %vm22683_vm14, %v21314_v38  ;;  %15708 = vmatmul.mubr.msk.f32.gmra.mrb[118].mxu0 %vm22684_vm3, %v21459_v40  ;;  %v15309_v37 = vpop.f32.mrb[13].mxu1  ;;  %vm22697_vm14 = vmmov %vm22583_vm0 }
 0x90a   : > { %15660 = vmatprep.mubr.msk.f32.mxu1 %vm16036_vm4, %v16037_v22  ;;  %15710 = vmatprep.mubr.msk.f32.mxu0 %vm16036_vm4, %v16037_v22  ;;  %vm22698_vm3 = vmmov %vm22583_vm0 }
 0x90c   : > { %v21588_v11 = vpop.f32.mrb[14].mxu0  ;;  %v9376_v6 = vpop.f32.mrb[14].mxu1 }
 0x90d   : > { %v9377_v24 = vadd.f32 %v9376_v6, %v9191_v59  ;;  %v15288_v42 = vpop.f32.mrb[15].mxu0  ;;  %15661 = vmatmul.mubr.msk.f32.gmra.mrb[120].mxu1 %vm22685_vm12, %v21328_v39  ;;  %15711 = vmatmul.mubr.msk.f32.gmra.mrb[120].mxu0 %vm22686_vm13, %v21470_v10  ;;  %v15320_v1 = vpop.f32.mrb[15].mxu1  ;;  %v12642_v10 = vld [vmem:[%s20860_s8 + $0xaa] sm:$0xff]  ;;  %v12614_v59 = vld [vmem:[%s20860_s8 + $0xb9] sm:$0xff] }
 0x90e   : > { %15663 = vmatprep.mubr.msk.f32.mxu1 %vm16036_vm4, %v16037_v22  ;;  %15713 = vmatprep.mubr.msk.f32.mxu0 %vm16036_vm4, %v16037_v22 }
 0x910   : > { %v9381_v36 = vpop.f32.mrb[16].mxu1  ;;  %v9582_v4 = vpop.f32.mrb[16].mxu0 }
 0x911   : > { %v9382_v28 = vadd.f32 %v9381_v36, %v9196_v0  ;;  %v21598_v38 = vadd.f32 %v9582_v4, %v9377_v24  ;;  %v15373_v31 = vpop.f32.mrb[17].mxu0  ;;  %15664 = vmatmul.mubr.msk.f32.gmra.mrb[122].mxu1 %vm22687_vm1, %v21345_v30  ;;  %15714 = vmatmul.mubr.msk.f32.gmra.mrb[122].mxu0 %vm22688_vm7, %v21481_v60  ;;  %v15323_v39 = vpop.f32.mrb[17].mxu1 }
 0x912   : > { %15666 = vmatprep.mubr.msk.f32.mxu1 %vm16036_vm4, %v16037_v22  ;;  %15716 = vmatprep.mubr.msk.f32.mxu0 %vm16036_vm4, %v16037_v22 }
 0x914   : > { %v9386_v35 = vpop.f32.mrb[18].mxu1  ;;  %v9587_v58 = vpop.f32.mrb[18].mxu0 }
 0x915   : > { %v9387_v62 = vadd.f32 %v9386_v35, %v9201_v14  ;;  %v21609_v12 = vadd.f32 %v9587_v58, %v9382_v28  ;;  %v15376_v29 = vpop.f32.mrb[19].mxu0  ;;  %15667 = vmatmul.mubr.msk.f32.gmra.mrb[124].mxu1 %vm22689_vm9, %v12611_v51  ;;  %15717 = vmatmul.mubr.msk.f32.gmra.mrb[124].mxu0 %vm22690_vm2, %v21492_v52  ;;  %v15326_v30 = vpop.f32.mrb[19].mxu1 }
 0x916   : > { %15669 = vmatprep.mubr.msk.f32.mxu1 %vm16036_vm4, %v16037_v22  ;;  %15719 = vmatprep.mubr.msk.f32.mxu0 %vm16036_vm4, %v16037_v22 }
 0x918   : > { %v9391_v54 = vpop.f32.mrb[20].mxu1  ;;  %v9592_v18 = vpop.f32.mrb[20].mxu0 }
 0x919   : > { %v9392_v33 = vadd.f32 %v9391_v54, %v21540_v32  ;;  %v21621_v63 = vadd.f32 %v9592_v18, %v9387_v62  ;;  %v15379_v53 = vpop.f32.mrb[21].mxu0  ;;  %15670 = vmatmul.mubr.msk.f32.gmra.mrb[126].mxu1 %vm22691_vm11, %v12612_v48  ;;  %15720 = vmatmul.mubr.msk.f32.gmra.mrb[126].mxu0 %vm22692_vm5, %v12641_v26  ;;  %v15329_v40 = vpop.f32.mrb[21].mxu1  ;;  %v12644_v32 = vld [vmem:[%s20860_s8 + $0xba] sm:$0xff] }
 0x91a   : > { %15672 = vmatprep.mubr.msk.f32.mxu1 %vm16036_vm4, %v16037_v22  ;;  %15722 = vmatprep.mubr.msk.f32.mxu0 %vm16036_vm4, %v16037_v22 }
 0x91c   : > { %v9396_v61 = vpop.f32.mrb[22].mxu1  ;;  %v9597_v60 = vpop.f32.mrb[22].mxu0 }
 0x91d   : > { %v9397_v25 = vadd.f32 %v9396_v61, %v21552_v9  ;;  %v21632_v52 = vadd.f32 %v9597_v60, %v9392_v33  ;;  %v15382_v2 = vpop.f32.mrb[23].mxu0  ;;  %15673 = vmatmul.mubr.msk.f32.gmra.mrb[128].mxu1 %vm22693_vm10, %v12613_v7  ;;  %15723 = vmatmul.mubr.msk.f32.gmra.mrb[128].mxu0 %vm22694_vm6, %v12642_v10  ;;  %v15332_v16 = vpop.f32.mrb[23].mxu1 }
 0x91e   : > { %15675 = vmatprep.mubr.msk.f32.mxu1 %vm16036_vm4, %v16037_v22  ;;  %15725 = vmatprep.mubr.msk.f32.mxu0 %vm16036_vm4, %v16037_v22 }
 0x920   : > { %v9401_v49 = vpop.f32.mrb[24].mxu1  ;;  %v9602_v0 = vpop.f32.mrb[24].mxu0 }
 0x921   : > { %v9402_v15 = vadd.f32 %v9401_v49, %v21564_v19  ;;  %v21643_v43 = vadd.f32 %v9602_v0, %v9397_v25  ;;  %v15385_v14 = vpop.f32.mrb[25].mxu0  ;;  %15676 = vmatmul.mubr.msk.f32.gmra.mrb[130].mxu1 %vm22695_vm15, %v12614_v59  ;;  %15726 = vmatmul.mubr.msk.f32.gmra.mrb[130].mxu0 %vm22583_vm0, %v12643_v23  ;;  %v15335_v41 = vpop.f32.mrb[25].mxu1 }
 0x922   : > { %15678 = vmatprep.mubr.msk.f32.mxu1 %vm16036_vm4, %v16037_v22  ;;  %15728 = vmatprep.mubr.msk.f32.mxu0 %vm16036_vm4, %v16037_v22 }
 0x924   : > { %v9406_v57 = vpop.f32.mrb[26].mxu1  ;;  %v9607_v17 = vpop.f32.mrb[26].mxu0 }
 0x925   : > { %v9407_v9 = vadd.f32 %v9406_v57, %v21576_v20  ;;  %v21654_v27 = vadd.f32 %v9607_v17, %v9402_v15  ;;  %v15388_v56 = vpop.f32.mrb[27].mxu0  ;;  %15679 = vmatmul.mubr.msk.f32.gmra.mrb[132].mxu1 %vm22696_vm8, %v12615_v55  ;;  %15729 = vmatmul.mubr.msk.f32.gmra.mrb[132].mxu0 %vm22697_vm14, %v12644_v32  ;;  %v15338_v19 = vpop.f32.mrb[27].mxu1 }
 0x926   : > { %15731 = vmatprep.mubr.msk.f32.mxu0 %vm16036_vm4, %v16037_v22  ;;  %vm11034_vm4 = vcmask 523264  }
 0x928   : > { %v9411_v13 = vpop.f32.mrb[28].mxu1  ;;  %v9612_v50 = vpop.f32.mrb[28].mxu0 }
 0x929   : > { %v9412_v37 = vadd.f32 %v9411_v13, %v21588_v11  ;;  %v21662_v6 = vadd.f32 %v9612_v50, %v9407_v9  ;;  %v15391_v24 = vpop.f32.mrb[29].mxu0  ;;  %15732 = vmatmul.mubr.msk.f32.gmra.mrb[134].mxu0 %vm22698_vm3, %v12645_v46  ;;  %v15341_v20 = vpop.f32.mrb[29].mxu1 }
 0x92c   : > { %v9416_v42 = vpop.f32.mrb[30].mxu1  ;;  %v9617_v1 = vpop.f32.mrb[30].mxu0 }
 0x92d   : > { %v9417_v36 = vadd.f32 %v9416_v42, %v21510_v47  ;;  %v21666_v4 = vadd.f32 %v9617_v1, %v9412_v37  ;;  %v15394_v28 = vpop.f32.mrb[31].mxu0  ;;  %v15344_v31 = vpop.f32.mrb[31].mxu1 }
 0x930   : > { %v9421_v22 = vpop.f32.mrb[32].mxu1  ;;  %v9622_v39 = vpop.f32.mrb[32].mxu0 }
 0x931   : > { %v9422_v51 = vadd.f32 %v9421_v22, %v21520_v5  ;;  %v21669_v35 = vadd.f32 %v9622_v39, %v9417_v36  ;;  %v15397_v11 = vpop.f32.mrb[33].mxu0  ;;  %v15347_v58 = vpop.f32.mrb[33].mxu1 }
 0x934   : > { %v9426_v62 = vpop.f32.mrb[34].mxu1  ;;  %v9627_v29 = vpop.f32.mrb[34].mxu0 }
 0x935   : > { %v9427_v30 = vadd.f32 %v9426_v62, %v21530_v21  ;;  %v21672_v48 = vadd.f32 %v9627_v29, %v9422_v51  ;;  %v15400_v26 = vpop.f32.mrb[35].mxu0  ;;  %v15350_v47 = vpop.f32.mrb[35].mxu1 }
 0x938   : > { %v9431_v54 = vpop.f32.mrb[36].mxu1  ;;  %v9632_v18 = vpop.f32.mrb[36].mxu0 }
 0x939   : > { %v9432_v33 = vadd.f32 %v9431_v54, %v21542_v45  ;;  %v21675_v53 = vadd.f32 %v9632_v18, %v9427_v30  ;;  %v15403_v40 = vpop.f32.mrb[37].mxu0  ;;  %v15353_v5 = vpop.f32.mrb[37].mxu1 }
 0x93c   : > { %v9436_v7 = vpop.f32.mrb[38].mxu1  ;;  %v9637_v10 = vpop.f32.mrb[38].mxu0 }
 0x93d   : > { %v9437_v61 = vadd.f32 %v9436_v7, %v21554_v34  ;;  %v21678_v60 = vadd.f32 %v9637_v10, %v9432_v33  ;;  %v15406_v25 = vpop.f32.mrb[39].mxu0  ;;  %v15356_v21 = vpop.f32.mrb[39].mxu1 }
 0x940   : > { %v9441_v2 = vpop.f32.mrb[40].mxu1  ;;  %v9642_v16 = vpop.f32.mrb[40].mxu0 }
 0x941   : > { %v9442_v59 = vadd.f32 %v9441_v2, %v21566_v8  ;;  %v21681_v23 = vadd.f32 %v9642_v16, %v9437_v61  ;;  %v15409_v49 = vpop.f32.mrb[41].mxu0  ;;  %v15359_v45 = vpop.f32.mrb[41].mxu1 }
 0x944   : > { %v9446_v0 = vpop.f32.mrb[42].mxu1  ;;  %v9647_v15 = vpop.f32.mrb[42].mxu0 }
 0x945   : > { %v9447_v14 = vadd.f32 %v9446_v0, %v21578_v3  ;;  %v21684_v41 = vadd.f32 %v9647_v15, %v9442_v59  ;;  %v15412_v55 = vpop.f32.mrb[43].mxu0  ;;  %v15362_v34 = vpop.f32.mrb[43].mxu1 }
 0x948   : > { %v9652_v32 = vpop.f32.mrb[44].mxu0  ;;  %v9803_v57 = vpop.f32.mrb[44].mxu1 }
 0x949   : > { %v21686_v17 = vadd.f32 %v9652_v32, %v9447_v14  ;;  %v9877_v9 = vadd.f32 %v9803_v57, %v21598_v38  ;;  %v15415_v56 = vpop.f32.mrb[45].mxu0  ;;  %v15426_v8 = vpop.f32.mrb[45].mxu1 }
 0x94c   : > { %v9808_v19 = vpop.f32.mrb[46].mxu1  ;;  %v10024_v46 = vpop.f32.mrb[46].mxu0 }
 0x94d   : > { %v9878_v13 = vadd.f32 %v9808_v19, %v21609_v12  ;;  %v21690_v50 = vadd.f32 %v10024_v46, %v9877_v9  ;;  %v15479_v37 = vpop.f32.mrb[47].mxu0  ;;  %v15429_v3 = vpop.f32.mrb[47].mxu1 }
 0x950   : > { %v9813_v24 = vpop.f32.mrb[48].mxu1  ;;  %v10029_v20 = vpop.f32.mrb[48].mxu0 }
 0x951   : > { %v9879_v42 = vadd.f32 %v9813_v24, %v21621_v63  ;;  %v21693_v1 = vadd.f32 %v10029_v20, %v9878_v13  ;;  %v15482_v36 = vpop.f32.mrb[49].mxu0  ;;  %v15432_v28 = vpop.f32.mrb[49].mxu1 }
 0x954   : > { %v9818_v31 = vpop.f32.mrb[50].mxu1  ;;  %v10034_v38 = vpop.f32.mrb[50].mxu0 }
 0x955   : > { %v9880_v22 = vadd.f32 %v9818_v31, %v21632_v52  ;;  %v21696_v39 = vadd.f32 %v10034_v38, %v9879_v42  ;;  %v15485_v51 = vpop.f32.mrb[51].mxu0  ;;  %v15435_v12 = vpop.f32.mrb[51].mxu1 }
 0x958   : > { %v9823_v11 = vpop.f32.mrb[52].mxu1  ;;  %v10039_v58 = vpop.f32.mrb[52].mxu0 }
 0x959   : > { %v9881_v62 = vadd.f32 %v9823_v11, %v21643_v43  ;;  %v21699_v29 = vadd.f32 %v10039_v58, %v9880_v22  ;;  %v15488_v30 = vpop.f32.mrb[53].mxu0  ;;  %v15438_v63 = vpop.f32.mrb[53].mxu1 }
 0x95c   : > { %v9828_v26 = vpop.f32.mrb[54].mxu1  ;;  %v10044_v47 = vpop.f32.mrb[54].mxu0 }
 0x95d   : > { %v9882_v54 = vadd.f32 %v9828_v26, %v21654_v27  ;;  %v21702_v18 = vadd.f32 %v10044_v47, %v9881_v62  ;;  %v15491_v33 = vpop.f32.mrb[55].mxu0  ;;  %v15441_v52 = vpop.f32.mrb[55].mxu1 }
 0x960   : > { %v9833_v40 = vpop.f32.mrb[56].mxu1  ;;  %v10049_v5 = vpop.f32.mrb[56].mxu0 }
 0x961   : > { %v9883_v7 = vadd.f32 %v9833_v40, %v21662_v6  ;;  %v21705_v10 = vadd.f32 %v10049_v5, %v9882_v54  ;;  %v15494_v61 = vpop.f32.mrb[57].mxu0  ;;  %v15444_v43 = vpop.f32.mrb[57].mxu1 }
 0x964   : > { %v9838_v25 = vpop.f32.mrb[58].mxu1  ;;  %v10054_v21 = vpop.f32.mrb[58].mxu0 }
 0x965   : > { %v9884_v2 = vadd.f32 %v9838_v25, %v21666_v4  ;;  %v21708_v16 = vadd.f32 %v10054_v21, %v9883_v7  ;;  %v15497_v59 = vpop.f32.mrb[59].mxu0  ;;  %v15447_v27 = vpop.f32.mrb[59].mxu1 }
 0x968   : > { %v9843_v49 = vpop.f32.mrb[60].mxu1  ;;  %v10059_v45 = vpop.f32.mrb[60].mxu0 }
 0x969   : > { %v9885_v0 = vadd.f32 %v9843_v49, %v21669_v35  ;;  %v21711_v15 = vadd.f32 %v10059_v45, %v9884_v2  ;;  %v15500_v14 = vpop.f32.mrb[61].mxu0  ;;  %v15450_v6 = vpop.f32.mrb[61].mxu1 }
 0x96c   : > { %v9848_v55 = vpop.f32.mrb[62].mxu1  ;;  %v10064_v34 = vpop.f32.mrb[62].mxu0 }
 0x96d   : > { %v9886_v32 = vadd.f32 %v9848_v55, %v21672_v48  ;;  %v21714_v57 = vadd.f32 %v10064_v34, %v9885_v0  ;;  %v15503_v9 = vpop.f32.mrb[63].mxu0  ;;  %v15453_v4 = vpop.f32.mrb[63].mxu1 }
 0x970   : > { %v9853_v56 = vpop.f32.mrb[64].mxu1  ;;  %v10069_v8 = vpop.f32.mrb[64].mxu0 }
 0x971   : > { %v9887_v19 = vadd.f32 %v9853_v56, %v21675_v53  ;;  %v21717_v46 = vadd.f32 %v10069_v8, %v9886_v32  ;;  %v15506_v13 = vpop.f32.mrb[65].mxu0  ;;  %v15456_v35 = vpop.f32.mrb[65].mxu1 }
 0x974   : > { %v9858_v37 = vpop.f32.mrb[66].mxu1  ;;  %v10074_v3 = vpop.f32.mrb[66].mxu0 }
 0x975   : > { %v9888_v24 = vadd.f32 %v9858_v37, %v21678_v60  ;;  %v21720_v20 = vadd.f32 %v10074_v3, %v9887_v19  ;;  %v15509_v42 = vpop.f32.mrb[67].mxu0  ;;  %v15459_v48 = vpop.f32.mrb[67].mxu1 }
 0x978   : > { %v9863_v36 = vpop.f32.mrb[68].mxu1  ;;  %v10079_v28 = vpop.f32.mrb[68].mxu0 }
 0x979   : > { %v9889_v31 = vadd.f32 %v9863_v36, %v21681_v23  ;;  %v21723_v38 = vadd.f32 %v10079_v28, %v9888_v24  ;;  %v15512_v22 = vpop.f32.mrb[69].mxu0  ;;  %v15462_v53 = vpop.f32.mrb[69].mxu1 }
 0x97c   : > { %v9868_v51 = vpop.f32.mrb[70].mxu1  ;;  %v10084_v12 = vpop.f32.mrb[70].mxu0 }
 0x97d   : > { %v9890_v11 = vadd.f32 %v9868_v51, %v21684_v41  ;;  %v21726_v58 = vadd.f32 %v10084_v12, %v9889_v31  ;;  %v15515_v62 = vpop.f32.mrb[71].mxu0  ;;  %v15465_v60 = vpop.f32.mrb[71].mxu1 }
 0x980   : > { %v9873_v30 = vpop.f32.mrb[72].mxu1  ;;  %v10089_v63 = vpop.f32.mrb[72].mxu0 }
 0x981   : > { %v9891_v26 = vadd.f32 %v9873_v30, %v21686_v17  ;;  %v21729_v47 = vadd.f32 %v10089_v63, %v9890_v11  ;;  %v15518_v54 = vpop.f32.mrb[73].mxu0  ;;  %v15468_v23 = vpop.f32.mrb[73].mxu1 }
 0x984   : > { %v10094_v33 = vpop.f32.mrb[74].mxu0  ;;  %v10245_v52 = vpop.f32.mrb[74].mxu1 }
 0x985   : > { %v21731_v40 = vadd.f32 %v10094_v33, %v9891_v26  ;;  %v10319_v5 = vadd.f32 %v10245_v52, %v21690_v50  ;;  %v15521_v7 = vpop.f32.mrb[75].mxu0  ;;  %v15532_v41 = vpop.f32.mrb[75].mxu1 }
 0x988   : > { %v10250_v61 = vpop.f32.mrb[76].mxu1  ;;  %v10466_v43 = vpop.f32.mrb[76].mxu0 }
 0x989   : > { %v10320_v25 = vadd.f32 %v10250_v61, %v21693_v1  ;;  %v21735_v21 = vadd.f32 %v10466_v43, %v10319_v5  ;;  %v15585_v2 = vpop.f32.mrb[77].mxu0  ;;  %v15535_v17 = vpop.f32.mrb[77].mxu1 }
 0x98c   : > { %v10255_v59 = vpop.f32.mrb[78].mxu1  ;;  %v10471_v27 = vpop.f32.mrb[78].mxu0 }
 0x98d   : > { %v10321_v49 = vadd.f32 %v10255_v59, %v21696_v39  ;;  %v21738_v45 = vadd.f32 %v10471_v27, %v10320_v25  ;;  %v15588_v0 = vpop.f32.mrb[79].mxu0  ;;  %v15538_v14 = vpop.f32.mrb[79].mxu1 }
 0x990   : > { %v10260_v6 = vpop.f32.mrb[80].mxu1  ;;  %v10476_v50 = vpop.f32.mrb[80].mxu0 }
 0x991   : > { %v10322_v55 = vadd.f32 %v10260_v6, %v21699_v29  ;;  %v21741_v34 = vadd.f32 %v10476_v50, %v10321_v49  ;;  %v15591_v32 = vpop.f32.mrb[81].mxu0  ;;  %v15541_v1 = vpop.f32.mrb[81].mxu1 }
 0x994   : > { %v10265_v9 = vpop.f32.mrb[82].mxu1  ;;  %v10481_v4 = vpop.f32.mrb[82].mxu0 }
 0x995   : > { %v10323_v56 = vadd.f32 %v10265_v9, %v21702_v18  ;;  %v21744_v8 = vadd.f32 %v10481_v4, %v10322_v55  ;;  %v15594_v19 = vpop.f32.mrb[83].mxu0  ;;  %v15544_v39 = vpop.f32.mrb[83].mxu1 }
 0x998   : > { %v10270_v13 = vpop.f32.mrb[84].mxu1  ;;  %v10486_v35 = vpop.f32.mrb[84].mxu0 }
 0x999   : > { %v10324_v37 = vadd.f32 %v10270_v13, %v21705_v10  ;;  %v21747_v3 = vadd.f32 %v10486_v35, %v10323_v56  ;;  %v15597_v24 = vpop.f32.mrb[85].mxu0  ;;  %v15547_v29 = vpop.f32.mrb[85].mxu1 }
 0x99c   : > { %v10275_v42 = vpop.f32.mrb[86].mxu1  ;;  %v10491_v48 = vpop.f32.mrb[86].mxu0 }
 0x99d   : > { %v10325_v36 = vadd.f32 %v10275_v42, %v21708_v16  ;;  %v21750_v28 = vadd.f32 %v10491_v48, %v10324_v37  ;;  %v15600_v31 = vpop.f32.mrb[87].mxu0  ;;  %v15550_v18 = vpop.f32.mrb[87].mxu1 }
 0x9a0   : > { %v10280_v22 = vpop.f32.mrb[88].mxu1  ;;  %v10496_v53 = vpop.f32.mrb[88].mxu0 }
 0x9a1   : > { %v10326_v51 = vadd.f32 %v10280_v22, %v21711_v15  ;;  %v21753_v12 = vadd.f32 %v10496_v53, %v10325_v36  ;;  %v15603_v11 = vpop.f32.mrb[89].mxu0  ;;  %v15553_v10 = vpop.f32.mrb[89].mxu1 }
 0x9a4   : > { %v10285_v62 = vpop.f32.mrb[90].mxu1  ;;  %v10501_v60 = vpop.f32.mrb[90].mxu0 }
 0x9a5   : > { %v10327_v30 = vadd.f32 %v10285_v62, %v21714_v57  ;;  %v21756_v63 = vadd.f32 %v10501_v60, %v10326_v51  ;;  %v15606_v26 = vpop.f32.mrb[91].mxu0  ;;  %v15556_v16 = vpop.f32.mrb[91].mxu1 }
 0x9a8   : > { %v10290_v54 = vpop.f32.mrb[92].mxu1  ;;  %v10506_v23 = vpop.f32.mrb[92].mxu0 }
 0x9a9   : > { %v10328_v33 = vadd.f32 %v10290_v54, %v21717_v46  ;;  %v21759_v52 = vadd.f32 %v10506_v23, %v10327_v30  ;;  %v15609_v5 = vpop.f32.mrb[93].mxu0  ;;  %v15559_v15 = vpop.f32.mrb[93].mxu1 }
 0x9ac   : > { %v10295_v7 = vpop.f32.mrb[94].mxu1  ;;  %v10511_v41 = vpop.f32.mrb[94].mxu0 }
 0x9ad   : > { %v10329_v61 = vadd.f32 %v10295_v7, %v21720_v20  ;;  %v21762_v43 = vadd.f32 %v10511_v41, %v10328_v33  ;;  %v15612_v25 = vpop.f32.mrb[95].mxu0  ;;  %v15562_v57 = vpop.f32.mrb[95].mxu1 }
 0x9b0   : > { %v10300_v2 = vpop.f32.mrb[96].mxu1  ;;  %v10516_v17 = vpop.f32.mrb[96].mxu0 }
 0x9b1   : > { %v10330_v59 = vadd.f32 %v10300_v2, %v21723_v38  ;;  %v21765_v27 = vadd.f32 %v10516_v17, %v10329_v61  ;;  %v15615_v49 = vpop.f32.mrb[97].mxu0  ;;  %v15565_v46 = vpop.f32.mrb[97].mxu1 }
 0x9b4   : > { %v10305_v0 = vpop.f32.mrb[98].mxu1  ;;  %v10521_v14 = vpop.f32.mrb[98].mxu0 }
 0x9b5   : > { %v10331_v6 = vadd.f32 %v10305_v0, %v21726_v58  ;;  %v21768_v50 = vadd.f32 %v10521_v14, %v10330_v59  ;;  %v15618_v55 = vpop.f32.mrb[99].mxu0  ;;  %v15568_v20 = vpop.f32.mrb[99].mxu1 }
 0x9b8   : > { %v10310_v32 = vpop.f32.mrb[100].mxu1  ;;  %v10526_v1 = vpop.f32.mrb[100].mxu0 }
 0x9b9   : > { %v10332_v9 = vadd.f32 %v10310_v32, %v21729_v47  ;;  %v21771_v4 = vadd.f32 %v10526_v1, %v10331_v6  ;;  %v15621_v56 = vpop.f32.mrb[101].mxu0  ;;  %v15571_v38 = vpop.f32.mrb[101].mxu1 }
 0x9bc   : > { %v10315_v19 = vpop.f32.mrb[102].mxu1  ;;  %v10531_v39 = vpop.f32.mrb[102].mxu0 }
 0x9bd   : > { %v10333_v13 = vadd.f32 %v10315_v19, %v21731_v40  ;;  %v21774_v35 = vadd.f32 %v10531_v39, %v10332_v9  ;;  %v15624_v58 = vpop.f32.mrb[103].mxu0  ;;  %v15574_v37 = vpop.f32.mrb[103].mxu1 }
 0x9c0   : > { %v10536_v24 = vpop.f32.mrb[104].mxu0  ;;  %v10687_v29 = vpop.f32.mrb[104].mxu1 }
 0x9c1   : > { %v21776_v42 = vadd.f32 %v10536_v24, %v10333_v13  ;;  %v10761_v48 = vadd.f32 %v10687_v29, %v21735_v21  ;;  %v15627_v47 = vpop.f32.mrb[105].mxu0  ;;  %v15638_v36 = vpop.f32.mrb[105].mxu1 }
 0x9c4   : > { %v10692_v31 = vpop.f32.mrb[106].mxu1  ;;  %v10908_v18 = vpop.f32.mrb[106].mxu0 }
 0x9c5   : > { %v10762_v22 = vadd.f32 %v10692_v31, %v21738_v45  ;;  %v10982_v53 = vadd.f32 %v10908_v18, %v10761_v48  ;;  %v15691_v51 = vpop.f32.mrb[107].mxu0  ;;  %v15641_v40 = vpop.f32.mrb[107].mxu1 }
 0x9c7   : > { %v11003_v11 = vadd.f32 %v20806_v44, %v10982_v53 }
 0x9c8   : > { %v10697_v10 = vpop.f32.mrb[108].mxu1  ;;  %v10913_v21 = vpop.f32.mrb[108].mxu0 }
 0x9c9   : > { %v11018_v62 = vmax.f32 %v11003_v11, 0.0  ;;  %v10763_v60 = vadd.f32 %v10697_v10, %v21741_v34  ;;  %v10983_v30 = vadd.f32 %v10913_v21, %v10762_v22  ;;  %v15694_v45 = vpop.f32.mrb[109].mxu0  ;;  %v15644_v26 = vpop.f32.mrb[109].mxu1 }
 0x9cb   : > { %11035 = vst.msk [vmem:[%s21785_s3] sm:$0xff] %vm11034_vm4, %v11018_v62  ;;  %v11004_v16 = vadd.f32 %v20806_v44, %v10983_v30 }
 0x9cc   : > { %v10702_v54 = vpop.f32.mrb[110].mxu1  ;;  %v10918_v23 = vpop.f32.mrb[110].mxu0 }
 0x9cd   : > { %v11019_v33 = vmax.f32 %v11004_v16, 0.0  ;;  %v10764_v5 = vadd.f32 %v10702_v54, %v21744_v8  ;;  %v10984_v15 = vadd.f32 %v10918_v23, %v10763_v60  ;;  %v15697_v7 = vpop.f32.mrb[111].mxu0  ;;  %v15647_v41 = vpop.f32.mrb[111].mxu1 }
 0x9cf   : > { %11036 = vst.msk [vmem:[%s21785_s3 + $0x8] sm:$0xff] %vm11034_vm4, %v11019_v33  ;;  %v11005_v34 = vadd.f32 %v20806_v44, %v10984_v15 }
 0x9d0   : > { %v10707_v61 = vpop.f32.mrb[112].mxu1  ;;  %v10923_v25 = vpop.f32.mrb[112].mxu0 }
 0x9d1   : > { %v11020_v57 = vmax.f32 %v11005_v34, 0.0  ;;  %v10765_v2 = vadd.f32 %v10707_v61, %v21747_v3  ;;  %v10985_v17 = vadd.f32 %v10923_v25, %v10764_v5  ;;  %v15700_v59 = vpop.f32.mrb[113].mxu0  ;;  %v15650_v49 = vpop.f32.mrb[113].mxu1 }
 0x9d3   : > { %11037 = vst.msk [vmem:[%s21785_s3 + $0x10] sm:$0xff] %vm11034_vm4, %v11020_v57  ;;  %v11006_v8 = vadd.f32 %v20806_v44, %v10985_v17 }
 0x9d4   : > { %v10712_v46 = vpop.f32.mrb[114].mxu1  ;;  %v10928_v0 = vpop.f32.mrb[114].mxu0 }
 0x9d5   : > { %v11021_v14 = vmax.f32 %v11006_v8, 0.0  ;;  %v10766_v6 = vadd.f32 %v10712_v46, %v21750_v28  ;;  %v10986_v55 = vadd.f32 %v10928_v0, %v10765_v2  ;;  %v15703_v20 = vpop.f32.mrb[115].mxu0  ;;  %v15653_v32 = vpop.f32.mrb[115].mxu1 }
 0x9d7   : > { %11038 = vst.msk [vmem:[%s21785_s3 + $0x18] sm:$0xff] %vm11034_vm4, %v11021_v14  ;;  %v11007_v3 = vadd.f32 %v20806_v44, %v10986_v55 }
 0x9d8   : > { %v10717_v1 = vpop.f32.mrb[116].mxu1  ;;  %v10933_v9 = vpop.f32.mrb[116].mxu0 }
 0x9d9   : > { %v11022_v56 = vmax.f32 %v11007_v3, 0.0  ;;  %v10767_v38 = vadd.f32 %v10717_v1, %v21753_v12  ;;  %v10987_v19 = vadd.f32 %v10933_v9, %v10766_v6  ;;  %v15706_v39 = vpop.f32.mrb[117].mxu0  ;;  %v15656_v13 = vpop.f32.mrb[117].mxu1 }
 0x9db   : > { %11039 = vst.msk [vmem:[%s21785_s3 + $0x20] sm:$0xff] %vm11034_vm4, %v11022_v56  ;;  %v11008_v28 = vadd.f32 %v20806_v44, %v10987_v19 }
 0x9dc   : > { %v10722_v58 = vpop.f32.mrb[118].mxu1  ;;  %v10938_v37 = vpop.f32.mrb[118].mxu0 }
 0x9dd   : > { %v11023_v24 = vmax.f32 %v11008_v28, 0.0  ;;  %v10768_v29 = vadd.f32 %v10722_v58, %v21756_v63  ;;  %v10988_v48 = vadd.f32 %v10938_v37, %v10767_v38  ;;  %v15709_v47 = vpop.f32.mrb[119].mxu0  ;;  %v15659_v36 = vpop.f32.mrb[119].mxu1 }
 0x9df   : > { %11040 = vst.msk [vmem:[%s21785_s3 + $0x28] sm:$0xff] %vm11034_vm4, %v11023_v24  ;;  %v11009_v12 = vadd.f32 %v20806_v44, %v10988_v48 }
 0x9e0   : > { %v10727_v31 = vpop.f32.mrb[120].mxu1  ;;  %v10943_v18 = vpop.f32.mrb[120].mxu0 }
 0x9e1   : > { %v11024_v22 = vmax.f32 %v11009_v12, 0.0  ;;  %v10769_v53 = vadd.f32 %v10727_v31, %v21759_v52  ;;  %v10989_v51 = vadd.f32 %v10943_v18, %v10768_v29  ;;  %v15712_v40 = vpop.f32.mrb[121].mxu0  ;;  %v15662_v11 = vpop.f32.mrb[121].mxu1 }
 0x9e3   : > { %11041 = vst.msk [vmem:[%s21785_s3 + $0x30] sm:$0xff] %vm11034_vm4, %v11024_v22  ;;  %v11010_v63 = vadd.f32 %v20806_v44, %v10989_v51 }
 0x9e4   : > { %v10732_v10 = vpop.f32.mrb[122].mxu1  ;;  %v10948_v21 = vpop.f32.mrb[122].mxu0 }
 0x9e5   : > { %v11025_v62 = vmax.f32 %v11010_v63, 0.0  ;;  %v10770_v60 = vadd.f32 %v10732_v10, %v21762_v43  ;;  %v10990_v30 = vadd.f32 %v10948_v21, %v10769_v53  ;;  %v15715_v45 = vpop.f32.mrb[123].mxu0  ;;  %v15665_v26 = vpop.f32.mrb[123].mxu1 }
 0x9e7   : > { %11042 = vst.msk [vmem:[%s21785_s3 + $0x38] sm:$0xff] %vm11034_vm4, %v11025_v62  ;;  %v11011_v52 = vadd.f32 %v20806_v44, %v10990_v30 }
 0x9e8   : > { %v10737_v16 = vpop.f32.mrb[124].mxu1  ;;  %v10953_v54 = vpop.f32.mrb[124].mxu0 }
 0x9e9   : > { %v11026_v23 = vmax.f32 %v11011_v52, 0.0  ;;  %v10771_v33 = vadd.f32 %v10737_v16, %v21765_v27  ;;  %v10991_v5 = vadd.f32 %v10953_v54, %v10770_v60  ;;  %v15718_v15 = vpop.f32.mrb[125].mxu0  ;;  %v15668_v7 = vpop.f32.mrb[125].mxu1 }
 0x9eb   : > { %11043 = vst.msk [vmem:[%s21785_s3 + $0x40] sm:$0xff] %vm11034_vm4, %v11026_v23  ;;  %v11012_v43 = vadd.f32 %v20806_v44, %v10991_v5 }
 0x9ec   : > { %v10742_v41 = vpop.f32.mrb[126].mxu1  ;;  %v10958_v34 = vpop.f32.mrb[126].mxu0 }
 0x9ed   : > { %v11027_v61 = vmax.f32 %v11012_v43, 0.0  ;;  %v10772_v25 = vadd.f32 %v10742_v41, %v21768_v50  ;;  %v10992_v57 = vadd.f32 %v10958_v34, %v10771_v33  ;;  %v15721_v2 = vpop.f32.mrb[127].mxu0  ;;  %v15671_v17 = vpop.f32.mrb[127].mxu1 }
 0x9ef   : > { %11044 = vst.msk [vmem:[%s21785_s3 + $0x48] sm:$0xff] %vm11034_vm4, %v11027_v61  ;;  %v11013_v27 = vadd.f32 %v20806_v44, %v10992_v57 }
 0x9f0   : > { %v10747_v59 = vpop.f32.mrb[128].mxu1  ;;  %v10963_v49 = vpop.f32.mrb[128].mxu0 }
 0x9f1   : > { %v11028_v8 = vmax.f32 %v11013_v27, 0.0  ;;  %v10773_v46 = vadd.f32 %v10747_v59, %v21771_v4  ;;  %v10993_v0 = vadd.f32 %v10963_v49, %v10772_v25  ;;  %v15724_v14 = vpop.f32.mrb[129].mxu0  ;;  %v15674_v6 = vpop.f32.mrb[129].mxu1 }
 0x9f3   : > { %11045 = vst.msk [vmem:[%s21785_s3 + $0x50] sm:$0xff] %vm11034_vm4, %v11028_v8  ;;  %v11014_v50 = vadd.f32 %v20806_v44, %v10993_v0 }
 0x9f4   : > { %v10752_v55 = vpop.f32.mrb[130].mxu1  ;;  %v10968_v20 = vpop.f32.mrb[130].mxu0 }
 0x9f5   : > { %v11029_v32 = vmax.f32 %v11014_v50, 0.0  ;;  %v10774_v3 = vadd.f32 %v10752_v55, %v21774_v35  ;;  %v10994_v1 = vadd.f32 %v10968_v20, %v10773_v46  ;;  %v15727_v9 = vpop.f32.mrb[131].mxu0  ;;  %v15677_v56 = vpop.f32.mrb[131].mxu1 }
 0x9f7   : > { %11046 = vst.msk [vmem:[%s21785_s3 + $0x58] sm:$0xff] %vm11034_vm4, %v11029_v32  ;;  %v11015_v4 = vadd.f32 %v20806_v44, %v10994_v1 }
 0x9f8   : > { %v10757_v38 = vpop.f32.mrb[132].mxu1  ;;  %v10973_v19 = vpop.f32.mrb[132].mxu0 }
 0x9f9   : > { %v11030_v39 = vmax.f32 %v11015_v4, 0.0  ;;  %v10775_v13 = vadd.f32 %v10757_v38, %v21776_v42  ;;  %v10995_v28 = vadd.f32 %v10973_v19, %v10774_v3  ;;  %v15730_v58 = vpop.f32.mrb[133].mxu0  ;;  %v15680_v37 = vpop.f32.mrb[133].mxu1 }
 0x9fb   : > { %11047 = vst.msk [vmem:[%s21785_s3 + $0x60] sm:$0xff] %vm11034_vm4, %v11030_v39  ;;  %v11016_v35 = vadd.f32 %v20806_v44, %v10995_v28 }
 0x9fc   : > { %v10978_v24 = vpop.f32.mrb[134].mxu0 }
 0x9fd   : > { %v11031_v29 = vmax.f32 %v11016_v35, 0.0  ;;  %v10996_v48 = vadd.f32 %v10978_v24, %v10775_v13  ;;  %v15733_v47 = vpop.f32.mrb[135].mxu0  ;;  %9034 = sbr.rel (!%p9032_p9) target bundleno = 2067 (0x813), region = 197 }
 0x9ff   : > { %11048 = vst.msk [vmem:[%s21785_s3 + $0x68] sm:$0xff] %vm11034_vm4, %v11031_v29  ;;  %v11017_v36 = vadd.f32 %v20806_v44, %v10996_v48 }
 0xa01   : > { %v11032_v12 = vmax.f32 %v11017_v36, 0.0 }
 0xa03   : > { %11049 = vst.msk [vmem:[%s21785_s3 + $0x70] sm:$0xff] %vm11034_vm4, %v11032_v12 }

</bundles_post_ra>
